<compile_context>
chip_gen: v5e
topology: v5e:2x2
jax: 0.10.0
libtpu: 0.0.40
codegen_flags: <defaults>
</compile_context>

<pallas_src>
import jax
import jax.numpy as jnp
from jax.experimental import pallas as pl
from jax.experimental.pallas import tpu as pltpu

# ----------------------------------------------------------------------------
# Model dimensions (small config implied by the module: batch=2, channels=4,
# spatial=16, hidden latent=32).
# ----------------------------------------------------------------------------
B = 2           # batch
C0 = 4          # image channels
C1 = 8          # encoder conv1 / decoder deconv1 output channels
C2 = 16         # encoder conv2 output channels
HID = 32        # latent width (mu / log_var)
H0 = 16         # input spatial size
S1 = H0 // 2    # 8 : conv1 output / deconv1 output spatial size
S2 = H0 // 4    # 4 : conv2 output / decoder input spatial size
FLAT = C2 * S2 * S2       # 256
ZDIM = HID * S2 * S2      # 512

# ConvTranspose2d(k=4, s=2, p=1) sub-pixel tap table:
#   output row 2a+r  <- taps (kernel row ki, window start sh in the 1-padded input)
TAPS_DEC = {0: ((1, 1), (3, 0)),
            1: ((2, 1), (0, 2))}


# ----------------------------------------------------------------------------
# Fused forward kernel
# Activation scratch layout: (rows, cols*B, channels)  -> channels on the lane axis,
# batch folded next to the column index so every window read is a static slice.
# ----------------------------------------------------------------------------
def _vae_kernel(x4_ref, w1_ref, b1_ref, w2_ref, b2_ref,
                wml_ref, bml_ref, wz_ref, bz_ref,
                wd1_ref, bd1_ref, wd2_ref, bd2_ref, eps_ref,
                img_ref, ml_ref,
                h00, h01, h10, h11, dil_ref, p2_ref):
    f32, bf16 = jnp.float32, jnp.bfloat16
    h1s = (h00, h01, h10, h11)

    # Zero-init scratch: untouched border rows/cols provide the conv zero-padding.
    for r in h1s:
        r[...] = jnp.zeros(r.shape, r.dtype)
    dil_ref[...] = jnp.zeros(dil_ref.shape, dil_ref.dtype)
    p2_ref[...] = jnp.zeros(p2_ref.shape, p2_ref.dtype)

    # ---------------- encoder conv1: 3x3 stride-2 pad-1 + ReLU -------------------
    # All 4 output-parity phases are row-stacked into one GEMM; results are written
    # straight into the parity-split padded layout conv2 reads with static slices.
    # The input arrives pre-split mod-4 (x4_ref), so every tap is a static slice.
    phase_lhs = []
    for ph in range(2):
        t0 = 1 - ph
        for pw in range(2):
            s0 = 1 - pw
            taps = []
            for ki in range(3):
                ch = 2 * ph - 2 + ki
                mh = ch % 4
                u0 = t0 + (ch - mh) // 4
                for kj in range(3):
                    cw = 2 * pw - 2 + kj
                    mw = cw % 4
                    v0 = s0 + (cw - mw) // 4
                    blk = x4_ref[mh * 4 + mw, u0:u0 + S2, v0 * B:(v0 + S2) * B, :]
                    taps.append(blk.reshape(S2 * S2 * B, C0))
            phase_lhs.append(jnp.concatenate(taps, axis=1))              # (32, 36)
    lhs1 = jnp.concatenate(phase_lhs, axis=0).astype(bf16)               # (128, 36)
    acc1 = jnp.dot(lhs1, w1_ref[...], preferred_element_type=f32)
    acc1 = jnp.maximum(acc1 + b1_ref[...], 0.0).astype(bf16)             # (128, C1)
    for ph in range(2):
        t0 = 1 - ph
        for pw in range(2):
            s0 = 1 - pw
            base = (ph * 2 + pw) * (S2 * S2 * B)
            dst = h1s[ph * 2 + pw]
            for t in range(S2):
                dst[t0 + t, s0 * B:(s0 + S2) * B, :] = \
                    acc1[base + t * S2 * B: base + (t + 1) * S2 * B, :]

    # ---------------- encoder conv2: 3x3 stride-2 pad-1 + ReLU -------------------
    taps = []
    for ki in range(3):
        for kj in range(3):
            src = h1s[(ki % 2) * 2 + (kj % 2)]
            blk = src[ki // 2:ki // 2 + S2, (kj // 2) * B:(kj // 2 + S2) * B, :]
            taps.append(blk.reshape(S2 * S2 * B, C1))
    lhs2 = jnp.concatenate(taps, axis=1)                                 # (32, 72) bf16
    h2 = jnp.dot(lhs2, w2_ref[...], preferred_element_type=f32)
    h2 = jnp.maximum(h2 + b2_ref[...], 0.0)                              # (32, C2) rows=(h,w,b)

    # ---------------- variational block (fully fused) ----------------------------
    # flatten (h,w,c order), one GEMM for [mu | log_var], reparameterize with the
    # externally supplied eps, then the sampler FC -- all without leaving VMEM.
    fc_in = jnp.concatenate([h2[s * B:(s + 1) * B, :] for s in range(S2 * S2)],
                            axis=1)                                      # (B, 256)
    ml = jnp.dot(fc_in.astype(bf16), wml_ref[...],
                 preferred_element_type=f32) + bml_ref[...]              # (B, 64)
    ml_ref[...] = ml                                                     # [mu | log_var]
    mu = ml[:, :HID]
    lv = ml[:, HID:]
    z = mu + eps_ref[...] * jnp.exp(0.5 * lv)
    zz = jnp.dot(z.astype(bf16), wz_ref[...],
                 preferred_element_type=f32) + bz_ref[...]               # (B, 512)
    zz = zz.astype(bf16)

    # ---------------- decoder deconv1: ConvTranspose 4x4 s2 p1 + ReLU ------------
    # Lowered to a stride-1 conv over the zero-dilated latent image held in VMEM.
    for i in range(S2):
        for j in range(S2):
            c0 = (i * S2 + j) * HID
            dil_ref[2 * i + 2, (2 * j + 2) * B:(2 * j + 3) * B, :] = zz[:, c0:c0 + HID]
    taps = []
    for ki in range(4):
        for kj in range(4):
            blk = dil_ref[ki:ki + S1, kj * B:(kj + S1) * B, :]
            taps.append(blk.reshape(S1 * S1 * B, HID))
    lhs3 = jnp.concatenate(taps, axis=1)                                 # (128, 512) bf16
    d1 = jnp.dot(lhs3, wd1_ref[...], preferred_element_type=f32)
    d1 = jnp.maximum(d1 + bd1_ref[...], 0.0).astype(bf16)                # (128, C1)
    for r in range(S1):
        p2_ref[1 + r, B:(S1 + 1) * B, :] = d1[r * S1 * B:(r + 1) * S1 * B, :]

    # ---------------- decoder deconv2: ConvTranspose 4x4 s2 p1 + Sigmoid ---------
    # Sub-pixel form, all 4 output phases in ONE GEMM: the lhs stacks the 9 possible
    # (sh, sw) windows along lanes; the weight is zero-padded so each output-phase
    # column block only picks up its own taps. No multiplications by inserted zeros.
    taps = []
    for sh in range(3):
        for sw in range(3):
            blk = p2_ref[sh:sh + S1, sw * B:(sw + S1) * B, :]
            taps.append(blk.reshape(S1 * S1 * B, C1))
    lhs4 = jnp.concatenate(taps, axis=1)                                 # (128, 72) bf16
    acc2 = jnp.dot(lhs4, wd2_ref[...], preferred_element_type=f32) + bd2_ref[...]
    # sigmoid = 1/(1+exp(-x)): exp + approx reciprocal both run on the EUP
    img_ref[...] = pl.reciprocal(1.0 + jnp.exp(-acc2), approx=True)      # (128, 16)


def _full_spec(shape):
    n = len(shape)
    return pl.BlockSpec(shape, lambda i, _n=n: (0,) * _n)


# ----------------------------------------------------------------------------
# Forward wrapper: one pallas_call; only boundary layout transforms run in XLA.
# ----------------------------------------------------------------------------
def conv_vae_forward(packed, x, eps):
    """x: (B, C0, H0, H0) NCHW, eps: (B, HID). Returns (reconstruction, mu, log_var)."""
    # Input prep: NHWC, pad 1 (conv padding) + 3 (so the mod-4 split is uniform),
    # then split rows/cols by residue mod 4 -> all kernel tap reads are static slices.
    xn = jnp.transpose(x, (0, 2, 3, 1)).astype(jnp.float32)               # (B, 16, 16, C0)
    xp = jnp.pad(xn, ((0, 0), (1, 3), (1, 3), (0, 0)))                    # (B, 20, 20, C0)
    x4 = (xp.reshape(B, 5, 4, 5, 4, C0)
            .transpose(2, 4, 1, 3, 0, 5)                                  # (mh, mw, u, v, b, c)
            .reshape(16, 5, 5 * B, C0))

    args = (x4,
            packed["w1"], packed["b1"], packed["w2"], packed["b2"],
            packed["wml"], packed["bml"], packed["wz"], packed["bz"],
            packed["wd1"], packed["bd1"], packed["wd2"], packed["bd2"],
            eps.astype(jnp.float32))

    out_shape = (
        jax.ShapeDtypeStruct((S1 * S1 * B, 4 * C0), jnp.float32),  # recon, rows=(a,b,batch), cols=(rh,rw,c)
        jax.ShapeDtypeStruct((B, 2 * HID), jnp.float32),           # [mu | log_var]
    )

    img_flat, ml = pl.pallas_call(
        _vae_kernel,
        out_shape=out_shape,
        grid=(1,),
        in_specs=[_full_spec(a.shape) for a in args],
        out_specs=tuple(_full_spec(s.shape) for s in out_shape),
        scratch_shapes=(
            [pltpu.VMEM((5, 5 * B, C1), jnp.bfloat16) for _ in range(4)]      # conv1 out, parity split
            + [pltpu.VMEM((2 * S2 + 3, (2 * S2 + 3) * B, HID), jnp.bfloat16),  # dilated latent
               pltpu.VMEM((S1 + 2, (S1 + 2) * B, C1), jnp.bfloat16)]           # padded deconv1 out
        ),
        compiler_params=pltpu.CompilerParams(dimension_semantics=("arbitrary",)),
    )(*args)

    # Re-interleave the four sub-pixel phases -> NCHW reconstruction.
    img = (img_flat.reshape(S1, S1, B, 2, 2, C0)
                   .transpose(2, 5, 0, 3, 1, 4)
                   .reshape(B, C0, H0, H0))
    mu = ml[:, :HID]
    log_var = ml[:, HID:]
    return img, mu, log_var


# ----------------------------------------------------------------------------
# Parameters: synthetic weights in native PyTorch layouts, plus a one-time repack
# into the GEMM layouts the fused kernel consumes.
# ----------------------------------------------------------------------------
def init_params(key):
    """PyTorch layouts: Conv2d (Cout,Cin,k,k), ConvTranspose2d (Cin,Cout,k,k), Linear (out,in)."""
    ks = jax.random.split(key, 14)

    def u(k, shape, fan_in):
        lim = 1.0 / jnp.sqrt(fan_in)
        return jax.random.uniform(k, shape, jnp.float32, -lim, lim)

    return {
        "enc1_w": u(ks[0], (C1, C0, 3, 3), C0 * 9), "enc1_b": u(ks[1], (C1,), C0 * 9),
        "enc2_w": u(ks[2], (C2, C1, 3, 3), C1 * 9), "enc2_b": u(ks[3], (C2,), C1 * 9),
        "fc_mu_w": u(ks[4], (HID, FLAT), FLAT),     "fc_mu_b": u(ks[5], (HID,), FLAT),
        "fc_lv_w": u(ks[6], (HID, FLAT), FLAT),     "fc_lv_b": u(ks[7], (HID,), FLAT),
        "fc_z_w": u(ks[8], (ZDIM, HID), HID),       "fc_z_b": u(ks[9], (ZDIM,), HID),
        "dec1_w": u(ks[10], (HID, C1, 4, 4), HID * 16), "dec1_b": u(ks[11], (C1,), HID * 16),
        "dec2_w": u(ks[12], (C1, C0, 4, 4), C1 * 16),   "dec2_b": u(ks[13], (C0,), C1 * 16),
    }


def pack_params(p):
    """One-time repack of PyTorch-layout weights (bf16 MXU operands, f32 biases)."""
    bf16, f32 = jnp.bfloat16, jnp.float32

    def conv_taps(w):                 # (Cout,Cin,k,k) -> (k*k*Cin, Cout), tap-major rows
        co, ci, k, _ = w.shape
        return jnp.transpose(w, (2, 3, 1, 0)).reshape(k * k * ci, co).astype(bf16)

    def fc_rows_hwc(wt):              # Linear (out, in=(c,h,w)) -> (in=(h,w,c), out)
        o = wt.shape[0]
        return (jnp.transpose(wt).reshape(C2, S2, S2, o)
                .transpose(1, 2, 0, 3).reshape(FLAT, o))

    wml = jnp.concatenate([fc_rows_hwc(p["fc_mu_w"]), fc_rows_hwc(p["fc_lv_w"])],
                          axis=1).astype(bf16)                               # (256, 64)
    bml = jnp.concatenate([p["fc_mu_b"], p["fc_lv_b"]]).reshape(1, 2 * HID).astype(f32)

    # sampler FC: reorder output features (c,h,w) -> (h,w,c)
    wz = (jnp.transpose(p["fc_z_w"]).reshape(HID, HID, S2, S2)
          .transpose(0, 2, 3, 1).reshape(HID, ZDIM).astype(bf16))            # (32, 512)
    bz = (p["fc_z_b"].reshape(HID, S2, S2).transpose(1, 2, 0)
          .reshape(1, ZDIM).astype(f32))

    # deconv1 as a stride-1 conv over the zero-dilated latent: flipped kernel, tap-major rows
    wd1 = (p["dec1_w"][:, :, ::-1, ::-1]
           .transpose(2, 3, 0, 1).reshape(16 * HID, C1).astype(bf16))        # (512, 8)

    # deconv2 sub-pixel, all phases fused: rows = 9 (sh,sw) window blocks x C1,
    # cols = 4 output phases x C0; zero where a window does not feed a phase.
    wd2 = jnp.zeros((9 * C1, 4 * C0), f32)
    for rh in range(2):
        for rw in range(2):
            for (ki, sh) in TAPS_DEC[rh]:
                for (kj, sw) in TAPS_DEC[rw]:
                    r0 = (sh * 3 + sw) * C1
                    c0 = (rh * 2 + rw) * C0
                    wd2 = wd2.at[r0:r0 + C1, c0:c0 + C0].set(p["dec2_w"][:, :, ki, kj])
    wd2 = wd2.astype(bf16)                                                   # (72, 16)
    bd2 = jnp.tile(p["dec2_b"], 4).reshape(1, 4 * C0).astype(f32)            # (1, 16)

    return {
        "w1": conv_taps(p["enc1_w"]), "b1": p["enc1_b"].reshape(1, C1).astype(f32),
        "w2": conv_taps(p["enc2_w"]), "b2": p["enc2_b"].reshape(1, C2).astype(f32),
        "wml": wml, "bml": bml, "wz": wz, "bz": bz,
        "wd1": wd1, "bd1": p["dec1_b"].reshape(1, C1).astype(f32),
        "wd2": wd2, "bd2": bd2,
    }


if __name__ == "__main__":
    key = jax.random.PRNGKey(0)
    k_params, k_x, k_eps = jax.random.split(key, 3)

    params = init_params(k_params)
    packed = pack_params(params)          # one-time weight repack, outside the hot path

    x = jax.random.normal(k_x, (B, C0, H0, H0), dtype=jnp.float32)
    # TODO(synk): torch.randn_like noise drawn inside VariationalNeuralBlock is replaced
    # by a deterministic eps passed in explicitly.
    eps = jax.random.normal(k_eps, (B, HID), dtype=jnp.float32)

    fwd = jax.jit(conv_vae_forward)
    recon, mu, log_var = fwd(packed, x, eps)
    jax.block_until_ready((recon, mu, log_var))

    assert recon.shape == (B, C0, H0, H0)
    assert mu.shape == (B, HID)
    assert log_var.shape == (B, HID)
    print("KERNEL_OK")
</pallas_src>

<mosaic_0001>
module attributes {stable_mosaic.version = 11 : i64} {
  func.func @_vae_kernel(%arg0: i32, %arg1: memref<16x5x10x4xf32, #tpu.memory_space<vmem>>, %arg2: memref<36x8xbf16, #tpu.memory_space<vmem>>, %arg3: memref<1x8xf32, #tpu.memory_space<vmem>>, %arg4: memref<72x16xbf16, #tpu.memory_space<vmem>>, %arg5: memref<1x16xf32, #tpu.memory_space<vmem>>, %arg6: memref<256x64xbf16, #tpu.memory_space<vmem>>, %arg7: memref<1x64xf32, #tpu.memory_space<vmem>>, %arg8: memref<32x512xbf16, #tpu.memory_space<vmem>>, %arg9: memref<1x512xf32, #tpu.memory_space<vmem>>, %arg10: memref<512x8xbf16, #tpu.memory_space<vmem>>, %arg11: memref<1x8xf32, #tpu.memory_space<vmem>>, %arg12: memref<72x16xbf16, #tpu.memory_space<vmem>>, %arg13: memref<1x16xf32, #tpu.memory_space<vmem>>, %arg14: memref<2x32xf32, #tpu.memory_space<vmem>>, %arg15: memref<128x16xf32, #tpu.memory_space<vmem>>, %arg16: memref<2x64xf32, #tpu.memory_space<vmem>>, %arg17: memref<5x10x8xbf16, #tpu.memory_space<vmem>>, %arg18: memref<5x10x8xbf16, #tpu.memory_space<vmem>>, %arg19: memref<5x10x8xbf16, #tpu.memory_space<vmem>>, %arg20: memref<5x10x8xbf16, #tpu.memory_space<vmem>>, %arg21: memref<11x22x32xbf16, #tpu.memory_space<vmem>>, %arg22: memref<10x20x8xbf16, #tpu.memory_space<vmem>>) attributes {dimension_semantics = [#tpu.dimension_semantics<arbitrary>], iteration_bounds = array<i64: 1>, scalar_prefetch = 0 : i64, scratch_operands = 6 : i64, tpu.core_type = #tpu.core_type<tc>, window_params = [{pipeline_mode = #tpu.pipeline_mode<synchronous>, transform_indices = @transform_0, window_bounds = array<i64: 16, 5, 10, 4>}, {pipeline_mode = #tpu.pipeline_mode<synchronous>, transform_indices = @transform_1, window_bounds = array<i64: 36, 8>}, {pipeline_mode = #tpu.pipeline_mode<synchronous>, transform_indices = @transform_2, window_bounds = array<i64: 1, 8>}, {pipeline_mode = #tpu.pipeline_mode<synchronous>, transform_indices = @transform_3, window_bounds = array<i64: 72, 16>}, {pipeline_mode = #tpu.pipeline_mode<synchronous>, transform_indices = @transform_4, window_bounds = array<i64: 1, 16>}, {pipeline_mode = #tpu.pipeline_mode<synchronous>, transform_indices = @transform_5, window_bounds = array<i64: 256, 64>}, {pipeline_mode = #tpu.pipeline_mode<synchronous>, transform_indices = @transform_6, window_bounds = array<i64: 1, 64>}, {pipeline_mode = #tpu.pipeline_mode<synchronous>, transform_indices = @transform_7, window_bounds = array<i64: 32, 512>}, {pipeline_mode = #tpu.pipeline_mode<synchronous>, transform_indices = @transform_8, window_bounds = array<i64: 1, 512>}, {pipeline_mode = #tpu.pipeline_mode<synchronous>, transform_indices = @transform_9, window_bounds = array<i64: 512, 8>}, {pipeline_mode = #tpu.pipeline_mode<synchronous>, transform_indices = @transform_10, window_bounds = array<i64: 1, 8>}, {pipeline_mode = #tpu.pipeline_mode<synchronous>, transform_indices = @transform_11, window_bounds = array<i64: 72, 16>}, {pipeline_mode = #tpu.pipeline_mode<synchronous>, transform_indices = @transform_12, window_bounds = array<i64: 1, 16>}, {pipeline_mode = #tpu.pipeline_mode<synchronous>, transform_indices = @transform_13, window_bounds = array<i64: 2, 32>}, {pipeline_mode = #tpu.pipeline_mode<synchronous>, transform_indices = @transform_14, window_bounds = array<i64: 128, 16>}, {pipeline_mode = #tpu.pipeline_mode<synchronous>, transform_indices = @transform_15, window_bounds = array<i64: 2, 64>}]} {
    %cst = arith.constant 0.000000e+00 : bf16
    %0 = vector.broadcast %cst : bf16 to vector<5x10x8xbf16>
    %c0 = arith.constant 0 : index
    %c0_0 = arith.constant 0 : index
    %c0_1 = arith.constant 0 : index
    %1 = vector.load %arg17[%c0, %c0_0, %c0_1] : memref<5x10x8xbf16, #tpu.memory_space<vmem>>, vector<5x10x8xbf16>
    tpu.vector_store %arg17[%c0, %c0_0, %c0_1], %0 {strides = array<i32>} : memref<5x10x8xbf16, #tpu.memory_space<vmem>>, vector<5x10x8xbf16>,
    %cst_2 = arith.constant 0.000000e+00 : bf16
    %2 = vector.broadcast %cst_2 : bf16 to vector<5x10x8xbf16>
    %c0_3 = arith.constant 0 : index
    %c0_4 = arith.constant 0 : index
    %c0_5 = arith.constant 0 : index
    %3 = vector.load %arg18[%c0_3, %c0_4, %c0_5] : memref<5x10x8xbf16, #tpu.memory_space<vmem>>, vector<5x10x8xbf16>
    tpu.vector_store %arg18[%c0_3, %c0_4, %c0_5], %2 {strides = array<i32>} : memref<5x10x8xbf16, #tpu.memory_space<vmem>>, vector<5x10x8xbf16>,
    %cst_6 = arith.constant 0.000000e+00 : bf16
    %4 = vector.broadcast %cst_6 : bf16 to vector<5x10x8xbf16>
    %c0_7 = arith.constant 0 : index
    %c0_8 = arith.constant 0 : index
    %c0_9 = arith.constant 0 : index
    %5 = vector.load %arg19[%c0_7, %c0_8, %c0_9] : memref<5x10x8xbf16, #tpu.memory_space<vmem>>, vector<5x10x8xbf16>
    tpu.vector_store %arg19[%c0_7, %c0_8, %c0_9], %4 {strides = array<i32>} : memref<5x10x8xbf16, #tpu.memory_space<vmem>>, vector<5x10x8xbf16>,
    %cst_10 = arith.constant 0.000000e+00 : bf16
    %6 = vector.broadcast %cst_10 : bf16 to vector<5x10x8xbf16>
    %c0_11 = arith.constant 0 : index
    %c0_12 = arith.constant 0 : index
    %c0_13 = arith.constant 0 : index
    %7 = vector.load %arg20[%c0_11, %c0_12, %c0_13] : memref<5x10x8xbf16, #tpu.memory_space<vmem>>, vector<5x10x8xbf16>
    tpu.vector_store %arg20[%c0_11, %c0_12, %c0_13], %6 {strides = array<i32>} : memref<5x10x8xbf16, #tpu.memory_space<vmem>>, vector<5x10x8xbf16>,
    %cst_14 = arith.constant 0.000000e+00 : bf16
    %8 = vector.broadcast %cst_14 : bf16 to vector<11x22x32xbf16>
    %c0_15 = arith.constant 0 : index
    %c0_16 = arith.constant 0 : index
    %c0_17 = arith.constant 0 : index
    %9 = vector.load %arg21[%c0_15, %c0_16, %c0_17] : memref<11x22x32xbf16, #tpu.memory_space<vmem>>, vector<11x22x32xbf16>
    tpu.vector_store %arg21[%c0_15, %c0_16, %c0_17], %8 {strides = array<i32>} : memref<11x22x32xbf16, #tpu.memory_space<vmem>>, vector<11x22x32xbf16>,
    %cst_18 = arith.constant 0.000000e+00 : bf16
    %10 = vector.broadcast %cst_18 : bf16 to vector<10x20x8xbf16>
    %c0_19 = arith.constant 0 : index
    %c0_20 = arith.constant 0 : index
    %c0_21 = arith.constant 0 : index
    %11 = vector.load %arg22[%c0_19, %c0_20, %c0_21] : memref<10x20x8xbf16, #tpu.memory_space<vmem>>, vector<10x20x8xbf16>
    tpu.vector_store %arg22[%c0_19, %c0_20, %c0_21], %10 {strides = array<i32>} : memref<10x20x8xbf16, #tpu.memory_space<vmem>>, vector<10x20x8xbf16>,
    %c10 = arith.constant 10 : index
    %c0_22 = arith.constant 0 : index
    %c0_23 = arith.constant 0 : index
    %c0_24 = arith.constant 0 : index
    %12 = vector.load %arg1[%c10, %c0_22, %c0_23, %c0_24] : memref<16x5x10x4xf32, #tpu.memory_space<vmem>>, vector<1x4x8x4xf32>
    %13 = vector.shape_cast %12 : vector<1x4x8x4xf32> to vector<4x8x4xf32>
    %14 = vector.shape_cast %13 : vector<4x8x4xf32> to vector<32x4xf32>
    %c11 = arith.constant 11 : index
    %c0_25 = arith.constant 0 : index
    %c0_26 = arith.constant 0 : index
    %c0_27 = arith.constant 0 : index
    %15 = vector.load %arg1[%c11, %c0_25, %c0_26, %c0_27] : memref<16x5x10x4xf32, #tpu.memory_space<vmem>>, vector<1x4x8x4xf32>
    %16 = vector.shape_cast %15 : vector<1x4x8x4xf32> to vector<4x8x4xf32>
    %17 = vector.shape_cast %16 : vector<4x8x4xf32> to vector<32x4xf32>
    %c8 = arith.constant 8 : index
    %c0_28 = arith.constant 0 : index
    %c2 = arith.constant 2 : index
    %c0_29 = arith.constant 0 : index
    %18 = vector.load %arg1[%c8, %c0_28, %c2, %c0_29] : memref<16x5x10x4xf32, #tpu.memory_space<vmem>>, vector<1x4x8x4xf32>
    %19 = vector.shape_cast %18 : vector<1x4x8x4xf32> to vector<4x8x4xf32>
    %20 = vector.shape_cast %19 : vector<4x8x4xf32> to vector<32x4xf32>
    %c14 = arith.constant 14 : index
    %c0_30 = arith.constant 0 : index
    %c0_31 = arith.constant 0 : index
    %c0_32 = arith.constant 0 : index
    %21 = vector.load %arg1[%c14, %c0_30, %c0_31, %c0_32] : memref<16x5x10x4xf32, #tpu.memory_space<vmem>>, vector<1x4x8x4xf32>
    %22 = vector.shape_cast %21 : vector<1x4x8x4xf32> to vector<4x8x4xf32>
    %23 = vector.shape_cast %22 : vector<4x8x4xf32> to vector<32x4xf32>
    %c15 = arith.constant 15 : index
    %c0_33 = arith.constant 0 : index
    %c0_34 = arith.constant 0 : index
    %c0_35 = arith.constant 0 : index
    %24 = vector.load %arg1[%c15, %c0_33, %c0_34, %c0_35] : memref<16x5x10x4xf32, #tpu.memory_space<vmem>>, vector<1x4x8x4xf32>
    %25 = vector.shape_cast %24 : vector<1x4x8x4xf32> to vector<4x8x4xf32>
    %26 = vector.shape_cast %25 : vector<4x8x4xf32> to vector<32x4xf32>
    %c12 = arith.constant 12 : index
    %c0_36 = arith.constant 0 : index
    %c2_37 = arith.constant 2 : index
    %c0_38 = arith.constant 0 : index
    %27 = vector.load %arg1[%c12, %c0_36, %c2_37, %c0_38] : memref<16x5x10x4xf32, #tpu.memory_space<vmem>>, vector<1x4x8x4xf32>
    %28 = vector.shape_cast %27 : vector<1x4x8x4xf32> to vector<4x8x4xf32>
    %29 = vector.shape_cast %28 : vector<4x8x4xf32> to vector<32x4xf32>
    %c2_39 = arith.constant 2 : index
    %c1 = arith.constant 1 : index
    %c0_40 = arith.constant 0 : index
    %c0_41 = arith.constant 0 : index
    %30 = vector.load %arg1[%c2_39, %c1, %c0_40, %c0_41] : memref<16x5x10x4xf32, #tpu.memory_space<vmem>>, vector<1x4x8x4xf32>
    %31 = vector.shape_cast %30 : vector<1x4x8x4xf32> to vector<4x8x4xf32>
    %32 = vector.shape_cast %31 : vector<4x8x4xf32> to vector<32x4xf32>
    %c3 = arith.constant 3 : index
    %c1_42 = arith.constant 1 : index
    %c0_43 = arith.constant 0 : index
    %c0_44 = arith.constant 0 : index
    %33 = vector.load %arg1[%c3, %c1_42, %c0_43, %c0_44] : memref<16x5x10x4xf32, #tpu.memory_space<vmem>>, vector<1x4x8x4xf32>
    %34 = vector.shape_cast %33 : vector<1x4x8x4xf32> to vector<4x8x4xf32>
    %35 = vector.shape_cast %34 : vector<4x8x4xf32> to vector<32x4xf32>
    %c0_45 = arith.constant 0 : index
    %c1_46 = arith.constant 1 : index
    %c2_47 = arith.constant 2 : index
    %c0_48 = arith.constant 0 : index
    %36 = vector.load %arg1[%c0_45, %c1_46, %c2_47, %c0_48] : memref<16x5x10x4xf32, #tpu.memory_space<vmem>>, vector<1x4x8x4xf32>
    %37 = vector.shape_cast %36 : vector<1x4x8x4xf32> to vector<4x8x4xf32>
    %38 = vector.shape_cast %37 : vector<4x8x4xf32> to vector<32x4xf32>
    %39 = tpu.concatenate %14, %17, %20, %23, %26, %29, %32, %35, %38 in 1 : vector<32x4xf32>, vector<32x4xf32>, vector<32x4xf32>, vector<32x4xf32>, vector<32x4xf32>, vector<32x4xf32>, vector<32x4xf32>, vector<32x4xf32>, vector<32x4xf32> -> vector<32x36xf32>
    %c8_49 = arith.constant 8 : index
    %c0_50 = arith.constant 0 : index
    %c0_51 = arith.constant 0 : index
    %c0_52 = arith.constant 0 : index
    %40 = vector.load %arg1[%c8_49, %c0_50, %c0_51, %c0_52] : memref<16x5x10x4xf32, #tpu.memory_space<vmem>>, vector<1x4x8x4xf32>
    %41 = vector.shape_cast %40 : vector<1x4x8x4xf32> to vector<4x8x4xf32>
    %42 = vector.shape_cast %41 : vector<4x8x4xf32> to vector<32x4xf32>
    %c9 = arith.constant 9 : index
    %c0_53 = arith.constant 0 : index
    %c0_54 = arith.constant 0 : index
    %c0_55 = arith.constant 0 : index
    %43 = vector.load %arg1[%c9, %c0_53, %c0_54, %c0_55] : memref<16x5x10x4xf32, #tpu.memory_space<vmem>>, vector<1x4x8x4xf32>
    %44 = vector.shape_cast %43 : vector<1x4x8x4xf32> to vector<4x8x4xf32>
    %45 = vector.shape_cast %44 : vector<4x8x4xf32> to vector<32x4xf32>
    %c10_56 = arith.constant 10 : index
    %c0_57 = arith.constant 0 : index
    %c0_58 = arith.constant 0 : index
    %c0_59 = arith.constant 0 : index
    %46 = vector.load %arg1[%c10_56, %c0_57, %c0_58, %c0_59] : memref<16x5x10x4xf32, #tpu.memory_space<vmem>>, vector<1x4x8x4xf32>
    %47 = vector.shape_cast %46 : vector<1x4x8x4xf32> to vector<4x8x4xf32>
    %48 = vector.shape_cast %47 : vector<4x8x4xf32> to vector<32x4xf32>
    %c12_60 = arith.constant 12 : index
    %c0_61 = arith.constant 0 : index
    %c0_62 = arith.constant 0 : index
    %c0_63 = arith.constant 0 : index
    %49 = vector.load %arg1[%c12_60, %c0_61, %c0_62, %c0_63] : memref<16x5x10x4xf32, #tpu.memory_space<vmem>>, vector<1x4x8x4xf32>
    %50 = vector.shape_cast %49 : vector<1x4x8x4xf32> to vector<4x8x4xf32>
    %51 = vector.shape_cast %50 : vector<4x8x4xf32> to vector<32x4xf32>
    %c13 = arith.constant 13 : index
    %c0_64 = arith.constant 0 : index
    %c0_65 = arith.constant 0 : index
    %c0_66 = arith.constant 0 : index
    %52 = vector.load %arg1[%c13, %c0_64, %c0_65, %c0_66] : memref<16x5x10x4xf32, #tpu.memory_space<vmem>>, vector<1x4x8x4xf32>
    %53 = vector.shape_cast %52 : vector<1x4x8x4xf32> to vector<4x8x4xf32>
    %54 = vector.shape_cast %53 : vector<4x8x4xf32> to vector<32x4xf32>
    %c14_67 = arith.constant 14 : index
    %c0_68 = arith.constant 0 : index
    %c0_69 = arith.constant 0 : index
    %c0_70 = arith.constant 0 : index
    %55 = vector.load %arg1[%c14_67, %c0_68, %c0_69, %c0_70] : memref<16x5x10x4xf32, #tpu.memory_space<vmem>>, vector<1x4x8x4xf32>
    %56 = vector.shape_cast %55 : vector<1x4x8x4xf32> to vector<4x8x4xf32>
    %57 = vector.shape_cast %56 : vector<4x8x4xf32> to vector<32x4xf32>
    %c0_71 = arith.constant 0 : index
    %c1_72 = arith.constant 1 : index
    %c0_73 = arith.constant 0 : index
    %c0_74 = arith.constant 0 : index
    %58 = vector.load %arg1[%c0_71, %c1_72, %c0_73, %c0_74] : memref<16x5x10x4xf32, #tpu.memory_space<vmem>>, vector<1x4x8x4xf32>
    %59 = vector.shape_cast %58 : vector<1x4x8x4xf32> to vector<4x8x4xf32>
    %60 = vector.shape_cast %59 : vector<4x8x4xf32> to vector<32x4xf32>
    %c1_75 = arith.constant 1 : index
    %c1_76 = arith.constant 1 : index
    %c0_77 = arith.constant 0 : index
    %c0_78 = arith.constant 0 : index
    %61 = vector.load %arg1[%c1_75, %c1_76, %c0_77, %c0_78] : memref<16x5x10x4xf32, #tpu.memory_space<vmem>>, vector<1x4x8x4xf32>
    %62 = vector.shape_cast %61 : vector<1x4x8x4xf32> to vector<4x8x4xf32>
    %63 = vector.shape_cast %62 : vector<4x8x4xf32> to vector<32x4xf32>
    %c2_79 = arith.constant 2 : index
    %c1_80 = arith.constant 1 : index
    %c0_81 = arith.constant 0 : index
    %c0_82 = arith.constant 0 : index
    %64 = vector.load %arg1[%c2_79, %c1_80, %c0_81, %c0_82] : memref<16x5x10x4xf32, #tpu.memory_space<vmem>>, vector<1x4x8x4xf32>
    %65 = vector.shape_cast %64 : vector<1x4x8x4xf32> to vector<4x8x4xf32>
    %66 = vector.shape_cast %65 : vector<4x8x4xf32> to vector<32x4xf32>
    %67 = tpu.concatenate %42, %45, %48, %51, %54, %57, %60, %63, %66 in 1 : vector<32x4xf32>, vector<32x4xf32>, vector<32x4xf32>, vector<32x4xf32>, vector<32x4xf32>, vector<32x4xf32>, vector<32x4xf32>, vector<32x4xf32>, vector<32x4xf32> -> vector<32x36xf32>
    %c2_83 = arith.constant 2 : index
    %c0_84 = arith.constant 0 : index
    %c0_85 = arith.constant 0 : index
    %c0_86 = arith.constant 0 : index
    %68 = vector.load %arg1[%c2_83, %c0_84, %c0_85, %c0_86] : memref<16x5x10x4xf32, #tpu.memory_space<vmem>>, vector<1x4x8x4xf32>
    %69 = vector.shape_cast %68 : vector<1x4x8x4xf32> to vector<4x8x4xf32>
    %70 = vector.shape_cast %69 : vector<4x8x4xf32> to vector<32x4xf32>
    %c3_87 = arith.constant 3 : index
    %c0_88 = arith.constant 0 : index
    %c0_89 = arith.constant 0 : index
    %c0_90 = arith.constant 0 : index
    %71 = vector.load %arg1[%c3_87, %c0_88, %c0_89, %c0_90] : memref<16x5x10x4xf32, #tpu.memory_space<vmem>>, vector<1x4x8x4xf32>
    %72 = vector.shape_cast %71 : vector<1x4x8x4xf32> to vector<4x8x4xf32>
    %73 = vector.shape_cast %72 : vector<4x8x4xf32> to vector<32x4xf32>
    %c0_91 = arith.constant 0 : index
    %c0_92 = arith.constant 0 : index
    %c2_93 = arith.constant 2 : index
    %c0_94 = arith.constant 0 : index
    %74 = vector.load %arg1[%c0_91, %c0_92, %c2_93, %c0_94] : memref<16x5x10x4xf32, #tpu.memory_space<vmem>>, vector<1x4x8x4xf32>
    %75 = vector.shape_cast %74 : vector<1x4x8x4xf32> to vector<4x8x4xf32>
    %76 = vector.shape_cast %75 : vector<4x8x4xf32> to vector<32x4xf32>
    %c6 = arith.constant 6 : index
    %c0_95 = arith.constant 0 : index
    %c0_96 = arith.constant 0 : index
    %c0_97 = arith.constant 0 : index
    %77 = vector.load %arg1[%c6, %c0_95, %c0_96, %c0_97] : memref<16x5x10x4xf32, #tpu.memory_space<vmem>>, vector<1x4x8x4xf32>
    %78 = vector.shape_cast %77 : vector<1x4x8x4xf32> to vector<4x8x4xf32>
    %79 = vector.shape_cast %78 : vector<4x8x4xf32> to vector<32x4xf32>
    %c7 = arith.constant 7 : index
    %c0_98 = arith.constant 0 : index
    %c0_99 = arith.constant 0 : index
    %c0_100 = arith.constant 0 : index
    %80 = vector.load %arg1[%c7, %c0_98, %c0_99, %c0_100] : memref<16x5x10x4xf32, #tpu.memory_space<vmem>>, vector<1x4x8x4xf32>
    %81 = vector.shape_cast %80 : vector<1x4x8x4xf32> to vector<4x8x4xf32>
    %82 = vector.shape_cast %81 : vector<4x8x4xf32> to vector<32x4xf32>
    %c4 = arith.constant 4 : index
    %c0_101 = arith.constant 0 : index
    %c2_102 = arith.constant 2 : index
    %c0_103 = arith.constant 0 : index
    %83 = vector.load %arg1[%c4, %c0_101, %c2_102, %c0_103] : memref<16x5x10x4xf32, #tpu.memory_space<vmem>>, vector<1x4x8x4xf32>
    %84 = vector.shape_cast %83 : vector<1x4x8x4xf32> to vector<4x8x4xf32>
    %85 = vector.shape_cast %84 : vector<4x8x4xf32> to vector<32x4xf32>
    %c10_104 = arith.constant 10 : index
    %c0_105 = arith.constant 0 : index
    %c0_106 = arith.constant 0 : index
    %c0_107 = arith.constant 0 : index
    %86 = vector.load %arg1[%c10_104, %c0_105, %c0_106, %c0_107] : memref<16x5x10x4xf32, #tpu.memory_space<vmem>>, vector<1x4x8x4xf32>
    %87 = vector.shape_cast %86 : vector<1x4x8x4xf32> to vector<4x8x4xf32>
    %88 = vector.shape_cast %87 : vector<4x8x4xf32> to vector<32x4xf32>
    %c11_108 = arith.constant 11 : index
    %c0_109 = arith.constant 0 : index
    %c0_110 = arith.constant 0 : index
    %c0_111 = arith.constant 0 : index
    %89 = vector.load %arg1[%c11_108, %c0_109, %c0_110, %c0_111] : memref<16x5x10x4xf32, #tpu.memory_space<vmem>>, vector<1x4x8x4xf32>
    %90 = vector.shape_cast %89 : vector<1x4x8x4xf32> to vector<4x8x4xf32>
    %91 = vector.shape_cast %90 : vector<4x8x4xf32> to vector<32x4xf32>
    %c8_112 = arith.constant 8 : index
    %c0_113 = arith.constant 0 : index
    %c2_114 = arith.constant 2 : index
    %c0_115 = arith.constant 0 : index
    %92 = vector.load %arg1[%c8_112, %c0_113, %c2_114, %c0_115] : memref<16x5x10x4xf32, #tpu.memory_space<vmem>>, vector<1x4x8x4xf32>
    %93 = vector.shape_cast %92 : vector<1x4x8x4xf32> to vector<4x8x4xf32>
    %94 = vector.shape_cast %93 : vector<4x8x4xf32> to vector<32x4xf32>
    %95 = tpu.concatenate %70, %73, %76, %79, %82, %85, %88, %91, %94 in 1 : vector<32x4xf32>, vector<32x4xf32>, vector<32x4xf32>, vector<32x4xf32>, vector<32x4xf32>, vector<32x4xf32>, vector<32x4xf32>, vector<32x4xf32>, vector<32x4xf32> -> vector<32x36xf32>
    %c0_116 = arith.constant 0 : index
    %c0_117 = arith.constant 0 : index
    %c0_118 = arith.constant 0 : index
    %c0_119 = arith.constant 0 : index
    %96 = vector.load %arg1[%c0_116, %c0_117, %c0_118, %c0_119] : memref<16x5x10x4xf32, #tpu.memory_space<vmem>>, vector<1x4x8x4xf32>
    %97 = vector.shape_cast %96 : vector<1x4x8x4xf32> to vector<4x8x4xf32>
    %98 = vector.shape_cast %97 : vector<4x8x4xf32> to vector<32x4xf32>
    %c1_120 = arith.constant 1 : index
    %c0_121 = arith.constant 0 : index
    %c0_122 = arith.constant 0 : index
    %c0_123 = arith.constant 0 : index
    %99 = vector.load %arg1[%c1_120, %c0_121, %c0_122, %c0_123] : memref<16x5x10x4xf32, #tpu.memory_space<vmem>>, vector<1x4x8x4xf32>
    %100 = vector.shape_cast %99 : vector<1x4x8x4xf32> to vector<4x8x4xf32>
    %101 = vector.shape_cast %100 : vector<4x8x4xf32> to vector<32x4xf32>
    %c2_124 = arith.constant 2 : index
    %c0_125 = arith.constant 0 : index
    %c0_126 = arith.constant 0 : index
    %c0_127 = arith.constant 0 : index
    %102 = vector.load %arg1[%c2_124, %c0_125, %c0_126, %c0_127] : memref<16x5x10x4xf32, #tpu.memory_space<vmem>>, vector<1x4x8x4xf32>
    %103 = vector.shape_cast %102 : vector<1x4x8x4xf32> to vector<4x8x4xf32>
    %104 = vector.shape_cast %103 : vector<4x8x4xf32> to vector<32x4xf32>
    %c4_128 = arith.constant 4 : index
    %c0_129 = arith.constant 0 : index
    %c0_130 = arith.constant 0 : index
    %c0_131 = arith.constant 0 : index
    %105 = vector.load %arg1[%c4_128, %c0_129, %c0_130, %c0_131] : memref<16x5x10x4xf32, #tpu.memory_space<vmem>>, vector<1x4x8x4xf32>
    %106 = vector.shape_cast %105 : vector<1x4x8x4xf32> to vector<4x8x4xf32>
    %107 = vector.shape_cast %106 : vector<4x8x4xf32> to vector<32x4xf32>
    %c5 = arith.constant 5 : index
    %c0_132 = arith.constant 0 : index
    %c0_133 = arith.constant 0 : index
    %c0_134 = arith.constant 0 : index
    %108 = vector.load %arg1[%c5, %c0_132, %c0_133, %c0_134] : memref<16x5x10x4xf32, #tpu.memory_space<vmem>>, vector<1x4x8x4xf32>
    %109 = vector.shape_cast %108 : vector<1x4x8x4xf32> to vector<4x8x4xf32>
    %110 = vector.shape_cast %109 : vector<4x8x4xf32> to vector<32x4xf32>
    %c6_135 = arith.constant 6 : index
    %c0_136 = arith.constant 0 : index
    %c0_137 = arith.constant 0 : index
    %c0_138 = arith.constant 0 : index
    %111 = vector.load %arg1[%c6_135, %c0_136, %c0_137, %c0_138] : memref<16x5x10x4xf32, #tpu.memory_space<vmem>>, vector<1x4x8x4xf32>
    %112 = vector.shape_cast %111 : vector<1x4x8x4xf32> to vector<4x8x4xf32>
    %113 = vector.shape_cast %112 : vector<4x8x4xf32> to vector<32x4xf32>
    %c8_139 = arith.constant 8 : index
    %c0_140 = arith.constant 0 : index
    %c0_141 = arith.constant 0 : index
    %c0_142 = arith.constant 0 : index
    %114 = vector.load %arg1[%c8_139, %c0_140, %c0_141, %c0_142] : memref<16x5x10x4xf32, #tpu.memory_space<vmem>>, vector<1x4x8x4xf32>
    %115 = vector.shape_cast %114 : vector<1x4x8x4xf32> to vector<4x8x4xf32>
    %116 = vector.shape_cast %115 : vector<4x8x4xf32> to vector<32x4xf32>
    %c9_143 = arith.constant 9 : index
    %c0_144 = arith.constant 0 : index
    %c0_145 = arith.constant 0 : index
    %c0_146 = arith.constant 0 : index
    %117 = vector.load %arg1[%c9_143, %c0_144, %c0_145, %c0_146] : memref<16x5x10x4xf32, #tpu.memory_space<vmem>>, vector<1x4x8x4xf32>
    %118 = vector.shape_cast %117 : vector<1x4x8x4xf32> to vector<4x8x4xf32>
    %119 = vector.shape_cast %118 : vector<4x8x4xf32> to vector<32x4xf32>
    %c10_147 = arith.constant 10 : index
    %c0_148 = arith.constant 0 : index
    %c0_149 = arith.constant 0 : index
    %c0_150 = arith.constant 0 : index
    %120 = vector.load %arg1[%c10_147, %c0_148, %c0_149, %c0_150] : memref<16x5x10x4xf32, #tpu.memory_space<vmem>>, vector<1x4x8x4xf32>
    %121 = vector.shape_cast %120 : vector<1x4x8x4xf32> to vector<4x8x4xf32>
    %122 = vector.shape_cast %121 : vector<4x8x4xf32> to vector<32x4xf32>
    %123 = tpu.concatenate %98, %101, %104, %107, %110, %113, %116, %119, %122 in 1 : vector<32x4xf32>, vector<32x4xf32>, vector<32x4xf32>, vector<32x4xf32>, vector<32x4xf32>, vector<32x4xf32>, vector<32x4xf32>, vector<32x4xf32>, vector<32x4xf32> -> vector<32x36xf32>
    %124 = tpu.concatenate %39, %67, %95, %123 in 0 : vector<32x36xf32>, vector<32x36xf32>, vector<32x36xf32>, vector<32x36xf32> -> vector<128x36xf32>
    %125 = arith.truncf %124 : vector<128x36xf32> to vector<128x36xbf16>
    %c0_151 = arith.constant 0 : index
    %c0_152 = arith.constant 0 : index
    %126 = vector.load %arg2[%c0_151, %c0_152] : memref<36x8xbf16, #tpu.memory_space<vmem>>, vector<36x8xbf16>
    %cst_153 = arith.constant dense<0.000000e+00> : vector<128x8xf32>
    %127 = tpu.matmul %125, %126, %cst_153 {dimension_numbers = #tpu.dot_dimension_numbers<[1], [0], [0], [1], [0, 0, 1, 1], [], []>} : vector<128x36xbf16>, vector<36x8xbf16>, vector<128x8xf32> -> vector<128x8xf32>
    %c0_154 = arith.constant 0 : index
    %c0_155 = arith.constant 0 : index
    %128 = vector.load %arg3[%c0_154, %c0_155] : memref<1x8xf32, #tpu.memory_space<vmem>>, vector<1x8xf32>
    %129 = vector.broadcast %128 : vector<1x8xf32> to vector<128x8xf32>
    %130 = arith.addf %127, %129 : vector<128x8xf32>
    %cst_156 = arith.constant 0.000000e+00 : f32
    %131 = vector.broadcast %cst_156 : f32 to vector<128x8xf32>
    %132 = arith.maximumf %130, %131 : vector<128x8xf32>
    %133 = arith.truncf %132 : vector<128x8xf32> to vector<128x8xbf16>
    %134 = vector.extract_strided_slice %133 {offsets = [0, 0], sizes = [8, 8], strides = [1, 1]} : vector<128x8xbf16> to vector<8x8xbf16>
    %c1_157 = arith.constant 1 : index
    %c2_158 = arith.constant 2 : index
    %c0_159 = arith.constant 0 : index
    %135 = vector.load %arg17[%c1_157, %c2_158, %c0_159] : memref<5x10x8xbf16, #tpu.memory_space<vmem>>, vector<1x8x8xbf16>
    %136 = vector.shape_cast %135 : vector<1x8x8xbf16> to vector<8x8xbf16>
    %137 = vector.shape_cast %134 : vector<8x8xbf16> to vector<1x8x8xbf16>
    tpu.vector_store %arg17[%c1_157, %c2_158, %c0_159], %137 {strides = array<i32>} : memref<5x10x8xbf16, #tpu.memory_space<vmem>>, vector<1x8x8xbf16>,
    %138 = vector.extract_strided_slice %133 {offsets = [8, 0], sizes = [8, 8], strides = [1, 1]} : vector<128x8xbf16> to vector<8x8xbf16>
    %c2_160 = arith.constant 2 : index
    %c2_161 = arith.constant 2 : index
    %c0_162 = arith.constant 0 : index
    %139 = vector.load %arg17[%c2_160, %c2_161, %c0_162] : memref<5x10x8xbf16, #tpu.memory_space<vmem>>, vector<1x8x8xbf16>
    %140 = vector.shape_cast %139 : vector<1x8x8xbf16> to vector<8x8xbf16>
    %141 = vector.shape_cast %138 : vector<8x8xbf16> to vector<1x8x8xbf16>
    tpu.vector_store %arg17[%c2_160, %c2_161, %c0_162], %141 {strides = array<i32>} : memref<5x10x8xbf16, #tpu.memory_space<vmem>>, vector<1x8x8xbf16>,
    %142 = vector.extract_strided_slice %133 {offsets = [16, 0], sizes = [8, 8], strides = [1, 1]} : vector<128x8xbf16> to vector<8x8xbf16>
    %c3_163 = arith.constant 3 : index
    %c2_164 = arith.constant 2 : index
    %c0_165 = arith.constant 0 : index
    %143 = vector.load %arg17[%c3_163, %c2_164, %c0_165] : memref<5x10x8xbf16, #tpu.memory_space<vmem>>, vector<1x8x8xbf16>
    %144 = vector.shape_cast %143 : vector<1x8x8xbf16> to vector<8x8xbf16>
    %145 = vector.shape_cast %142 : vector<8x8xbf16> to vector<1x8x8xbf16>
    tpu.vector_store %arg17[%c3_163, %c2_164, %c0_165], %145 {strides = array<i32>} : memref<5x10x8xbf16, #tpu.memory_space<vmem>>, vector<1x8x8xbf16>,
    %146 = vector.extract_strided_slice %133 {offsets = [24, 0], sizes = [8, 8], strides = [1, 1]} : vector<128x8xbf16> to vector<8x8xbf16>
    %c4_166 = arith.constant 4 : index
    %c2_167 = arith.constant 2 : index
    %c0_168 = arith.constant 0 : index
    %147 = vector.load %arg17[%c4_166, %c2_167, %c0_168] : memref<5x10x8xbf16, #tpu.memory_space<vmem>>, vector<1x8x8xbf16>
    %148 = vector.shape_cast %147 : vector<1x8x8xbf16> to vector<8x8xbf16>
    %149 = vector.shape_cast %146 : vector<8x8xbf16> to vector<1x8x8xbf16>
    tpu.vector_store %arg17[%c4_166, %c2_167, %c0_168], %149 {strides = array<i32>} : memref<5x10x8xbf16, #tpu.memory_space<vmem>>, vector<1x8x8xbf16>,
    %150 = vector.extract_strided_slice %133 {offsets = [32, 0], sizes = [8, 8], strides = [1, 1]} : vector<128x8xbf16> to vector<8x8xbf16>
    %c1_169 = arith.constant 1 : index
    %c0_170 = arith.constant 0 : index
    %c0_171 = arith.constant 0 : index
    %151 = vector.load %arg18[%c1_169, %c0_170, %c0_171] : memref<5x10x8xbf16, #tpu.memory_space<vmem>>, vector<1x8x8xbf16>
    %152 = vector.shape_cast %151 : vector<1x8x8xbf16> to vector<8x8xbf16>
    %153 = vector.shape_cast %150 : vector<8x8xbf16> to vector<1x8x8xbf16>
    tpu.vector_store %arg18[%c1_169, %c0_170, %c0_171], %153 {strides = array<i32>} : memref<5x10x8xbf16, #tpu.memory_space<vmem>>, vector<1x8x8xbf16>,
    %154 = vector.extract_strided_slice %133 {offsets = [40, 0], sizes = [8, 8], strides = [1, 1]} : vector<128x8xbf16> to vector<8x8xbf16>
    %c2_172 = arith.constant 2 : index
    %c0_173 = arith.constant 0 : index
    %c0_174 = arith.constant 0 : index
    %155 = vector.load %arg18[%c2_172, %c0_173, %c0_174] : memref<5x10x8xbf16, #tpu.memory_space<vmem>>, vector<1x8x8xbf16>
    %156 = vector.shape_cast %155 : vector<1x8x8xbf16> to vector<8x8xbf16>
    %157 = vector.shape_cast %154 : vector<8x8xbf16> to vector<1x8x8xbf16>
    tpu.vector_store %arg18[%c2_172, %c0_173, %c0_174], %157 {strides = array<i32>} : memref<5x10x8xbf16, #tpu.memory_space<vmem>>, vector<1x8x8xbf16>,
    %158 = vector.extract_strided_slice %133 {offsets = [48, 0], sizes = [8, 8], strides = [1, 1]} : vector<128x8xbf16> to vector<8x8xbf16>
    %c3_175 = arith.constant 3 : index
    %c0_176 = arith.constant 0 : index
    %c0_177 = arith.constant 0 : index
    %159 = vector.load %arg18[%c3_175, %c0_176, %c0_177] : memref<5x10x8xbf16, #tpu.memory_space<vmem>>, vector<1x8x8xbf16>
    %160 = vector.shape_cast %159 : vector<1x8x8xbf16> to vector<8x8xbf16>
    %161 = vector.shape_cast %158 : vector<8x8xbf16> to vector<1x8x8xbf16>
    tpu.vector_store %arg18[%c3_175, %c0_176, %c0_177], %161 {strides = array<i32>} : memref<5x10x8xbf16, #tpu.memory_space<vmem>>, vector<1x8x8xbf16>,
    %162 = vector.extract_strided_slice %133 {offsets = [56, 0], sizes = [8, 8], strides = [1, 1]} : vector<128x8xbf16> to vector<8x8xbf16>
    %c4_178 = arith.constant 4 : index
    %c0_179 = arith.constant 0 : index
    %c0_180 = arith.constant 0 : index
    %163 = vector.load %arg18[%c4_178, %c0_179, %c0_180] : memref<5x10x8xbf16, #tpu.memory_space<vmem>>, vector<1x8x8xbf16>
    %164 = vector.shape_cast %163 : vector<1x8x8xbf16> to vector<8x8xbf16>
    %165 = vector.shape_cast %162 : vector<8x8xbf16> to vector<1x8x8xbf16>
    tpu.vector_store %arg18[%c4_178, %c0_179, %c0_180], %165 {strides = array<i32>} : memref<5x10x8xbf16, #tpu.memory_space<vmem>>, vector<1x8x8xbf16>,
    %166 = vector.extract_strided_slice %133 {offsets = [64, 0], sizes = [8, 8], strides = [1, 1]} : vector<128x8xbf16> to vector<8x8xbf16>
    %c0_181 = arith.constant 0 : index
    %c2_182 = arith.constant 2 : index
    %c0_183 = arith.constant 0 : index
    %167 = vector.load %arg19[%c0_181, %c2_182, %c0_183] : memref<5x10x8xbf16, #tpu.memory_space<vmem>>, vector<1x8x8xbf16>
    %168 = vector.shape_cast %167 : vector<1x8x8xbf16> to vector<8x8xbf16>
    %169 = vector.shape_cast %166 : vector<8x8xbf16> to vector<1x8x8xbf16>
    tpu.vector_store %arg19[%c0_181, %c2_182, %c0_183], %169 {strides = array<i32>} : memref<5x10x8xbf16, #tpu.memory_space<vmem>>, vector<1x8x8xbf16>,
    %170 = vector.extract_strided_slice %133 {offsets = [72, 0], sizes = [8, 8], strides = [1, 1]} : vector<128x8xbf16> to vector<8x8xbf16>
    %c1_184 = arith.constant 1 : index
    %c2_185 = arith.constant 2 : index
    %c0_186 = arith.constant 0 : index
    %171 = vector.load %arg19[%c1_184, %c2_185, %c0_186] : memref<5x10x8xbf16, #tpu.memory_space<vmem>>, vector<1x8x8xbf16>
    %172 = vector.shape_cast %171 : vector<1x8x8xbf16> to vector<8x8xbf16>
    %173 = vector.shape_cast %170 : vector<8x8xbf16> to vector<1x8x8xbf16>
    tpu.vector_store %arg19[%c1_184, %c2_185, %c0_186], %173 {strides = array<i32>} : memref<5x10x8xbf16, #tpu.memory_space<vmem>>, vector<1x8x8xbf16>,
    %174 = vector.extract_strided_slice %133 {offsets = [80, 0], sizes = [8, 8], strides = [1, 1]} : vector<128x8xbf16> to vector<8x8xbf16>
    %c2_187 = arith.constant 2 : index
    %c2_188 = arith.constant 2 : index
    %c0_189 = arith.constant 0 : index
    %175 = vector.load %arg19[%c2_187, %c2_188, %c0_189] : memref<5x10x8xbf16, #tpu.memory_space<vmem>>, vector<1x8x8xbf16>
    %176 = vector.shape_cast %175 : vector<1x8x8xbf16> to vector<8x8xbf16>
    %177 = vector.shape_cast %174 : vector<8x8xbf16> to vector<1x8x8xbf16>
    tpu.vector_store %arg19[%c2_187, %c2_188, %c0_189], %177 {strides = array<i32>} : memref<5x10x8xbf16, #tpu.memory_space<vmem>>, vector<1x8x8xbf16>,
    %178 = vector.extract_strided_slice %133 {offsets = [88, 0], sizes = [8, 8], strides = [1, 1]} : vector<128x8xbf16> to vector<8x8xbf16>
    %c3_190 = arith.constant 3 : index
    %c2_191 = arith.constant 2 : index
    %c0_192 = arith.constant 0 : index
    %179 = vector.load %arg19[%c3_190, %c2_191, %c0_192] : memref<5x10x8xbf16, #tpu.memory_space<vmem>>, vector<1x8x8xbf16>
    %180 = vector.shape_cast %179 : vector<1x8x8xbf16> to vector<8x8xbf16>
    %181 = vector.shape_cast %178 : vector<8x8xbf16> to vector<1x8x8xbf16>
    tpu.vector_store %arg19[%c3_190, %c2_191, %c0_192], %181 {strides = array<i32>} : memref<5x10x8xbf16, #tpu.memory_space<vmem>>, vector<1x8x8xbf16>,
    %182 = vector.extract_strided_slice %133 {offsets = [96, 0], sizes = [8, 8], strides = [1, 1]} : vector<128x8xbf16> to vector<8x8xbf16>
    %c0_193 = arith.constant 0 : index
    %c0_194 = arith.constant 0 : index
    %c0_195 = arith.constant 0 : index
    %183 = vector.load %arg20[%c0_193, %c0_194, %c0_195] : memref<5x10x8xbf16, #tpu.memory_space<vmem>>, vector<1x8x8xbf16>
    %184 = vector.shape_cast %183 : vector<1x8x8xbf16> to vector<8x8xbf16>
    %185 = vector.shape_cast %182 : vector<8x8xbf16> to vector<1x8x8xbf16>
    tpu.vector_store %arg20[%c0_193, %c0_194, %c0_195], %185 {strides = array<i32>} : memref<5x10x8xbf16, #tpu.memory_space<vmem>>, vector<1x8x8xbf16>,
    %186 = vector.extract_strided_slice %133 {offsets = [104, 0], sizes = [8, 8], strides = [1, 1]} : vector<128x8xbf16> to vector<8x8xbf16>
    %c1_196 = arith.constant 1 : index
    %c0_197 = arith.constant 0 : index
    %c0_198 = arith.constant 0 : index
    %187 = vector.load %arg20[%c1_196, %c0_197, %c0_198] : memref<5x10x8xbf16, #tpu.memory_space<vmem>>, vector<1x8x8xbf16>
    %188 = vector.shape_cast %187 : vector<1x8x8xbf16> to vector<8x8xbf16>
    %189 = vector.shape_cast %186 : vector<8x8xbf16> to vector<1x8x8xbf16>
    tpu.vector_store %arg20[%c1_196, %c0_197, %c0_198], %189 {strides = array<i32>} : memref<5x10x8xbf16, #tpu.memory_space<vmem>>, vector<1x8x8xbf16>,
    %190 = vector.extract_strided_slice %133 {offsets = [112, 0], sizes = [8, 8], strides = [1, 1]} : vector<128x8xbf16> to vector<8x8xbf16>
    %c2_199 = arith.constant 2 : index
    %c0_200 = arith.constant 0 : index
    %c0_201 = arith.constant 0 : index
    %191 = vector.load %arg20[%c2_199, %c0_200, %c0_201] : memref<5x10x8xbf16, #tpu.memory_space<vmem>>, vector<1x8x8xbf16>
    %192 = vector.shape_cast %191 : vector<1x8x8xbf16> to vector<8x8xbf16>
    %193 = vector.shape_cast %190 : vector<8x8xbf16> to vector<1x8x8xbf16>
    tpu.vector_store %arg20[%c2_199, %c0_200, %c0_201], %193 {strides = array<i32>} : memref<5x10x8xbf16, #tpu.memory_space<vmem>>, vector<1x8x8xbf16>,
    %194 = vector.extract_strided_slice %133 {offsets = [120, 0], sizes = [8, 8], strides = [1, 1]} : vector<128x8xbf16> to vector<8x8xbf16>
    %c3_202 = arith.constant 3 : index
    %c0_203 = arith.constant 0 : index
    %c0_204 = arith.constant 0 : index
    %195 = vector.load %arg20[%c3_202, %c0_203, %c0_204] : memref<5x10x8xbf16, #tpu.memory_space<vmem>>, vector<1x8x8xbf16>
    %196 = vector.shape_cast %195 : vector<1x8x8xbf16> to vector<8x8xbf16>
    %197 = vector.shape_cast %194 : vector<8x8xbf16> to vector<1x8x8xbf16>
    tpu.vector_store %arg20[%c3_202, %c0_203, %c0_204], %197 {strides = array<i32>} : memref<5x10x8xbf16, #tpu.memory_space<vmem>>, vector<1x8x8xbf16>,
    %c0_205 = arith.constant 0 : index
    %c0_206 = arith.constant 0 : index
    %c0_207 = arith.constant 0 : index
    %198 = vector.load %arg17[%c0_205, %c0_206, %c0_207] : memref<5x10x8xbf16, #tpu.memory_space<vmem>>, vector<4x8x8xbf16>
    %199 = vector.shape_cast %198 : vector<4x8x8xbf16> to vector<32x8xbf16>
    %c0_208 = arith.constant 0 : index
    %c0_209 = arith.constant 0 : index
    %c0_210 = arith.constant 0 : index
    %200 = vector.load %arg18[%c0_208, %c0_209, %c0_210] : memref<5x10x8xbf16, #tpu.memory_space<vmem>>, vector<4x8x8xbf16>
    %201 = vector.shape_cast %200 : vector<4x8x8xbf16> to vector<32x8xbf16>
    %c0_211 = arith.constant 0 : index
    %c2_212 = arith.constant 2 : index
    %c0_213 = arith.constant 0 : index
    %202 = vector.load %arg17[%c0_211, %c2_212, %c0_213] : memref<5x10x8xbf16, #tpu.memory_space<vmem>>, vector<4x8x8xbf16>
    %203 = vector.shape_cast %202 : vector<4x8x8xbf16> to vector<32x8xbf16>
    %c0_214 = arith.constant 0 : index
    %c0_215 = arith.constant 0 : index
    %c0_216 = arith.constant 0 : index
    %204 = vector.load %arg19[%c0_214, %c0_215, %c0_216] : memref<5x10x8xbf16, #tpu.memory_space<vmem>>, vector<4x8x8xbf16>
    %205 = vector.shape_cast %204 : vector<4x8x8xbf16> to vector<32x8xbf16>
    %c0_217 = arith.constant 0 : index
    %c0_218 = arith.constant 0 : index
    %c0_219 = arith.constant 0 : index
    %206 = vector.load %arg20[%c0_217, %c0_218, %c0_219] : memref<5x10x8xbf16, #tpu.memory_space<vmem>>, vector<4x8x8xbf16>
    %207 = vector.shape_cast %206 : vector<4x8x8xbf16> to vector<32x8xbf16>
    %c0_220 = arith.constant 0 : index
    %c2_221 = arith.constant 2 : index
    %c0_222 = arith.constant 0 : index
    %208 = vector.load %arg19[%c0_220, %c2_221, %c0_222] : memref<5x10x8xbf16, #tpu.memory_space<vmem>>, vector<4x8x8xbf16>
    %209 = vector.shape_cast %208 : vector<4x8x8xbf16> to vector<32x8xbf16>
    %c1_223 = arith.constant 1 : index
    %c0_224 = arith.constant 0 : index
    %c0_225 = arith.constant 0 : index
    %210 = vector.load %arg17[%c1_223, %c0_224, %c0_225] : memref<5x10x8xbf16, #tpu.memory_space<vmem>>, vector<4x8x8xbf16>
    %211 = vector.shape_cast %210 : vector<4x8x8xbf16> to vector<32x8xbf16>
    %c1_226 = arith.constant 1 : index
    %c0_227 = arith.constant 0 : index
    %c0_228 = arith.constant 0 : index
    %212 = vector.load %arg18[%c1_226, %c0_227, %c0_228] : memref<5x10x8xbf16, #tpu.memory_space<vmem>>, vector<4x8x8xbf16>
    %213 = vector.shape_cast %212 : vector<4x8x8xbf16> to vector<32x8xbf16>
    %c1_229 = arith.constant 1 : index
    %c2_230 = arith.constant 2 : index
    %c0_231 = arith.constant 0 : index
    %214 = vector.load %arg17[%c1_229, %c2_230, %c0_231] : memref<5x10x8xbf16, #tpu.memory_space<vmem>>, vector<4x8x8xbf16>
    %215 = vector.shape_cast %214 : vector<4x8x8xbf16> to vector<32x8xbf16>
    %216 = tpu.concatenate %199, %201, %203, %205, %207, %209, %211, %213, %215 in 1 : vector<32x8xbf16>, vector<32x8xbf16>, vector<32x8xbf16>, vector<32x8xbf16>, vector<32x8xbf16>, vector<32x8xbf16>, vector<32x8xbf16>, vector<32x8xbf16>, vector<32x8xbf16> -> vector<32x72xbf16>
    %c0_232 = arith.constant 0 : index
    %c0_233 = arith.constant 0 : index
    %217 = vector.load %arg4[%c0_232, %c0_233] : memref<72x16xbf16, #tpu.memory_space<vmem>>, vector<72x16xbf16>
    %cst_234 = arith.constant dense<0.000000e+00> : vector<32x16xf32>
    %218 = tpu.matmul %216, %217, %cst_234 {dimension_numbers = #tpu.dot_dimension_numbers<[1], [0], [0], [1], [0, 0, 1, 1], [], []>} : vector<32x72xbf16>, vector<72x16xbf16>, vector<32x16xf32> -> vector<32x16xf32>
    %c0_235 = arith.constant 0 : index
    %c0_236 = arith.constant 0 : index
    %219 = vector.load %arg5[%c0_235, %c0_236] : memref<1x16xf32, #tpu.memory_space<vmem>>, vector<1x16xf32>
    %220 = vector.broadcast %219 : vector<1x16xf32> to vector<32x16xf32>
    %221 = arith.addf %218, %220 : vector<32x16xf32>
    %cst_237 = arith.constant 0.000000e+00 : f32
    %222 = vector.broadcast %cst_237 : f32 to vector<32x16xf32>
    %223 = arith.maximumf %221, %222 : vector<32x16xf32>
    %224 = vector.extract_strided_slice %223 {offsets = [0, 0], sizes = [2, 16], strides = [1, 1]} : vector<32x16xf32> to vector<2x16xf32>
    %225 = vector.extract_strided_slice %223 {offsets = [2, 0], sizes = [2, 16], strides = [1, 1]} : vector<32x16xf32> to vector<2x16xf32>
    %226 = vector.extract_strided_slice %223 {offsets = [4, 0], sizes = [2, 16], strides = [1, 1]} : vector<32x16xf32> to vector<2x16xf32>
    %227 = vector.extract_strided_slice %223 {offsets = [6, 0], sizes = [2, 16], strides = [1, 1]} : vector<32x16xf32> to vector<2x16xf32>
    %228 = vector.extract_strided_slice %223 {offsets = [8, 0], sizes = [2, 16], strides = [1, 1]} : vector<32x16xf32> to vector<2x16xf32>
    %229 = vector.extract_strided_slice %223 {offsets = [10, 0], sizes = [2, 16], strides = [1, 1]} : vector<32x16xf32> to vector<2x16xf32>
    %230 = vector.extract_strided_slice %223 {offsets = [12, 0], sizes = [2, 16], strides = [1, 1]} : vector<32x16xf32> to vector<2x16xf32>
    %231 = vector.extract_strided_slice %223 {offsets = [14, 0], sizes = [2, 16], strides = [1, 1]} : vector<32x16xf32> to vector<2x16xf32>
    %232 = vector.extract_strided_slice %223 {offsets = [16, 0], sizes = [2, 16], strides = [1, 1]} : vector<32x16xf32> to vector<2x16xf32>
    %233 = vector.extract_strided_slice %223 {offsets = [18, 0], sizes = [2, 16], strides = [1, 1]} : vector<32x16xf32> to vector<2x16xf32>
    %234 = vector.extract_strided_slice %223 {offsets = [20, 0], sizes = [2, 16], strides = [1, 1]} : vector<32x16xf32> to vector<2x16xf32>
    %235 = vector.extract_strided_slice %223 {offsets = [22, 0], sizes = [2, 16], strides = [1, 1]} : vector<32x16xf32> to vector<2x16xf32>
    %236 = vector.extract_strided_slice %223 {offsets = [24, 0], sizes = [2, 16], strides = [1, 1]} : vector<32x16xf32> to vector<2x16xf32>
    %237 = vector.extract_strided_slice %223 {offsets = [26, 0], sizes = [2, 16], strides = [1, 1]} : vector<32x16xf32> to vector<2x16xf32>
    %238 = vector.extract_strided_slice %223 {offsets = [28, 0], sizes = [2, 16], strides = [1, 1]} : vector<32x16xf32> to vector<2x16xf32>
    %239 = vector.extract_strided_slice %223 {offsets = [30, 0], sizes = [2, 16], strides = [1, 1]} : vector<32x16xf32> to vector<2x16xf32>
    %240 = tpu.concatenate %224, %225, %226, %227, %228, %229, %230, %231, %232, %233, %234, %235, %236, %237, %238, %239 in 1 : vector<2x16xf32>, vector<2x16xf32>, vector<2x16xf32>, vector<2x16xf32>, vector<2x16xf32>, vector<2x16xf32>, vector<2x16xf32>, vector<2x16xf32>, vector<2x16xf32>, vector<2x16xf32>, vector<2x16xf32>, vector<2x16xf32>, vector<2x16xf32>, vector<2x16xf32>, vector<2x16xf32>, vector<2x16xf32> -> vector<2x256xf32>
    %241 = arith.truncf %240 : vector<2x256xf32> to vector<2x256xbf16>
    %c0_238 = arith.constant 0 : index
    %c0_239 = arith.constant 0 : index
    %242 = vector.load %arg6[%c0_238, %c0_239] : memref<256x64xbf16, #tpu.memory_space<vmem>>, vector<256x64xbf16>
    %cst_240 = arith.constant dense<0.000000e+00> : vector<2x64xf32>
    %243 = tpu.matmul %241, %242, %cst_240 {dimension_numbers = #tpu.dot_dimension_numbers<[1], [0], [0], [1], [0, 0, 1, 1], [], []>} : vector<2x256xbf16>, vector<256x64xbf16>, vector<2x64xf32> -> vector<2x64xf32>
    %c0_241 = arith.constant 0 : index
    %c0_242 = arith.constant 0 : index
    %244 = vector.load %arg7[%c0_241, %c0_242] : memref<1x64xf32, #tpu.memory_space<vmem>>, vector<1x64xf32>
    %245 = vector.broadcast %244 : vector<1x64xf32> to vector<2x64xf32>
    %246 = arith.addf %243, %245 : vector<2x64xf32>
    %c0_243 = arith.constant 0 : index
    %c0_244 = arith.constant 0 : index
    %247 = vector.load %arg16[%c0_243, %c0_244] : memref<2x64xf32, #tpu.memory_space<vmem>>, vector<2x64xf32>
    tpu.vector_store %arg16[%c0_243, %c0_244], %246 {strides = array<i32>} : memref<2x64xf32, #tpu.memory_space<vmem>>, vector<2x64xf32>,
    %248 = vector.extract_strided_slice %246 {offsets = [0, 0], sizes = [2, 32], strides = [1, 1]} : vector<2x64xf32> to vector<2x32xf32>
    %249 = vector.extract_strided_slice %246 {offsets = [0, 32], sizes = [2, 32], strides = [1, 1]} : vector<2x64xf32> to vector<2x32xf32>
    %c0_245 = arith.constant 0 : index
    %c0_246 = arith.constant 0 : index
    %250 = vector.load %arg14[%c0_245, %c0_246] : memref<2x32xf32, #tpu.memory_space<vmem>>, vector<2x32xf32>
    %cst_247 = arith.constant 5.000000e-01 : f32
    %251 = vector.broadcast %cst_247 : f32 to vector<2x32xf32>
    %252 = arith.mulf %251, %249 : vector<2x32xf32>
    %253 = math.exp %252 : vector<2x32xf32>
    %254 = arith.mulf %250, %253 : vector<2x32xf32>
    %255 = arith.addf %248, %254 : vector<2x32xf32>
    %256 = arith.truncf %255 : vector<2x32xf32> to vector<2x32xbf16>
    %c0_248 = arith.constant 0 : index
    %c0_249 = arith.constant 0 : index
    %257 = vector.load %arg8[%c0_248, %c0_249] : memref<32x512xbf16, #tpu.memory_space<vmem>>, vector<32x512xbf16>
    %cst_250 = arith.constant dense<0.000000e+00> : vector<2x512xf32>
    %258 = tpu.matmul %256, %257, %cst_250 {dimension_numbers = #tpu.dot_dimension_numbers<[1], [0], [0], [1], [0, 0, 1, 1], [], []>} : vector<2x32xbf16>, vector<32x512xbf16>, vector<2x512xf32> -> vector<2x512xf32>
    %c0_251 = arith.constant 0 : index
    %c0_252 = arith.constant 0 : index
    %259 = vector.load %arg9[%c0_251, %c0_252] : memref<1x512xf32, #tpu.memory_space<vmem>>, vector<1x512xf32>
    %260 = vector.broadcast %259 : vector<1x512xf32> to vector<2x512xf32>
    %261 = arith.addf %258, %260 : vector<2x512xf32>
    %262 = arith.truncf %261 : vector<2x512xf32> to vector<2x512xbf16>
    %263 = vector.extract_strided_slice %262 {offsets = [0, 0], sizes = [2, 32], strides = [1, 1]} : vector<2x512xbf16> to vector<2x32xbf16>
    %c2_253 = arith.constant 2 : index
    %c4_254 = arith.constant 4 : index
    %c0_255 = arith.constant 0 : index
    %264 = vector.load %arg21[%c2_253, %c4_254, %c0_255] : memref<11x22x32xbf16, #tpu.memory_space<vmem>>, vector<1x2x32xbf16>
    %265 = vector.shape_cast %264 : vector<1x2x32xbf16> to vector<2x32xbf16>
    %266 = vector.shape_cast %263 : vector<2x32xbf16> to vector<1x2x32xbf16>
    tpu.vector_store %arg21[%c2_253, %c4_254, %c0_255], %266 {strides = array<i32>} : memref<11x22x32xbf16, #tpu.memory_space<vmem>>, vector<1x2x32xbf16>,
    %267 = vector.extract_strided_slice %262 {offsets = [0, 32], sizes = [2, 32], strides = [1, 1]} : vector<2x512xbf16> to vector<2x32xbf16>
    %c2_256 = arith.constant 2 : index
    %c8_257 = arith.constant 8 : index
    %c0_258 = arith.constant 0 : index
    %268 = vector.load %arg21[%c2_256, %c8_257, %c0_258] : memref<11x22x32xbf16, #tpu.memory_space<vmem>>, vector<1x2x32xbf16>
    %269 = vector.shape_cast %268 : vector<1x2x32xbf16> to vector<2x32xbf16>
    %270 = vector.shape_cast %267 : vector<2x32xbf16> to vector<1x2x32xbf16>
    tpu.vector_store %arg21[%c2_256, %c8_257, %c0_258], %270 {strides = array<i32>} : memref<11x22x32xbf16, #tpu.memory_space<vmem>>, vector<1x2x32xbf16>,
    %271 = vector.extract_strided_slice %262 {offsets = [0, 64], sizes = [2, 32], strides = [1, 1]} : vector<2x512xbf16> to vector<2x32xbf16>
    %c2_259 = arith.constant 2 : index
    %c12_260 = arith.constant 12 : index
    %c0_261 = arith.constant 0 : index
    %272 = vector.load %arg21[%c2_259, %c12_260, %c0_261] : memref<11x22x32xbf16, #tpu.memory_space<vmem>>, vector<1x2x32xbf16>
    %273 = vector.shape_cast %272 : vector<1x2x32xbf16> to vector<2x32xbf16>
    %274 = vector.shape_cast %271 : vector<2x32xbf16> to vector<1x2x32xbf16>
    tpu.vector_store %arg21[%c2_259, %c12_260, %c0_261], %274 {strides = array<i32>} : memref<11x22x32xbf16, #tpu.memory_space<vmem>>, vector<1x2x32xbf16>,
    %275 = vector.extract_strided_slice %262 {offsets = [0, 96], sizes = [2, 32], strides = [1, 1]} : vector<2x512xbf16> to vector<2x32xbf16>
    %c2_262 = arith.constant 2 : index
    %c16 = arith.constant 16 : index
    %c0_263 = arith.constant 0 : index
    %276 = vector.load %arg21[%c2_262, %c16, %c0_263] : memref<11x22x32xbf16, #tpu.memory_space<vmem>>, vector<1x2x32xbf16>
    %277 = vector.shape_cast %276 : vector<1x2x32xbf16> to vector<2x32xbf16>
    %278 = vector.shape_cast %275 : vector<2x32xbf16> to vector<1x2x32xbf16>
    tpu.vector_store %arg21[%c2_262, %c16, %c0_263], %278 {strides = array<i32>} : memref<11x22x32xbf16, #tpu.memory_space<vmem>>, vector<1x2x32xbf16>,
    %279 = vector.extract_strided_slice %262 {offsets = [0, 128], sizes = [2, 32], strides = [1, 1]} : vector<2x512xbf16> to vector<2x32xbf16>
    %c4_264 = arith.constant 4 : index
    %c4_265 = arith.constant 4 : index
    %c0_266 = arith.constant 0 : index
    %280 = vector.load %arg21[%c4_264, %c4_265, %c0_266] : memref<11x22x32xbf16, #tpu.memory_space<vmem>>, vector<1x2x32xbf16>
    %281 = vector.shape_cast %280 : vector<1x2x32xbf16> to vector<2x32xbf16>
    %282 = vector.shape_cast %279 : vector<2x32xbf16> to vector<1x2x32xbf16>
    tpu.vector_store %arg21[%c4_264, %c4_265, %c0_266], %282 {strides = array<i32>} : memref<11x22x32xbf16, #tpu.memory_space<vmem>>, vector<1x2x32xbf16>,
    %283 = vector.extract_strided_slice %262 {offsets = [0, 160], sizes = [2, 32], strides = [1, 1]} : vector<2x512xbf16> to vector<2x32xbf16>
    %c4_267 = arith.constant 4 : index
    %c8_268 = arith.constant 8 : index
    %c0_269 = arith.constant 0 : index
    %284 = vector.load %arg21[%c4_267, %c8_268, %c0_269] : memref<11x22x32xbf16, #tpu.memory_space<vmem>>, vector<1x2x32xbf16>
    %285 = vector.shape_cast %284 : vector<1x2x32xbf16> to vector<2x32xbf16>
    %286 = vector.shape_cast %283 : vector<2x32xbf16> to vector<1x2x32xbf16>
    tpu.vector_store %arg21[%c4_267, %c8_268, %c0_269], %286 {strides = array<i32>} : memref<11x22x32xbf16, #tpu.memory_space<vmem>>, vector<1x2x32xbf16>,
    %287 = vector.extract_strided_slice %262 {offsets = [0, 192], sizes = [2, 32], strides = [1, 1]} : vector<2x512xbf16> to vector<2x32xbf16>
    %c4_270 = arith.constant 4 : index
    %c12_271 = arith.constant 12 : index
    %c0_272 = arith.constant 0 : index
    %288 = vector.load %arg21[%c4_270, %c12_271, %c0_272] : memref<11x22x32xbf16, #tpu.memory_space<vmem>>, vector<1x2x32xbf16>
    %289 = vector.shape_cast %288 : vector<1x2x32xbf16> to vector<2x32xbf16>
    %290 = vector.shape_cast %287 : vector<2x32xbf16> to vector<1x2x32xbf16>
    tpu.vector_store %arg21[%c4_270, %c12_271, %c0_272], %290 {strides = array<i32>} : memref<11x22x32xbf16, #tpu.memory_space<vmem>>, vector<1x2x32xbf16>,
    %291 = vector.extract_strided_slice %262 {offsets = [0, 224], sizes = [2, 32], strides = [1, 1]} : vector<2x512xbf16> to vector<2x32xbf16>
    %c4_273 = arith.constant 4 : index
    %c16_274 = arith.constant 16 : index
    %c0_275 = arith.constant 0 : index
    %292 = vector.load %arg21[%c4_273, %c16_274, %c0_275] : memref<11x22x32xbf16, #tpu.memory_space<vmem>>, vector<1x2x32xbf16>
    %293 = vector.shape_cast %292 : vector<1x2x32xbf16> to vector<2x32xbf16>
    %294 = vector.shape_cast %291 : vector<2x32xbf16> to vector<1x2x32xbf16>
    tpu.vector_store %arg21[%c4_273, %c16_274, %c0_275], %294 {strides = array<i32>} : memref<11x22x32xbf16, #tpu.memory_space<vmem>>, vector<1x2x32xbf16>,
    %295 = vector.extract_strided_slice %262 {offsets = [0, 256], sizes = [2, 32], strides = [1, 1]} : vector<2x512xbf16> to vector<2x32xbf16>
    %c6_276 = arith.constant 6 : index
    %c4_277 = arith.constant 4 : index
    %c0_278 = arith.constant 0 : index
    %296 = vector.load %arg21[%c6_276, %c4_277, %c0_278] : memref<11x22x32xbf16, #tpu.memory_space<vmem>>, vector<1x2x32xbf16>
    %297 = vector.shape_cast %296 : vector<1x2x32xbf16> to vector<2x32xbf16>
    %298 = vector.shape_cast %295 : vector<2x32xbf16> to vector<1x2x32xbf16>
    tpu.vector_store %arg21[%c6_276, %c4_277, %c0_278], %298 {strides = array<i32>} : memref<11x22x32xbf16, #tpu.memory_space<vmem>>, vector<1x2x32xbf16>,
    %299 = vector.extract_strided_slice %262 {offsets = [0, 288], sizes = [2, 32], strides = [1, 1]} : vector<2x512xbf16> to vector<2x32xbf16>
    %c6_279 = arith.constant 6 : index
    %c8_280 = arith.constant 8 : index
    %c0_281 = arith.constant 0 : index
    %300 = vector.load %arg21[%c6_279, %c8_280, %c0_281] : memref<11x22x32xbf16, #tpu.memory_space<vmem>>, vector<1x2x32xbf16>
    %301 = vector.shape_cast %300 : vector<1x2x32xbf16> to vector<2x32xbf16>
    %302 = vector.shape_cast %299 : vector<2x32xbf16> to vector<1x2x32xbf16>
    tpu.vector_store %arg21[%c6_279, %c8_280, %c0_281], %302 {strides = array<i32>} : memref<11x22x32xbf16, #tpu.memory_space<vmem>>, vector<1x2x32xbf16>,
    %303 = vector.extract_strided_slice %262 {offsets = [0, 320], sizes = [2, 32], strides = [1, 1]} : vector<2x512xbf16> to vector<2x32xbf16>
    %c6_282 = arith.constant 6 : index
    %c12_283 = arith.constant 12 : index
    %c0_284 = arith.constant 0 : index
    %304 = vector.load %arg21[%c6_282, %c12_283, %c0_284] : memref<11x22x32xbf16, #tpu.memory_space<vmem>>, vector<1x2x32xbf16>
    %305 = vector.shape_cast %304 : vector<1x2x32xbf16> to vector<2x32xbf16>
    %306 = vector.shape_cast %303 : vector<2x32xbf16> to vector<1x2x32xbf16>
    tpu.vector_store %arg21[%c6_282, %c12_283, %c0_284], %306 {strides = array<i32>} : memref<11x22x32xbf16, #tpu.memory_space<vmem>>, vector<1x2x32xbf16>,
    %307 = vector.extract_strided_slice %262 {offsets = [0, 352], sizes = [2, 32], strides = [1, 1]} : vector<2x512xbf16> to vector<2x32xbf16>
    %c6_285 = arith.constant 6 : index
    %c16_286 = arith.constant 16 : index
    %c0_287 = arith.constant 0 : index
    %308 = vector.load %arg21[%c6_285, %c16_286, %c0_287] : memref<11x22x32xbf16, #tpu.memory_space<vmem>>, vector<1x2x32xbf16>
    %309 = vector.shape_cast %308 : vector<1x2x32xbf16> to vector<2x32xbf16>
    %310 = vector.shape_cast %307 : vector<2x32xbf16> to vector<1x2x32xbf16>
    tpu.vector_store %arg21[%c6_285, %c16_286, %c0_287], %310 {strides = array<i32>} : memref<11x22x32xbf16, #tpu.memory_space<vmem>>, vector<1x2x32xbf16>,
    %311 = vector.extract_strided_slice %262 {offsets = [0, 384], sizes = [2, 32], strides = [1, 1]} : vector<2x512xbf16> to vector<2x32xbf16>
    %c8_288 = arith.constant 8 : index
    %c4_289 = arith.constant 4 : index
    %c0_290 = arith.constant 0 : index
    %312 = vector.load %arg21[%c8_288, %c4_289, %c0_290] : memref<11x22x32xbf16, #tpu.memory_space<vmem>>, vector<1x2x32xbf16>
    %313 = vector.shape_cast %312 : vector<1x2x32xbf16> to vector<2x32xbf16>
    %314 = vector.shape_cast %311 : vector<2x32xbf16> to vector<1x2x32xbf16>
    tpu.vector_store %arg21[%c8_288, %c4_289, %c0_290], %314 {strides = array<i32>} : memref<11x22x32xbf16, #tpu.memory_space<vmem>>, vector<1x2x32xbf16>,
    %315 = vector.extract_strided_slice %262 {offsets = [0, 416], sizes = [2, 32], strides = [1, 1]} : vector<2x512xbf16> to vector<2x32xbf16>
    %c8_291 = arith.constant 8 : index
    %c8_292 = arith.constant 8 : index
    %c0_293 = arith.constant 0 : index
    %316 = vector.load %arg21[%c8_291, %c8_292, %c0_293] : memref<11x22x32xbf16, #tpu.memory_space<vmem>>, vector<1x2x32xbf16>
    %317 = vector.shape_cast %316 : vector<1x2x32xbf16> to vector<2x32xbf16>
    %318 = vector.shape_cast %315 : vector<2x32xbf16> to vector<1x2x32xbf16>
    tpu.vector_store %arg21[%c8_291, %c8_292, %c0_293], %318 {strides = array<i32>} : memref<11x22x32xbf16, #tpu.memory_space<vmem>>, vector<1x2x32xbf16>,
    %319 = vector.extract_strided_slice %262 {offsets = [0, 448], sizes = [2, 32], strides = [1, 1]} : vector<2x512xbf16> to vector<2x32xbf16>
    %c8_294 = arith.constant 8 : index
    %c12_295 = arith.constant 12 : index
    %c0_296 = arith.constant 0 : index
    %320 = vector.load %arg21[%c8_294, %c12_295, %c0_296] : memref<11x22x32xbf16, #tpu.memory_space<vmem>>, vector<1x2x32xbf16>
    %321 = vector.shape_cast %320 : vector<1x2x32xbf16> to vector<2x32xbf16>
    %322 = vector.shape_cast %319 : vector<2x32xbf16> to vector<1x2x32xbf16>
    tpu.vector_store %arg21[%c8_294, %c12_295, %c0_296], %322 {strides = array<i32>} : memref<11x22x32xbf16, #tpu.memory_space<vmem>>, vector<1x2x32xbf16>,
    %323 = vector.extract_strided_slice %262 {offsets = [0, 480], sizes = [2, 32], strides = [1, 1]} : vector<2x512xbf16> to vector<2x32xbf16>
    %c8_297 = arith.constant 8 : index
    %c16_298 = arith.constant 16 : index
    %c0_299 = arith.constant 0 : index
    %324 = vector.load %arg21[%c8_297, %c16_298, %c0_299] : memref<11x22x32xbf16, #tpu.memory_space<vmem>>, vector<1x2x32xbf16>
    %325 = vector.shape_cast %324 : vector<1x2x32xbf16> to vector<2x32xbf16>
    %326 = vector.shape_cast %323 : vector<2x32xbf16> to vector<1x2x32xbf16>
    tpu.vector_store %arg21[%c8_297, %c16_298, %c0_299], %326 {strides = array<i32>} : memref<11x22x32xbf16, #tpu.memory_space<vmem>>, vector<1x2x32xbf16>,
    %c0_300 = arith.constant 0 : index
    %c0_301 = arith.constant 0 : index
    %c0_302 = arith.constant 0 : index
    %327 = vector.load %arg21[%c0_300, %c0_301, %c0_302] : memref<11x22x32xbf16, #tpu.memory_space<vmem>>, vector<8x16x32xbf16>
    %328 = vector.shape_cast %327 : vector<8x16x32xbf16> to vector<128x32xbf16>
    %c0_303 = arith.constant 0 : index
    %c2_304 = arith.constant 2 : index
    %c0_305 = arith.constant 0 : index
    %329 = vector.load %arg21[%c0_303, %c2_304, %c0_305] : memref<11x22x32xbf16, #tpu.memory_space<vmem>>, vector<8x16x32xbf16>
    %330 = vector.shape_cast %329 : vector<8x16x32xbf16> to vector<128x32xbf16>
    %c0_306 = arith.constant 0 : index
    %c4_307 = arith.constant 4 : index
    %c0_308 = arith.constant 0 : index
    %331 = vector.load %arg21[%c0_306, %c4_307, %c0_308] : memref<11x22x32xbf16, #tpu.memory_space<vmem>>, vector<8x16x32xbf16>
    %332 = vector.shape_cast %331 : vector<8x16x32xbf16> to vector<128x32xbf16>
    %c0_309 = arith.constant 0 : index
    %c6_310 = arith.constant 6 : index
    %c0_311 = arith.constant 0 : index
    %333 = vector.load %arg21[%c0_309, %c6_310, %c0_311] : memref<11x22x32xbf16, #tpu.memory_space<vmem>>, vector<8x16x32xbf16>
    %334 = vector.shape_cast %333 : vector<8x16x32xbf16> to vector<128x32xbf16>
    %c1_312 = arith.constant 1 : index
    %c0_313 = arith.constant 0 : index
    %c0_314 = arith.constant 0 : index
    %335 = vector.load %arg21[%c1_312, %c0_313, %c0_314] : memref<11x22x32xbf16, #tpu.memory_space<vmem>>, vector<8x16x32xbf16>
    %336 = vector.shape_cast %335 : vector<8x16x32xbf16> to vector<128x32xbf16>
    %c1_315 = arith.constant 1 : index
    %c2_316 = arith.constant 2 : index
    %c0_317 = arith.constant 0 : index
    %337 = vector.load %arg21[%c1_315, %c2_316, %c0_317] : memref<11x22x32xbf16, #tpu.memory_space<vmem>>, vector<8x16x32xbf16>
    %338 = vector.shape_cast %337 : vector<8x16x32xbf16> to vector<128x32xbf16>
    %c1_318 = arith.constant 1 : index
    %c4_319 = arith.constant 4 : index
    %c0_320 = arith.constant 0 : index
    %339 = vector.load %arg21[%c1_318, %c4_319, %c0_320] : memref<11x22x32xbf16, #tpu.memory_space<vmem>>, vector<8x16x32xbf16>
    %340 = vector.shape_cast %339 : vector<8x16x32xbf16> to vector<128x32xbf16>
    %c1_321 = arith.constant 1 : index
    %c6_322 = arith.constant 6 : index
    %c0_323 = arith.constant 0 : index
    %341 = vector.load %arg21[%c1_321, %c6_322, %c0_323] : memref<11x22x32xbf16, #tpu.memory_space<vmem>>, vector<8x16x32xbf16>
    %342 = vector.shape_cast %341 : vector<8x16x32xbf16> to vector<128x32xbf16>
    %c2_324 = arith.constant 2 : index
    %c0_325 = arith.constant 0 : index
    %c0_326 = arith.constant 0 : index
    %343 = vector.load %arg21[%c2_324, %c0_325, %c0_326] : memref<11x22x32xbf16, #tpu.memory_space<vmem>>, vector<8x16x32xbf16>
    %344 = vector.shape_cast %343 : vector<8x16x32xbf16> to vector<128x32xbf16>
    %c2_327 = arith.constant 2 : index
    %c2_328 = arith.constant 2 : index
    %c0_329 = arith.constant 0 : index
    %345 = vector.load %arg21[%c2_327, %c2_328, %c0_329] : memref<11x22x32xbf16, #tpu.memory_space<vmem>>, vector<8x16x32xbf16>
    %346 = vector.shape_cast %345 : vector<8x16x32xbf16> to vector<128x32xbf16>
    %c2_330 = arith.constant 2 : index
    %c4_331 = arith.constant 4 : index
    %c0_332 = arith.constant 0 : index
    %347 = vector.load %arg21[%c2_330, %c4_331, %c0_332] : memref<11x22x32xbf16, #tpu.memory_space<vmem>>, vector<8x16x32xbf16>
    %348 = vector.shape_cast %347 : vector<8x16x32xbf16> to vector<128x32xbf16>
    %c2_333 = arith.constant 2 : index
    %c6_334 = arith.constant 6 : index
    %c0_335 = arith.constant 0 : index
    %349 = vector.load %arg21[%c2_333, %c6_334, %c0_335] : memref<11x22x32xbf16, #tpu.memory_space<vmem>>, vector<8x16x32xbf16>
    %350 = vector.shape_cast %349 : vector<8x16x32xbf16> to vector<128x32xbf16>
    %c3_336 = arith.constant 3 : index
    %c0_337 = arith.constant 0 : index
    %c0_338 = arith.constant 0 : index
    %351 = vector.load %arg21[%c3_336, %c0_337, %c0_338] : memref<11x22x32xbf16, #tpu.memory_space<vmem>>, vector<8x16x32xbf16>
    %352 = vector.shape_cast %351 : vector<8x16x32xbf16> to vector<128x32xbf16>
    %c3_339 = arith.constant 3 : index
    %c2_340 = arith.constant 2 : index
    %c0_341 = arith.constant 0 : index
    %353 = vector.load %arg21[%c3_339, %c2_340, %c0_341] : memref<11x22x32xbf16, #tpu.memory_space<vmem>>, vector<8x16x32xbf16>
    %354 = vector.shape_cast %353 : vector<8x16x32xbf16> to vector<128x32xbf16>
    %c3_342 = arith.constant 3 : index
    %c4_343 = arith.constant 4 : index
    %c0_344 = arith.constant 0 : index
    %355 = vector.load %arg21[%c3_342, %c4_343, %c0_344] : memref<11x22x32xbf16, #tpu.memory_space<vmem>>, vector<8x16x32xbf16>
    %356 = vector.shape_cast %355 : vector<8x16x32xbf16> to vector<128x32xbf16>
    %c3_345 = arith.constant 3 : index
    %c6_346 = arith.constant 6 : index
    %c0_347 = arith.constant 0 : index
    %357 = vector.load %arg21[%c3_345, %c6_346, %c0_347] : memref<11x22x32xbf16, #tpu.memory_space<vmem>>, vector<8x16x32xbf16>
    %358 = vector.shape_cast %357 : vector<8x16x32xbf16> to vector<128x32xbf16>
    %359 = tpu.concatenate %328, %330, %332, %334, %336, %338, %340, %342, %344, %346, %348, %350, %352, %354, %356, %358 in 1 : vector<128x32xbf16>, vector<128x32xbf16>, vector<128x32xbf16>, vector<128x32xbf16>, vector<128x32xbf16>, vector<128x32xbf16>, vector<128x32xbf16>, vector<128x32xbf16>, vector<128x32xbf16>, vector<128x32xbf16>, vector<128x32xbf16>, vector<128x32xbf16>, vector<128x32xbf16>, vector<128x32xbf16>, vector<128x32xbf16>, vector<128x32xbf16> -> vector<128x512xbf16>
    %c0_348 = arith.constant 0 : index
    %c0_349 = arith.constant 0 : index
    %360 = vector.load %arg10[%c0_348, %c0_349] : memref<512x8xbf16, #tpu.memory_space<vmem>>, vector<512x8xbf16>
    %cst_350 = arith.constant dense<0.000000e+00> : vector<128x8xf32>
    %361 = tpu.matmul %359, %360, %cst_350 {dimension_numbers = #tpu.dot_dimension_numbers<[1], [0], [0], [1], [0, 0, 1, 1], [], []>} : vector<128x512xbf16>, vector<512x8xbf16>, vector<128x8xf32> -> vector<128x8xf32>
    %c0_351 = arith.constant 0 : index
    %c0_352 = arith.constant 0 : index
    %362 = vector.load %arg11[%c0_351, %c0_352] : memref<1x8xf32, #tpu.memory_space<vmem>>, vector<1x8xf32>
    %363 = vector.broadcast %362 : vector<1x8xf32> to vector<128x8xf32>
    %364 = arith.addf %361, %363 : vector<128x8xf32>
    %cst_353 = arith.constant 0.000000e+00 : f32
    %365 = vector.broadcast %cst_353 : f32 to vector<128x8xf32>
    %366 = arith.maximumf %364, %365 : vector<128x8xf32>
    %367 = arith.truncf %366 : vector<128x8xf32> to vector<128x8xbf16>
    %368 = vector.extract_strided_slice %367 {offsets = [0, 0], sizes = [16, 8], strides = [1, 1]} : vector<128x8xbf16> to vector<16x8xbf16>
    %c1_354 = arith.constant 1 : index
    %c2_355 = arith.constant 2 : index
    %c0_356 = arith.constant 0 : index
    %369 = vector.load %arg22[%c1_354, %c2_355, %c0_356] : memref<10x20x8xbf16, #tpu.memory_space<vmem>>, vector<1x16x8xbf16>
    %370 = vector.shape_cast %369 : vector<1x16x8xbf16> to vector<16x8xbf16>
    %371 = vector.shape_cast %368 : vector<16x8xbf16> to vector<1x16x8xbf16>
    tpu.vector_store %arg22[%c1_354, %c2_355, %c0_356], %371 {strides = array<i32>} : memref<10x20x8xbf16, #tpu.memory_space<vmem>>, vector<1x16x8xbf16>,
    %372 = vector.extract_strided_slice %367 {offsets = [16, 0], sizes = [16, 8], strides = [1, 1]} : vector<128x8xbf16> to vector<16x8xbf16>
    %c2_357 = arith.constant 2 : index
    %c2_358 = arith.constant 2 : index
    %c0_359 = arith.constant 0 : index
    %373 = vector.load %arg22[%c2_357, %c2_358, %c0_359] : memref<10x20x8xbf16, #tpu.memory_space<vmem>>, vector<1x16x8xbf16>
    %374 = vector.shape_cast %373 : vector<1x16x8xbf16> to vector<16x8xbf16>
    %375 = vector.shape_cast %372 : vector<16x8xbf16> to vector<1x16x8xbf16>
    tpu.vector_store %arg22[%c2_357, %c2_358, %c0_359], %375 {strides = array<i32>} : memref<10x20x8xbf16, #tpu.memory_space<vmem>>, vector<1x16x8xbf16>,
    %376 = vector.extract_strided_slice %367 {offsets = [32, 0], sizes = [16, 8], strides = [1, 1]} : vector<128x8xbf16> to vector<16x8xbf16>
    %c3_360 = arith.constant 3 : index
    %c2_361 = arith.constant 2 : index
    %c0_362 = arith.constant 0 : index
    %377 = vector.load %arg22[%c3_360, %c2_361, %c0_362] : memref<10x20x8xbf16, #tpu.memory_space<vmem>>, vector<1x16x8xbf16>
    %378 = vector.shape_cast %377 : vector<1x16x8xbf16> to vector<16x8xbf16>
    %379 = vector.shape_cast %376 : vector<16x8xbf16> to vector<1x16x8xbf16>
    tpu.vector_store %arg22[%c3_360, %c2_361, %c0_362], %379 {strides = array<i32>} : memref<10x20x8xbf16, #tpu.memory_space<vmem>>, vector<1x16x8xbf16>,
    %380 = vector.extract_strided_slice %367 {offsets = [48, 0], sizes = [16, 8], strides = [1, 1]} : vector<128x8xbf16> to vector<16x8xbf16>
    %c4_363 = arith.constant 4 : index
    %c2_364 = arith.constant 2 : index
    %c0_365 = arith.constant 0 : index
    %381 = vector.load %arg22[%c4_363, %c2_364, %c0_365] : memref<10x20x8xbf16, #tpu.memory_space<vmem>>, vector<1x16x8xbf16>
    %382 = vector.shape_cast %381 : vector<1x16x8xbf16> to vector<16x8xbf16>
    %383 = vector.shape_cast %380 : vector<16x8xbf16> to vector<1x16x8xbf16>
    tpu.vector_store %arg22[%c4_363, %c2_364, %c0_365], %383 {strides = array<i32>} : memref<10x20x8xbf16, #tpu.memory_space<vmem>>, vector<1x16x8xbf16>,
    %384 = vector.extract_strided_slice %367 {offsets = [64, 0], sizes = [16, 8], strides = [1, 1]} : vector<128x8xbf16> to vector<16x8xbf16>
    %c5_366 = arith.constant 5 : index
    %c2_367 = arith.constant 2 : index
    %c0_368 = arith.constant 0 : index
    %385 = vector.load %arg22[%c5_366, %c2_367, %c0_368] : memref<10x20x8xbf16, #tpu.memory_space<vmem>>, vector<1x16x8xbf16>
    %386 = vector.shape_cast %385 : vector<1x16x8xbf16> to vector<16x8xbf16>
    %387 = vector.shape_cast %384 : vector<16x8xbf16> to vector<1x16x8xbf16>
    tpu.vector_store %arg22[%c5_366, %c2_367, %c0_368], %387 {strides = array<i32>} : memref<10x20x8xbf16, #tpu.memory_space<vmem>>, vector<1x16x8xbf16>,
    %388 = vector.extract_strided_slice %367 {offsets = [80, 0], sizes = [16, 8], strides = [1, 1]} : vector<128x8xbf16> to vector<16x8xbf16>
    %c6_369 = arith.constant 6 : index
    %c2_370 = arith.constant 2 : index
    %c0_371 = arith.constant 0 : index
    %389 = vector.load %arg22[%c6_369, %c2_370, %c0_371] : memref<10x20x8xbf16, #tpu.memory_space<vmem>>, vector<1x16x8xbf16>
    %390 = vector.shape_cast %389 : vector<1x16x8xbf16> to vector<16x8xbf16>
    %391 = vector.shape_cast %388 : vector<16x8xbf16> to vector<1x16x8xbf16>
    tpu.vector_store %arg22[%c6_369, %c2_370, %c0_371], %391 {strides = array<i32>} : memref<10x20x8xbf16, #tpu.memory_space<vmem>>, vector<1x16x8xbf16>,
    %392 = vector.extract_strided_slice %367 {offsets = [96, 0], sizes = [16, 8], strides = [1, 1]} : vector<128x8xbf16> to vector<16x8xbf16>
    %c7_372 = arith.constant 7 : index
    %c2_373 = arith.constant 2 : index
    %c0_374 = arith.constant 0 : index
    %393 = vector.load %arg22[%c7_372, %c2_373, %c0_374] : memref<10x20x8xbf16, #tpu.memory_space<vmem>>, vector<1x16x8xbf16>
    %394 = vector.shape_cast %393 : vector<1x16x8xbf16> to vector<16x8xbf16>
    %395 = vector.shape_cast %392 : vector<16x8xbf16> to vector<1x16x8xbf16>
    tpu.vector_store %arg22[%c7_372, %c2_373, %c0_374], %395 {strides = array<i32>} : memref<10x20x8xbf16, #tpu.memory_space<vmem>>, vector<1x16x8xbf16>,
    %396 = vector.extract_strided_slice %367 {offsets = [112, 0], sizes = [16, 8], strides = [1, 1]} : vector<128x8xbf16> to vector<16x8xbf16>
    %c8_375 = arith.constant 8 : index
    %c2_376 = arith.constant 2 : index
    %c0_377 = arith.constant 0 : index
    %397 = vector.load %arg22[%c8_375, %c2_376, %c0_377] : memref<10x20x8xbf16, #tpu.memory_space<vmem>>, vector<1x16x8xbf16>
    %398 = vector.shape_cast %397 : vector<1x16x8xbf16> to vector<16x8xbf16>
    %399 = vector.shape_cast %396 : vector<16x8xbf16> to vector<1x16x8xbf16>
    tpu.vector_store %arg22[%c8_375, %c2_376, %c0_377], %399 {strides = array<i32>} : memref<10x20x8xbf16, #tpu.memory_space<vmem>>, vector<1x16x8xbf16>,
    %c0_378 = arith.constant 0 : index
    %c0_379 = arith.constant 0 : index
    %c0_380 = arith.constant 0 : index
    %400 = vector.load %arg22[%c0_378, %c0_379, %c0_380] : memref<10x20x8xbf16, #tpu.memory_space<vmem>>, vector<8x16x8xbf16>
    %401 = vector.shape_cast %400 : vector<8x16x8xbf16> to vector<128x8xbf16>
    %c0_381 = arith.constant 0 : index
    %c2_382 = arith.constant 2 : index
    %c0_383 = arith.constant 0 : index
    %402 = vector.load %arg22[%c0_381, %c2_382, %c0_383] : memref<10x20x8xbf16, #tpu.memory_space<vmem>>, vector<8x16x8xbf16>
    %403 = vector.shape_cast %402 : vector<8x16x8xbf16> to vector<128x8xbf16>
    %c0_384 = arith.constant 0 : index
    %c4_385 = arith.constant 4 : index
    %c0_386 = arith.constant 0 : index
    %404 = vector.load %arg22[%c0_384, %c4_385, %c0_386] : memref<10x20x8xbf16, #tpu.memory_space<vmem>>, vector<8x16x8xbf16>
    %405 = vector.shape_cast %404 : vector<8x16x8xbf16> to vector<128x8xbf16>
    %c1_387 = arith.constant 1 : index
    %c0_388 = arith.constant 0 : index
    %c0_389 = arith.constant 0 : index
    %406 = vector.load %arg22[%c1_387, %c0_388, %c0_389] : memref<10x20x8xbf16, #tpu.memory_space<vmem>>, vector<8x16x8xbf16>
    %407 = vector.shape_cast %406 : vector<8x16x8xbf16> to vector<128x8xbf16>
    %c1_390 = arith.constant 1 : index
    %c2_391 = arith.constant 2 : index
    %c0_392 = arith.constant 0 : index
    %408 = vector.load %arg22[%c1_390, %c2_391, %c0_392] : memref<10x20x8xbf16, #tpu.memory_space<vmem>>, vector<8x16x8xbf16>
    %409 = vector.shape_cast %408 : vector<8x16x8xbf16> to vector<128x8xbf16>
    %c1_393 = arith.constant 1 : index
    %c4_394 = arith.constant 4 : index
    %c0_395 = arith.constant 0 : index
    %410 = vector.load %arg22[%c1_393, %c4_394, %c0_395] : memref<10x20x8xbf16, #tpu.memory_space<vmem>>, vector<8x16x8xbf16>
    %411 = vector.shape_cast %410 : vector<8x16x8xbf16> to vector<128x8xbf16>
    %c2_396 = arith.constant 2 : index
    %c0_397 = arith.constant 0 : index
    %c0_398 = arith.constant 0 : index
    %412 = vector.load %arg22[%c2_396, %c0_397, %c0_398] : memref<10x20x8xbf16, #tpu.memory_space<vmem>>, vector<8x16x8xbf16>
    %413 = vector.shape_cast %412 : vector<8x16x8xbf16> to vector<128x8xbf16>
    %c2_399 = arith.constant 2 : index
    %c2_400 = arith.constant 2 : index
    %c0_401 = arith.constant 0 : index
    %414 = vector.load %arg22[%c2_399, %c2_400, %c0_401] : memref<10x20x8xbf16, #tpu.memory_space<vmem>>, vector<8x16x8xbf16>
    %415 = vector.shape_cast %414 : vector<8x16x8xbf16> to vector<128x8xbf16>
    %c2_402 = arith.constant 2 : index
    %c4_403 = arith.constant 4 : index
    %c0_404 = arith.constant 0 : index
    %416 = vector.load %arg22[%c2_402, %c4_403, %c0_404] : memref<10x20x8xbf16, #tpu.memory_space<vmem>>, vector<8x16x8xbf16>
    %417 = vector.shape_cast %416 : vector<8x16x8xbf16> to vector<128x8xbf16>
    %418 = tpu.concatenate %401, %403, %405, %407, %409, %411, %413, %415, %417 in 1 : vector<128x8xbf16>, vector<128x8xbf16>, vector<128x8xbf16>, vector<128x8xbf16>, vector<128x8xbf16>, vector<128x8xbf16>, vector<128x8xbf16>, vector<128x8xbf16>, vector<128x8xbf16> -> vector<128x72xbf16>
    %c0_405 = arith.constant 0 : index
    %c0_406 = arith.constant 0 : index
    %419 = vector.load %arg12[%c0_405, %c0_406] : memref<72x16xbf16, #tpu.memory_space<vmem>>, vector<72x16xbf16>
    %cst_407 = arith.constant dense<0.000000e+00> : vector<128x16xf32>
    %420 = tpu.matmul %418, %419, %cst_407 {dimension_numbers = #tpu.dot_dimension_numbers<[1], [0], [0], [1], [0, 0, 1, 1], [], []>} : vector<128x72xbf16>, vector<72x16xbf16>, vector<128x16xf32> -> vector<128x16xf32>
    %c0_408 = arith.constant 0 : index
    %c0_409 = arith.constant 0 : index
    %421 = vector.load %arg13[%c0_408, %c0_409] : memref<1x16xf32, #tpu.memory_space<vmem>>, vector<1x16xf32>
    %422 = vector.broadcast %421 : vector<1x16xf32> to vector<128x16xf32>
    %423 = arith.addf %420, %422 : vector<128x16xf32>
    %cst_410 = arith.constant 0.000000e+00 : f32
    %424 = vector.broadcast %cst_410 : f32 to vector<128x16xf32>
    %425 = arith.subf %424, %423 : vector<128x16xf32>
    %426 = math.exp %425 : vector<128x16xf32>
    %cst_411 = arith.constant 1.000000e+00 : f32
    %427 = vector.broadcast %cst_411 : f32 to vector<128x16xf32>
    %428 = arith.addf %427, %426 : vector<128x16xf32>
    %429 = tpu.reciprocal %428 {approx = true} : vector<128x16xf32> -> vector<128x16xf32>
    %c0_412 = arith.constant 0 : index
    %c0_413 = arith.constant 0 : index
    %430 = vector.load %arg15[%c0_412, %c0_413] : memref<128x16xf32, #tpu.memory_space<vmem>>, vector<128x16xf32>
    tpu.vector_store %arg15[%c0_412, %c0_413], %429 {strides = array<i32>} : memref<128x16xf32, #tpu.memory_space<vmem>>, vector<128x16xf32>,
    return
  }
  func.func @transform_0(%arg0: i32) -> (i32, i32, i32, i32) {
    %c0_i32 = arith.constant 0 : i32
    %c0_i32_0 = arith.constant 0 : i32
    %c0_i32_1 = arith.constant 0 : i32
    %c0_i32_2 = arith.constant 0 : i32
    %c0_i32_3 = arith.constant 0 : i32
    return %c0_i32, %c0_i32_0, %c0_i32_1, %c0_i32_2 : i32, i32, i32, i32
  }
  func.func @transform_1(%arg0: i32) -> (i32, i32) {
    %c0_i32 = arith.constant 0 : i32
    %c0_i32_0 = arith.constant 0 : i32
    %c0_i32_1 = arith.constant 0 : i32
    return %c0_i32, %c0_i32_0 : i32, i32
  }
  func.func @transform_2(%arg0: i32) -> (i32, i32) {
    %c0_i32 = arith.constant 0 : i32
    %c0_i32_0 = arith.constant 0 : i32
    %c0_i32_1 = arith.constant 0 : i32
    return %c0_i32, %c0_i32_0 : i32, i32
  }
  func.func @transform_3(%arg0: i32) -> (i32, i32) {
    %c0_i32 = arith.constant 0 : i32
    %c0_i32_0 = arith.constant 0 : i32
    %c0_i32_1 = arith.constant 0 : i32
    return %c0_i32, %c0_i32_0 : i32, i32
  }
  func.func @transform_4(%arg0: i32) -> (i32, i32) {
    %c0_i32 = arith.constant 0 : i32
    %c0_i32_0 = arith.constant 0 : i32
    %c0_i32_1 = arith.constant 0 : i32
    return %c0_i32, %c0_i32_0 : i32, i32
  }
  func.func @transform_5(%arg0: i32) -> (i32, i32) {
    %c0_i32 = arith.constant 0 : i32
    %c0_i32_0 = arith.constant 0 : i32
    %c0_i32_1 = arith.constant 0 : i32
    return %c0_i32, %c0_i32_0 : i32, i32
  }
  func.func @transform_6(%arg0: i32) -> (i32, i32) {
    %c0_i32 = arith.constant 0 : i32
    %c0_i32_0 = arith.constant 0 : i32
    %c0_i32_1 = arith.constant 0 : i32
    return %c0_i32, %c0_i32_0 : i32, i32
  }
  func.func @transform_7(%arg0: i32) -> (i32, i32) {
    %c0_i32 = arith.constant 0 : i32
    %c0_i32_0 = arith.constant 0 : i32
    %c0_i32_1 = arith.constant 0 : i32
    return %c0_i32, %c0_i32_0 : i32, i32
  }
  func.func @transform_8(%arg0: i32) -> (i32, i32) {
    %c0_i32 = arith.constant 0 : i32
    %c0_i32_0 = arith.constant 0 : i32
    %c0_i32_1 = arith.constant 0 : i32
    return %c0_i32, %c0_i32_0 : i32, i32
  }
  func.func @transform_9(%arg0: i32) -> (i32, i32) {
    %c0_i32 = arith.constant 0 : i32
    %c0_i32_0 = arith.constant 0 : i32
    %c0_i32_1 = arith.constant 0 : i32
    return %c0_i32, %c0_i32_0 : i32, i32
  }
  func.func @transform_10(%arg0: i32) -> (i32, i32) {
    %c0_i32 = arith.constant 0 : i32
    %c0_i32_0 = arith.constant 0 : i32
    %c0_i32_1 = arith.constant 0 : i32
    return %c0_i32, %c0_i32_0 : i32, i32
  }
  func.func @transform_11(%arg0: i32) -> (i32, i32) {
    %c0_i32 = arith.constant 0 : i32
    %c0_i32_0 = arith.constant 0 : i32
    %c0_i32_1 = arith.constant 0 : i32
    return %c0_i32, %c0_i32_0 : i32, i32
  }
  func.func @transform_12(%arg0: i32) -> (i32, i32) {
    %c0_i32 = arith.constant 0 : i32
    %c0_i32_0 = arith.constant 0 : i32
    %c0_i32_1 = arith.constant 0 : i32
    return %c0_i32, %c0_i32_0 : i32, i32
  }
  func.func @transform_13(%arg0: i32) -> (i32, i32) {
    %c0_i32 = arith.constant 0 : i32
    %c0_i32_0 = arith.constant 0 : i32
    %c0_i32_1 = arith.constant 0 : i32
    return %c0_i32, %c0_i32_0 : i32, i32
  }
  func.func @transform_14(%arg0: i32) -> (i32, i32) {
    %c0_i32 = arith.constant 0 : i32
    %c0_i32_0 = arith.constant 0 : i32
    %c0_i32_1 = arith.constant 0 : i32
    return %c0_i32, %c0_i32_0 : i32, i32
  }
  func.func @transform_15(%arg0: i32) -> (i32, i32) {
    %c0_i32 = arith.constant 0 : i32
    %c0_i32_0 = arith.constant 0 : i32
    %c0_i32_1 = arith.constant 0 : i32
    return %c0_i32, %c0_i32_0 : i32, i32
  }
}

</mosaic_0001>

<bundles_post_ra>
// kernel: conv_vae_forward.1
= control target key start
LH: loop header
LB: loop body
LE: loop exit
PB: predicated region body
PF: predicated region fallthrough
CT: control target
= control target key end

     0   :  { %s10097_s26 = smov 4   ;;  %s7226_s27 = smov 12   ;;  %vm950_vm0 = vcmask 1041408   ;;  %vm331_vm1 = vcmask 31744   ;;  %vm336_vm2 = vcmask 64512   ;;  %vm341_vm3 = vcmask 97280   ;;  %s10071_s0 = inlined_call_operand.vmem [shape: f32[16,5,10,4], index: 0, kind: input, shape index: {}]   ;;  %s10072_s1 = inlined_call_operand.vmem [shape: bf16[36,8], index: 1, kind: input, shape index: {}]   ;;  %s10073_s2 = inlined_call_operand.vmem [shape: f32[1,8], index: 2, kind: input, shape index: {}]   ;;  %s10074_s4 = inlined_call_operand.vmem [shape: f32[1,16], index: 4, kind: input, shape index: {}]   ;;  %s10075_s3 = inlined_call_operand.vmem [shape: bf16[72,16], index: 3, kind: input, shape index: {}]   ;;  %s10076_s6 = inlined_call_operand.vmem [shape: f32[1,64], index: 6, kind: input, shape index: {}]   ;;  %s10077_s5 = inlined_call_operand.vmem [shape: bf16[256,64], index: 5, kind: input, shape index: {}]   ;;  %s10078_s7 = inlined_call_operand.vmem [shape: bf16[32,512], index: 7, kind: input, shape index: {}]   ;;  %s10079_s15 = inlined_call_operand.vmem [shape: f32[2,64], index: 15, kind: output, shape index: {1}]   ;;  %s10080_s13 = inlined_call_operand.vmem [shape: f32[2,32], index: 13, kind: input, shape index: {}]   ;;  %s10081_s9 = inlined_call_operand.vmem [shape: bf16[512,8], index: 9, kind: input, shape index: {}]   ;;  %s10082_s8 = inlined_call_operand.vmem [shape: f32[1,512], index: 8, kind: input, shape index: {}]   ;;  %s10083_s11 = inlined_call_operand.vmem [shape: bf16[72,16], index: 11, kind: input, shape index: {}]   ;;  %s10084_s10 = inlined_call_operand.vmem [shape: f32[1,8], index: 10, kind: input, shape index: {}]   ;;  %s10085_s12 = inlined_call_operand.vmem [shape: f32[1,16], index: 12, kind: input, shape index: {}]   ;;  %s10086_s14 = inlined_call_operand.vmem [shape: f32[128,16], index: 14, kind: output, shape index: {0}]  }
   0x1   :  { %v5834_v0 = vld [vmem:[%s10071_s0 + $0x370] sm:$0xff]  ;;  %v5835_v1 = vld [vmem:[%s10071_s0 + $0x380] sm:$0xff]  ;;  %s10095_s25 = smov 20   ;;  %s10091_s17 = smov 8   ;;  %vm10104_vm4 = vcmask 130048   ;;  %vm351_vm5 = vcmask 162816  }
   0x2   :  { %v5842_v2 = vld [vmem:[%s10071_s0 + $0x460] sm:$0xff]  ;;  %v7330_v3 = vpack.i.bf16 %v5835_v1, %v5834_v0  ;;  %v5843_v4 = vld [vmem:[%s10071_s0 + $0x470] sm:$0xff]  ;;  %s10089_s18 = smov 16   ;;  %s10087_s30 = smov 24   ;;  %vm10103_vm6 = vcmask 195584   ;;  %vm361_vm7 = vcmask 228352  }
   0x3   :  { %v7335_v5 = vpack.i.bf16 %v5843_v4, %v5842_v2  ;;  %v5838_v6 = vld [vmem:[%s10071_s0 + $0x282] sm:$0xff]  ;;  %v5839_v7 = vld [vmem:[%s10071_s0 + $0x292] sm:$0xff]  ;;  %s7231_s22 = smov 28   ;;  %s10093_s23 = smov 32   ;;  %vm366_vm8 = vcmask 261120   ;;  %vm925_vm9 = vcmask 293888  }
   0x4   :  { %6799 = vrot.lane.b32.xlu0 %v7330_v3, %s10097_s26  ;;  %v5846_v8 = vld [vmem:[%s10071_s0 + $0x4b0] sm:$0xff]  ;;  %v5847_v9 = vld [vmem:[%s10071_s0 + $0x4c0] sm:$0xff]  ;;  %v7359_v13 = vpack.i.bf16 %v5839_v7, %v5838_v6  ;;  %s10107_s24 = smov 24   ;;  %s10108_s16 = smov 16   ;;  %vm50_vm10 = vcmask 60416   ;;  %vm52_vm11 = vcmask 57344  }
   0x5   :  { %6809 = vrot.lane.b32.xlu1 %v7335_v5, %s7226_s27  ;;  %v5850_v10 = vld [vmem:[%s10071_s0 + $0x3c2] sm:$0xff]  ;;  %v5851_v11 = vld [vmem:[%s10071_s0 + $0x3d2] sm:$0xff]  ;;  %v6813_v14 = vpack.i.bf16 %v5847_v9, %v5846_v8  ;;  %s10111_s20 = smov 20   ;;  %vm1041_vm12 = vcmask 60417   ;;  %vm1138_vm13 = vcmask 1042432   ;;  %vm1139_vm14 = vcmask 1046532  }
   0x6   :  { %v6818_v12 = vpack.i.bf16 %v5851_v11, %v5850_v10  ;;  %v7365_v15 = vld [vmem:[%s10071_s0 + $0xb0] sm:$0xff]  ;;  %v7370_v16 = vld [vmem:[%s10071_s0 + $0xc0] sm:$0xff]  ;;  %vm8039_vm15 = vmor %vm1138_vm13, %vm1139_vm14  ;;  %s7235_s28 = smov 56   ;;  %s7237_s29 = smov 64   ;;  %vm10099_vm13 = vcmask 588800   ;;  %vm1519_vm14 = vcmask 654336  }
   0x7   :  { %v7378_v17 = vld [vmem:[%s10071_s0 + $0x100] sm:$0xff]  ;;  %v7383_v18 = vld [vmem:[%s10071_s0 + $0x110] sm:$0xff]  ;;  %v7387_v19 = vpack.i.bf16 %v7370_v16, %v7365_v15 }
   0x8   :  { %6819 = vrot.lane.b32.xlu2 %v6818_v12, %s10095_s25  ;;  %v7392_v20 = vld [vmem:[%s10071_s0 + $0x12] sm:$0xff]  ;;  %v7397_v21 = vld [vmem:[%s10071_s0 + $0x22] sm:$0xff]  ;;  %v6828_v22 = vpack.i.bf16 %v7383_v18, %v7378_v17 }
   0x9   :  { %v6833_v23 = vpack.i.bf16 %v7397_v21, %v7392_v20  ;;  %v5836_v24 = vld [vmem:[%s10071_s0 + $0x390] sm:$0xff]  ;;  %v5837_v25 = vld [vmem:[%s10071_s0 + $0x3a0] sm:$0xff] }
   0xa   :  { %v5840_v26 = vld [vmem:[%s10071_s0 + $0x2a2] sm:$0xff]  ;;  %v5841_v27 = vld [vmem:[%s10071_s0 + $0x2b2] sm:$0xff]  ;;  %v7419_v28 = vpack.i.bf16 %v5837_v25, %v5836_v24 }
   0xb   :  { %v5844_v29 = vld [vmem:[%s10071_s0 + $0x480] sm:$0xff]  ;;  %v5845_v30 = vld [vmem:[%s10071_s0 + $0x490] sm:$0xff]  ;;  %v7427_v31 = vpack.i.bf16 %v5841_v27, %v5840_v26 }
   0xc   :  { %6804 = vrot.lane.b32.xlu0 %v7359_v13, %s10091_s17  ;;  %v7429_v32 = vpack.i.bf16 %v5845_v30, %v5844_v29  ;;  %v5848_v33 = vld [vmem:[%s10071_s0 + $0x4d0] sm:$0xff]  ;;  %v5849_v34 = vld [vmem:[%s10071_s0 + $0x4e0] sm:$0xff] }
   0xd   :  { %6814 = vrot.lane.b32.xlu1 %v6813_v14, %s10089_s18  ;;  %v5852_v35 = vld [vmem:[%s10071_s0 + $0x3e2] sm:$0xff]  ;;  %v5853_v36 = vld [vmem:[%s10071_s0 + $0x3f2] sm:$0xff]  ;;  %v6853_v37 = vpack.i.bf16 %v5849_v34, %v5848_v33 }
   0xe   :  { %v7452_v38 = vld [vmem:[%s10071_s0 + $0xd0] sm:$0xff]  ;;  %v5857_v39 = vld [vmem:[%s10071_s0 + $0xe0] sm:$0xff]  ;;  %v6858_v40 = vpack.i.bf16 %v5853_v36, %v5852_v35 }
   0xf   :  { %v7458_v41 = vpack.i.bf16 %v5857_v39, %v7452_v38  ;;  %v7464_v42 = vld [vmem:[%s10071_s0 + $0x120] sm:$0xff]  ;;  %v5861_v43 = vld [vmem:[%s10071_s0 + $0x130] sm:$0xff] }
  0x10   :  { %6824 = vrot.lane.b32.xlu2 %v7387_v19, %s10087_s30  ;;  %v7475_v44 = vld [vmem:[%s10071_s0 + $0x32] sm:$0xff]  ;;  %v5865_v45 = vld [vmem:[%s10071_s0 + $0x42] sm:$0xff]  ;;  %v6868_v46 = vpack.i.bf16 %v5861_v43, %v7464_v42  ;;  %s10109_s30 = smov 8   ;;  %v905_v39 = vld [vmem:[%s10072_s1 + $0x10] sm:$0x3] }
  0x11   :  { %v5870_v47 = vld [vmem:[%s10071_s0 + $0x2d0] sm:$0xff]  ;;  %v5871_v48 = vld [vmem:[%s10071_s0 + $0x2e0] sm:$0xff]  ;;  %v6873_v49 = vpack.i.bf16 %v5865_v45, %v7475_v44  ;;  %v919_v43 = vunpack.c.l.b16 %v905_v39 }
  0x12   :  { %v7488_v50 = vpack.i.bf16 %v5871_v48, %v5870_v47  ;;  %v7494_v51 = vld [vmem:[%s10071_s0 + $0x320] sm:$0xff]  ;;  %v7499_v52 = vld [vmem:[%s10071_s0 + $0x330] sm:$0xff] }
  0x13   :  { %v5874_v53 = vld [vmem:[%s10071_s0 + $0x3c0] sm:$0xff]  ;;  %v5875_v54 = vld [vmem:[%s10071_s0 + $0x3d0] sm:$0xff]  ;;  %v7512_v55 = vpack.i.bf16 %v7499_v52, %v7494_v51  ;;  %v922_v45 = vpack.c.b16 %v919_v43, %v919_v43 }
  0x14   :  { %6829 = vrot.lane.b32.xlu0 %v6828_v22, %s7231_s22  ;;  %v5878_v56 = vld [vmem:[%s10071_s0 + $0x410] sm:$0xff]  ;;  %v5879_v57 = vld [vmem:[%s10071_s0 + $0x420] sm:$0xff]  ;;  %v6888_v58 = vpack.i.bf16 %v5875_v54, %v5874_v53  ;;  %v6998_v54 = vpack.i.bf16 %v7464_v42, %v7383_v18  ;;  %v7003_v18 = vpack.i.bf16 %v7475_v44, %v7397_v21 }
  0x15   :  { %6834 = vrot.lane.b32.xlu1 %v6833_v23, %s10093_s23  ;;  %v6893_v59 = vpack.i.bf16 %v5879_v57, %v5878_v56  ;;  %v7527_v60 = vld [vmem:[%s10071_s0 + $0x10] sm:$0xff]  ;;  %v7532_v61 = vld [vmem:[%s10071_s0 + $0x20] sm:$0xff]  ;;  %v952_v47 = vsel %vm950_vm0, %v922_v45, 0 }
  0x16   :  { %v7537_v62 = vld [vmem:[%s10071_s0 + $0x60] sm:$0xff]  ;;  %v7542_v63 = vld [vmem:[%s10071_s0 + $0x70] sm:$0xff]  ;;  %v6903_v0 = vpack.i.bf16 %v7532_v61, %v7527_v60  ;;  %959 = vmatpush.bf16.msra.mxu0 %v952_v47 }
  0x17   :  { %v6908_v1 = vpack.i.bf16 %v7542_v63, %v7537_v62  ;;  %v5872_v2 = vld [vmem:[%s10071_s0 + $0x2f0] sm:$0xff]  ;;  %v5873_v4 = vld [vmem:[%s10071_s0 + $0x300] sm:$0xff] }
  0x18   :  { %6839 = vrot.lane.b32.xlu2 %v7419_v28, %s10097_s26  ;;  %v7561_v6 = vld [vmem:[%s10071_s0 + $0x340] sm:$0xff]  ;;  %v7568_v7 = vpack.i.bf16 %v5873_v4, %v5872_v2  ;;  %v5877_v10 = vld [vmem:[%s10071_s0 + $0x3f0] sm:$0xff] }
  0x19   :  { %v5876_v9 = vld [vmem:[%s10071_s0 + $0x3e0] sm:$0xff]  ;;  %v5880_v11 = vld [vmem:[%s10071_s0 + $0x430] sm:$0xff] }
  0x1a   :  { %v5881_v12 = vld [vmem:[%s10071_s0 + $0x440] sm:$0xff]  ;;  %v6928_v14 = vpack.i.bf16 %v5877_v10, %v5876_v9  ;;  %v7596_v22 = vld [vmem:[%s10071_s0 + $0x30] sm:$0xff] }
  0x1b   :  { %v5885_v23 = vld [vmem:[%s10071_s0 + $0x40] sm:$0xff]  ;;  %v5889_v25 = vld [vmem:[%s10071_s0 + $0x90] sm:$0xff] }
  0x1c   :  { %6844 = vrot.lane.b32.xlu0 %v7427_v31, %s10091_s17  ;;  %v7607_v24 = vld [vmem:[%s10071_s0 + $0x80] sm:$0xff]  ;;  %v6943_v26 = vpack.i.bf16 %v5885_v23, %v7596_v22  ;;  %v5894_v29 = vld [vmem:[%s10071_s0 + $0xf0] sm:$0xff] }
  0x1d   :  { %6849 = vrot.lane.b32.xlu1 %v7429_v32, %s7226_s27  ;;  %v6948_v27 = vpack.i.bf16 %v5889_v25, %v7607_v24  ;;  %v560_v30 = vld [vmem:[%s10071_s0 + $0x2] sm:$0xff]  ;;  %v5899_v34 = vld [vmem:[%s10071_s0 + $0x1f0] sm:$0xff] }
  0x1e   :  { %v5898_v33 = vld [vmem:[%s10071_s0 + $0x1e0] sm:$0xff]  ;;  %v6963_v35 = vpack.i.bf16 %v7392_v20, %v560_v30  ;;  %v5909_v21 = vld [vmem:[%s10071_s0 + $0x172] sm:$0xff] }
  0x1f   :  { %v7632_v36 = vpack.i.bf16 %v5899_v34, %v5898_v33  ;;  %v5906_v20 = vld [vmem:[%s10071_s0 + $0x142] sm:$0xff]  ;;  %v5910_v9 = vld [vmem:[%s10071_s0 + $0x50] sm:$0xff] }
  0x20   :  { %6854 = vrot.lane.b32.xlu2 %v6853_v37, %s10089_s18  ;;  %v5902_v37 = vld [vmem:[%s10071_s0 + $0x230] sm:$0xff]  ;;  %v6640_v53 = vld [vmem:[%s10072_s1] sm:$0xff]  ;;  %s10112_s18 = smov 4  }
  0x21   :  { %v5900_v57 = vld [vmem:[%s10071_s0 + $0x200] sm:$0xff]  ;;  %v5918_v47 = vld [vmem:[%s10071_s0 + $0x190] sm:$0xff] }
  0x22   :  { %v7717_v23 = vld [vmem:[%s10071_s0 + $0xa0] sm:$0xff] }
  0x24   :  { %6859 = vrot.lane.b32.xlu0 %v6858_v40, %s10095_s25  ;;  %v5907_v40 = vld [vmem:[%s10071_s0 + $0x152] sm:$0xff] }
  0x25   :  { %6864 = vrot.lane.b32.xlu1 %v7458_v41, %s10107_s24 }
  0x28   :  { %6869 = vrot.lane.b32.xlu2 %v6868_v46, %s7231_s22  ;;  %v6978_v46 = vpack.i.bf16 %v5907_v40, %v5906_v20 }
  0x2c   :  { %6874 = vrot.lane.b32.xlu0 %v6873_v49, %s10093_s23  ;;  %v6641_v49 = vld [vmem:[%s10072_s1 + $0x8] sm:$0xff]  ;;  %s7239_s1 = smov 80  }
  0x2d   :  { %6879 = vrot.lane.b32.xlu1 %v7488_v50, %s10097_s26  ;;  %960 = vmatpush.bf16.msra.mxu0 %v6641_v49 }
  0x30   :  { %6884 = vrot.lane.b32.xlu2 %v7512_v55, %s10091_s17  ;;  %s10110_s17 = smov 32  }
  0x31   :  { %961 = vmatpush.bf16.msra.mxu0 %v6640_v53 }
  0x34   :  { %6889 = vrot.lane.b32.xlu0 %v6888_v58, %s7226_s27  ;;  %v5901_v58 = vld [vmem:[%s10071_s0 + $0x210] sm:$0xff] }
  0x35   :  { %6894 = vrot.lane.b32.xlu1 %v6893_v59, %s10108_s16  ;;  %v7689_v42 = vpack.i.bf16 %v5901_v58, %v5900_v57 }
  0x38   :  { %6899 = vrot.lane.b32.xlu2 %v7335_v5, %s10095_s25  ;;  %v7566_v5 = vld [vmem:[%s10071_s0 + $0x350] sm:$0xff] }
  0x39   :  { %v7572_v8 = vpack.i.bf16 %v7566_v5, %v7561_v6 }
  0x3c   :  { %6904 = vrot.lane.b32.xlu0 %v6903_v0, %s10107_s24  ;;  %v5908_v0 = vld [vmem:[%s10071_s0 + $0x162] sm:$0xff] }
  0x3d   :  { %6909 = vrot.lane.b32.xlu1 %v6908_v1, %s7231_s22  ;;  %v7018_v1 = vpack.i.bf16 %v5909_v21, %v5908_v0 }
  0x40   :  { %6914 = vrot.lane.b32.xlu2 %v7387_v19, %s10093_s23  ;;  %v6933_v19 = vpack.i.bf16 %v5881_v12, %v5880_v11 }
  0x44   :  { %6919 = vrot.lane.b32.xlu0 %v7568_v7, %s10097_s26 }
  0x45   :  { %6924 = vrot.lane.b32.xlu1 %v7572_v8, %s10109_s30 }
  0x48   :  { %6929 = vrot.lane.b32.xlu2 %v6928_v14, %s7226_s27 }
  0x4c   :  { %6934 = vrot.lane.b32.xlu0 %v6933_v19, %s10108_s16  ;;  %v7038_v19 = vpack.i.bf16 %v7537_v62, %v5910_v9 }
  0x4d   :  { %6939 = vrot.lane.b32.xlu1 %v7429_v32, %s10095_s25  ;;  %v6958_v32 = vpack.i.bf16 %v7378_v17, %v5894_v29  ;;  %v5903_v17 = vld [vmem:[%s10071_s0 + $0x240] sm:$0xff]  ;;  %s7236_s25 = smov 40  }
  0x50   :  { %6944 = vrot.lane.b32.xlu2 %v6943_v26, %s10107_s24 }
  0x54   :  { %6949 = vrot.lane.b32.xlu0 %v6948_v27, %s7231_s22 }
  0x55   :  { %6954 = vrot.lane.b32.xlu1 %v7458_v41, %s10110_s17  ;;  %v6973_v41 = vpack.i.bf16 %v5903_v17, %v5902_v37  ;;  %v7043_v37 = vpack.i.bf16 %v7365_v15, %v7717_v23 }
  0x58   :  { %6959 = vrot.lane.b32.xlu2 %v6958_v32, %s10097_s26 }
  0x5c   :  { %6964 = vrot.lane.b32.xlu0 %v6963_v35, %s10109_s30 }
  0x5d   :  { %6969 = vrot.lane.b32.xlu1 %v7632_v36, %s7226_s27 }
  0x60   :  { %6974 = vrot.lane.b32.xlu2 %v6973_v41, %s10108_s16 }
  0x62   :  { %v7655_v48 = vpop.permute.xlu2 %6819 }
  0x63   :  { %v6822_v20 = vunpack.i.h.bf16 %v7655_v48  ;;  %v6821_v40 = vunpack.i.l.bf16 %v7655_v48  ;;  %v5919_v48 = vld [vmem:[%s10071_s0 + $0x1a0] sm:$0xff] }
  0x64   :  { %6979 = vrot.lane.b32.xlu0 %v6978_v46, %s10111_s20 }
  0x65   :  { %6984 = vrot.lane.b32.xlu1 %v7512_v55, %s10107_s24 }
  0x68   :  { %6989 = vrot.lane.b32.xlu2 %v7330_v3, %s7231_s22  ;;  %v5904_v3 = vld [vmem:[%s10071_s0 + $0x250] sm:$0xff] }
  0x6a   :  { %v7670_v56 = vpop.permute.xlu2 %6824 }
  0x6b   :  { %v6827_v45 = vunpack.i.h.bf16 %v7670_v56  ;;  %v6826_v46 = vunpack.i.l.bf16 %v7670_v56 }
  0x6c   :  { %6994 = vrot.lane.b32.xlu0 %v7359_v13, %s10110_s17  ;;  %v5905_v13 = vld [vmem:[%s10071_s0 + $0x260] sm:$0xff] }
  0x6d   :  { %6999 = vrot.lane.b32.xlu1 %v6998_v54, %s10112_s18  ;;  %v7013_v59 = vpack.i.bf16 %v5905_v13, %v5904_v3  ;;  %v7053_v3 = vpack.i.bf16 %v5919_v48, %v5918_v47 }
  0x70   :  { %7004 = vrot.lane.b32.xlu2 %v7003_v18, %s10109_s30 }
  0x72   :  { %v7698_v44 = vpop.permute.xlu2 %6839 }
  0x74   :  { %7009 = vrot.lane.b32.xlu0 %v7689_v42, %s7226_s27 }
  0x75   :  { %7014 = vrot.lane.b32.xlu1 %v7013_v59, %s10108_s16 }
  0x76   :  { %v6800_v2 = vpop.permute.xlu0 %6799 }
  0x77   :  { %v6810_v4 = vpop.permute.xlu1 %6809  ;;  %v6802_v11 = vunpack.i.h.bf16 %v6800_v2  ;;  %v6801_v12 = vunpack.i.l.bf16 %v6800_v2 }
  0x78   :  { %7019 = vrot.lane.b32.xlu2 %v7018_v1, %s10111_s20  ;;  %v6812_v25 = vunpack.i.h.bf16 %v6810_v4  ;;  %v6811_v26 = vunpack.i.l.bf16 %v6810_v4 }
  0x79   :  { %v332_v32 = vsel %vm331_vm1, %v7494_v51, %v6801_v12  ;;  %v5914_v51 = vld [vmem:[%s10071_s0 + $0x140] sm:$0xff]  ;;  %v7770_v12 = vld [vmem:[%s10071_s0 + $0x290] sm:$0xff] }
  0x7a   :  { %v7707_v10 = vpop.permute.xlu2 %6854 }
  0x7c   :  { %7024 = vrot.lane.b32.xlu0 %v7572_v8, %s10107_s24 }
  0x7d   :  { %7029 = vrot.lane.b32.xlu1 %v7419_v28, %s7231_s22  ;;  %v333_v28 = vsel %vm331_vm1, %v7499_v52, %v6802_v11  ;;  %v5915_v52 = vld [vmem:[%s10071_s0 + $0x150] sm:$0xff]  ;;  %v7765_v11 = vld [vmem:[%s10071_s0 + $0x280] sm:$0xff] }
  0x7e   :  { %v6805_v14 = vpop.permute.xlu0 %6804  ;;  %v7048_v54 = vpack.i.bf16 %v5915_v52, %v5914_v51  ;;  %v7078_v51 = vpack.i.bf16 %v7607_v24, %v7542_v63 }
  0x7f   :  { %v6807_v27 = vunpack.i.h.bf16 %v6805_v14  ;;  %v6806_v29 = vunpack.i.l.bf16 %v6805_v14  ;;  %v6815_v30 = vpop.permute.xlu1 %6814 }
  0x80   :  { %v6817_v33 = vunpack.i.h.bf16 %v6815_v30  ;;  %v6816_v34 = vunpack.i.l.bf16 %v6815_v30  ;;  %7034 = vrot.lane.b32.xlu2 %v7427_v31, %s10110_s17 }
  0x81   :  { %v337_v62 = vsel %vm336_vm2, %v332_v32, %v6806_v29  ;;  %v338_v35 = vsel %vm336_vm2, %v333_v28, %v6807_v27  ;;  %v7063_v27 = vpack.i.bf16 %v7770_v12, %v7765_v11 }
  0x82   :  { %v342_v17 = vsel %vm341_vm3, %v337_v62, %v6811_v26  ;;  %v343_v39 = vsel %vm341_vm3, %v338_v35, %v6812_v25  ;;  %v7741_v43 = vpop.permute.xlu2 %6869  ;;  %v6842_v25 = vunpack.i.h.bf16 %v7698_v44  ;;  %v6841_v26 = vunpack.i.l.bf16 %v7698_v44 }
  0x83   :  { %v347_v41 = vsel %vm10104_vm4, %v342_v17, %v6816_v34  ;;  %v348_v31 = vsel %vm10104_vm4, %v343_v39, %v6817_v33  ;;  %v6857_v17 = vunpack.i.h.bf16 %v7707_v10  ;;  %v5917_v39 = vld [vmem:[%s10071_s0 + $0x170] sm:$0xff] }
  0x84   :  { %7039 = vrot.lane.b32.xlu0 %v7038_v19, %s10112_s18  ;;  %v352_v49 = vsel %vm351_vm5, %v347_v41, %v6821_v40  ;;  %v353_v53 = vsel %vm351_vm5, %v348_v31, %v6822_v20  ;;  %v334_v33 = vsel %vm331_vm1, %v7561_v6, %v6841_v26  ;;  %v335_v44 = vsel %vm331_vm1, %v7566_v5, %v6842_v25  ;;  %v5916_v5 = vld [vmem:[%s10071_s0 + $0x160] sm:$0xff] }
  0x85   :  { %7044 = vrot.lane.b32.xlu1 %v7043_v37, %s10109_s30  ;;  %v357_v13 = vsel %vm10103_vm6, %v352_v49, %v6826_v46  ;;  %v358_v59 = vsel %vm10103_vm6, %v353_v53, %v6827_v45  ;;  %v6856_v6 = vunpack.i.l.bf16 %v7707_v10  ;;  %v7088_v31 = vpack.i.bf16 %v5917_v39, %v5916_v5  ;;  %v5920_v49 = vld [vmem:[%s10071_s0 + $0x1b0] sm:$0xff]  ;;  %v5921_v53 = vld [vmem:[%s10071_s0 + $0x1c0] sm:$0xff] }
  0x86   :  { %v6830_v57 = vpop.permute.xlu0 %6829 }
  0x87   :  { %v6832_v56 = vunpack.i.h.bf16 %v6830_v57  ;;  %v6831_v58 = vunpack.i.l.bf16 %v6830_v57  ;;  %v6835_v18 = vpop.permute.xlu1 %6834  ;;  %v6872_v57 = vunpack.i.h.bf16 %v7741_v43 }
  0x88   :  { %v6837_v0 = vunpack.i.h.bf16 %v6835_v18  ;;  %v6836_v21 = vunpack.i.l.bf16 %v6835_v18  ;;  %7049 = vrot.lane.b32.xlu2 %v7048_v54, %s7226_s27 }
  0x89   :  { %v362_v1 = vsel %vm361_vm7, %v357_v13, %v6831_v58  ;;  %v363_v2 = vsel %vm361_vm7, %v358_v59, %v6832_v56  ;;  %v6871_v56 = vunpack.i.l.bf16 %v7741_v43  ;;  %v7831_v59 = vld [vmem:[%s10071_s0 + $0x2a0] sm:$0xff] }
  0x8a   :  { %v367_v4 = vsel %vm366_vm8, %v362_v1, %v6836_v21  ;;  %v368_v9 = vsel %vm366_vm8, %v363_v2, %v6837_v0  ;;  %v7772_v19 = vpop.permute.xlu2 %6884  ;;  %v7836_v0 = vld [vmem:[%s10071_s0 + $0x2b0] sm:$0xff] }
  0x8b   :  { %v893_v14 = vpack.c.bf16 %v368_v9, %v367_v4 }
  0x8c   :  { %7054 = vrot.lane.b32.xlu0 %v7053_v3, %s10108_s16  ;;  %v7093_v3 = vpack.i.bf16 %v5921_v53, %v5920_v49 }
  0x8d   :  { %7059 = vrot.lane.b32.xlu1 %v7632_v36, %s10111_s20  ;;  %5930 = vmatmul.msk.bf16.vlgmr.msra.gmra.mxu0 %vm925_vm9, %v893_v14 }
  0x8e   :  { %v6845_v29 = vpop.permute.xlu0 %6844 }
  0x8f   :  { %v6847_v30 = vunpack.i.h.bf16 %v6845_v29  ;;  %v6846_v32 = vunpack.i.l.bf16 %v6845_v29  ;;  %v6850_v28 = vpop.permute.xlu1 %6849 }
  0x90   :  { %7064 = vrot.lane.b32.xlu2 %v7063_v27, %s10107_s24  ;;  %v6852_v34 = vunpack.i.h.bf16 %v6850_v28  ;;  %v6851_v62 = vunpack.i.l.bf16 %v6850_v28  ;;  %v7103_v27 = vpack.i.bf16 %v7836_v0, %v7831_v59 }
  0x91   :  { %v339_v36 = vsel %vm336_vm2, %v334_v33, %v6846_v32  ;;  %v340_v35 = vsel %vm336_vm2, %v335_v44, %v6847_v30  ;;  %v6887_v30 = vunpack.i.h.bf16 %v7772_v19  ;;  %v6886_v32 = vunpack.i.l.bf16 %v7772_v19 }
  0x92   :  { %v7789_v37 = vpop.permute.xlu2 %6899  ;;  %v345_v52 = vsel %vm341_vm3, %v340_v35, %v6852_v34 }
  0x93   :  { %v350_v46 = vsel %vm10104_vm4, %v345_v52, %v6857_v17  ;;  %v6902_v39 = vunpack.i.h.bf16 %v7789_v37 }
  0x94   :  { %7069 = vrot.lane.b32.xlu0 %v7488_v50, %s7231_s22  ;;  %v344_v50 = vsel %vm341_vm3, %v339_v36, %v6851_v62 }
  0x95   :  { %7074 = vrot.lane.b32.xlu1 %v7512_v55, %s10110_s17  ;;  %v7083_v55 = vpack.i.bf16 %v7452_v38, %v7370_v16  ;;  %v349_v45 = vsel %vm10104_vm4, %v344_v50, %v6856_v6 }
  0x96   :  { %v6860_v20 = vpop.permute.xlu0 %6859 }
  0x97   :  { %v6862_v10 = vunpack.i.h.bf16 %v6860_v20  ;;  %v6861_v40 = vunpack.i.l.bf16 %v6860_v20  ;;  %v6865_v41 = vpop.permute.xlu1 %6864 }
  0x98   :  { %v6867_v47 = vunpack.i.h.bf16 %v6865_v41  ;;  %v6866_v48 = vunpack.i.l.bf16 %v6865_v41  ;;  %7079 = vrot.lane.b32.xlu2 %v7078_v51, %s10112_s18  ;;  %v6901_v51 = vunpack.i.l.bf16 %v7789_v37  ;;  %s7240_s18 = smov 112  }
  0x99   :  { %v354_v63 = vsel %vm351_vm5, %v349_v45, %v6861_v40  ;;  %v355_v24 = vsel %vm351_vm5, %v350_v46, %v6862_v10 }
  0x9a   :  { %v7820_v54 = vpop.permute.xlu2 %6914  ;;  %v359_v58 = vsel %vm10103_vm6, %v354_v63, %v6866_v48  ;;  %v360_v18 = vsel %vm10103_vm6, %v355_v24, %v6867_v47 }
  0x9b   :  { %v364_v9 = vsel %vm361_vm7, %v359_v58, %v6871_v56  ;;  %v365_v14 = vsel %vm361_vm7, %v360_v18, %v6872_v57  ;;  %v6917_v41 = vunpack.i.h.bf16 %v7820_v54 }
  0x9c   :  { %7084 = vrot.lane.b32.xlu0 %v7083_v55, %s10109_s30  ;;  %v6916_v55 = vunpack.i.l.bf16 %v7820_v54 }
  0x9d   :  { %7089 = vrot.lane.b32.xlu1 %v7088_v31, %s7226_s27 }
  0x9e   :  { %v6875_v13 = vpop.permute.xlu0 %6874 }
  0x9f   :  { %v6877_v43 = vunpack.i.h.bf16 %v6875_v13  ;;  %v6876_v21 = vunpack.i.l.bf16 %v6875_v13  ;;  %v6880_v1 = vpop.permute.xlu1 %6879 }
  0xa0   :  { %v6882_v2 = vunpack.i.h.bf16 %v6880_v1  ;;  %v6881_v4 = vunpack.i.l.bf16 %v6880_v1  ;;  %7094 = vrot.lane.b32.xlu2 %v7093_v3, %s10108_s16 }
  0xa1   :  { %v369_v25 = vsel %vm366_vm8, %v364_v9, %v6876_v21  ;;  %v370_v26 = vsel %vm366_vm8, %v365_v14, %v6877_v43 }
  0xa2   :  { %v894_v29 = vpack.c.bf16 %v370_v26, %v369_v25  ;;  %v6930_v28 = vpop.permute.xlu2 %6929  ;;  %v518_v33 = vsel %vm331_vm1, %v7765_v11, %v6881_v4  ;;  %v519_v44 = vsel %vm331_vm1, %v7770_v12, %v6882_v2 }
  0xa3   :  { %v522_v35 = vsel %vm336_vm2, %v518_v33, %v6886_v32  ;;  %v523_v19 = vsel %vm336_vm2, %v519_v44, %v6887_v30  ;;  %v6932_v1 = vunpack.i.h.bf16 %v6930_v28  ;;  %v6931_v2 = vunpack.i.l.bf16 %v6930_v28 }
  0xa4   :  { %7099 = vrot.lane.b32.xlu0 %v7689_v42, %s10111_s20  ;;  %5931 = vmatmul.msk.bf16.gmra.mxu0 %vm925_vm9, %v894_v29 }
  0xa5   :  { %7104 = vrot.lane.b32.xlu1 %v7103_v27, %s10107_s24 }
  0xa6   :  { %v6890_v34 = vpop.permute.xlu0 %6889 }
  0xa7   :  { %v6892_v62 = vunpack.i.h.bf16 %v6890_v34  ;;  %v6891_v36 = vunpack.i.l.bf16 %v6890_v34  ;;  %v6895_v17 = vpop.permute.xlu1 %6894 }
  0xa8   :  { %v6897_v6 = vunpack.i.h.bf16 %v6895_v17  ;;  %v6896_v42 = vunpack.i.l.bf16 %v6895_v17  ;;  %7109 = vrot.lane.b32.xlu2 %v7568_v7, %s7231_s22 }
  0xa9   :  { %v526_v11 = vsel %vm341_vm3, %v522_v35, %v6891_v36  ;;  %v527_v5 = vsel %vm341_vm3, %v523_v19, %v6892_v62 }
  0xaa   :  { %v6945_v12 = vpop.permute.xlu2 %6944  ;;  %v530_v50 = vsel %vm10104_vm4, %v526_v11, %v6896_v42  ;;  %v531_v52 = vsel %vm10104_vm4, %v527_v5, %v6897_v6 }
  0xab   :  { %v534_v31 = vsel %vm351_vm5, %v530_v50, %v6901_v51  ;;  %v535_v45 = vsel %vm351_vm5, %v531_v52, %v6902_v39  ;;  %v6947_v28 = vunpack.i.h.bf16 %v6945_v12  ;;  %v6946_v34 = vunpack.i.l.bf16 %v6945_v12 }
  0xac   :  { %7114 = vrot.lane.b32.xlu0 %v7572_v8, %s10110_s17 }
  0xae   :  { %v6905_v20 = vpop.permute.xlu0 %6904 }
  0xaf   :  { %v6907_v10 = vunpack.i.h.bf16 %v6905_v20  ;;  %v6906_v40 = vunpack.i.l.bf16 %v6905_v20  ;;  %v6910_v7 = vpop.permute.xlu1 %6909 }
  0xb0   :  { %v6912_v37 = vunpack.i.h.bf16 %v6910_v7  ;;  %v6911_v46 = vunpack.i.l.bf16 %v6910_v7 }
  0xb1   :  { %v538_v8 = vsel %vm10103_vm6, %v534_v31, %v6906_v40  ;;  %v539_v47 = vsel %vm10103_vm6, %v535_v45, %v6907_v10 }
  0xb2   :  { %v542_v48 = vsel %vm361_vm7, %v538_v8, %v6911_v46  ;;  %v543_v63 = vsel %vm361_vm7, %v539_v47, %v6912_v37  ;;  %v6960_v54 = vpop.permute.xlu2 %6959 }
  0xb3   :  { %v546_v24 = vsel %vm366_vm8, %v542_v48, %v6916_v55  ;;  %v547_v49 = vsel %vm366_vm8, %v543_v63, %v6917_v41  ;;  %v6962_v40 = vunpack.i.h.bf16 %v6960_v54  ;;  %v6961_v7 = vunpack.i.l.bf16 %v6960_v54 }
  0xb4   :  { %v895_v53 = vpack.c.bf16 %v547_v49, %v546_v24 }
  0xb5   :  { %v696_v37 = vsel %vm331_vm1, %v7365_v15, %v6962_v40  ;;  %v695_v46 = vsel %vm331_vm1, %v7717_v23, %v6961_v7 }
  0xb6   :  { %v6920_v57 = vpop.permute.xlu0 %6919  ;;  %5932 = vmatmul.msk.bf16.gmra.mxu0 %vm925_vm9, %v895_v53 }
  0xb7   :  { %v6922_v56 = vunpack.i.h.bf16 %v6920_v57  ;;  %v6921_v58 = vunpack.i.l.bf16 %v6920_v57  ;;  %v6925_v18 = vpop.permute.xlu1 %6924 }
  0xb8   :  { %v6927_v3 = vunpack.i.h.bf16 %v6925_v18  ;;  %v6926_v13 = vunpack.i.l.bf16 %v6925_v18 }
  0xb9   :  { %v521_v43 = vsel %vm331_vm1, %v7836_v0, %v6922_v56  ;;  %v520_v21 = vsel %vm331_vm1, %v7831_v59, %v6921_v58 }
  0xba   :  { %v525_v4 = vsel %vm336_vm2, %v521_v43, %v6927_v3  ;;  %v524_v9 = vsel %vm336_vm2, %v520_v21, %v6926_v13  ;;  %v6975_v29 = vpop.permute.xlu2 %6974 }
  0xbb   :  { %v529_v30 = vsel %vm341_vm3, %v525_v4, %v6932_v1  ;;  %v528_v32 = vsel %vm341_vm3, %v524_v9, %v6931_v2  ;;  %v6977_v49 = vunpack.i.h.bf16 %v6975_v29  ;;  %v6976_v53 = vunpack.i.l.bf16 %v6975_v29 }
  0xbe   :  { %v6935_v14 = vpop.permute.xlu0 %6934 }
  0xbf   :  { %v6937_v25 = vunpack.i.h.bf16 %v6935_v14  ;;  %v6936_v26 = vunpack.i.l.bf16 %v6935_v14  ;;  %v6940_v27 = vpop.permute.xlu1 %6939 }
  0xc0   :  { %v6942_v33 = vunpack.i.h.bf16 %v6940_v27  ;;  %v6941_v0 = vunpack.i.l.bf16 %v6940_v27 }
  0xc1   :  { %v532_v44 = vsel %vm10104_vm4, %v528_v32, %v6936_v26  ;;  %v533_v59 = vsel %vm10104_vm4, %v529_v30, %v6937_v25 }
  0xc2   :  { %v536_v62 = vsel %vm351_vm5, %v532_v44, %v6941_v0  ;;  %v537_v36 = vsel %vm351_vm5, %v533_v59, %v6942_v33  ;;  %v6990_v52 = vpop.permute.xlu2 %6989 }
  0xc3   :  { %v540_v42 = vsel %vm10103_vm6, %v536_v62, %v6946_v34  ;;  %v541_v11 = vsel %vm10103_vm6, %v537_v36, %v6947_v28  ;;  %v6992_v2 = vunpack.i.h.bf16 %v6990_v52  ;;  %v6991_v4 = vunpack.i.l.bf16 %v6990_v52 }
  0xc6   :  { %v6950_v35 = vpop.permute.xlu0 %6949 }
  0xc7   :  { %v6952_v19 = vunpack.i.h.bf16 %v6950_v35  ;;  %v6951_v17 = vunpack.i.l.bf16 %v6950_v35  ;;  %v6955_v6 = vpop.permute.xlu1 %6954 }
  0xc8   :  { %v6957_v5 = vunpack.i.h.bf16 %v6955_v6  ;;  %v6956_v39 = vunpack.i.l.bf16 %v6955_v6 }
  0xc9   :  { %v544_v51 = vsel %vm361_vm7, %v540_v42, %v6951_v17  ;;  %v545_v50 = vsel %vm361_vm7, %v541_v11, %v6952_v19 }
  0xca   :  { %v548_v12 = vsel %vm366_vm8, %v544_v51, %v6956_v39  ;;  %v549_v20 = vsel %vm366_vm8, %v545_v50, %v6957_v5  ;;  %v7005_v24 = vpop.permute.xlu2 %7004 }
  0xcb   :  { %v896_v10 = vpack.c.bf16 %v549_v20, %v548_v12  ;;  %v7007_v62 = vunpack.i.h.bf16 %v7005_v24  ;;  %v7006_v36 = vunpack.i.l.bf16 %v7005_v24  ;;  %v10105_v12 = vmov 0  }
  0xcc   :  { %54 = vst.msk [vmem:[#allocation2 + $0x8] sm:$0xf] %vm50_vm10, %v10105_v12 }
  0xcd   :  { %5933 = vmatmul.msk.bf16.gmra.mxu0 %vm925_vm9, %v896_v10  ;;  %55 = vst.msk [vmem:[#allocation2 + $0xc] sm:$0x1] %vm52_vm11, %v10105_v12 }
  0xce   :  { %v6965_v41 = vpop.permute.xlu0 %6964  ;;  %51 = vst.msk [vmem:[#allocation2] sm:$0xf] %vm50_vm10, %v10105_v12 }
  0xcf   :  { %v6967_v55 = vunpack.i.h.bf16 %v6965_v41  ;;  %v6966_v31 = vunpack.i.l.bf16 %v6965_v41  ;;  %v6970_v45 = vpop.permute.xlu1 %6969  ;;  %53 = vst.msk [vmem:[#allocation2 + $0x4] sm:$0x1] %vm52_vm11, %v10105_v12 }
  0xd0   :  { %v6972_v8 = vunpack.i.h.bf16 %v6970_v45  ;;  %v6971_v47 = vunpack.i.l.bf16 %v6970_v45  ;;  %56 = vst.msk [vmem:[#allocation2 + $0x10] sm:$0xf] %vm50_vm10, %v10105_v12 }
  0xd1   :  { %v699_v48 = vsel %vm336_vm2, %v695_v46, %v6966_v31  ;;  %v700_v63 = vsel %vm336_vm2, %v696_v37, %v6967_v55  ;;  %57 = vst.msk [vmem:[#allocation2 + $0x14] sm:$0x1] %vm52_vm11, %v10105_v12 }
  0xd2   :  { %v703_v54 = vsel %vm341_vm3, %v699_v48, %v6971_v47  ;;  %v704_v57 = vsel %vm341_vm3, %v700_v63, %v6972_v8  ;;  %v7020_v25 = vpop.permute.xlu2 %7019  ;;  %58 = vst.msk [vmem:[#allocation2 + $0x18] sm:$0xf] %vm50_vm10, %v10105_v12 }
  0xd3   :  { %v707_v3 = vsel %vm10104_vm4, %v703_v54, %v6976_v53  ;;  %v708_v23 = vsel %vm10104_vm4, %v704_v57, %v6977_v49  ;;  %v7022_v20 = vunpack.i.h.bf16 %v7020_v25  ;;  %v7021_v10 = vunpack.i.l.bf16 %v7020_v25  ;;  %59 = vst.msk [vmem:[#allocation2 + $0x1c] sm:$0x1] %vm52_vm11, %v10105_v12 }
  0xd4   :  { %60 = vst.msk [vmem:[#allocation2 + $0x20] sm:$0xf] %vm50_vm10, %v10105_v12 }
  0xd5   :  { %61 = vst.msk [vmem:[#allocation2 + $0x24] sm:$0x1] %vm52_vm11, %v10105_v12 }
  0xd6   :  { %v6980_v56 = vpop.permute.xlu0 %6979  ;;  %62 = vst.msk [vmem:[#allocation3] sm:$0xf] %vm50_vm10, %v10105_v12 }
  0xd7   :  { %v6982_v58 = vunpack.i.h.bf16 %v6980_v56  ;;  %v6981_v18 = vunpack.i.l.bf16 %v6980_v56  ;;  %v6985_v15 = vpop.permute.xlu1 %6984  ;;  %64 = vst.msk [vmem:[#allocation3 + $0x8] sm:$0xf] %vm50_vm10, %v10105_v12 }
  0xd8   :  { %v6987_v13 = vunpack.i.h.bf16 %v6985_v15  ;;  %v6986_v43 = vunpack.i.l.bf16 %v6985_v15  ;;  %66 = vst.msk [vmem:[#allocation3 + $0x10] sm:$0xf] %vm50_vm10, %v10105_v12 }
  0xd9   :  { %v711_v21 = vsel %vm351_vm5, %v707_v3, %v6981_v18  ;;  %v712_v1 = vsel %vm351_vm5, %v708_v23, %v6982_v58  ;;  %68 = vst.msk [vmem:[#allocation3 + $0x18] sm:$0xf] %vm50_vm10, %v10105_v12 }
  0xda   :  { %v715_v9 = vsel %vm10103_vm6, %v711_v21, %v6986_v43  ;;  %v716_v14 = vsel %vm10103_vm6, %v712_v1, %v6987_v13  ;;  %v7035_v51 = vpop.permute.xlu2 %7034  ;;  %v727_v43 = vld [vmem:[%s10071_s0] sm:$0xff]  ;;  %70 = vst.msk [vmem:[#allocation3 + $0x20] sm:$0xf] %vm50_vm10, %v10105_v12 }
  0xdb   :  { %v719_v0 = vsel %vm361_vm7, %v715_v9, %v6991_v4  ;;  %v720_v44 = vsel %vm361_vm7, %v716_v14, %v6992_v2  ;;  %v7037_v37 = vunpack.i.h.bf16 %v7035_v51  ;;  %v7036_v46 = vunpack.i.l.bf16 %v7035_v51  ;;  %72 = vst.msk [vmem:[#allocation4] sm:$0xf] %vm50_vm10, %v10105_v12 }
  0xdc   :  { %73 = vst.msk [vmem:[#allocation4 + $0x4] sm:$0x1] %vm52_vm11, %v10105_v12 }
  0xdd   :  { %74 = vst.msk [vmem:[#allocation4 + $0x8] sm:$0xf] %vm50_vm10, %v10105_v12 }
  0xde   :  { %v6995_v26 = vpop.permute.xlu0 %6994  ;;  %75 = vst.msk [vmem:[#allocation4 + $0xc] sm:$0x1] %vm52_vm11, %v10105_v12 }
  0xdf   :  { %v6997_v27 = vunpack.i.h.bf16 %v6995_v26  ;;  %v6996_v29 = vunpack.i.l.bf16 %v6995_v26  ;;  %v7000_v30 = vpop.permute.xlu1 %6999  ;;  %76 = vst.msk [vmem:[#allocation4 + $0x10] sm:$0xf] %vm50_vm10, %v10105_v12 }
  0xe0   :  { %v7002_v32 = vunpack.i.h.bf16 %v7000_v30  ;;  %v7001_v33 = vunpack.i.l.bf16 %v7000_v30  ;;  %77 = vst.msk [vmem:[#allocation4 + $0x14] sm:$0x1] %vm52_vm11, %v10105_v12 }
  0xe1   :  { %v723_v59 = vsel %vm366_vm8, %v719_v0, %v6996_v29  ;;  %v724_v28 = vsel %vm366_vm8, %v720_v44, %v6997_v27  ;;  %78 = vst.msk [vmem:[#allocation4 + $0x18] sm:$0xf] %vm50_vm10, %v10105_v12 }
  0xe2   :  { %v897_v34 = vpack.c.bf16 %v724_v28, %v723_v59  ;;  %v698_v35 = vsel %vm331_vm1, %v7452_v38, %v7002_v32  ;;  %v697_v19 = vsel %vm331_vm1, %v7370_v16, %v7001_v33  ;;  %v7050_v53 = vpop.permute.xlu2 %7049  ;;  %79 = vst.msk [vmem:[#allocation4 + $0x1c] sm:$0x1] %vm52_vm11, %v10105_v12 }
  0xe3   :  { %v702_v6 = vsel %vm336_vm2, %v698_v35, %v7007_v62  ;;  %v701_v42 = vsel %vm336_vm2, %v697_v19, %v7006_v36  ;;  %v7052_v14 = vunpack.i.h.bf16 %v7050_v53  ;;  %v7051_v25 = vunpack.i.l.bf16 %v7050_v53  ;;  %82 = vst.msk [vmem:[#allocation5] sm:$0xf] %vm50_vm10, %v10105_v12 }
  0xe4   :  { %5934 = vmatmul.msk.bf16.gmra.mxu0 %vm925_vm9, %v897_v34  ;;  %84 = vst.msk [vmem:[#allocation5 + $0x8] sm:$0xf] %vm50_vm10, %v10105_v12 }
  0xe5   :  { %86 = vst.msk [vmem:[#allocation5 + $0x10] sm:$0xf] %vm50_vm10, %v10105_v12 }
  0xe6   :  { %v7010_v17 = vpop.permute.xlu0 %7009  ;;  %88 = vst.msk [vmem:[#allocation5 + $0x18] sm:$0xf] %vm50_vm10, %v10105_v12 }
  0xe7   :  { %v7012_v11 = vunpack.i.h.bf16 %v7010_v17  ;;  %v7011_v5 = vunpack.i.l.bf16 %v7010_v17  ;;  %v7015_v39 = vpop.permute.xlu1 %7014  ;;  %127 = vst.msk [vmem:[#allocation7] sm:$0xf] %vm50_vm10, %v10105_v12 }
  0xe8   :  { %v7017_v50 = vunpack.i.h.bf16 %v7015_v39  ;;  %v7016_v52 = vunpack.i.l.bf16 %v7015_v39  ;;  %v7986_v39 = vld [vmem:[%s10073_s2] ss:$0 sm:$0xff]  ;;  %128 = vst.msk [vmem:[#allocation7 + $0x4] sm:$0xf] %vm50_vm10, %v10105_v12  ;;  %s7234_s2 = smov 48  }
  0xe9   :  { %v705_v16 = vsel %vm341_vm3, %v701_v42, %v7011_v5  ;;  %v706_v38 = vsel %vm341_vm3, %v702_v6, %v7012_v11  ;;  %131 = vst.msk [vmem:[#allocation7 + $0xc] sm:$0xf] %vm50_vm10, %v10105_v12 }
  0xea   :  { %v709_v40 = vsel %vm10104_vm4, %v705_v16, %v7016_v52  ;;  %v710_v7 = vsel %vm10104_vm4, %v706_v38, %v7017_v50  ;;  %v7065_v9 = vpop.permute.xlu2 %7064  ;;  %132 = vst.msk [vmem:[#allocation7 + $0x10] sm:$0xf] %vm50_vm10, %v10105_v12 }
  0xeb   :  { %v713_v8 = vsel %vm351_vm5, %v709_v40, %v7021_v10  ;;  %v714_v47 = vsel %vm351_vm5, %v710_v7, %v7022_v20  ;;  %v7067_v62 = vunpack.i.h.bf16 %v7065_v9  ;;  %v7066_v36 = vunpack.i.l.bf16 %v7065_v9  ;;  %134 = vst.msk [vmem:[#allocation7 + $0x18] sm:$0xf] %vm50_vm10, %v10105_v12 }
  0xec   :  { %135 = vst.msk [vmem:[#allocation7 + $0x1c] sm:$0xf] %vm50_vm10, %v10105_v12 }
  0xed   :  { %137 = vst.msk [vmem:[#allocation7 + $0x24] sm:$0xf] %vm50_vm10, %v10105_v12 }
  0xee   :  { %v7025_v41 = vpop.permute.xlu0 %7024  ;;  %138 = vst.msk [vmem:[#allocation7 + $0x28] sm:$0xf] %vm50_vm10, %v10105_v12 }
  0xef   :  { %v7027_v55 = vunpack.i.h.bf16 %v7025_v41  ;;  %v7026_v31 = vunpack.i.l.bf16 %v7025_v41  ;;  %v7030_v45 = vpop.permute.xlu1 %7029  ;;  %140 = vst.msk [vmem:[#allocation7 + $0x30] sm:$0xf] %vm50_vm10, %v10105_v12 }
  0xf0   :  { %v7032_v48 = vunpack.i.h.bf16 %v7030_v45  ;;  %v7031_v63 = vunpack.i.l.bf16 %v7030_v45  ;;  %141 = vst.msk [vmem:[#allocation7 + $0x34] sm:$0xf] %vm50_vm10, %v10105_v12 }
  0xf1   :  { %v717_v24 = vsel %vm10103_vm6, %v713_v8, %v7026_v31  ;;  %v718_v49 = vsel %vm10103_vm6, %v714_v47, %v7027_v55  ;;  %143 = vst.msk [vmem:[#allocation7 + $0x3c] sm:$0xf] %vm50_vm10, %v10105_v12 }
  0xf2   :  { %v721_v54 = vsel %vm361_vm7, %v717_v24, %v7031_v63  ;;  %v722_v57 = vsel %vm361_vm7, %v718_v49, %v7032_v48  ;;  %v7080_v17 = vpop.permute.xlu2 %7079  ;;  %144 = vst.msk [vmem:[#allocation7 + $0x40] sm:$0xf] %vm50_vm10, %v10105_v12 }
  0xf3   :  { %v725_v56 = vsel %vm366_vm8, %v721_v54, %v7036_v46  ;;  %v726_v58 = vsel %vm366_vm8, %v722_v57, %v7037_v37  ;;  %v7082_v31 = vunpack.i.h.bf16 %v7080_v17  ;;  %v7081_v45 = vunpack.i.l.bf16 %v7080_v17  ;;  %146 = vst.msk [vmem:[#allocation7 + $0x48] sm:$0xf] %vm50_vm10, %v10105_v12 }
  0xf4   :  { %v898_v18 = vpack.c.bf16 %v726_v58, %v725_v56  ;;  %147 = vst.msk [vmem:[#allocation7 + $0x4c] sm:$0xf] %vm50_vm10, %v10105_v12 }
  0xf5   :  { %v864_v49 = vsel %vm331_vm1, %v7596_v22, %v7082_v31  ;;  %v863_v53 = vsel %vm331_vm1, %v7532_v61, %v7081_v45  ;;  %149 = vst.msk [vmem:[#allocation7 + $0x54] sm:$0xf] %vm50_vm10, %v10105_v12 }
  0xf6   :  { %v7040_v15 = vpop.permute.xlu0 %7039  ;;  %5935 = vmatmul.msk.bf16.gmra.mxu0 %vm925_vm9, %v898_v18  ;;  %150 = vst.msk [vmem:[#allocation7 + $0x58] sm:$0xf] %vm50_vm10, %v10105_v12 }
  0xf7   :  { %v7042_v3 = vunpack.i.h.bf16 %v7040_v15  ;;  %v7041_v23 = vunpack.i.l.bf16 %v7040_v15  ;;  %v7045_v13 = vpop.permute.xlu1 %7044  ;;  %152 = vst.msk [vmem:[#allocation7 + $0x60] sm:$0xf] %vm50_vm10, %v10105_v12 }
  0xf8   :  { %v7047_v21 = vunpack.i.h.bf16 %v7045_v13  ;;  %v7046_v1 = vunpack.i.l.bf16 %v7045_v13  ;;  %153 = vst.msk [vmem:[#allocation7 + $0x64] sm:$0xf] %vm50_vm10, %v10105_v12 }
  0xf9   :  { %v862_v2 = vsel %vm331_vm1, %v7527_v60, %v7042_v3  ;;  %v861_v4 = vsel %vm331_vm1, %v727_v43, %v7041_v23  ;;  %v1122_v3 = vld [vmem:[#allocation2] sm:$0xe]  ;;  %v1123_v23 = vld [vmem:[#allocation2 + $0x4] sm:$0x1]  ;;  %155 = vst.msk [vmem:[#allocation7 + $0x6c] sm:$0xf] %vm50_vm10, %v10105_v12 }
  0xfa   :  { %v866_v26 = vsel %vm336_vm2, %v862_v2, %v7047_v21  ;;  %v865_v27 = vsel %vm336_vm2, %v861_v4, %v7046_v1  ;;  %v7095_v24 = vpop.permute.xlu2 %7094  ;;  %156 = vst.msk [vmem:[#allocation7 + $0x70] sm:$0xf] %vm50_vm10, %v10105_v12  ;;  %vm1430_vm1 = vcmask 1043456  }
  0xfb   :  { %v870_v33 = vsel %vm341_vm3, %v866_v26, %v7052_v14  ;;  %v869_v0 = vsel %vm341_vm3, %v865_v27, %v7051_v25  ;;  %v7097_v13 = vunpack.i.h.bf16 %v7095_v24  ;;  %v7096_v43 = vunpack.i.l.bf16 %v7095_v24 }
  0xfc   :  { %v5938_v25 = vrot.slane %v1122_v3, 9  ;;  %v1143_v26 = vrot.slane %v1123_v23, 5 }
  0xfe   :  { %v7055_v29 = vpop.permute.xlu0 %7054 }
  0xff   :  { %v7057_v60 = vunpack.i.h.bf16 %v7055_v29  ;;  %v7056_v30 = vunpack.i.l.bf16 %v7055_v29  ;;  %v7060_v32 = vpop.permute.xlu1 %7059 }
 0x100   :  { %v7062_v44 = vunpack.i.h.bf16 %v7060_v32  ;;  %v7061_v59 = vunpack.i.l.bf16 %v7060_v32 }
 0x101   :  { %v873_v28 = vsel %vm10104_vm4, %v869_v0, %v7056_v30  ;;  %v874_v34 = vsel %vm10104_vm4, %v870_v33, %v7057_v60 }
 0x102   :  { %v877_v35 = vsel %vm351_vm5, %v873_v28, %v7061_v59  ;;  %v878_v19 = vsel %vm351_vm5, %v874_v34, %v7062_v44  ;;  %v7110_v0 = vpop.permute.xlu2 %7109  ;;  %v1144_v34 = vsel %vm8039_vm15, %v5938_v25, %v1143_v26 }
 0x103   :  { %v881_v51 = vsel %vm10103_vm6, %v877_v35, %v7066_v36  ;;  %v882_v50 = vsel %vm10103_vm6, %v878_v19, %v7067_v62  ;;  %v7112_v36 = vunpack.i.h.bf16 %v7110_v0  ;;  %v7111_v35 = vunpack.i.l.bf16 %v7110_v0 }
 0x106   :  { %v7070_v6 = vpop.permute.xlu0 %7069 }
 0x107   :  { %v7072_v42 = vunpack.i.h.bf16 %v7070_v6  ;;  %v7071_v11 = vunpack.i.l.bf16 %v7070_v6  ;;  %v7075_v5 = vpop.permute.xlu1 %7074 }
 0x108   :  { %v7077_v52 = vunpack.i.h.bf16 %v7075_v5  ;;  %v7076_v16 = vunpack.i.l.bf16 %v7075_v5 }
 0x109   :  { %v885_v38 = vsel %vm361_vm7, %v881_v51, %v7071_v11  ;;  %v886_v20 = vsel %vm361_vm7, %v882_v50, %v7072_v42  ;;  %v1261_v51 = vunpack.c.l.b16 %v1144_v34 }
 0x10a   :  { %v963_v10 = vpop.f32.mrf.mxu0  ;;  %v889_v40 = vsel %vm366_vm8, %v885_v38, %v7076_v16  ;;  %v890_v7 = vsel %vm366_vm8, %v886_v20, %v7077_v52 }
 0x10b   :  { %v964_v41 = vadd.f32 %v7986_v39, %v963_v10  ;;  %v899_v55 = vpack.c.bf16 %v890_v7, %v889_v40 }
 0x10d   :  { %v1003_v37 = vmax.f32 %v964_v41, 0.0  ;;  %5936 = vmatmul.msk.bf16.gmra.mxu0 %vm925_vm9, %v899_v55 }
 0x10e   :  { %v7085_v46 = vpop.permute.xlu0 %7084 }
 0x10f   :  { %v1019_v8 = vpack.c.bf16 %v1003_v37, %v1003_v37  ;;  %v7087_v47 = vunpack.i.h.bf16 %v7085_v46  ;;  %v7086_v48 = vunpack.i.l.bf16 %v7085_v46  ;;  %v7090_v63 = vpop.permute.xlu1 %7089 }
 0x110   :  { %v7092_v57 = vunpack.i.h.bf16 %v7090_v63  ;;  %v7091_v56 = vunpack.i.l.bf16 %v7090_v63 }
 0x111   :  { %v1036_v54 = vrot.slane %v1019_v8, 7  ;;  %v867_v22 = vsel %vm336_vm2, %v863_v53, %v7086_v48  ;;  %v868_v61 = vsel %vm336_vm2, %v864_v49, %v7087_v47 }
 0x112   :  { %v965_v58 = vpop.f32.mrf.mxu0  ;;  %v871_v21 = vsel %vm341_vm3, %v867_v22, %v7091_v56  ;;  %v872_v1 = vsel %vm341_vm3, %v868_v61, %v7092_v57  ;;  %vm10102_vm3 = vcmask 326656  }
 0x113   :  { %v1037_v18 = vrot.slane %v1036_v54, 4  ;;  %1042 = vst.msk [vmem:[#allocation2 + $0x8] sm:$0xe] %vm1041_vm12, %v1036_v54  ;;  %v966_v15 = vadd.f32 %v7986_v39, %v965_v58  ;;  %v875_v60 = vsel %vm10104_vm4, %v871_v21, %v7096_v43  ;;  %v876_v30 = vsel %vm10104_vm4, %v872_v1, %v7097_v13  ;;  %v5960_v1 = vld [vmem:[#allocation3] sm:$0xf] }
 0x115   :  { %1043 = vst.msk [vmem:[#allocation2 + $0xc] sm:$0x1] %vm52_vm11, %v1037_v18  ;;  %v1004_v27 = vmax.f32 %v966_v15, 0.0 }
 0x116   :  { %v7100_v2 = vpop.permute.xlu0 %7099 }
 0x117   :  { %v7102_v4 = vunpack.i.h.bf16 %v7100_v2  ;;  %v7101_v9 = vunpack.i.l.bf16 %v7100_v2  ;;  %v7105_v14 = vpop.permute.xlu1 %7104  ;;  %v1020_v62 = vpack.c.bf16 %v1004_v27, %v1004_v27 }
 0x118   :  { %v7107_v32 = vunpack.i.h.bf16 %v7105_v14  ;;  %v7106_v33 = vunpack.i.l.bf16 %v7105_v14 }
 0x119   :  { %v879_v44 = vsel %vm351_vm5, %v875_v60, %v7101_v9  ;;  %v880_v59 = vsel %vm351_vm5, %v876_v30, %v7102_v4  ;;  %v1045_v38 = vrot.slane %v1020_v62, 7  ;;  %vm10101_vm5 = vcmask 392192  }
 0x11a   :  { %v1124_v28 = vld [vmem:[#allocation2 + $0x8] sm:$0xe]  ;;  %v883_v17 = vsel %vm10103_vm6, %v879_v44, %v7106_v33  ;;  %v884_v6 = vsel %vm10103_vm6, %v880_v59, %v7107_v32 }
 0x11b   :  { %v5939_v42 = vrot.slane %v1124_v28, 9  ;;  %v887_v20 = vsel %vm361_vm7, %v883_v17, %v7111_v35  ;;  %v888_v10 = vsel %vm361_vm7, %v884_v6, %v7112_v36  ;;  %v1046_v46 = vrot.slane %v1045_v38, 4  ;;  %1050 = vst.msk [vmem:[#allocation2 + $0x10] sm:$0xe] %vm1041_vm12, %v1045_v38  ;;  %v5984_v54 = vld [vmem:[#allocation2 + $0x8] sm:$0xf] }
 0x11c   :  { %v1125_v19 = vld [vmem:[#allocation2 + $0xc] sm:$0x1]  ;;  %vm10100_vm7 = vcmask 457728  }
 0x11d   :  { %v1147_v11 = vrot.slane %v1125_v19, 5  ;;  %1051 = vst.msk [vmem:[#allocation2 + $0x14] sm:$0x1] %vm52_vm11, %v1046_v46 }
 0x11e   :  { %v7115_v5 = vpop.permute.xlu0 %7114 }
 0x11f   :  { %v7117_v50 = vunpack.i.h.bf16 %v7115_v5  ;;  %v7116_v52 = vunpack.i.l.bf16 %v7115_v5  ;;  %v1148_v16 = vsel %vm8039_vm15, %v5939_v42, %v1147_v11 }
 0x120   :  { %v1262_v40 = vunpack.c.l.b16 %v1148_v16 }
 0x121   :  { %v968_v7 = vpop.f32.mrf.mxu0  ;;  %v891_v41 = vsel %vm366_vm8, %v887_v20, %v7116_v52  ;;  %v892_v55 = vsel %vm366_vm8, %v888_v10, %v7117_v50 }
 0x122   :  { %v969_v31 = vadd.f32 %v7986_v39, %v968_v7  ;;  %v900_v45 = vpack.c.bf16 %v892_v55, %v891_v41  ;;  %v1265_v37 = vpack.c.b16 %v1262_v40, %v1261_v51  ;;  %v6650_v57 = vld [vmem:[#allocation2 + $0xc] sm:$0xf0] }
 0x123   :  { %v5985_v58 = vor.u32 %v6650_v57, %v5984_v54  ;;  %v1206_v54 = vld [vmem:[#allocation2 + $0xc] sm:$0x1]  ;;  %v1207_v57 = vld [vmem:[#allocation2 + $0x10] sm:$0xe] }
 0x124   :  { %v1005_v8 = vmax.f32 %v969_v31, 0.0  ;;  %5937 = vmatmul.msk.bf16.gmra.mxu0 %vm925_vm9, %v900_v45  ;;  %1267 = vrot.lane.b32.xlu2 %v1265_v37, %s10108_s16  ;;  %vm1380_vm9 = vcmask 523264  }
 0x125   :  { %1319 = vrot.lane.b32.xlu0 %v5985_v58, %s7234_s2 }
 0x126   :  { %v1021_v47 = vpack.c.bf16 %v1005_v8, %v1005_v8 }
 0x128   :  { %v1053_v48 = vrot.slane %v1021_v47, 7 }
 0x129   :  { %v970_v63 = vpop.f32.mrf.mxu0 }
 0x12a   :  { %v1054_v24 = vrot.slane %v1053_v48, 4  ;;  %1058 = vst.msk [vmem:[#allocation2 + $0x18] sm:$0xe] %vm1041_vm12, %v1053_v48  ;;  %v971_v49 = vadd.f32 %v7986_v39, %v970_v63  ;;  %v1208_v48 = vld [vmem:[#allocation2 + $0x14] sm:$0x1] }
 0x12c   :  { %1059 = vst.msk [vmem:[#allocation2 + $0x1c] sm:$0x1] %vm52_vm11, %v1054_v24  ;;  %v1006_v53 = vmax.f32 %v971_v49, 0.0 }
 0x12e   :  { %v1022_v56 = vpack.c.bf16 %v1006_v53, %v1006_v53 }
 0x130   :  { %v1061_v18 = vrot.slane %v1022_v56, 7 }
 0x132   :  { %v1062_v22 = vrot.slane %v1061_v18, 4  ;;  %1066 = vst.msk [vmem:[#allocation2 + $0x20] sm:$0xe] %vm1041_vm12, %v1061_v18  ;;  %v1227_v18 = vrot.slane %v1208_v48, 5 }
 0x133   :  { %v973_v61 = vpop.f32.mrf.mxu0 }
 0x134   :  { %1067 = vst.msk [vmem:[#allocation2 + $0x24] sm:$0x1] %vm52_vm11, %v1062_v22  ;;  %v974_v15 = vadd.f32 %v7986_v39, %v973_v61 }
 0x136   :  { %v1007_v3 = vmax.f32 %v974_v15, 0.0 }
 0x138   :  { %v1023_v23 = vpack.c.bf16 %v1007_v3, %v1007_v3  ;;  %v1205_v3 = vld [vmem:[#allocation2 + $0x8] sm:$0xe] }
 0x13a   :  { %1069 = vst.msk [vmem:[#allocation3 + $0x8] sm:$0xf] %vm50_vm10, %v1023_v23 }
 0x13b   :  { %v975_v13 = vpop.f32.mrf.mxu0 }
 0x13c   :  { %v976_v43 = vadd.f32 %v7986_v39, %v975_v13  ;;  %v1223_v13 = vrot.slane %v1206_v54, 5 }
 0x13e   :  { %v1008_v21 = vmax.f32 %v976_v43, 0.0  ;;  %v5947_v43 = vrot.slane %v1207_v57, 9 }
 0x140   :  { %v1024_v2 = vpack.c.bf16 %v1008_v21, %v1008_v21 }
 0x141   :  { %v6644_v4 = vld [vmem:[#allocation3 + $0x4] sm:$0xf0] }
 0x142   :  { %1071 = vst.msk [vmem:[#allocation3 + $0x10] sm:$0xf] %vm50_vm10, %v1024_v2  ;;  %v5961_v9 = vor.u32 %v6644_v4, %v5960_v1  ;;  %v5992_v14 = vld [vmem:[#allocation3 + $0x8] sm:$0xf] }
 0x144   :  { %1257 = vrot.lane.b32.xlu1 %v5961_v9, %s10109_s30  ;;  %v5946_v9 = vrot.slane %v1205_v3, 9 }
 0x149   :  { %v6652_v25 = vld [vmem:[#allocation3 + $0xc] sm:$0xf0] }
 0x14a   :  { %v978_v26 = vpop.f32.mrf.mxu0  ;;  %v5993_v27 = vor.u32 %v6652_v25, %v5992_v14  ;;  %v5964_v1 = vld [vmem:[#allocation3 + $0x10] sm:$0xf]  ;;  %v1228_v14 = vsel %vm8039_vm15, %v5947_v43, %v1227_v18  ;;  %v1210_v43 = vld [vmem:[#allocation2 + $0x1c] sm:$0x1] }
 0x14b   :  { %v979_v60 = vadd.f32 %v7986_v39, %v978_v26  ;;  %v1224_v26 = vsel %vm8039_vm15, %v5946_v9, %v1223_v13  ;;  %v1209_v9 = vld [vmem:[#allocation2 + $0x18] sm:$0xe] }
 0x14c   :  { %1333 = vrot.lane.b32.xlu1 %v5993_v27, %s7235_s28  ;;  %v1338_v27 = vunpack.c.l.b16 %v1228_v14 }
 0x14d   :  { %v1009_v30 = vmax.f32 %v979_v60, 0.0  ;;  %v1337_v60 = vunpack.c.l.b16 %v1224_v26  ;;  %v5948_v26 = vrot.slane %v1209_v9, 9 }
 0x14f   :  { %v1025_v32 = vpack.c.bf16 %v1009_v30, %v1009_v30  ;;  %v1341_v30 = vpack.c.b16 %v1338_v27, %v1337_v60 }
 0x151   :  { %1073 = vst.msk [vmem:[#allocation3 + $0x18] sm:$0xf] %vm50_vm10, %v1025_v32 }
 0x152   :  { %v980_v33 = vpop.f32.mrf.mxu0 }
 0x153   :  { %v981_v0 = vadd.f32 %v7986_v39, %v980_v33 }
 0x155   :  { %v1010_v44 = vmax.f32 %v981_v0, 0.0 }
 0x157   :  { %v1026_v59 = vpack.c.bf16 %v1010_v44, %v1010_v44 }
 0x158   :  { %v6645_v15 = vld [vmem:[#allocation3 + $0x14] sm:$0xf0] }
 0x159   :  { %1075 = vst.msk [vmem:[#allocation3 + $0x20] sm:$0xf] %vm50_vm10, %v1026_v59  ;;  %v5965_v4 = vor.u32 %v6645_v15, %v5964_v1  ;;  %v1212_v15 = vld [vmem:[#allocation2 + $0x24] sm:$0x1] }
 0x161   :  { %v983_v28 = vpop.f32.mrf.mxu0 }
 0x162   :  { %v984_v34 = vadd.f32 %v7986_v39, %v983_v28 }
 0x164   :  { %v1011_v62 = vmax.f32 %v984_v34, 0.0 }
 0x166   :  { %v1027_v36 = vpack.c.bf16 %v1011_v62, %v1011_v62 }
 0x168   :  { %v1077_v35 = vrot.slane %v1027_v36, 7 }
 0x169   :  { %v985_v19 = vpop.f32.mrf.mxu0 }
 0x16a   :  { %v1078_v17 = vrot.slane %v1077_v35, 4  ;;  %1081 = vst.msk [vmem:[#allocation4] sm:$0xe] %vm1041_vm12, %v1077_v35  ;;  %v986_v6 = vadd.f32 %v7986_v39, %v985_v19  ;;  %v6651_v19 = vld [vmem:[#allocation2 + $0x1c] sm:$0xf0] }
 0x16c   :  { %1082 = vst.msk [vmem:[#allocation4 + $0x4] sm:$0x1] %vm52_vm11, %v1078_v17  ;;  %v1012_v42 = vmax.f32 %v986_v6, 0.0  ;;  %v5988_v6 = vld [vmem:[#allocation2 + $0x18] sm:$0xf] }
 0x16e   :  { %v1028_v11 = vpack.c.bf16 %v1012_v42, %v1012_v42  ;;  %v5989_v42 = vor.u32 %v6651_v19, %v5988_v6  ;;  %v6657_v6 = vld [vmem:[%s10075_s3 + $0x18] sm:$0xff] }
 0x170   :  { %v1084_v5 = vrot.slane %v1028_v11, 7  ;;  %v1129_v11 = vld [vmem:[#allocation2 + $0x1c] sm:$0x1] }
 0x171   :  { %v1165_v20 = vld [vmem:[#allocation4] sm:$0xe] }
 0x172   :  { %v1085_v51 = vrot.slane %v1084_v5, 4  ;;  %1089 = vst.msk [vmem:[#allocation4 + $0x8] sm:$0xe] %vm1041_vm12, %v1084_v5  ;;  %v5968_v7 = vld [vmem:[#allocation4] sm:$0xf]  ;;  %v5942_v31 = vrot.slane %v1165_v20, 9 }
 0x173   :  { %v988_v50 = vpop.f32.mrf.mxu0  ;;  %v1166_v16 = vld [vmem:[#allocation4 + $0x4] sm:$0x1] }
 0x174   :  { %1090 = vst.msk [vmem:[#allocation4 + $0xc] sm:$0x1] %vm52_vm11, %v1085_v51  ;;  %v989_v52 = vadd.f32 %v7986_v39, %v988_v50  ;;  %v1183_v10 = vrot.slane %v1166_v16, 5  ;;  %v1127_v5 = vld [vmem:[#allocation2 + $0x14] sm:$0x1]  ;;  %v1155_v50 = vrot.slane %v1129_v11, 5 }
 0x175   :  { %v1128_v51 = vld [vmem:[#allocation2 + $0x18] sm:$0xe]  ;;  %v1151_v20 = vrot.slane %v1127_v5, 5  ;;  %v6655_v11 = vld [vmem:[%s10075_s3 + $0x8] sm:$0xff]  ;;  %v6654_v5 = vld [vmem:[%s10075_s3] sm:$0xff] }
 0x176   :  { %v1013_v38 = vmax.f32 %v989_v52, 0.0  ;;  %v1184_v47 = vsel %vm8039_vm15, %v5942_v31, %v1183_v10  ;;  %v1126_v52 = vld [vmem:[#allocation2 + $0x10] sm:$0xe]  ;;  %v5941_v10 = vrot.slane %v1128_v51, 9 }
 0x177   :  { %v1299_v22 = vunpack.c.l.b16 %v1184_v47 }
 0x178   :  { %v1029_v40 = vpack.c.bf16 %v1013_v38, %v1013_v38  ;;  %v1156_v31 = vsel %vm8039_vm15, %v5941_v10, %v1155_v50 }
 0x179   :  { %v6646_v41 = vld [vmem:[#allocation4 + $0x4] sm:$0xf0] }
 0x17a   :  { %v1167_v55 = vld [vmem:[#allocation4 + $0x8] sm:$0xe]  ;;  %v1092_v45 = vrot.slane %v1029_v40, 7  ;;  %v5969_v37 = vor.u32 %v6646_v41, %v5968_v7 }
 0x17b   :  { %v990_v46 = vpop.f32.mrf.mxu0  ;;  %v1168_v8 = vld [vmem:[#allocation4 + $0xc] sm:$0x1]  ;;  %v5943_v49 = vrot.slane %v1167_v55, 9  ;;  %v5940_v55 = vrot.slane %v1126_v52, 9 }
 0x17c   :  { %v1093_v63 = vrot.slane %v1092_v45, 4  ;;  %1097 = vst.msk [vmem:[#allocation4 + $0x10] sm:$0xe] %vm1041_vm12, %v1092_v45  ;;  %v991_v24 = vadd.f32 %v7986_v39, %v990_v46  ;;  %1281 = vrot.lane.b32.xlu0 %v5969_v37, %s10107_s24  ;;  %v1187_v53 = vrot.slane %v1168_v8, 5  ;;  %v1264_v8 = vunpack.c.l.b16 %v1156_v31 }
 0x17d   :  { %v1152_v46 = vsel %vm8039_vm15, %v5940_v55, %v1151_v20 }
 0x17e   :  { %1098 = vst.msk [vmem:[#allocation4 + $0x14] sm:$0x1] %vm52_vm11, %v1093_v63  ;;  %v1014_v56 = vmax.f32 %v991_v24, 0.0  ;;  %v1188_v58 = vsel %vm8039_vm15, %v5943_v49, %v1187_v53  ;;  %v1263_v49 = vunpack.c.l.b16 %v1152_v46  ;;  %v1268_v50 = vpop.permute.xlu2 %1267 }
 0x17f   :  { %v1300_v61 = vunpack.c.l.b16 %v1188_v58 }
 0x180   :  { %v1030_v23 = vpack.c.bf16 %v1014_v56, %v1014_v56  ;;  %v1266_v58 = vpack.c.b16 %v1264_v8, %v1263_v49  ;;  %v6643_v49 = vld [vmem:[#allocation2 + $0x14] sm:$0xf0] }
 0x181   :  { %v1303_v21 = vpack.c.b16 %v1300_v61, %v1299_v22 }
 0x182   :  { %v1100_v2 = vrot.slane %v1030_v23, 7 }
 0x183   :  { %1305 = vrot.lane.b32.xlu2 %v1303_v21, %s7236_s25  ;;  %v5972_v28 = vld [vmem:[#allocation4 + $0x10] sm:$0xf] }
 0x184   :  { %v1101_v25 = vrot.slane %v1100_v2, 4  ;;  %1105 = vst.msk [vmem:[#allocation4 + $0x18] sm:$0xe] %vm1041_vm12, %v1100_v2  ;;  %1259 = vrot.lane.b32.xlu0 %v5965_v4, %s10109_s30  ;;  %v1169_v53 = vld [vmem:[#allocation4 + $0x10] sm:$0xe]  ;;  %v1235_v2 = vrot.slane %v1212_v15, 5 }
 0x185   :  { %v1170_v47 = vld [vmem:[#allocation4 + $0x14] sm:$0x1]  ;;  %v5944_v22 = vrot.slane %v1169_v53, 9  ;;  %v1211_v21 = vld [vmem:[#allocation2 + $0x20] sm:$0xe] }
 0x186   :  { %1106 = vst.msk [vmem:[#allocation4 + $0x1c] sm:$0x1] %vm52_vm11, %v1101_v25  ;;  %v1191_v54 = vrot.slane %v1170_v47, 5  ;;  %v5949_v14 = vrot.slane %v1211_v21, 9 }
 0x188   :  { %v1192_v23 = vsel %vm8039_vm15, %v5944_v22, %v1191_v54  ;;  %v1236_v27 = vsel %vm8039_vm15, %v5949_v14, %v1235_v2  ;;  %v5956_v54 = vld [vmem:[#allocation2 + $0x10] sm:$0xf] }
 0x189   :  { %v1301_v4 = vunpack.c.l.b16 %v1192_v23 }
 0x18a   :  { %v993_v32 = vpop.f32.mrf.mxu0 }
 0x18b   :  { %v994_v33 = vadd.f32 %v7986_v39, %v993_v32  ;;  %1343 = vrot.lane.b32.xlu2 %v1341_v30, %s7237_s29  ;;  %v6647_v44 = vld [vmem:[#allocation4 + $0x14] sm:$0xf0]  ;;  %v1340_v30 = vunpack.c.l.b16 %v1236_v27 }
 0x18c   :  { %v5973_v34 = vor.u32 %v6647_v44, %v5972_v28  ;;  %v1171_v48 = vld [vmem:[#allocation4 + $0x18] sm:$0xe] }
 0x18d   :  { %v1015_v0 = vmax.f32 %v994_v33, 0.0  ;;  %v1172_v45 = vld [vmem:[#allocation4 + $0x1c] sm:$0x1]  ;;  %v5945_v57 = vrot.slane %v1171_v48, 9  ;;  %v6653_v28 = vld [vmem:[#allocation3 + $0x1c] sm:$0xf0] }
 0x18e   :  { %v1195_v24 = vrot.slane %v1172_v45, 5 }
 0x18f   :  { %v1031_v59 = vpack.c.bf16 %v1015_v0, %v1015_v0 }
 0x190   :  { %v1196_v61 = vsel %vm8039_vm15, %v5945_v57, %v1195_v24  ;;  %v5957_v57 = vor.u32 %v6643_v49, %v5956_v54  ;;  %v6659_v49 = vld [vmem:[%s10077_s5 + $0x8] sm:$0xff]  ;;  %v6658_v54 = vld [vmem:[%s10077_s5] sm:$0xff] }
 0x191   :  { %1107 = vst.msk [vmem:[#allocation5] sm:$0xf] %vm50_vm10, %v1031_v59  ;;  %v1302_v13 = vunpack.c.l.b16 %v1196_v61 }
 0x192   :  { %v995_v62 = vpop.f32.mrf.mxu0 }
 0x193   :  { %v996_v36 = vadd.f32 %v7986_v39, %v995_v62  ;;  %1283 = vrot.lane.b32.xlu2 %v5973_v34, %s10107_s24  ;;  %v1304_v25 = vpack.c.b16 %v1302_v13, %v1301_v4  ;;  %v5996_v34 = vld [vmem:[#allocation3 + $0x18] sm:$0xf] }
 0x194   :  { %v5997_v62 = vor.u32 %v6653_v28, %v5996_v34 }
 0x195   :  { %v1016_v35 = vmax.f32 %v996_v36, 0.0  ;;  %v1393_v36 = vld [vmem:[%s10075_s3 + $0x20] sm:$0xf] }
 0x197   :  { %v1032_v17 = vpack.c.bf16 %v1016_v35, %v1016_v35  ;;  %v1415_v35 = vunpack.c.l.b16 %v1393_v36  ;;  %v1320_v52 = vpop.permute.xlu0 %1319 }
 0x198   :  { %v5976_v16 = vld [vmem:[#allocation5] sm:$0xf] }
 0x199   :  { %1109 = vst.msk [vmem:[#allocation5 + $0x8] sm:$0xf] %vm50_vm10, %v1032_v17  ;;  %v1420_v19 = vpack.c.b16 %v1415_v35, %v1415_v35 }
 0x19b   :  { %1321 = vrot.lane.b32.xlu2 %v5989_v42, %s7234_s2  ;;  %v1432_v17 = vsel %vm1430_vm1, %v1420_v19, 0  ;;  %v6656_v42 = vld [vmem:[%s10075_s3 + $0x10] sm:$0xff] }
 0x19c   :  { %1437 = vmatpush.bf16.msra.mxu2 %v1432_v17 }
 0x1a0   :  { %v6648_v38 = vld [vmem:[#allocation5 + $0x4] sm:$0xf0]  ;;  %1438 = vmatpush.bf16.msra.mxu2 %v6657_v6 }
 0x1a1   :  { %v998_v40 = vpop.f32.mrf.mxu0  ;;  %v5977_v7 = vor.u32 %v6648_v38, %v5976_v16  ;;  %v5952_v16 = vld [vmem:[#allocation2] sm:$0xf]  ;;  %v6642_v38 = vld [vmem:[#allocation2 + $0x4] sm:$0xf0] }
 0x1a2   :  { %v999_v41 = vadd.f32 %v7986_v39, %v998_v40  ;;  %v5953_v10 = vor.u32 %v6642_v38, %v5952_v16 }
 0x1a3   :  { %1295 = vrot.lane.b32.xlu1 %v5977_v7, %s10110_s17 }
 0x1a4   :  { %v1017_v37 = vmax.f32 %v999_v41, 0.0  ;;  %1439 = vmatpush.bf16.msra.mxu2 %v6656_v42 }
 0x1a6   :  { %v1033_v63 = vpack.c.bf16 %v1017_v37, %v1017_v37 }
 0x1a8   :  { %1111 = vst.msk [vmem:[#allocation5 + $0x10] sm:$0xf] %vm50_vm10, %v1033_v63  ;;  %1440 = vmatpush.bf16.msra.mxu2 %v6655_v11 }
 0x1a9   :  { %v1000_v56 = vpop.f32.mrf.mxu0 }
 0x1aa   :  { %v1001_v18 = vadd.f32 %v7986_v39, %v1000_v56  ;;  %v1231_v39 = vrot.slane %v1210_v43, 5 }
 0x1ab   :  { %1269 = vrot.lane.b32.xlu1 %v1266_v58, %s10108_s16 }
 0x1ac   :  { %v1018_v3 = vmax.f32 %v1001_v18, 0.0  ;;  %v1232_v60 = vsel %vm8039_vm15, %v5948_v26, %v1231_v39  ;;  %1441 = vmatpush.bf16.msra.mxu2 %v6654_v5  ;;  %v7154_v39 = vld [vmem:[%s10074_s4] ss:$0 sm:$0xff]  ;;  %s7238_s4 = smov 96  }
 0x1ad   :  { %v1339_v0 = vunpack.c.l.b16 %v1232_v60 }
 0x1ae   :  { %v1034_v1 = vpack.c.bf16 %v1018_v3, %v1018_v3 }
 0x1af   :  { %v5980_v32 = vld [vmem:[#allocation5 + $0x10] sm:$0xf]  ;;  %v1342_v59 = vpack.c.b16 %v1340_v30, %v1339_v0 }
 0x1b0   :  { %1113 = vst.msk [vmem:[#allocation5 + $0x18] sm:$0xf] %vm50_vm10, %v1034_v1 }
 0x1b3   :  { %1307 = vrot.lane.b32.xlu1 %v1304_v25, %s7236_s25 }
 0x1b6   :  { %v1258_v51 = vpop.permute.xlu1 %1257 }
 0x1b7   :  { %v6649_v33 = vld [vmem:[#allocation5 + $0x14] sm:$0xf0]  ;;  %v1349_v7 = vsel %vm336_vm2, %v5953_v10, %v1258_v51 }
 0x1b8   :  { %v5981_v44 = vor.u32 %v6649_v33, %v5980_v32  ;;  %v1354_v55 = vsel %vm10104_vm4, %v1349_v7, %v1268_v50  ;;  %v6665_v7 = vld [vmem:[%s10077_s5 + $0x38] sm:$0xff] }
 0x1b9   :  { %1666 = vmatpush.bf16.msrb.mxu2 %v6665_v7  ;;  %v7155_v7 = vld [vmem:[%s10076_s6] ss:$0 sm:$0xff] }
 0x1ba   :  { %1297 = vrot.lane.b32.xlu0 %v5981_v44, %s10110_s17 }
 0x1bb   :  { %1345 = vrot.lane.b32.xlu1 %v1342_v59, %s7237_s29 }
 0x1be   :  { %v1334_v20 = vpop.permute.xlu1 %1333 }
 0x1c2   :  { %1335 = vrot.lane.b32.xlu0 %v5997_v62, %s7235_s28 }
 0x1dd   :  { %v1306_v40 = vpop.permute.xlu2 %1305 }
 0x1e5   :  { %v1344_v47 = vpop.permute.xlu2 %1343 }
 0x1ed   :  { %v1284_v56 = vpop.permute.xlu2 %1283 }
 0x1ee   :  { %v1282_v41 = vpop.permute.xlu0 %1281 }
 0x1ef   :  { %v1358_v31 = vsel %vm10103_vm6, %v1354_v55, %v1282_v41  ;;  %v6673_v41 = vld [vmem:[%s10077_s5 + $0x78] sm:$0xff]  ;;  %v6664_v55 = vld [vmem:[%s10077_s5 + $0x30] sm:$0xff] }
 0x1f0   :  { %1679 = vmatpush.bf16.msra.mxu3 %v6673_v41  ;;  %1667 = vmatpush.bf16.msrb.mxu2 %v6664_v55 }
 0x1f5   :  { %v1322_v13 = vpop.permute.xlu2 %1321 }
 0x1f6   :  { %v1260_v53 = vpop.permute.xlu0 %1259 }
 0x1f7   :  { %v1352_v58 = vsel %vm336_vm2, %v5957_v57, %v1260_v53  ;;  %v6667_v53 = vld [vmem:[%s10077_s5 + $0x48] sm:$0xff]  ;;  %v6666_v57 = vld [vmem:[%s10077_s5 + $0x40] sm:$0xff] }
 0x215   :  { %v1296_v45 = vpop.permute.xlu1 %1295 }
 0x216   :  { %v1362_v37 = vsel %vm366_vm8, %v1358_v31, %v1296_v45  ;;  %v6672_v31 = vld [vmem:[%s10077_s5 + $0x70] sm:$0xff]  ;;  %v6663_v45 = vld [vmem:[%s10077_s5 + $0x28] sm:$0xff] }
 0x217   :  { %v1367_v46 = vsel %vm10102_vm3, %v1362_v37, %v1306_v40  ;;  %1680 = vmatpush.bf16.msra.mxu3 %v6672_v31  ;;  %1668 = vmatpush.bf16.msrb.mxu2 %v6663_v45  ;;  %v6671_v37 = vld [vmem:[%s10077_s5 + $0x68] sm:$0xff] }
 0x218   :  { %v1372_v8 = vsel %vm10101_vm5, %v1367_v46, %v1320_v52  ;;  %v6662_v46 = vld [vmem:[%s10077_s5 + $0x20] sm:$0xff] }
 0x219   :  { %v1377_v48 = vsel %vm10100_vm7, %v1372_v8, %v1334_v20  ;;  %v6670_v8 = vld [vmem:[%s10077_s5 + $0x60] sm:$0xff] }
 0x21a   :  { %v1382_v63 = vsel %vm1380_vm9, %v1377_v48, %v1344_v47  ;;  %v6661_v47 = vld [vmem:[%s10077_s5 + $0x18] sm:$0xff] }
 0x21b   :  { %6014 = vmatmul.msk.bf16.vlgmr.msra.gmra.mxu2 %vm10099_vm13, %v1382_v63  ;;  %1681 = vmatpush.bf16.msra.mxu3 %v6671_v37  ;;  %v6669_v48 = vld [vmem:[%s10077_s5 + $0x58] sm:$0xff]  ;;  %v6660_v63 = vld [vmem:[%s10077_s5 + $0x10] sm:$0xff] }
 0x21c   :  { %1669 = vmatpush.bf16.msrb.mxu2 %v6662_v46 }
 0x21d   :  { %v1270_v24 = vpop.permute.xlu1 %1269 }
 0x21e   :  { %v1356_v18 = vsel %vm10104_vm4, %v1352_v58, %v1270_v24  ;;  %v6668_v24 = vld [vmem:[%s10077_s5 + $0x50] sm:$0xff] }
 0x21f   :  { %v1360_v15 = vsel %vm10103_vm6, %v1356_v18, %v1284_v56  ;;  %1682 = vmatpush.bf16.msra.mxu3 %v6670_v8  ;;  %vm2035_vm6 = vcmask 1045508  }
 0x220   :  { %1670 = vmatpush.bf16.msrb.mxu2 %v6661_v47 }
 0x223   :  { %1683 = vmatpush.bf16.msra.mxu3 %v6669_v48 }
 0x224   :  { %1671 = vmatpush.bf16.msrb.mxu2 %v6660_v63  ;;  %v6674_v63 = vld [vmem:[%s10078_s7 + $0x4] sm:$0xf] }
 0x225   :  { %v1308_v22 = vpop.permute.xlu1 %1307 }
 0x227   :  { %1684 = vmatpush.bf16.msra.mxu3 %v6668_v24  ;;  %v6084_v24 = vld [vmem:[%s10078_s7 + $0x10] sm:$0xf0] }
 0x228   :  { %1672 = vmatpush.bf16.msrb.mxu2 %v6659_v49  ;;  %v6087_v49 = vor.u32 %v6674_v63, %v6084_v24 }
 0x22b   :  { %1685 = vmatpush.bf16.msra.mxu3 %v6667_v53  ;;  %v6106_v53 = vld [vmem:[%s10078_s7 + $0x28] sm:$0xf] }
 0x22c   :  { %v1298_v61 = vpop.permute.xlu0 %1297  ;;  %1673 = vmatpush.bf16.msrb.mxu2 %v6658_v54  ;;  %v6681_v54 = vld [vmem:[%s10078_s7 + $0x34] sm:$0xf0] }
 0x22d   :  { %v1364_v3 = vsel %vm366_vm8, %v1360_v15, %v1298_v61  ;;  %v1346_v1 = vpop.permute.xlu1 %1345 }
 0x22e   :  { %v1369_v23 = vsel %vm10102_vm3, %v1364_v3, %v1308_v22  ;;  %vm2126_vm3 = vcmask 1044484  }
 0x22f   :  { %v1374_v21 = vsel %vm10101_vm5, %v1369_v23, %v1322_v13  ;;  %1686 = vmatpush.bf16.msra.mxu3 %v6666_v57  ;;  %v6679_v57 = vld [vmem:[%s10078_s7 + $0x2c] sm:$0xf] }
 0x234   :  { %v1336_v43 = vpop.permute.xlu0 %1335 }
 0x235   :  { %v1379_v2 = vsel %vm10100_vm7, %v1374_v21, %v1336_v43  ;;  %vm1523_vm7 = vcmask 916480  }
 0x236   :  { %v1384_v4 = vsel %vm1380_vm9, %v1379_v2, %v1346_v1 }
 0x237   :  { %6015 = vmatmul.msk.bf16.gmra.mxu2 %vm10099_vm13, %v1384_v4  ;;  %vm1521_vm13 = vcmask 785408  }
 0x29e   :  { %v1443_v9 = vpop.f32.mrf.mxu2 }
 0x29f   :  { %v1444_v25 = vadd.f32 %v7154_v39, %v1443_v9 }
 0x2a1   :  { %v8195_v26 = vmax.f32 %v1444_v25, 0.0 }
 0x2a3   :  { %v1466_v32 = vrot.slane %v8195_v26, 6  ;;  %v1462_v33 = vrot.slane %v8195_v26, 4  ;;  %v1458_v0 = vrot.slane %v8195_v26, 2 }
 0x2a6   :  { %v1445_v14 = vpop.f32.mrf.mxu2 }
 0x2a7   :  { %v1446_v44 = vadd.f32 %v7154_v39, %v1445_v14 }
 0x2a9   :  { %v1454_v17 = vmax.f32 %v1446_v44, 0.0 }
 0x2ab   :  { %v1478_v11 = vrot.slane %v1454_v17, 4  ;;  %v1474_v51 = vrot.slane %v1454_v17, 2  ;;  %v1482_v10 = vrot.slane %v1454_v17, 6 }
 0x2ba   :  { %v1448_v27 = vpop.f32.mrf.mxu2 }
 0x2bb   :  { %v1449_v60 = vadd.f32 %v7154_v39, %v1448_v27 }
 0x2bd   :  { %v8197_v30 = vmax.f32 %v1449_v60, 0.0 }
 0x2bf   :  { %v1495_v59 = vrot.slane %v8197_v30, 6  ;;  %v1491_v28 = vrot.slane %v8197_v30, 4  ;;  %v1487_v34 = vrot.slane %v8197_v30, 2 }
 0x2c1   :  { %v7128_v62 = vpack.i.bf16 %v1495_v59, %v1466_v32  ;;  %v7123_v36 = vpack.i.bf16 %v1491_v28, %v1462_v33  ;;  %v7118_v35 = vpack.i.bf16 %v1487_v34, %v1458_v0 }
 0x2c2   :  { %v1450_v19 = vpop.f32.mrf.mxu2 }
 0x2c3   :  { %v1451_v6 = vadd.f32 %v7154_v39, %v1450_v19  ;;  %7129 = vrot.lane.b32.xlu1 %v7128_v62, %s7234_s2  ;;  %7124 = vrot.lane.b32.xlu0 %v7123_v36, %s10110_s17 }
 0x2c4   :  { %7119 = vrot.lane.b32.xlu2 %v7118_v35, %s10108_s16 }
 0x2c5   :  { %v1456_v42 = vmax.f32 %v1451_v6, 0.0 }
 0x2c7   :  { %v1507_v5 = vrot.slane %v1456_v42, 4  ;;  %v1503_v50 = vrot.slane %v1456_v42, 2  ;;  %v7133_v38 = vpack.i.bf16 %v1456_v42, %v1454_v17  ;;  %v1511_v20 = vrot.slane %v1456_v42, 6 }
 0x2c9   :  { %v7143_v52 = vpack.i.bf16 %v1507_v5, %v1478_v11  ;;  %v7138_v16 = vpack.i.bf16 %v1503_v50, %v1474_v51  ;;  %v7148_v40 = vpack.i.bf16 %v1511_v20, %v1482_v10  ;;  %v6098_v5 = vld [vmem:[%s10078_s7 + $0x20] sm:$0xf]  ;;  %v6680_v51 = vld [vmem:[%s10078_s7 + $0x2c] sm:$0xf0]  ;;  %v6100_v20 = vld [vmem:[%s10078_s7 + $0x30] sm:$0xf0] }
 0x2ca   :  { %v6082_v50 = vld [vmem:[%s10078_s7] sm:$0xf] }
 0x2cb   :  { %7144 = vrot.lane.b32.xlu1 %v7143_v52, %s7238_s4  ;;  %7139 = vrot.lane.b32.xlu0 %v7138_v16, %s7239_s1  ;;  %v6099_v52 = vor.u32 %v6680_v51, %v6098_v5  ;;  %v6676_v16 = vld [vmem:[%s10078_s7 + $0xc] sm:$0xf0] }
 0x2cc   :  { %7134 = vrot.lane.b32.xlu2 %v7133_v38, %s7237_s29  ;;  %v6678_v38 = vld [vmem:[%s10078_s7 + $0x24] sm:$0xf] }
 0x2cd   :  { %v6103_v10 = vor.u32 %v6678_v38, %v6100_v20  ;;  %1772 = vmatpush.bf16.msra.mxu2 %v6099_v52 }
 0x2cf   :  { %1785 = vmatpush.bf16.msra.mxu1 %v6103_v10 }
 0x2d3   :  { %1786 = vmatpush.bf16.msra.mxu1 %v6087_v49 }
 0x2d4   :  { %7149 = vrot.lane.b32.xlu2 %v7148_v40, %s7240_s18  ;;  %v6083_v40 = vor.u32 %v6676_v16, %v6082_v50 }
 0x2d6   :  { %1773 = vmatpush.bf16.msra.mxu2 %v6083_v40 }
 0x31e   :  { %v7120_v56 = vpop.permute.xlu2 %7119 }
 0x31f   :  { %v7122_v18 = vunpack.i.h.bf16 %v7120_v56  ;;  %v7121_v22 = vunpack.i.l.bf16 %v7120_v56  ;;  %v6107_v56 = vor.u32 %v6681_v54, %v6106_v53 }
 0x321   :  { %v1525_v13 = vsel %vm10104_vm4, %v8197_v30, %v7122_v18  ;;  %v1515_v43 = vsel %vm10104_vm4, %v8195_v26, %v7121_v22  ;;  %v6090_v18 = vld [vmem:[%s10078_s7 + $0x8] sm:$0xf]  ;;  %v6677_v22 = vld [vmem:[%s10078_s7 + $0x14] sm:$0xf0]  ;;  %1798 = vmatpush.bf16.msrb.mxu1 %v6107_v56 }
 0x326   :  { %v7135_v58 = vpop.permute.xlu2 %7134 }
 0x327   :  { %v7137_v25 = vunpack.i.h.bf16 %v7135_v58  ;;  %v7136_v27 = vunpack.i.l.bf16 %v7135_v58  ;;  %v6108_v58 = vld [vmem:[%s10078_s7 + $0x38] sm:$0xf0] }
 0x32e   :  { %v7150_v9 = vpop.permute.xlu2 %7149 }
 0x32f   :  { %v7152_v28 = vunpack.i.h.bf16 %v7150_v9  ;;  %v7151_v34 = vunpack.i.l.bf16 %v7150_v9 }
 0x335   :  { %v7130_v61 = vpop.permute.xlu1 %7129  ;;  %v7125_v15 = vpop.permute.xlu0 %7124 }
 0x336   :  { %v7127_v3 = vunpack.i.h.bf16 %v7125_v15  ;;  %v7126_v23 = vunpack.i.l.bf16 %v7125_v15  ;;  %v7132_v21 = vunpack.i.h.bf16 %v7130_v61  ;;  %v7131_v1 = vunpack.i.l.bf16 %v7130_v61  ;;  %v6675_v15 = vld [vmem:[%s10078_s7 + $0xc] sm:$0xf] }
 0x337   :  { %v6111_v61 = vor.u32 %v6679_v57, %v6108_v58 }
 0x338   :  { %v1516_v2 = vsel %vm366_vm8, %v1515_v43, %v7126_v23  ;;  %v1526_v4 = vsel %vm366_vm8, %v1525_v13, %v7127_v3  ;;  %v6092_v3 = vld [vmem:[%s10078_s7 + $0x18] sm:$0xf0]  ;;  %v6091_v23 = vor.u32 %v6677_v22, %v6090_v18  ;;  %v1694_v43 = vld [vmem:[%s10080_s13] sm:$0x3] }
 0x339   :  { %v1517_v39 = vsel %vm10101_vm5, %v1516_v2, %v7131_v1  ;;  %v1527_v14 = vsel %vm10101_vm5, %v1526_v4, %v7132_v21  ;;  %v6095_v13 = vor.u32 %v6675_v15, %v6092_v3  ;;  %vm2125_vm5 = vcmask 1040384  }
 0x33a   :  { %v1518_v44 = vsel %vm1380_vm9, %v1517_v39, %v7136_v27  ;;  %v1528_v59 = vsel %vm1380_vm9, %v1527_v14, %v7137_v25  ;;  %1799 = vmatpush.bf16.msrb.mxu1 %v6091_v23  ;;  %vm8348_vm4 = vmor %vm2125_vm5, %vm2126_vm3  ;;  %vm10126_vm5 = vcmask 457728  }
 0x33b   :  { %vm8391_vm3 = vmor %vm950_vm0, %vm2035_vm6  ;;  %vm1824_vm0 = vcmask 256002   ;;  %vm1829_vm6 = vcmask 253952  }
 0x33d   :  { %v7145_v60 = vpop.permute.xlu1 %7144  ;;  %v7140_v32 = vpop.permute.xlu0 %7139 }
 0x33e   :  { %v7147_v30 = vunpack.i.h.bf16 %v7145_v60  ;;  %v7146_v33 = vunpack.i.l.bf16 %v7145_v60  ;;  %v7142_v26 = vunpack.i.h.bf16 %v7140_v32  ;;  %v7141_v0 = vunpack.i.l.bf16 %v7140_v32 }
 0x340   :  { %v1520_v62 = vsel %vm1519_vm14, %v1518_v44, %v7141_v0  ;;  %v1529_v36 = vsel %vm1519_vm14, %v1528_v59, %v7142_v26  ;;  %vm92_vm14 = vcmask 257024  }
 0x341   :  { %v1522_v35 = vsel %vm1521_vm13, %v1520_v62, %v7146_v33  ;;  %v1530_v19 = vsel %vm1521_vm13, %v1529_v36, %v7147_v30  ;;  %93 = vst.msk [vmem:[#allocation6] sm:$0xf] %vm92_vm14, %v10105_v12 }
 0x342   :  { %v1524_v17 = vsel %vm1523_vm7, %v1522_v35, %v7151_v34  ;;  %v1531_v6 = vsel %vm1523_vm7, %v1530_v19, %v7152_v28  ;;  %vm1692_vm7 = vcmask 517120   ;;  %94 = vst.msk [vmem:[#allocation6 + $0x4] sm:$0xf] %vm92_vm14, %v10105_v12 }
 0x343   :  { %v1532_v42 = vpack.c.bf16 %v1524_v17, %v1524_v17  ;;  %v1533_v11 = vpack.c.bf16 %v1531_v6, %v1531_v6  ;;  %97 = vst.msk [vmem:[#allocation6 + $0xc] sm:$0xf] %vm92_vm14, %v10105_v12 }
 0x344   :  { %98 = vst.msk [vmem:[#allocation6 + $0x10] sm:$0xf] %vm92_vm14, %v10105_v12 }
 0x345   :  { %1674 = vmatmul.bf16.vlgmr.msrb.gmra.mxu2 %v1532_v42  ;;  %1687 = vmatmul.bf16.vlgmr.msra.gmra.mxu3 %v1533_v11  ;;  %100 = vst.msk [vmem:[#allocation6 + $0x18] sm:$0xf] %vm92_vm14, %v10105_v12 }
 0x346   :  { %1811 = vmatpush.bf16.msrb.mxu2 %v6111_v61  ;;  %101 = vst.msk [vmem:[#allocation6 + $0x1c] sm:$0xf] %vm92_vm14, %v10105_v12 }
 0x347   :  { %103 = vst.msk [vmem:[#allocation6 + $0x24] sm:$0xf] %vm92_vm14, %v10105_v12 }
 0x348   :  { %v1906_v21 = vld [vmem:[#allocation6] sm:$0xe]  ;;  %104 = vst.msk [vmem:[#allocation6 + $0x28] sm:$0xf] %vm92_vm14, %v10105_v12 }
 0x349   :  { %v2093_v1 = vld [vmem:[#allocation6] sm:$0x8]  ;;  %v8344_v4 = vld [vmem:[#allocation6 + $0x4] sm:$0xf]  ;;  %v6120_v9 = vrot.slane %v1906_v21, 9 }
 0x34a   :  { %1812 = vmatpush.bf16.msrb.mxu2 %v6095_v13  ;;  %v6136_v14 = vrot.slane %v2093_v1, 11  ;;  %v1948_v60 = vrot.slane %v8344_v4, 5  ;;  %v2130_v32 = vrot.slane %v8344_v4, 7  ;;  %v2039_v26 = vrot.slane %v8344_v4, 6  ;;  %106 = vst.msk [vmem:[#allocation6 + $0x30] sm:$0xf] %vm92_vm14, %v10105_v12 }
 0x34b   :  { %v8365_v34 = vld [vmem:[#allocation6 + $0x10] sm:$0xf]  ;;  %v1908_v17 = vld [vmem:[#allocation6 + $0xc] sm:$0xe]  ;;  %107 = vst.msk [vmem:[#allocation6 + $0x34] sm:$0xf] %vm92_vm14, %v10105_v12 }
 0x34c   :  { %v1949_v44 = vsel %vm8039_vm15, %v6120_v9, %v1948_v60  ;;  %v1950_v59 = vrot.slane %v1948_v60, 4  ;;  %v2131_v28 = vsel %vm8348_vm4, %v6136_v14, %v2130_v32  ;;  %v2132_v36 = vrot.slane %v2130_v32, 4  ;;  %v2095_v38 = vld [vmem:[#allocation6 + $0xc] sm:$0x8]  ;;  %109 = vst.msk [vmem:[#allocation6 + $0x3c] sm:$0xf] %vm92_vm14, %v10105_v12 }
 0x34d   :  { %v3082_v62 = vunpack.c.l.b16 %v1949_v44  ;;  %v3162_v19 = vunpack.c.l.b16 %v2131_v28  ;;  %v6121_v5 = vrot.slane %v1908_v17, 9  ;;  %v1955_v51 = vrot.slane %v8365_v34, 5  ;;  %110 = vst.msk [vmem:[#allocation6 + $0x40] sm:$0xf] %vm92_vm14, %v10105_v12 }
 0x34e   :  { %v2137_v20 = vrot.slane %v8365_v34, 7  ;;  %112 = vst.msk [vmem:[#allocation6 + $0x48] sm:$0xf] %vm92_vm14, %v10105_v12  ;;  %v2041_v58 = vrot.slane %v2039_v26, 4  ;;  %v2008_v3 = vld [vmem:[#allocation6 + $0x24] sm:$0xc] }
 0x34f   :  { %v1956_v40 = vsel %vm8039_vm15, %v6121_v5, %v1955_v51  ;;  %v8408_v18 = vld [vmem:[#allocation6 + $0x28] sm:$0xf]  ;;  %113 = vst.msk [vmem:[#allocation6 + $0x4c] sm:$0xf] %vm92_vm14, %v10105_v12  ;;  %v6131_v21 = vrot.slane %v2008_v3, 10  ;;  %v2046_v28 = vrot.slane %v8365_v34, 6 }
 0x350   :  { %v2060_v23 = vrot.slane %v8408_v18, 6  ;;  %v2151_v1 = vrot.slane %v8408_v18, 7  ;;  %115 = vst.msk [vmem:[#allocation6 + $0x54] sm:$0xf] %vm92_vm14, %v10105_v12  ;;  %v8473_v3 = vld [vmem:[#allocation6 + $0x28] sm:$0xf] }
 0x351   :  { %116 = vst.msk [vmem:[#allocation6 + $0x58] sm:$0xf] %vm92_vm14, %v10105_v12 }
 0x352   :  { %v2062_v9 = vrot.slane %v2060_v23, 4  ;;  %v2061_v60 = vsel %vm8391_vm3, %v6131_v21, %v2060_v23  ;;  %118 = vst.msk [vmem:[#allocation6 + $0x60] sm:$0xf] %vm92_vm14, %v10105_v12  ;;  %v2874_v21 = vld [vmem:[#allocation6 + $0x24] sm:$0xc] }
 0x353   :  { %119 = vst.msk [vmem:[#allocation6 + $0x64] sm:$0xf] %vm92_vm14, %v10105_v12  ;;  %v3128_v17 = vunpack.c.l.b16 %v2061_v60 }
 0x354   :  { %121 = vst.msk [vmem:[#allocation6 + $0x6c] sm:$0xf] %vm92_vm14, %v10105_v12 }
 0x355   :  { %122 = vst.msk [vmem:[#allocation6 + $0x70] sm:$0xf] %vm92_vm14, %v10105_v12 }
 0x356   :  { %124 = vst.msk [vmem:[#allocation6 + $0x78] sm:$0xf] %vm92_vm14, %v10105_v12 }
 0x357   :  { %125 = vst.msk [vmem:[#allocation6 + $0x7c] sm:$0xf] %vm92_vm14, %v10105_v12 }
 0x3c8   :  { %v1675_v41 = vpop.f32.mrf.mxu2  ;;  %v1688_v55 = vpop.f32.mrf.mxu3 }
 0x3c9   :  { %v1676_v31 = vadd.f32 %v7155_v7, %v1675_v41  ;;  %v1957_v7 = vrot.slane %v1955_v51, 4  ;;  %v8440_v51 = vld [vmem:[#allocation6 + $0x10] sm:$0xf] }
 0x3cb   :  { %v1689_v45 = vadd.f32 %v1688_v55, %v1676_v31  ;;  %v6137_v55 = vrot.slane %v2095_v38, 11  ;;  %v2297_v38 = vld [vmem:[#allocation6 + $0xc] sm:$0xc] }
 0x3cd   :  { %1693 = vst.msk [vmem:[%s10079_s15] sm:$0x3] %vm1692_vm7, %v1689_v45  ;;  %v1695_v37 = vmul.f32 0.5, %v1689_v45  ;;  %vm95_vm7 = vcmask 256000   ;;  %v2138_v24 = vsel %vm8348_vm4, %v6137_v55, %v2137_v20  ;;  %v2385_v55 = vld [vmem:[#allocation6 + $0xc] sm:$0x8] }
 0x3ce   :  { %96 = vst.msk [vmem:[#allocation6 + $0x8] sm:$0x7] %vm95_vm7, %v10105_v12  ;;  %v3164_v56 = vunpack.c.l.b16 %v2138_v24 }
 0x3cf   :  { %v1696_v46 = vmul.f32 1.442695, %v1695_v37  ;;  %99 = vst.msk [vmem:[#allocation6 + $0x14] sm:$0x7] %vm95_vm7, %v10105_v12  ;;  %v3084_v37 = vunpack.c.l.b16 %v1956_v40 }
 0x3d0   :  { %v1677_v8 = vpop.f32.mrf.mxu2  ;;  %v1690_v47 = vpop.f32.mrf.mxu3  ;;  %102 = vst.msk [vmem:[#allocation6 + $0x20] sm:$0x7] %vm95_vm7, %v10105_v12 }
 0x3d1   :  { %7158 = vpow2.f32 %v1696_v46  ;;  %105 = vst.msk [vmem:[#allocation6 + $0x2c] sm:$0x7] %vm95_vm7, %v10105_v12  ;;  %v2139_v46 = vrot.slane %v2137_v20, 4  ;;  %v2002_v47 = vld [vmem:[#allocation6] sm:$0xc] }
 0x3d2   :  { %108 = vst.msk [vmem:[#allocation6 + $0x38] sm:$0x7] %vm95_vm7, %v10105_v12  ;;  %v6128_v53 = vrot.slane %v2002_v47, 10 }
 0x3d3   :  { %111 = vst.msk [vmem:[#allocation6 + $0x44] sm:$0x7] %vm95_vm7, %v10105_v12 }
 0x3d4   :  { %v2040_v61 = vsel %vm8391_vm3, %v6128_v53, %v2039_v26  ;;  %114 = vst.msk [vmem:[#allocation6 + $0x50] sm:$0x7] %vm95_vm7, %v10105_v12 }
 0x3d5   :  { %v1907_v27 = vld [vmem:[#allocation6 + $0x8] sm:$0x1]  ;;  %v3122_v13 = vunpack.c.l.b16 %v2040_v61  ;;  %117 = vst.msk [vmem:[#allocation6 + $0x5c] sm:$0x7] %vm95_vm7, %v10105_v12 }
 0x3d6   :  { %v1951_v30 = vrot.slane %v1907_v27, 5  ;;  %v2094_v33 = vld [vmem:[#allocation6 + $0x8] sm:$0x7]  ;;  %v1909_v11 = vld [vmem:[#allocation6 + $0x14] sm:$0x1] }
 0x3d7   :  { %v7159_v48 = vpop.eup %7158  ;;  %v2133_v35 = vrot.slane %v2094_v33, 7  ;;  %v1958_v16 = vrot.slane %v1909_v11, 5  ;;  %v2096_v41 = vld [vmem:[#allocation6 + $0x14] sm:$0x7]  ;;  %v2003_v49 = vld [vmem:[#allocation6 + $0x8] sm:$0x3] }
 0x3d8   :  { %1699 = vrot.lane.b32.xlu0 %v7159_v48, %s7238_s4  ;;  %v1952_v42 = vsel %vm8039_vm15, %v1950_v59, %v1951_v30  ;;  %v2140_v8 = vrot.slane %v2096_v41, 7  ;;  %v2042_v15 = vrot.slane %v2003_v49, 6  ;;  %v2100_v32 = vld [vmem:[#allocation6 + $0x2c] sm:$0x7]  ;;  %v2153_v33 = vrot.slane %v2151_v1, 4 }
 0x3d9   :  { %v3083_v50 = vunpack.c.l.b16 %v1952_v42  ;;  %v2134_v52 = vsel %vm8348_vm4, %v2132_v36, %v2133_v35  ;;  %v1959_v63 = vsel %vm8039_vm15, %v1957_v7, %v1958_v16  ;;  %v2154_v44 = vrot.slane %v2100_v32, 7  ;;  %v2004_v59 = vld [vmem:[#allocation6 + $0xc] sm:$0xc]  ;;  %v2005_v35 = vld [vmem:[#allocation6 + $0x14] sm:$0x3] }
 0x3da   :  { %v3163_v10 = vunpack.c.l.b16 %v2134_v52  ;;  %v3085_v54 = vunpack.c.l.b16 %v1959_v63  ;;  %v2141_v57 = vsel %vm8348_vm4, %v2139_v46, %v2140_v8  ;;  %v2043_v4 = vsel %vm8391_vm3, %v2041_v58, %v2042_v15  ;;  %120 = vst.msk [vmem:[#allocation6 + $0x68] sm:$0x7] %vm95_vm7, %v10105_v12  ;;  %v2298_v20 = vld [vmem:[#allocation6 + $0x14] sm:$0x3]  ;;  %v2963_v32 = vld [vmem:[#allocation6 + $0x2c] sm:$0x7] }
 0x3db   :  { %v3165_v22 = vunpack.c.l.b16 %v2141_v57  ;;  %v3123_v27 = vunpack.c.l.b16 %v2043_v4  ;;  %v2155_v42 = vsel %vm8348_vm4, %v2153_v33, %v2154_v44  ;;  %v2048_v11 = vrot.slane %v2046_v28, 4  ;;  %v2386_v46 = vld [vmem:[#allocation6 + $0x14] sm:$0x7]  ;;  %123 = vst.msk [vmem:[#allocation6 + $0x74] sm:$0x7] %vm95_vm7, %v10105_v12 }
 0x3dc   :  { %v3178_v48 = vpack.c.b16 %v3163_v10, %v3162_v19  ;;  %v6129_v19 = vrot.slane %v2004_v59, 10  ;;  %v2049_v5 = vrot.slane %v2005_v35, 6  ;;  %v3169_v52 = vunpack.c.l.b16 %v2155_v42  ;;  %v1912_v57 = vld [vmem:[#allocation6 + $0x24] sm:$0xe]  ;;  %126 = vst.msk [vmem:[#allocation6 + $0x80] sm:$0x7] %vm95_vm7, %v10105_v12 }
 0x3dd   :  { %v3179_v26 = vpack.c.b16 %v3165_v22, %v3164_v56  ;;  %v6152_v7 = vrot.slane %v2297_v38, 10  ;;  %v2331_v41 = vrot.slane %v8440_v51, 6  ;;  %v6160_v8 = vrot.slane %v2385_v55, 11  ;;  %v1913_v56 = vld [vmem:[#allocation6 + $0x2c] sm:$0x1] }
 0x3de   :  { %v2047_v16 = vsel %vm8391_vm3, %v6129_v19, %v2046_v28  ;;  %v2050_v10 = vsel %vm8391_vm3, %v2048_v11, %v2049_v5  ;;  %v2419_v63 = vrot.slane %v8440_v51, 7  ;;  %v2422_v24 = vrot.slane %v2386_v46, 7  ;;  %v2875_v4 = vld [vmem:[#allocation6 + $0x2c] sm:$0x3]  ;;  %v2202_v59 = vld [vmem:[#allocation6 + $0x14] sm:$0x1] }
 0x3df   :  { %v3124_v40 = vunpack.c.l.b16 %v2047_v16  ;;  %v2332_v47 = vsel %vm8391_vm3, %v6152_v7, %v2331_v41  ;;  %v6123_v15 = vrot.slane %v1912_v57, 9  ;;  %v2201_v44 = vld [vmem:[#allocation6 + $0xc] sm:$0xe]  ;;  %v2999_v42 = vrot.slane %v2963_v32, 7  ;;  %v2778_v11 = vld [vmem:[#allocation6 + $0x24] sm:$0xe] }
 0x3e0   :  { %3186 = vrot.lane.b32.xlu0 %v3178_v48, %s7238_s4  ;;  %v2333_v48 = vrot.slane %v2331_v41, 4  ;;  %v2420_v22 = vsel %vm8348_vm4, %v6160_v8, %v2419_v63  ;;  %v2421_v61 = vrot.slane %v2419_v63, 4  ;;  %v3274_v23 = vunpack.c.l.b16 %v2332_v47  ;;  %v2779_v16 = vld [vmem:[#allocation6 + $0x2c] sm:$0x1]  ;;  %v8496_v7 = vld [vmem:[#allocation6 + $0x28] sm:$0xf] }
 0x3e1   :  { %v2587_v41 = vld [vmem:[#allocation6 + $0x24] sm:$0xc]  ;;  %v6192_v46 = vrot.slane %v2778_v11, 9  ;;  %v2823_v63 = vrot.slane %v2779_v16, 5 }
 0x3e2   :  { %v2675_v57 = vld [vmem:[#allocation6 + $0x24] sm:$0x8] }
 0x3e8   :  { %3188 = vrot.lane.b32.xlu0 %v3179_v26, %s7238_s4 }
 0x44a   :  { %v1700_v2 = vpop.permute.xlu0 %1699 }
 0x44b   :  { %v1702_v25 = vmul.f32 %v1700_v2, %v1694_v43  ;;  %v2009_v43 = vld [vmem:[#allocation6 + $0x2c] sm:$0x3]  ;;  %v3099_v2 = vpack.c.b16 %v3085_v54, %v3084_v37  ;;  %v2334_v37 = vrot.slane %v2298_v20, 6 }
 0x44c   :  { %v2063_v14 = vrot.slane %v2009_v43, 6  ;;  %v1972_v43 = vrot.slane %v1913_v56, 5 }
 0x44d   :  { %v1703_v0 = vadd.f32 %v1702_v25, %v1689_v45  ;;  %v3098_v45 = vpack.c.b16 %v3083_v50, %v3082_v62  ;;  %v2099_v25 = vld [vmem:[#allocation6 + $0x24] sm:$0x8]  ;;  %v3138_v62 = vpack.c.b16 %v3123_v27, %v3122_v13  ;;  %v2335_v58 = vsel %vm8391_vm3, %v2333_v48, %v2334_v37 }
 0x44e   :  { %v6139_v30 = vrot.slane %v2099_v25, 11  ;;  %v3275_v13 = vunpack.c.l.b16 %v2335_v58  ;;  %v2962_v25 = vld [vmem:[#allocation6 + $0x24] sm:$0x8]  ;;  %v2820_v48 = vrot.slane %v8473_v3, 5 }
 0x44f   :  { %v8369_v6 = vpack.c.bf16 %v1703_v0, %v1703_v0  ;;  %3106 = vrot.lane.b32.xlu1 %v3098_v45, %s10110_s17  ;;  %v2064_v0 = vsel %vm8391_vm3, %v2062_v9, %v2063_v14  ;;  %3146 = vrot.lane.b32.xlu2 %v3138_v62, %s7237_s29  ;;  %v3125_v45 = vunpack.c.l.b16 %v2050_v10  ;;  %v6200_v9 = vrot.slane %v2874_v21, 10 }
 0x450   :  { %v2152_v36 = vsel %vm8348_vm4, %v6139_v30, %v2151_v1  ;;  %v3129_v34 = vunpack.c.l.b16 %v2064_v0  ;;  %v2423_v1 = vsel %vm8348_vm4, %v2421_v61, %v2422_v24  ;;  %v2908_v14 = vrot.slane %v8473_v3, 6 }
 0x451   :  { %6112 = vmatmul.msk.bf16.vlgmr.msra.gmra.mxu2 %vm366_vm8, %v8369_v6  ;;  %6113 = vmatmul.msk.bf16.vlgmr.msra.gmra.mxu1 %vm366_vm8, %v8369_v6  ;;  %v3168_v50 = vunpack.c.l.b16 %v2152_v36  ;;  %v3139_v54 = vpack.c.b16 %v3125_v45, %v3124_v40  ;;  %v3315_v27 = vunpack.c.l.b16 %v2423_v1  ;;  %v2911_v0 = vrot.slane %v2875_v4, 6 }
 0x452   :  { %v3141_v49 = vpack.c.b16 %v3129_v34, %v3128_v17  ;;  %v2909_v33 = vsel %vm8391_vm3, %v6200_v9, %v2908_v14  ;;  %v2910_v26 = vrot.slane %v2908_v14, 4  ;;  %v3290_v28 = vpack.c.b16 %v3275_v13, %v3274_v23  ;;  %v2491_v14 = vld [vmem:[#allocation6 + $0x24] sm:$0xe] }
 0x453   :  { %v3181_v53 = vpack.c.b16 %v3169_v52, %v3168_v50  ;;  %v6208_v36 = vrot.slane %v2962_v25, 11  ;;  %v2996_v17 = vrot.slane %v8473_v3, 7  ;;  %v3578_v5 = vunpack.c.l.b16 %v2909_v33  ;;  %v2492_v25 = vld [vmem:[#allocation6 + $0x2c] sm:$0x1] }
 0x454   :  { %3152 = vrot.lane.b32.xlu0 %v3141_v49, %s7237_s29  ;;  %v6144_v34 = vrot.slane %v2201_v44, 9  ;;  %v2243_v50 = vrot.slane %v8440_v51, 5  ;;  %v2246_v52 = vrot.slane %v2202_v59, 5  ;;  %v2912_v20 = vsel %vm8391_vm3, %v2910_v26, %v2911_v0  ;;  %v2588_v51 = vld [vmem:[#allocation6 + $0x2c] sm:$0x3] }
 0x455   :  { %v2997_v10 = vsel %vm8348_vm4, %v6208_v36, %v2996_v17  ;;  %v2998_v40 = vrot.slane %v2996_v17, 4  ;;  %v3579_v56 = vunpack.c.l.b16 %v2912_v20  ;;  %v2629_v61 = vrot.slane %v2588_v51, 6  ;;  %v2205_v0 = vld [vmem:[#allocation6 + $0x24] sm:$0xe] }
 0x456   :  { %v3618_v55 = vunpack.c.l.b16 %v2997_v10  ;;  %v2244_v45 = vsel %vm8039_vm15, %v6144_v34, %v2243_v50  ;;  %v2245_v37 = vrot.slane %v2243_v50, 4  ;;  %v2821_v3 = vsel %vm8039_vm15, %v6192_v46, %v2820_v48  ;;  %v2301_v44 = vld [vmem:[#allocation6 + $0x24] sm:$0xc] }
 0x457   :  { %3108 = vrot.lane.b32.xlu1 %v3099_v2, %s10110_s17  ;;  %v3314_v2 = vunpack.c.l.b16 %v2420_v22  ;;  %3148 = vrot.lane.b32.xlu2 %v3139_v54, %s7237_s29  ;;  %v3000_v8 = vsel %vm8348_vm4, %v2998_v40, %v2999_v42  ;;  %v3234_v47 = vunpack.c.l.b16 %v2244_v45  ;;  %v2626_v54 = vrot.slane %v8496_v7, 6 }
 0x458   :  { %v3619_v24 = vunpack.c.l.b16 %v3000_v8  ;;  %v2247_v49 = vsel %vm8039_vm15, %v2245_v37, %v2246_v52  ;;  %v2822_v22 = vrot.slane %v2820_v48, 4  ;;  %v6185_v21 = vrot.slane %v2675_v57, 11 }
 0x459   :  { %v3330_v35 = vpack.c.b16 %v3315_v27, %v3314_v2  ;;  %v3235_v58 = vunpack.c.l.b16 %v2247_v49  ;;  %v2628_v23 = vrot.slane %v2626_v54, 4  ;;  %v2714_v4 = vrot.slane %v8496_v7, 7 }
 0x45a   :  { %v3634_v13 = vpack.c.b16 %v3619_v24, %v3618_v55  ;;  %v2824_v1 = vsel %vm8039_vm15, %v2822_v22, %v2823_v63  ;;  %v3594_v27 = vpack.c.b16 %v3579_v56, %v3578_v5  ;;  %v3538_v32 = vunpack.c.l.b16 %v2821_v3  ;;  %v2389_v63 = vld [vmem:[#allocation6 + $0x24] sm:$0x8]  ;;  %v2390_v24 = vld [vmem:[#allocation6 + $0x2c] sm:$0x7] }
 0x45b   :  { %v2630_v2 = vsel %vm8391_vm3, %v2628_v23, %v2629_v61  ;;  %v2715_v33 = vsel %vm8348_vm4, %v6185_v21, %v2714_v4  ;;  %v2716_v26 = vrot.slane %v2714_v4, 4  ;;  %v3539_v59 = vunpack.c.l.b16 %v2824_v1  ;;  %v8549_v4 = vld [vmem:[#allocation6 + $0x40] sm:$0xf] }
 0x45c   :  { %3298 = vrot.lane.b32.xlu0 %v3290_v28, %s7237_s29  ;;  %v3429_v28 = vunpack.c.l.b16 %v2630_v2  ;;  %v2541_v36 = vrot.slane %v2492_v25, 5  ;;  %v3468_v42 = vunpack.c.l.b16 %v2715_v33  ;;  %v6146_v50 = vrot.slane %v2205_v0, 9 }
 0x45d   :  { %v6154_v52 = vrot.slane %v2301_v44, 10  ;;  %v3554_v40 = vpack.c.b16 %v3539_v59, %v3538_v32  ;;  %v6162_v22 = vrot.slane %v2389_v63, 11  ;;  %v6721_v44 = vld [vmem:[%s10081_s9 + $0x38] sm:$0xff]  ;;  %v6720_v59 = vld [vmem:[%s10081_s9 + $0x30] sm:$0xff] }
 0x45e   :  { %4174 = vmatpush.bf16.msra.mxu1 %v6721_v44  ;;  %6774 = vmatpush.bf16.msrb.mxu3 %v6721_v44 }
 0x45f   :  { %3192 = vrot.lane.b32.xlu1 %v3181_v53, %s7238_s4  ;;  %v6177_v53 = vrot.slane %v2587_v41, 10 }
 0x461   :  { %6114 = vmatmul.msk.bf16.vlgmr.msrb.gmra.mxu1 %vm366_vm8, %v8369_v6  ;;  %6115 = vmatmul.msk.bf16.vlgmr.msrb.gmra.mxu2 %vm366_vm8, %v8369_v6  ;;  %v1969_v6 = vrot.slane %v8408_v18, 5 }
 0x462   :  { %4175 = vmatpush.bf16.msra.mxu1 %v6720_v59  ;;  %6775 = vmatpush.bf16.msrb.mxu3 %v6720_v59  ;;  %v2394_v59 = vld [vmem:[#allocation6 + $0x44] sm:$0x7] }
 0x463   :  { %v1970_v60 = vsel %vm8039_vm15, %v6123_v15, %v1969_v6  ;;  %v1971_v18 = vrot.slane %v1969_v6, 4  ;;  %v2676_v15 = vld [vmem:[#allocation6 + $0x2c] sm:$0x7]  ;;  %v3250_v6 = vpack.c.b16 %v3235_v58, %v3234_v47 }
 0x464   :  { %v3088_v30 = vunpack.c.l.b16 %v1970_v60  ;;  %v2717_v9 = vrot.slane %v2676_v15, 7  ;;  %v2538_v60 = vrot.slane %v8496_v7, 5  ;;  %3602 = vrot.lane.b32.xlu0 %v3594_v27, %s7237_s29  ;;  %v2436_v15 = vrot.slane %v2390_v24, 7 }
 0x465   :  { %v1973_v62 = vsel %vm8039_vm15, %v1971_v18, %v1972_v43  ;;  %v2627_v43 = vsel %vm8391_vm3, %v6177_v53, %v2626_v54  ;;  %v2190_v18 = vld [vmem:[#allocation6 + $0x28] sm:$0xf]  ;;  %v3010_v27 = vrot.slane %v8549_v4, 7 }
 0x466   :  { %v3089_v19 = vunpack.c.l.b16 %v1973_v62  ;;  %v6169_v62 = vrot.slane %v2491_v14, 9  ;;  %v2718_v17 = vsel %vm8348_vm4, %v2716_v26, %v2717_v9  ;;  %v2540_v11 = vrot.slane %v2538_v60, 4  ;;  %v2966_v9 = vld [vmem:[#allocation6 + $0x3c] sm:$0x8]  ;;  %v2967_v14 = vld [vmem:[#allocation6 + $0x44] sm:$0x7] }
 0x467   :  { %3338 = vrot.lane.b32.xlu1 %v3330_v35, %s7238_s4  ;;  %v2206_v35 = vld [vmem:[#allocation6 + $0x2c] sm:$0x1]  ;;  %v2257_v5 = vrot.slane %v2190_v18, 5  ;;  %v3469_v34 = vunpack.c.l.b16 %v2718_v17  ;;  %v2345_v16 = vrot.slane %v2190_v18, 6  ;;  %v2433_v47 = vrot.slane %v2190_v18, 7 }
 0x468   :  { %v3101_v38 = vpack.c.b16 %v3089_v19, %v3088_v30  ;;  %v3428_v30 = vunpack.c.l.b16 %v2627_v43  ;;  %v2302_v19 = vld [vmem:[#allocation6 + $0x2c] sm:$0x3]  ;;  %v2260_v20 = vrot.slane %v2206_v35, 5  ;;  %v2539_v45 = vsel %vm8039_vm15, %v6169_v62, %v2538_v60  ;;  %v8569_v62 = vld [vmem:[%s10082_s8] sm:$0xf] }
 0x469   :  { %v2348_v10 = vrot.slane %v2302_v19, 6  ;;  %v2347_v7 = vrot.slane %v2345_v16, 4  ;;  %v3483_v55 = vpack.c.b16 %v3469_v34, %v3468_v42  ;;  %v2542_v37 = vsel %vm8039_vm15, %v2540_v11, %v2541_v36  ;;  %v2782_v36 = vld [vmem:[#allocation6 + $0x3c] sm:$0xe]  ;;  %v2783_v35 = vld [vmem:[#allocation6 + $0x44] sm:$0x1] }
 0x46a   :  { %3112 = vrot.lane.b32.xlu2 %v3101_v38, %s10110_s17  ;;  %v2259_v38 = vrot.slane %v2257_v5, 4  ;;  %v3443_v41 = vpack.c.b16 %v3429_v28, %v3428_v30  ;;  %v2258_v46 = vsel %vm8039_vm15, %v6146_v50, %v2257_v5  ;;  %v2346_v51 = vsel %vm8391_vm3, %v6154_v52, %v2345_v16  ;;  %v6719_v28 = vld [vmem:[%s10081_s9 + $0x28] sm:$0xff]  ;;  %v8572_v17 = vld [vmem:[#allocation6 + $0x40] sm:$0xf]  ;;  %v2878_v50 = vld [vmem:[#allocation6 + $0x3c] sm:$0xc] }
 0x46b   :  { %v2349_v8 = vsel %vm8391_vm3, %v2347_v7, %v2348_v10  ;;  %v3388_v49 = vunpack.c.l.b16 %v2539_v45  ;;  %v3389_v53 = vunpack.c.l.b16 %v2542_v37  ;;  %v3238_v54 = vunpack.c.l.b16 %v2258_v46  ;;  %4176 = vmatpush.bf16.msra.mxu1 %v6719_v28  ;;  %v6718_v42 = vld [vmem:[%s10081_s9 + $0x20] sm:$0xff]  ;;  %6776 = vmatpush.bf16.msrb.mxu3 %v6719_v28  ;;  %v6717_v45 = vld [vmem:[%s10081_s9 + $0x18] sm:$0xff] }
 0x46c   :  { %v2261_v48 = vsel %vm8039_vm15, %v2259_v38, %v2260_v20  ;;  %v3278_v57 = vunpack.c.l.b16 %v2346_v51  ;;  %v3279_v56 = vunpack.c.l.b16 %v2349_v8  ;;  %3452 = vrot.lane.b32.xlu0 %v3443_v41, %s7237_s29  ;;  %v2435_v61 = vrot.slane %v2433_v47, 4  ;;  %v2879_v52 = vld [vmem:[#allocation6 + $0x44] sm:$0x3]  ;;  %v5626_v16 = vld [vmem:[%s10083_s11 + $0x20] sm:$0xf] }
 0x46d   :  { %v3239_v58 = vunpack.c.l.b16 %v2261_v48  ;;  %v3403_v3 = vpack.c.b16 %v3389_v53, %v3388_v49  ;;  %v6210_v25 = vrot.slane %v2966_v9, 11  ;;  %v3013_v60 = vrot.slane %v2967_v14, 7  ;;  %v2679_v41 = vld [vmem:[#allocation6 + $0x3c] sm:$0x8]  ;;  %v6682_v28 = vld [vmem:[#allocation6] sm:$0xff] }
 0x46e   :  { %v3292_v23 = vpack.c.b16 %v3279_v56, %v3278_v57  ;;  %v2437_v43 = vsel %vm8348_vm4, %v2435_v61, %v2436_v15  ;;  %v3012_v32 = vrot.slane %v3010_v27, 4  ;;  %v2834_v19 = vrot.slane %v8549_v4, 5  ;;  %v2496_v57 = vld [vmem:[#allocation6 + $0x44] sm:$0x1]  ;;  %v8592_v61 = vld [vmem:[#allocation6 + $0x40] sm:$0xf] }
 0x46f   :  { %3642 = vrot.lane.b32.xlu1 %v3634_v13, %s7238_s4  ;;  %v3252_v13 = vpack.c.b16 %v3239_v58, %v3238_v54  ;;  %v3319_v1 = vunpack.c.l.b16 %v2437_v43  ;;  %v3011_v18 = vsel %vm8348_vm4, %v6210_v25, %v3010_v27  ;;  %v2922_v5 = vrot.slane %v8549_v4, 6  ;;  %4177 = vmatpush.bf16.msra.mxu1 %v6718_v42  ;;  %v6716_v43 = vld [vmem:[%s10081_s9 + $0x10] sm:$0xff]  ;;  %v2591_v14 = vld [vmem:[#allocation6 + $0x3c] sm:$0xc]  ;;  %v2592_v25 = vld [vmem:[#allocation6 + $0x44] sm:$0x3] }
 0x470   :  { %v3622_v30 = vunpack.c.l.b16 %v3011_v18  ;;  %v3014_v33 = vsel %vm8348_vm4, %v3012_v32, %v3013_v60  ;;  %v1716_v34 = vperm.slane %v8569_v62, 1  ;;  %v1715_v38 = vperm.slane %v8569_v62, 0  ;;  %6777 = vmatpush.bf16.msrb.mxu3 %v6718_v42  ;;  %v2393_v32 = vld [vmem:[#allocation6 + $0x3c] sm:$0x8] }
 0x471   :  { %v3623_v26 = vunpack.c.l.b16 %v3014_v33  ;;  %v6194_v20 = vrot.slane %v2782_v36, 9  ;;  %v2837_v10 = vrot.slane %v2783_v35, 5  ;;  %v2836_v7 = vrot.slane %v2834_v19, 4 }
 0x472   :  { %3258 = vrot.lane.b32.xlu2 %v3250_v6, %s10110_s17  ;;  %v2434_v6 = vsel %vm8348_vm4, %v6162_v22, %v2433_v47  ;;  %v6202_v37 = vrot.slane %v2878_v50, 10  ;;  %v2924_v46 = vrot.slane %v2922_v5, 4  ;;  %v2925_v51 = vrot.slane %v2879_v52, 6  ;;  %v2495_v47 = vld [vmem:[#allocation6 + $0x3c] sm:$0xe] }
 0x473   :  { %v3318_v21 = vunpack.c.l.b16 %v2434_v6  ;;  %v3636_v0 = vpack.c.b16 %v3623_v26, %v3622_v30  ;;  %v5648_v8 = vunpack.c.l.b16 %v5626_v16  ;;  %v2552_v48 = vrot.slane %v8572_v17, 5  ;;  %4178 = vmatpush.bf16.msra.mxu1 %v6717_v45 }
 0x474   :  { %3262 = vrot.lane.b32.xlu0 %v3252_v13, %s10110_s17  ;;  %v2835_v24 = vsel %vm8039_vm15, %v6194_v20, %v2834_v19  ;;  %v6187_v49 = vrot.slane %v2679_v41, 11  ;;  %v2838_v22 = vsel %vm8039_vm15, %v2836_v7, %v2837_v10  ;;  %6778 = vmatpush.bf16.msrb.mxu3 %v6717_v45  ;;  %v6171_v13 = vrot.slane %v2495_v47, 9  ;;  %v8626_v45 = vld [vmem:[#allocation6 + $0x58] sm:$0xf] }
 0x475   :  { %v3332_v2 = vpack.c.b16 %v3319_v1, %v3318_v21  ;;  %v2640_v6 = vrot.slane %v8572_v17, 6  ;;  %v2554_v4 = vrot.slane %v2552_v48, 4  ;;  %v2555_v9 = vrot.slane %v2496_v57, 5  ;;  %v3187_v57 = vpop.permute.xlu0 %3186 }
 0x476   :  { %v3543_v27 = vunpack.c.l.b16 %v2838_v22  ;;  %v2447_v30 = vrot.slane %v8592_v61, 7  ;;  %v5653_v35 = vpack.c.b16 %v5648_v8, %v5648_v8  ;;  %v6179_v19 = vrot.slane %v2591_v14, 10 }
 0x477   :  { %3492 = vrot.lane.b32.xlu1 %v3483_v55, %s7238_s4  ;;  %v2680_v55 = vld [vmem:[#allocation6 + $0x44] sm:$0x7]  ;;  %v2643_v42 = vrot.slane %v2592_v25, 6  ;;  %4179 = vmatpush.bf16.msra.mxu1 %v6716_v43  ;;  %v2553_v50 = vsel %vm8039_vm15, %v6171_v13, %v2552_v48  ;;  %v2556_v52 = vsel %vm8039_vm15, %v2554_v4, %v2555_v9  ;;  %v2450_v10 = vrot.slane %v2394_v59, 7 }
 0x478   :  { %v2731_v54 = vrot.slane %v2680_v55, 7  ;;  %6779 = vmatpush.bf16.msrb.mxu3 %v6716_v43  ;;  %v2449_v20 = vrot.slane %v2447_v30, 4  ;;  %v2209_v55 = vld [vmem:[#allocation6 + $0x3c] sm:$0xe]  ;;  %v2271_v47 = vrot.slane %v8592_v61, 5  ;;  %v6714_v48 = vld [vmem:[%s10081_s9] sm:$0xff] }
 0x479   :  { %v6148_v22 = vrot.slane %v2209_v55, 9  ;;  %v1718_v13 = vperm.slane %v8569_v62, 3 }
 0x47a   :  { %3562 = vrot.lane.b32.xlu2 %v3554_v40, %s10110_s17  ;;  %v2728_v40 = vrot.slane %v8572_v17, 7  ;;  %v2642_v17 = vrot.slane %v2640_v6, 4  ;;  %v2273_v4 = vrot.slane %v2271_v47, 4 }
 0x47c   :  { %v2730_v53 = vrot.slane %v2728_v40, 4  ;;  %v2729_v60 = vsel %vm8348_vm4, %v6187_v49, %v2728_v40  ;;  %v2644_v8 = vsel %vm8391_vm3, %v2642_v17, %v2643_v42  ;;  %v3393_v49 = vunpack.c.l.b16 %v2556_v52  ;;  %v2786_v42 = vld [vmem:[#allocation6 + $0x54] sm:$0xe] }
 0x47d   :  { %v3433_v43 = vunpack.c.l.b16 %v2644_v8  ;;  %v6196_v55 = vrot.slane %v2786_v42, 9  ;;  %v6706_v42 = vld [vmem:[#allocation6 + $0x24] sm:$0xff] }
 0x47e   :  { %v2732_v18 = vsel %vm8348_vm4, %v2730_v53, %v2731_v54  ;;  %v2210_v53 = vld [vmem:[#allocation6 + $0x44] sm:$0x1] }
 0x47f   :  { %3302 = vrot.lane.b32.xlu1 %v3292_v23, %s7237_s29  ;;  %v2926_v23 = vsel %vm8391_vm3, %v2924_v46, %v2925_v51  ;;  %v2641_v51 = vsel %vm8391_vm3, %v6179_v19, %v2640_v6  ;;  %v2274_v9 = vrot.slane %v2210_v53, 5 }
 0x480   :  { %v3583_v44 = vunpack.c.l.b16 %v2926_v23  ;;  %v1717_v23 = vperm.slane %v8569_v62, 2  ;;  %v3432_v6 = vunpack.c.l.b16 %v2641_v51 }
 0x482   :  { %3412 = vrot.lane.b32.xlu2 %v3403_v3, %s10110_s17  ;;  %v2923_v3 = vsel %vm8391_vm3, %v6202_v37, %v2922_v5  ;;  %v3472_v5 = vunpack.c.l.b16 %v2729_v60  ;;  %v5675_v37 = vsel %vm1430_vm1, %v5653_v35, 0  ;;  %v3445_v59 = vpack.c.b16 %v3433_v43, %v3432_v6 }
 0x483   :  { %v2848_v35 = vrot.slane %v8626_v45, 5  ;;  %vm129_vm1 = vcmask 58368  }
 0x48a   :  { %3342 = vrot.lane.b32.xlu2 %v3332_v2, %s7238_s4  ;;  %v3542_v2 = vunpack.c.l.b16 %v2835_v24  ;;  %v3392_v24 = vunpack.c.l.b16 %v2553_v50 }
 0x48c   :  { %v3556_v7 = vpack.c.b16 %v3543_v27, %v3542_v2  ;;  %v2971_v2 = vld [vmem:[#allocation6 + $0x5c] sm:$0x7]  ;;  %v3405_v25 = vpack.c.b16 %v3393_v49, %v3392_v24 }
 0x48d   :  { %v2305_v24 = vld [vmem:[#allocation6 + $0x3c] sm:$0xc] }
 0x492   :  { %3646 = vrot.lane.b32.xlu2 %v3636_v0, %s7238_s4  ;;  %v3582_v0 = vunpack.c.l.b16 %v2923_v3 }
 0x494   :  { %v3596_v41 = vpack.c.b16 %v3583_v44, %v3582_v0 }
 0x4a9   :  { %v3147_v21 = vpop.permute.xlu2 %3146 }
 0x4b1   :  { %v8643_v3 = vpop.permute.xlu2 %3148 }
 0x4c1   :  { %v3107_v36 = vpop.permute.xlu1 %3106 }
 0x4c2   :  { %v3660_v40 = vsel %vm366_vm8, %v6682_v28, %v3107_v36  ;;  %v2275_v36 = vsel %vm8039_vm15, %v2273_v4, %v2274_v9 }
 0x4c3   :  { %v3683_v54 = vsel %vm1380_vm9, %v3660_v40, %v3147_v21  ;;  %v2970_v21 = vld [vmem:[#allocation6 + $0x54] sm:$0x8] }
 0x4c4   :  { %v3699_v14 = vsel %vm1521_vm13, %v3683_v54, %v3187_v57  ;;  %v6744_v40 = vld [vmem:[%s10081_s9 + $0xf0] sm:$0xff]  ;;  %v8673_v51 = vpop.permute.xlu2 %3112  ;;  %v2306_v54 = vld [vmem:[#allocation6 + $0x44] sm:$0x3]  ;;  %v6156_v57 = vrot.slane %v2305_v24, 10 }
 0x4ce   :  { %v1788_v11 = vpop.f32.mrf.mxu1 }
 0x4cf   :  { %v1789_v56 = vadd.f32 %v1788_v11, %v1716_v34  ;;  %v6715_v11 = vld [vmem:[%s10081_s9 + $0x8] sm:$0xff]  ;;  %v3473_v34 = vunpack.c.l.b16 %v2732_v18  ;;  %v6745_v18 = vld [vmem:[%s10081_s9 + $0xf8] sm:$0xff] }
 0x4d0   :  { %4180 = vmatpush.bf16.msra.mxu1 %v6715_v11  ;;  %6780 = vmatpush.bf16.msrb.mxu3 %v6715_v11  ;;  %v2787_v11 = vld [vmem:[#allocation6 + $0x5c] sm:$0x1] }
 0x4d1   :  { %4321 = vmatpush.bf16.msrb.mxu0 %v6745_v18  ;;  %v2883_v18 = vld [vmem:[#allocation6 + $0x5c] sm:$0x3] }
 0x4d4   :  { %v1775_v63 = vpop.f32.mrf.mxu2  ;;  %4181 = vmatpush.bf16.msra.mxu1 %v6714_v48  ;;  %6781 = vmatpush.bf16.msrb.mxu3 %v6714_v48  ;;  %v6743_v48 = vld [vmem:[%s10081_s9 + $0xe8] sm:$0xff] }
 0x4d5   :  { %v1776_v58 = vadd.f32 %v1775_v63, %v1715_v38  ;;  %v6164_v38 = vrot.slane %v2393_v32, 11  ;;  %v3485_v63 = vpack.c.b16 %v3473_v34, %v3472_v5  ;;  %v2272_v32 = vsel %vm8039_vm15, %v6148_v22, %v2271_v47  ;;  %4322 = vmatpush.bf16.msrb.mxu0 %v6744_v40 }
 0x4d6   :  { %v1790_v15 = vpop.f32.mrf.mxu1  ;;  %v3242_v5 = vunpack.c.l.b16 %v2272_v32  ;;  %v2362_v22 = vrot.slane %v2306_v54, 6  ;;  %v2596_v54 = vld [vmem:[#allocation6 + $0x5c] sm:$0x3] }
 0x4d7   :  { %v8602_v1 = vpack.c.bf16 %v1789_v56, %v1776_v58  ;;  %v2448_v56 = vsel %vm8348_vm4, %v6164_v38, %v2447_v30  ;;  %v2451_v58 = vsel %vm8348_vm4, %v2449_v20, %v2450_v10  ;;  %v3024_v15 = vrot.slane %v8626_v45, 7  ;;  %4182 = vmatmul.bf16.vlgmr.msra.gmra.mxu1 %v3699_v14  ;;  %v6683_v20 = vld [vmem:[#allocation6 + $0xc] sm:$0xff]  ;;  %v3109_v10 = vpop.permute.xlu1 %3108 }
 0x4d8   :  { %v3322_v27 = vunpack.c.l.b16 %v2448_v56  ;;  %v3323_v60 = vunpack.c.l.b16 %v2451_v58  ;;  %5680 = vmatpush.bf16.msra.mxu3 %v5675_v37  ;;  %v6212_v30 = vrot.slane %v2970_v21, 11  ;;  %v2850_v37 = vrot.slane %v2848_v35, 4 }
 0x4d9   :  { %v6116_v33 = vrot.slane %v8602_v1, 10  ;;  %1835 = vrot.lane.b32.xlu0 %v8602_v1, %s10110_s17  ;;  %1826 = vrot.lane.b32.xlu1 %v8602_v1, %s7238_s4  ;;  %v1821_v26 = vrot.slane %v8602_v1, 6  ;;  %v2849_v56 = vsel %vm8039_vm15, %v6196_v55, %v2848_v35 }
 0x4da   :  { %v3334_v17 = vpack.c.b16 %v3323_v60, %v3322_v27  ;;  %v3025_v34 = vsel %vm8348_vm4, %v6212_v30, %v3024_v15  ;;  %4323 = vmatpush.bf16.msrb.mxu0 %v6743_v48  ;;  %v3546_v21 = vunpack.c.l.b16 %v2849_v56  ;;  %v6741_v27 = vld [vmem:[%s10081_s9 + $0xd8] sm:$0xff]  ;;  %v2882_v60 = vld [vmem:[#allocation6 + $0x54] sm:$0xc]  ;;  %v2939_v30 = vrot.slane %v2883_v18, 6 }
 0x4db   :  { %1843 = vst.msk [vmem:[#allocation6 + $0x30] sm:$0x4] %vm1824_vm0, %v6116_v33  ;;  %1831 = vrot.lane.b32.xlu2 %v1821_v26, %s7237_s29  ;;  %v3026_v33 = vrot.slane %v3024_v15, 4  ;;  %v3626_v8 = vunpack.c.l.b16 %v3025_v34  ;;  %v6204_v32 = vrot.slane %v2882_v60, 10 }
 0x4dc   :  { %1825 = vst.msk [vmem:[#allocation6 + $0x18] sm:$0x4] %vm1824_vm0, %v1821_v26  ;;  %v1777_v16 = vpop.f32.mrf.mxu2  ;;  %v3027_v26 = vrot.slane %v2971_v2, 7 }
 0x4dd   :  { %v3243_v16 = vunpack.c.l.b16 %v2275_v36 }
 0x4de   :  { %v1801_v46 = vpop.f32.mrf.mxu1  ;;  %v3028_v50 = vsel %vm8348_vm4, %v3026_v33, %v3027_v26 }
 0x4df   :  { %v1802_v0 = vadd.f32 %v1801_v46, %v1717_v23  ;;  %v2851_v46 = vrot.slane %v2787_v11, 5  ;;  %v3627_v47 = vunpack.c.l.b16 %v3028_v50  ;;  %v3254_v53 = vpack.c.b16 %v3243_v16, %v3242_v5  ;;  %v6739_v11 = vld [vmem:[%s10081_s9 + $0xc8] sm:$0xff] }
 0x4e1   :  { %3566 = vrot.lane.b32.xlu0 %v3556_v7, %s10110_s17  ;;  %3606 = vrot.lane.b32.xlu1 %v3596_v41, %s7237_s29  ;;  %v3189_v7 = vpop.permute.xlu0 %3188  ;;  %v2359_v41 = vrot.slane %v8592_v61, 6  ;;  %v3663_v61 = vsel %vm366_vm8, %v6683_v20, %v3109_v10  ;;  %v2852_v58 = vsel %vm8039_vm15, %v2850_v37, %v2851_v46  ;;  %v3638_v15 = vpack.c.b16 %v3627_v47, %v3626_v8  ;;  %v8750_v37 = vld [vmem:[#allocation6 + $0x40] sm:$0xf]  ;;  %v2012_v46 = vld [vmem:[#allocation6 + $0x3c] sm:$0xc] }
 0x4e2   :  { %v3685_v23 = vsel %vm1380_vm9, %v3663_v61, %v8643_v3  ;;  %v3547_v2 = vunpack.c.l.b16 %v2852_v58  ;;  %v8702_v3 = vpop.permute.xlu1 %3192  ;;  %v2013_v8 = vld [vmem:[#allocation6 + $0x44] sm:$0x3]  ;;  %v6133_v47 = vrot.slane %v2012_v46, 10  ;;  %v2074_v48 = vrot.slane %v8750_v37, 6 }
 0x4e3   :  { %3496 = vrot.lane.b32.xlu2 %v3485_v63, %s7238_s4  ;;  %v2361_v49 = vrot.slane %v2359_v41, 4  ;;  %v2360_v6 = vsel %vm8391_vm3, %v6156_v57, %v2359_v41 }
 0x4e4   :  { %v1814_v62 = vpop.f32.mrf.mxu2  ;;  %v3282_v9 = vunpack.c.l.b16 %v2360_v6  ;;  %v3558_v33 = vpack.c.b16 %v3547_v2, %v3546_v21  ;;  %v2075_v61 = vsel %vm8391_vm3, %v6133_v47, %v2074_v48  ;;  %v2076_v24 = vrot.slane %v2074_v48, 4 }
 0x4e5   :  { %v1815_v44 = vadd.f32 %v1814_v62, %v1718_v13  ;;  %v6742_v13 = vld [vmem:[%s10081_s9 + $0xe0] sm:$0xff]  ;;  %v2363_v43 = vsel %vm8391_vm3, %v2361_v49, %v2362_v22  ;;  %v8710_v62 = vpop.permute.xlu2 %3258  ;;  %v8757_v49 = vld [vmem:[#allocation6 + $0x58] sm:$0xf] }
 0x4e6   :  { %v1803_v28 = vpop.f32.mrf.mxu1  ;;  %v3283_v14 = vunpack.c.l.b16 %v2363_v43  ;;  %4324 = vmatpush.bf16.msrb.mxu0 %v6742_v13  ;;  %v2654_v22 = vrot.slane %v8757_v49, 6 }
 0x4e7   :  { %v8659_v19 = vpack.c.bf16 %v1815_v44, %v1802_v0 }
 0x4e8   :  { %v3294_v26 = vpack.c.b16 %v3283_v14, %v3282_v9  ;;  %v2656_v6 = vrot.slane %v2654_v22, 4 }
 0x4e9   :  { %v6118_v52 = vrot.slane %v8659_v19, 10  ;;  %3416 = vrot.lane.b32.xlu0 %v3405_v25, %s10110_s17  ;;  %3456 = vrot.lane.b32.xlu1 %v3445_v59, %s7237_s29  ;;  %v1857_v38 = vrot.slane %v8659_v19, 6  ;;  %v8700_v4 = vpop.permute.xlu0 %3152  ;;  %v3702_v25 = vsel %vm1521_vm13, %v3685_v23, %v3189_v7  ;;  %v6740_v59 = vld [vmem:[%s10081_s9 + $0xd0] sm:$0xff] }
 0x4ea   :  { %4187 = vmatmul.bf16.gmra.mxu1 %v3702_v25  ;;  %4325 = vmatpush.bf16.msrb.mxu0 %v6741_v27  ;;  %v8722_v36 = vpop.permute.xlu1 %3338 }
 0x4eb   :  { %1877 = vst.msk [vmem:[#allocation6 + $0x60] sm:$0x4] %vm1824_vm0, %v6118_v52  ;;  %3346 = vrot.lane.b32.xlu2 %v3334_v17, %s7238_s4  ;;  %v6738_v52 = vld [vmem:[%s10081_s9 + $0xc0] sm:$0xff] }
 0x4ec   :  { %v1816_v63 = vpop.f32.mrf.mxu2  ;;  %1860 = vst.msk [vmem:[#allocation6 + $0x48] sm:$0x4] %vm1824_vm0, %v1857_v38 }
 0x4ed   :  { %v3563_v34 = vpop.permute.xlu2 %3562  ;;  %v2077_v63 = vrot.slane %v2013_v8, 6 }
 0x4ee   :  { %4326 = vmatpush.bf16.msrb.mxu0 %v6740_v59  ;;  %v3852_v50 = vsel %vm366_vm8, %v6706_v42, %v3563_v34  ;;  %v1910_v42 = vld [vmem:[#allocation6 + $0x18] sm:$0xe] }
 0x4f1   :  { %3266 = vrot.lane.b32.xlu0 %v3254_v53, %s10110_s17  ;;  %1847 = vrot.lane.b32.xlu1 %v8602_v1, %s7237_s29  ;;  %v2936_v1 = vrot.slane %v8626_v45, 6  ;;  %v8720_v45 = vpop.permute.xlu0 %3298  ;;  %v2595_v53 = vld [vmem:[#allocation6 + $0x54] sm:$0xc] }
 0x4f2   :  { %4327 = vmatpush.bf16.msrb.mxu0 %v6739_v11  ;;  %v3643_v20 = vpop.permute.xlu1 %3642  ;;  %v6181_v58 = vrot.slane %v2595_v53, 10  ;;  %v2310_v11 = vld [vmem:[#allocation6 + $0x5c] sm:$0x3] }
 0x4f3   :  { %3650 = vrot.lane.b32.xlu2 %v3638_v15, %s7238_s4  ;;  %v2938_v0 = vrot.slane %v2936_v1, 4  ;;  %v2937_v44 = vsel %vm8391_vm3, %v6204_v32, %v2936_v1  ;;  %v2657_v15 = vrot.slane %v2596_v54, 6  ;;  %v8779_v32 = vld [vmem:[#allocation6 + $0x58] sm:$0xf]  ;;  %v2104_v54 = vld [vmem:[#allocation6 + $0x44] sm:$0x7] }
 0x4f4   :  { %v3586_v35 = vunpack.c.l.b16 %v2937_v44  ;;  %v2655_v13 = vsel %vm8391_vm3, %v6181_v58, %v2654_v22  ;;  %v2373_v34 = vrot.slane %v8779_v32, 6 }
 0x4f5   :  { %v2940_v28 = vsel %vm8391_vm3, %v2938_v0, %v2939_v30  ;;  %v8744_v7 = vpop.permute.xlu2 %3412  ;;  %v2658_v2 = vsel %vm8391_vm3, %v2656_v6, %v2657_v15  ;;  %v3436_v9 = vunpack.c.l.b16 %v2655_v13  ;;  %v2309_v30 = vld [vmem:[#allocation6 + $0x54] sm:$0xc]  ;;  %v1916_v0 = vld [vmem:[#allocation6 + $0x3c] sm:$0xe] }
 0x4f6   :  { %v3587_v17 = vunpack.c.l.b16 %v2940_v28  ;;  %4328 = vmatpush.bf16.msrb.mxu0 %v6738_v52  ;;  %v3437_v14 = vunpack.c.l.b16 %v2658_v2  ;;  %v1983_v28 = vrot.slane %v8750_v37, 5  ;;  %v6125_v52 = vrot.slane %v1916_v0, 9 }
 0x4f7   :  { %v2375_v8 = vrot.slane %v2373_v34, 4 }
 0x4f8   :  { %v3598_v5 = vpack.c.b16 %v3587_v17, %v3586_v35  ;;  %v3447_v27 = vpack.c.b16 %v3437_v14, %v3436_v9  ;;  %v2006_v17 = vld [vmem:[#allocation6 + $0x18] sm:$0xc]  ;;  %v1985_v47 = vrot.slane %v1983_v28, 4 }
 0x4f9   :  { %3570 = vrot.lane.b32.xlu0 %v3558_v33, %s10110_s17  ;;  %3306 = vrot.lane.b32.xlu1 %v3294_v26, %s7237_s29  ;;  %v3603_v16 = vpop.permute.xlu0 %3602 }
 0x4fa   :  { %v3875_v10 = vsel %vm1380_vm9, %v3852_v50, %v3603_v16  ;;  %v8765_v21 = vpop.permute.xlu1 %3492  ;;  %v1917_v50 = vld [vmem:[#allocation6 + $0x44] sm:$0x1]  ;;  %v2097_v16 = vld [vmem:[#allocation6 + $0x18] sm:$0x8] }
 0x4fb   :  { %1861 = vrot.lane.b32.xlu2 %v8659_v19, %s7238_s4  ;;  %v3891_v40 = vsel %vm1521_vm13, %v3875_v10, %v3643_v20  ;;  %v2165_v20 = vrot.slane %v8750_v37, 7  ;;  %v2376_v10 = vrot.slane %v2310_v11, 6  ;;  %v1986_v48 = vrot.slane %v1917_v50, 5  ;;  %v8817_v11 = vld [vmem:[#allocation6 + $0x70] sm:$0xf] }
 0x4fc   :  { %4329 = vmatmul.bf16.vlgmr.msrb.gmra.mxu0 %v3891_v40  ;;  %v2103_v40 = vld [vmem:[#allocation6 + $0x3c] sm:$0x8] }
 0x4fd   :  { %v8746_v41 = vpop.permute.xlu2 %3342  ;;  %v8805_v14 = vsel %vm8391_vm3, %v2375_v8, %v2376_v10 }
 0x501   :  { %1869 = vrot.lane.b32.xlu0 %v8659_v19, %s10110_s17  ;;  %3610 = vrot.lane.b32.xlu1 %v3598_v5, %s7237_s29  ;;  %v8763_v43 = vpop.permute.xlu0 %3452  ;;  %v6158_v5 = vrot.slane %v2309_v30, 10 }
 0x502   :  { %v8775_v18 = vpop.permute.xlu1 %3302 }
 0x503   :  { %1881 = vrot.lane.b32.xlu2 %v8659_v19, %s7237_s29  ;;  %v3132_v19 = vunpack.c.l.b16 %v2075_v61  ;;  %v8792_v46 = vsel %vm8391_vm3, %v6158_v5, %v2373_v34  ;;  %v6130_v61 = vrot.slane %v2006_v17, 10 }
 0x504   :  { %v3286_v13 = vunpack.c.l.b16 %v8792_v46 }
 0x505   :  { %v8748_v55 = vpop.permute.xlu2 %3646 }
 0x509   :  { %1865 = vrot.lane.b32.xlu0 %v1857_v38, %s7237_s29  ;;  %v2078_v38 = vsel %vm8391_vm3, %v2076_v24, %v2077_v63  ;;  %v8773_v60 = vpop.permute.xlu0 %3262  ;;  %v6138_v63 = vrot.slane %v2097_v16, 11  ;;  %v6122_v24 = vrot.slane %v1910_v42, 9  ;;  %v2168_v42 = vrot.slane %v2104_v54, 7 }
 0x50a   :  { %v3133_v56 = vunpack.c.l.b16 %v2078_v38 }
 0x50c   :  { %v3143_v23 = vpack.c.b16 %v3133_v56, %v3132_v19  ;;  %v8796_v19 = vsel %vm8039_vm15, %v6125_v52, %v1983_v28  ;;  %v2167_v56 = vrot.slane %v2165_v20, 4 }
 0x50d   :  { %v3092_v30 = vunpack.c.l.b16 %v8796_v19  ;;  %v2950_v19 = vrot.slane %v8817_v11, 6 }
 0x50e   :  { %3156 = vrot.lane.b32.xlu1 %v3143_v23, %s7237_s29 }
 0x516   :  { %3460 = vrot.lane.b32.xlu1 %v3447_v27, %s7237_s29  ;;  %v8809_v27 = vsel %vm8039_vm15, %v1985_v47, %v1986_v48 }
 0x535   :  { %v1832_v57 = vpop.permute.xlu2 %1831 }
 0x536   :  { %1834 = vst.msk [vmem:[#allocation6 + $0x1c] sm:$0x4] %vm1824_vm0, %v1832_v57  ;;  %v6141_v57 = vrot.slane %v2103_v40, 11 }
 0x538   :  { %v2166_v8 = vsel %vm8348_vm4, %v6141_v57, %v2165_v20  ;;  %v3287_v57 = vunpack.c.l.b16 %v8805_v14  ;;  %v2952_v14 = vrot.slane %v2950_v19, 4 }
 0x53d   :  { %v8770_v25 = vpop.permute.xlu2 %3496 }
 0x545   :  { %v8777_v1 = vpop.permute.xlu2 %3346 }
 0x54b   :  { %v1827_v33 = vpop.permute.xlu1 %1826  ;;  %v1836_v26 = vpop.permute.xlu0 %1835 }
 0x54c   :  { %1830 = vst.msk [vmem:[#allocation6 + $0x1c] sm:$0x1] %vm1829_vm6, %v1827_v33  ;;  %v1844_v44 = vrot.slane %v1827_v33, 4  ;;  %v1853_v59 = vrot.slane %v1836_v26, 4 }
 0x54d   :  { %1838 = vst.msk [vmem:[#allocation6 + $0x20] sm:$0x1] %vm1829_vm6, %v1836_v26  ;;  %v8784_v35 = vpop.permute.xlu2 %3650 }
 0x54e   :  { %1846 = vst.msk [vmem:[#allocation6 + $0x34] sm:$0x1] %vm1829_vm6, %v1844_v44 }
 0x54f   :  { %1855 = vst.msk [vmem:[#allocation6 + $0x38] sm:$0x1] %vm1829_vm6, %v1853_v59 }
 0x553   :  { %v8798_v38 = vpop.permute.xlu1 %3606  ;;  %v8800_v53 = vpop.permute.xlu0 %3566  ;;  %v1895_v37 = vld [vmem:[#allocation6 + $0x1c] sm:$0xf] }
 0x554   :  { %v2098_v58 = vld [vmem:[#allocation6 + $0x20] sm:$0x7]  ;;  %v2144_v22 = vrot.slane %v1895_v37, 7  ;;  %v2053_v23 = vrot.slane %v1895_v37, 6  ;;  %v1962_v9 = vrot.slane %v1895_v37, 5 }
 0x555   :  { %v2007_v15 = vld [vmem:[#allocation6 + $0x20] sm:$0x3]  ;;  %v1862_v6 = vpop.permute.xlu2 %1861  ;;  %v2147_v44 = vrot.slane %v2098_v58, 7 }
 0x556   :  { %v1911_v2 = vld [vmem:[#allocation6 + $0x20] sm:$0x1]  ;;  %1864 = vst.msk [vmem:[#allocation6 + $0x4c] sm:$0x1] %vm1829_vm6, %v1862_v6  ;;  %v1878_v33 = vrot.slane %v1862_v6, 4  ;;  %v2145_v26 = vsel %vm8348_vm4, %v6138_v63, %v2144_v22  ;;  %v2146_v0 = vrot.slane %v2144_v22, 4  ;;  %v2054_v59 = vsel %vm8391_vm3, %v6130_v61, %v2053_v23 }
 0x557   :  { %v2055_v28 = vrot.slane %v2053_v23, 4  ;;  %v2056_v17 = vrot.slane %v2007_v15, 6  ;;  %v1963_v34 = vsel %vm8039_vm15, %v6122_v24, %v1962_v9  ;;  %v1964_v50 = vrot.slane %v1962_v9, 4  ;;  %v2886_v61 = vld [vmem:[#allocation6 + $0x6c] sm:$0xc] }
 0x558   :  { %1880 = vst.msk [vmem:[#allocation6 + $0x64] sm:$0x1] %vm1829_vm6, %v1878_v33  ;;  %v2148_v5 = vsel %vm8348_vm4, %v2146_v0, %v2147_v44  ;;  %v1965_v52 = vrot.slane %v1911_v2, 5  ;;  %v3166_v16 = vunpack.c.l.b16 %v2145_v26  ;;  %v3126_v47 = vunpack.c.l.b16 %v2054_v59  ;;  %v2887_v15 = vld [vmem:[#allocation6 + $0x74] sm:$0x3] }
 0x559   :  { %v3167_v10 = vunpack.c.l.b16 %v2148_v5  ;;  %v2057_v40 = vsel %vm8391_vm3, %v2055_v28, %v2056_v17  ;;  %v3086_v58 = vunpack.c.l.b16 %v1963_v34  ;;  %v2499_v23 = vld [vmem:[#allocation6 + $0x54] sm:$0xe]  ;;  %v2566_v6 = vrot.slane %v8757_v49, 5  ;;  %v2500_v9 = vld [vmem:[#allocation6 + $0x5c] sm:$0x1] }
 0x55a   :  { %v3127_v48 = vunpack.c.l.b16 %v2057_v40  ;;  %v1966_v63 = vsel %vm8039_vm15, %v1964_v50, %v1965_v52  ;;  %v2169_v2 = vsel %vm8348_vm4, %v2167_v56, %v2168_v42  ;;  %v2683_v33 = vld [vmem:[#allocation6 + $0x54] sm:$0x8]  ;;  %v2742_v26 = vrot.slane %v8757_v49, 7  ;;  %v2684_v5 = vld [vmem:[#allocation6 + $0x5c] sm:$0x7] }
 0x55b   :  { %v8831_v37 = vpop.permute.xlu1 %3456  ;;  %v8833_v24 = vpop.permute.xlu0 %3416  ;;  %v3180_v54 = vpack.c.b16 %v3167_v10, %v3166_v16  ;;  %v3087_v22 = vunpack.c.l.b16 %v1966_v63  ;;  %v3093_v59 = vunpack.c.l.b16 %v8809_v27  ;;  %v3172_v28 = vunpack.c.l.b16 %v2166_v8  ;;  %v8845_v27 = vld [vmem:[#allocation6 + $0x1c] sm:$0xf] }
 0x55c   :  { %v3140_v20 = vpack.c.b16 %v3127_v48, %v3126_v47  ;;  %v6206_v17 = vrot.slane %v2886_v61, 10  ;;  %v2953_v50 = vrot.slane %v2887_v15, 6  ;;  %v6173_v52 = vrot.slane %v2499_v23, 9  ;;  %v2214_v23 = vld [vmem:[#allocation6 + $0x5c] sm:$0x1] }
 0x55d   :  { %v1882_v0 = vpop.permute.xlu2 %1881  ;;  %3190 = vrot.lane.b32.xlu1 %v3180_v54, %s7238_s4  ;;  %v3100_v44 = vpack.c.b16 %v3087_v22, %v3086_v58  ;;  %v3173_v56 = vunpack.c.l.b16 %v2169_v2  ;;  %v2568_v42 = vrot.slane %v2566_v6, 4  ;;  %v2569_v49 = vrot.slane %v2500_v9, 5 }
 0x55e   :  { %v6119_v34 = vrot.slane %v1882_v0, 10  ;;  %3150 = vrot.lane.b32.xlu0 %v3140_v20, %s7237_s29  ;;  %v6189_v16 = vrot.slane %v2683_v33, 11  ;;  %v2744_v10 = vrot.slane %v2742_v26, 4  ;;  %v2745_v40 = vrot.slane %v2684_v5, 7  ;;  %v2490_v0 = vld [vmem:[#allocation6 + $0x20] sm:$0x1] }
 0x55f   :  { %3110 = vrot.lane.b32.xlu2 %v3100_v44, %s10110_s17  ;;  %v3296_v8 = vpack.c.b16 %v3287_v57, %v3286_v13  ;;  %v3103_v47 = vpack.c.b16 %v3093_v59, %v3092_v30  ;;  %v2951_v48 = vsel %vm8391_vm3, %v6206_v17, %v2950_v19  ;;  %v2954_v63 = vsel %vm8391_vm3, %v2952_v14, %v2953_v50  ;;  %v2213_v30 = vld [vmem:[#allocation6 + $0x54] sm:$0xe]  ;;  %v2398_v59 = vld [vmem:[#allocation6 + $0x5c] sm:$0x7]  ;;  %v2489_v50 = vld [vmem:[#allocation6 + $0x18] sm:$0xe] }
 0x560   :  { %1886 = vst.msk [vmem:[#allocation6 + $0x64] sm:$0x4] %vm1824_vm0, %v6119_v34  ;;  %v2567_v61 = vsel %vm8039_vm15, %v6173_v52, %v2566_v6  ;;  %v2285_v54 = vrot.slane %v8779_v32, 5  ;;  %v3183_v15 = vpack.c.b16 %v3173_v56, %v3172_v28  ;;  %v2570_v46 = vsel %vm8039_vm15, %v2568_v42, %v2569_v49  ;;  %v2397_v44 = vld [vmem:[#allocation6 + $0x54] sm:$0x8] }
 0x561   :  { %v2531_v13 = vrot.slane %v8845_v27, 5  ;;  %v2743_v20 = vsel %vm8348_vm4, %v6189_v16, %v2742_v26  ;;  %v2746_v6 = vsel %vm8348_vm4, %v2744_v10, %v2745_v40  ;;  %v2461_v57 = vrot.slane %v8779_v32, 7 }
 0x562   :  { %v3590_v2 = vunpack.c.l.b16 %v2951_v48  ;;  %v3591_v9 = vunpack.c.l.b16 %v2954_v63  ;;  %v3396_v33 = vunpack.c.l.b16 %v2567_v61  ;;  %v3397_v28 = vunpack.c.l.b16 %v2570_v46 }
 0x563   :  { %v1848_v58 = vpop.permute.xlu1 %1847  ;;  %v8856_v22 = vpop.permute.xlu0 %3266  ;;  %v6150_v17 = vrot.slane %v2213_v30, 9  ;;  %v2287_v26 = vrot.slane %v2285_v54, 4  ;;  %v2288_v5 = vrot.slane %v2214_v23, 5  ;;  %v3476_v34 = vunpack.c.l.b16 %v2743_v20  ;;  %v2791_v23 = vld [vmem:[#allocation6 + $0x74] sm:$0x1] }
 0x564   :  { %v6117_v19 = vrot.slane %v1848_v58, 10  ;;  %v3477_v32 = vunpack.c.l.b16 %v2746_v6  ;;  %v2533_v14 = vrot.slane %v2531_v13, 4  ;;  %v6166_v52 = vrot.slane %v2397_v44, 11 }
 0x565   :  { %3310 = vrot.lane.b32.xlu1 %v3296_v8, %s7237_s29  ;;  %v2463_v56 = vrot.slane %v2461_v57, 4  ;;  %v2464_v42 = vrot.slane %v2398_v59, 7  ;;  %v3600_v49 = vpack.c.b16 %v3591_v9, %v3590_v2  ;;  %v2534_v16 = vrot.slane %v2490_v0, 5  ;;  %v2674_v2 = vld [vmem:[#allocation6 + $0x20] sm:$0x7] }
 0x566   :  { %1852 = vst.msk [vmem:[#allocation6 + $0x34] sm:$0x4] %vm1824_vm0, %v6117_v19  ;;  %3116 = vrot.lane.b32.xlu0 %v3103_v47, %s10110_s17  ;;  %v3407_v10 = vpack.c.b16 %v3397_v28, %v3396_v33  ;;  %v2286_v40 = vsel %vm8039_vm15, %v6150_v17, %v2285_v54  ;;  %v2289_v8 = vsel %vm8039_vm15, %v2287_v26, %v2288_v5  ;;  %v2707_v47 = vrot.slane %v8845_v27, 7  ;;  %v2673_v33 = vld [vmem:[#allocation6 + $0x18] sm:$0x8] }
 0x567   :  { %3196 = vrot.lane.b32.xlu2 %v3183_v15, %s7238_s4  ;;  %v3487_v63 = vpack.c.b16 %v3477_v32, %v3476_v34  ;;  %v6168_v61 = vrot.slane %v2489_v50, 9  ;;  %v2535_v58 = vsel %vm8039_vm15, %v2533_v14, %v2534_v16  ;;  %v2790_v15 = vld [vmem:[#allocation6 + $0x6c] sm:$0xe]  ;;  %v2862_v46 = vrot.slane %v8817_v11, 5  ;;  %v8890_v5 = vld [vmem:[#allocation6 + $0x58] sm:$0xf] }
 0x568   :  { %v2462_v30 = vsel %vm8348_vm4, %v6166_v52, %v2461_v57  ;;  %v2465_v54 = vsel %vm8348_vm4, %v2463_v56, %v2464_v42  ;;  %v3246_v20 = vunpack.c.l.b16 %v2286_v40  ;;  %v3247_v6 = vunpack.c.l.b16 %v2289_v8  ;;  %v2585_v50 = vld [vmem:[#allocation6 + $0x18] sm:$0xc]  ;;  %v2586_v52 = vld [vmem:[#allocation6 + $0x20] sm:$0x3]  ;;  %v2017_v16 = vld [vmem:[#allocation6 + $0x5c] sm:$0x3] }
 0x569   :  { %v2532_v19 = vsel %vm8039_vm15, %v6168_v61, %v2531_v13  ;;  %v3387_v9 = vunpack.c.l.b16 %v2535_v58  ;;  %v2709_v0 = vrot.slane %v2707_v47, 4  ;;  %v6198_v44 = vrot.slane %v2790_v15, 9  ;;  %v1920_v58 = vld [vmem:[#allocation6 + $0x54] sm:$0xe]  ;;  %v1921_v15 = vld [vmem:[#allocation6 + $0x5c] sm:$0x1] }
 0x56a   :  { %v2619_v57 = vrot.slane %v8845_v27, 6  ;;  %v3326_v59 = vunpack.c.l.b16 %v2462_v30  ;;  %v3327_v28 = vunpack.c.l.b16 %v2465_v54  ;;  %v2864_v17 = vrot.slane %v2862_v46, 4 }
 0x56b   :  { %v8875_v48 = vpop.permute.xlu0 %3570  ;;  %v2865_v26 = vrot.slane %v2791_v23, 5  ;;  %v2710_v13 = vrot.slane %v2674_v2, 7  ;;  %v3386_v34 = vunpack.c.l.b16 %v2532_v19  ;;  %v3256_v32 = vpack.c.b16 %v3247_v6, %v3246_v20  ;;  %v6694_v20 = vld [vmem:[#allocation6 + $0x3c] sm:$0xff] }
 0x56c   :  { %v6184_v14 = vrot.slane %v2673_v33, 11  ;;  %v2863_v27 = vsel %vm8039_vm15, %v6198_v44, %v2862_v46  ;;  %v2621_v42 = vrot.slane %v2619_v57, 4  ;;  %v1997_v30 = vrot.slane %v8890_v5, 5  ;;  %v2975_v44 = vld [vmem:[#allocation6 + $0x74] sm:$0x7] }
 0x56d   :  { %3614 = vrot.lane.b32.xlu1 %v3600_v49, %s7237_s29  ;;  %v2711_v56 = vsel %vm8348_vm4, %v2709_v0, %v2710_v13  ;;  %v2016_v49 = vld [vmem:[#allocation6 + $0x54] sm:$0xc]  ;;  %v3402_v8 = vpack.c.b16 %v3387_v9, %v3386_v34  ;;  %v2866_v61 = vsel %vm8039_vm15, %v2864_v17, %v2865_v26  ;;  %v6176_v23 = vrot.slane %v2585_v50, 10  ;;  %v2974_v0 = vld [vmem:[#allocation6 + $0x6c] sm:$0x8] }
 0x56e   :  { %3420 = vrot.lane.b32.xlu0 %v3407_v10, %s10110_s17  ;;  %v2088_v10 = vrot.slane %v8890_v5, 6  ;;  %v2622_v46 = vrot.slane %v2586_v52, 6  ;;  %v3038_v19 = vrot.slane %v8817_v11, 7  ;;  %v2708_v6 = vsel %vm8348_vm4, %v6184_v14, %v2707_v47  ;;  %v3307_v14 = vpop.permute.xlu1 %3306 }
 0x56f   :  { %3500 = vrot.lane.b32.xlu2 %v3487_v63, %s7238_s4  ;;  %v3336_v63 = vpack.c.b16 %v3327_v28, %v3326_v59  ;;  %v3467_v2 = vunpack.c.l.b16 %v2711_v56  ;;  %v3550_v9 = vunpack.c.l.b16 %v2863_v27  ;;  %v6135_v33 = vrot.slane %v2016_v49, 10  ;;  %v8912_v27 = vld [vmem:[#allocation6 + $0x1c] sm:$0xf] }
 0x570   :  { %v3551_v59 = vunpack.c.l.b16 %v2866_v61  ;;  %v2623_v28 = vsel %vm8391_vm3, %v2621_v42, %v2622_v46  ;;  %v2090_v11 = vrot.slane %v2088_v10, 4  ;;  %v2091_v17 = vrot.slane %v2017_v16, 6  ;;  %v6710_v46 = vld [vmem:[#allocation6 + $0x54] sm:$0xff] }
 0x571   :  { %v2620_v47 = vsel %vm8391_vm3, %v6176_v23, %v2619_v57  ;;  %v6127_v26 = vrot.slane %v1920_v58, 9  ;;  %v1999_v13 = vrot.slane %v1997_v30, 4  ;;  %v2000_v34 = vrot.slane %v1921_v15, 5 }
 0x572   :  { %v6214_v50 = vrot.slane %v2974_v0, 11  ;;  %v3040_v52 = vrot.slane %v3038_v19, 4  ;;  %v3041_v56 = vrot.slane %v2975_v44, 7  ;;  %v3466_v42 = vunpack.c.l.b16 %v2708_v6 }
 0x573   :  { %v1870_v40 = vpop.permute.xlu0 %1869  ;;  %v3427_v49 = vunpack.c.l.b16 %v2623_v28  ;;  %v3560_v16 = vpack.c.b16 %v3551_v59, %v3550_v9  ;;  %v2092_v57 = vsel %vm8391_vm3, %v2090_v11, %v2091_v17  ;;  %v1998_v58 = vsel %vm8039_vm15, %v6127_v26, %v1997_v30  ;;  %v2387_v28 = vld [vmem:[#allocation6 + $0x18] sm:$0x8]  ;;  %v2300_v17 = vld [vmem:[#allocation6 + $0x20] sm:$0x3] }
 0x574   :  { %1872 = vst.msk [vmem:[#allocation6 + $0x50] sm:$0x1] %vm1829_vm6, %v1870_v40  ;;  %v1887_v54 = vrot.slane %v1870_v40, 4  ;;  %v3426_v40 = vunpack.c.l.b16 %v2620_v47  ;;  %v3482_v61 = vpack.c.b16 %v3467_v2, %v3466_v42  ;;  %v2001_v15 = vsel %vm8039_vm15, %v1999_v13, %v2000_v34  ;;  %v2299_v47 = vld [vmem:[#allocation6 + $0x18] sm:$0xc] }
 0x575   :  { %3410 = vrot.lane.b32.xlu1 %v3402_v8, %s10110_s17  ;;  %v2089_v8 = vsel %vm8391_vm3, %v6135_v33, %v2088_v10  ;;  %v3042_v10 = vsel %vm8348_vm4, %v3040_v52, %v3041_v56  ;;  %v2338_v23 = vrot.slane %v8912_v27, 6  ;;  %v3137_v6 = vunpack.c.l.b16 %v2092_v57  ;;  %v2388_v33 = vld [vmem:[#allocation6 + $0x20] sm:$0x7]  ;;  %v8940_v56 = vld [vmem:[#allocation6 + $0x34] sm:$0xf] }
 0x576   :  { %1889 = vst.msk [vmem:[#allocation6 + $0x68] sm:$0x1] %vm1829_vm6, %v1887_v54  ;;  %3270 = vrot.lane.b32.xlu0 %v3256_v32, %s10110_s17  ;;  %v3736_v32 = vsel %vm366_vm8, %v6694_v20, %v8856_v22  ;;  %v2426_v22 = vrot.slane %v8912_v27, 7  ;;  %v3039_v54 = vsel %vm8348_vm4, %v6214_v50, %v3038_v19  ;;  %v3442_v20 = vpack.c.b16 %v3427_v49, %v3426_v40  ;;  %v2204_v52 = vld [vmem:[#allocation6 + $0x20] sm:$0x1] }
 0x577   :  { %3350 = vrot.lane.b32.xlu2 %v3336_v63, %s7238_s4  ;;  %v3136_v30 = vunpack.c.l.b16 %v2089_v8  ;;  %v3096_v2 = vunpack.c.l.b16 %v1998_v58  ;;  %v3097_v9 = vunpack.c.l.b16 %v2001_v15  ;;  %v2250_v0 = vrot.slane %v8912_v27, 5  ;;  %v3611_v27 = vpop.permute.xlu1 %3610  ;;  %v2203_v49 = vld [vmem:[#allocation6 + $0x18] sm:$0xe] }
 0x578   :  { %v8935_v19 = vsel %vm1380_vm9, %v3736_v32, %v3307_v14  ;;  %v3630_v44 = vunpack.c.l.b16 %v3039_v54  ;;  %v3631_v59 = vunpack.c.l.b16 %v3042_v10  ;;  %v2428_v11 = vrot.slane %v2426_v22, 4 }
 0x579   :  { %v2340_v26 = vrot.slane %v2338_v23, 4  ;;  %v3864_v13 = vsel %vm366_vm8, %v6710_v46, %v8875_v48  ;;  %v3145_v34 = vpack.c.b16 %v3137_v6, %v3136_v30  ;;  %v2429_v50 = vrot.slane %v2388_v33, 7  ;;  %v2965_v33 = vld [vmem:[#allocation6 + $0x38] sm:$0x7] }
 0x57a   :  { %v3105_v14 = vpack.c.b16 %v3097_v9, %v3096_v2  ;;  %v6161_v32 = vrot.slane %v2387_v28, 11  ;;  %v2341_v42 = vrot.slane %v2300_v17, 6  ;;  %v3640_v40 = vpack.c.b16 %v3631_v59, %v3630_v44  ;;  %v2964_v9 = vld [vmem:[#allocation6 + $0x30] sm:$0x8] }
 0x57b   :  { %v1866_v63 = vpop.permute.xlu0 %1865  ;;  %v2430_v8 = vsel %vm8348_vm4, %v2428_v11, %v2429_v50  ;;  %v6153_v57 = vrot.slane %v2299_v47, 10  ;;  %v2253_v48 = vrot.slane %v2204_v52, 5  ;;  %v8948_v58 = vsel %vm1380_vm9, %v3864_v13, %v3611_v27  ;;  %v2876_v44 = vld [vmem:[#allocation6 + $0x30] sm:$0xc]  ;;  %v8963_v13 = vld [vmem:[#allocation6 + $0x34] sm:$0xf] }
 0x57c   :  { %1868 = vst.msk [vmem:[#allocation6 + $0x4c] sm:$0x4] %vm1824_vm0, %v1866_v63  ;;  %v2342_v63 = vsel %vm8391_vm3, %v2340_v26, %v2341_v42  ;;  %v6145_v15 = vrot.slane %v2203_v49, 9  ;;  %v2915_v54 = vrot.slane %v8940_v56, 6  ;;  %v2427_v10 = vsel %vm8348_vm4, %v6161_v32, %v2426_v22  ;;  %v2877_v22 = vld [vmem:[#allocation6 + $0x38] sm:$0x3] }
 0x57d   :  { %3490 = vrot.lane.b32.xlu1 %v3482_v61, %s7238_s4  ;;  %v3003_v61 = vrot.slane %v8940_v56, 7  ;;  %v2339_v46 = vsel %vm8391_vm3, %v6153_v57, %v2338_v23  ;;  %v2827_v30 = vrot.slane %v8940_v56, 5  ;;  %v3317_v6 = vunpack.c.l.b16 %v2430_v8  ;;  %v2781_v26 = vld [vmem:[#allocation6 + $0x38] sm:$0x1]  ;;  %v2780_v56 = vld [vmem:[#allocation6 + $0x30] sm:$0xe] }
 0x57e   :  { %3574 = vrot.lane.b32.xlu0 %v3560_v16, %s10110_s17  ;;  %v2252_v16 = vrot.slane %v2250_v0, 4  ;;  %v3277_v2 = vunpack.c.l.b16 %v2342_v63  ;;  %v2251_v59 = vsel %vm8039_vm15, %v6145_v15, %v2250_v0  ;;  %v3316_v11 = vunpack.c.l.b16 %v2427_v10  ;;  %v2108_v10 = vld [vmem:[#allocation6 + $0x5c] sm:$0x7] }
 0x57f   :  { %3450 = vrot.lane.b32.xlu2 %v3442_v20, %s7237_s29  ;;  %v3005_v28 = vrot.slane %v3003_v61, 4  ;;  %v3276_v17 = vunpack.c.l.b16 %v2339_v46  ;;  %v2917_v47 = vrot.slane %v2915_v54, 4  ;;  %v3006_v50 = vrot.slane %v2965_v33, 7 }
 0x580   :  { %v2254_v20 = vsel %vm8039_vm15, %v2252_v16, %v2253_v48  ;;  %v6201_v52 = vrot.slane %v2876_v44, 10  ;;  %v2829_v27 = vrot.slane %v2827_v30, 4  ;;  %v3236_v42 = vunpack.c.l.b16 %v2251_v59  ;;  %v2589_v59 = vld [vmem:[#allocation6 + $0x30] sm:$0xc] }
 0x581   :  { %v3237_v23 = vunpack.c.l.b16 %v2254_v20  ;;  %v3291_v32 = vpack.c.b16 %v3277_v2, %v3276_v17  ;;  %v2918_v49 = vrot.slane %v2877_v22, 6  ;;  %v3007_v0 = vsel %vm8348_vm4, %v3005_v28, %v3006_v50  ;;  %v6708_v20 = vld [vmem:[#allocation6 + $0x3c] sm:$0xff]  ;;  %v2590_v28 = vld [vmem:[#allocation6 + $0x38] sm:$0x3]  ;;  %v8983_v50 = vld [vmem:[#allocation6 + $0x34] sm:$0xf] }
 0x582   :  { %v2830_v16 = vrot.slane %v2781_v26, 5  ;;  %v2179_v8 = vrot.slane %v8890_v5, 7  ;;  %v2633_v57 = vrot.slane %v8963_v13, 6  ;;  %v6193_v15 = vrot.slane %v2780_v56, 9 }
 0x583   :  { %v3251_v63 = vpack.c.b16 %v3237_v23, %v3236_v42  ;;  %v2919_v48 = vsel %vm8391_vm3, %v2917_v47, %v2918_v49  ;;  %v2545_v46 = vrot.slane %v8963_v13, 5  ;;  %v3621_v2 = vunpack.c.l.b16 %v3007_v0 }
 0x584   :  { %v2831_v5 = vsel %vm8039_vm15, %v2829_v27, %v2830_v16  ;;  %v2828_v33 = vsel %vm8039_vm15, %v6193_v15, %v2827_v30  ;;  %v3581_v22 = vunpack.c.l.b16 %v2919_v48  ;;  %v2182_v17 = vrot.slane %v2108_v10, 7  ;;  %v2493_v30 = vld [vmem:[#allocation6 + $0x30] sm:$0xe] }
 0x585   :  { %3160 = vrot.lane.b32.xlu1 %v3145_v34, %s7237_s29  ;;  %v6209_v34 = vrot.slane %v2964_v9, 11  ;;  %v2916_v9 = vsel %vm8391_vm3, %v6201_v52, %v2915_v54  ;;  %v2635_v23 = vrot.slane %v2633_v57, 4  ;;  %v3541_v26 = vunpack.c.l.b16 %v2831_v5 }
 0x586   :  { %3120 = vrot.lane.b32.xlu0 %v3105_v14, %s10110_s17  ;;  %v3331_v14 = vpack.c.b16 %v3317_v6, %v3316_v11  ;;  %v2181_v11 = vrot.slane %v2179_v8, 4  ;;  %v3858_v56 = vsel %vm366_vm8, %v6708_v20, %v8800_v53  ;;  %v3580_v54 = vunpack.c.l.b16 %v2916_v9 }
 0x587   :  { %3654 = vrot.lane.b32.xlu2 %v3640_v40, %s7238_s4  ;;  %v2107_v40 = vld [vmem:[#allocation6 + $0x54] sm:$0x8]  ;;  %v3004_v6 = vsel %vm8348_vm4, %v6209_v34, %v3003_v61  ;;  %v2494_v61 = vld [vmem:[#allocation6 + $0x38] sm:$0x1]  ;;  %v2547_v34 = vrot.slane %v2545_v46, 4  ;;  %v6178_v52 = vrot.slane %v2589_v59, 10 }
 0x588   :  { %v6143_v44 = vrot.slane %v2107_v40, 11  ;;  %v3620_v47 = vunpack.c.l.b16 %v3004_v6  ;;  %v2636_v27 = vrot.slane %v2590_v28, 6  ;;  %v2548_v49 = vrot.slane %v2494_v61, 5  ;;  %v6729_v59 = vld [vmem:[%s10081_s9 + $0x78] sm:$0xff] }
 0x589   :  { %v3595_v0 = vpack.c.b16 %v3581_v22, %v3580_v54  ;;  %v2183_v16 = vsel %vm8348_vm4, %v2181_v11, %v2182_v17  ;;  %v6170_v48 = vrot.slane %v2493_v30, 9  ;;  %v2264_v10 = vrot.slane %v8983_v50, 5  ;;  %v2677_v22 = vld [vmem:[#allocation6 + $0x30] sm:$0x8]  ;;  %v2208_v11 = vld [vmem:[#allocation6 + $0x38] sm:$0x1]  ;;  %4223 = vmatpush.bf16.msrb.mxu1 %v6729_v59 }
 0x58a   :  { %v2180_v42 = vsel %vm8348_vm4, %v6143_v44, %v2179_v8  ;;  %v2637_v40 = vsel %vm8391_vm3, %v2635_v23, %v2636_v27  ;;  %v2549_v15 = vsel %vm8039_vm15, %v2547_v34, %v2548_v49  ;;  %v2634_v20 = vsel %vm8391_vm3, %v6178_v52, %v2633_v57  ;;  %v2304_v44 = vld [vmem:[#allocation6 + $0x38] sm:$0x3]  ;;  %v2207_v52 = vld [vmem:[#allocation6 + $0x30] sm:$0xe] }
 0x58b   :  { %v3176_v8 = vunpack.c.l.b16 %v2180_v42  ;;  %v2721_v6 = vrot.slane %v8963_v13, 7  ;;  %v3177_v5 = vunpack.c.l.b16 %v2183_v16  ;;  %v2546_v9 = vsel %vm8039_vm15, %v6170_v48, %v2545_v46  ;;  %v2678_v23 = vld [vmem:[#allocation6 + $0x38] sm:$0x7]  ;;  %v2391_v59 = vld [vmem:[#allocation6 + $0x30] sm:$0x8] }
 0x58c   :  { %v9010_v28 = vsel %vm1380_vm9, %v3858_v56, %v8798_v38  ;;  %v3391_v57 = vunpack.c.l.b16 %v2549_v15  ;;  %v3430_v17 = vunpack.c.l.b16 %v2634_v20  ;;  %v2266_v61 = vrot.slane %v2264_v10, 4 }
 0x58d   :  { %3340 = vrot.lane.b32.xlu1 %v3331_v14, %s7238_s4  ;;  %v3635_v14 = vpack.c.b16 %v3621_v2, %v3620_v47  ;;  %v3431_v2 = vunpack.c.l.b16 %v2637_v40  ;;  %v9012_v47 = vld [vmem:[#allocation6 + $0x34] sm:$0xf]  ;;  %v3390_v46 = vunpack.c.l.b16 %v2546_v9  ;;  %v2355_v54 = vrot.slane %v2304_v44, 6 }
 0x58e   :  { %3300 = vrot.lane.b32.xlu0 %v3291_v32, %s7237_s29  ;;  %v3540_v32 = vunpack.c.l.b16 %v2828_v33  ;;  %v2303_v33 = vld [vmem:[#allocation6 + $0x30] sm:$0xc]  ;;  %v3185_v27 = vpack.c.b16 %v3177_v5, %v3176_v8  ;;  %v2267_v38 = vrot.slane %v2208_v11, 5  ;;  %v2067_v49 = vrot.slane %v9012_v47, 6 }
 0x58f   :  { %3260 = vrot.lane.b32.xlu2 %v3251_v63, %s10110_s17  ;;  %v2352_v63 = vrot.slane %v8983_v50, 6  ;;  %v6155_v34 = vrot.slane %v2303_v33, 10  ;;  %v3444_v30 = vpack.c.b16 %v3431_v2, %v3430_v17  ;;  %v3404_v56 = vpack.c.b16 %v3391_v57, %v3390_v46  ;;  %v2010_v5 = vld [vmem:[#allocation6 + $0x30] sm:$0xc]  ;;  %v2011_v2 = vld [vmem:[#allocation6 + $0x38] sm:$0x3] }
 0x590   :  { %v3555_v53 = vpack.c.b16 %v3541_v26, %v3540_v32  ;;  %v2723_v26 = vrot.slane %v2721_v6, 4  ;;  %v2724_v32 = vrot.slane %v2678_v23, 7  ;;  %v2268_v16 = vsel %vm8039_vm15, %v2266_v61, %v2267_v38  ;;  %v6728_v9 = vld [vmem:[%s10081_s9 + $0x70] sm:$0xff]  ;;  %v1915_v57 = vld [vmem:[#allocation6 + $0x38] sm:$0x1] }
 0x591   :  { %v2354_v13 = vrot.slane %v2352_v63, 4  ;;  %v1976_v40 = vrot.slane %v9012_v47, 5  ;;  %v2353_v48 = vsel %vm8391_vm3, %v6155_v34, %v2352_v63  ;;  %v2440_v15 = vrot.slane %v8983_v50, 7  ;;  %v9035_v17 = vld [vmem:[#allocation6 + $0x4c] sm:$0xf]  ;;  %4224 = vmatpush.bf16.msrb.mxu1 %v6728_v9 }
 0x592   :  { %v3241_v44 = vunpack.c.l.b16 %v2268_v16  ;;  %v2069_v63 = vrot.slane %v2067_v49, 4  ;;  %v6132_v61 = vrot.slane %v2010_v5, 10  ;;  %v2070_v46 = vrot.slane %v2011_v2, 6  ;;  %v2880_v5 = vld [vmem:[#allocation6 + $0x48] sm:$0xc] }
 0x593   :  { %v2356_v42 = vsel %vm8391_vm3, %v2354_v13, %v2355_v54  ;;  %v2392_v13 = vld [vmem:[#allocation6 + $0x38] sm:$0x7]  ;;  %v1978_v11 = vrot.slane %v1976_v40, 4  ;;  %v2442_v23 = vrot.slane %v2440_v15, 4  ;;  %v2929_v38 = vrot.slane %v9035_v17, 6  ;;  %v6727_v9 = vld [vmem:[%s10081_s9 + $0x68] sm:$0xff] }
 0x594   :  { %v3281_v8 = vunpack.c.l.b16 %v2356_v42  ;;  %v2881_v2 = vld [vmem:[#allocation6 + $0x50] sm:$0x3] }
 0x595   :  { %3644 = vrot.lane.b32.xlu1 %v3635_v14, %s7238_s4  ;;  %v6186_v14 = vrot.slane %v2677_v22, 11  ;;  %v3280_v22 = vunpack.c.l.b16 %v2353_v48  ;;  %v2158_v48 = vrot.slane %v9012_v47, 7  ;;  %4225 = vmatpush.bf16.msrb.mxu1 %v6727_v9  ;;  %v6726_v9 = vld [vmem:[%s10081_s9 + $0x60] sm:$0xff] }
 0x596   :  { %3604 = vrot.lane.b32.xlu0 %v3595_v0, %s7237_s29  ;;  %v6147_v0 = vrot.slane %v2207_v52, 9  ;;  %v6163_v52 = vrot.slane %v2391_v59, 11  ;;  %v2101_v59 = vld [vmem:[#allocation6 + $0x30] sm:$0x8] }
 0x597   :  { %3564 = vrot.lane.b32.xlu2 %v3555_v53, %s10110_s17  ;;  %v2725_v53 = vsel %vm8348_vm4, %v2723_v26, %v2724_v32  ;;  %v2722_v33 = vsel %vm8348_vm4, %v6186_v14, %v2721_v6  ;;  %v1914_v26 = vld [vmem:[#allocation6 + $0x30] sm:$0xe]  ;;  %v3293_v54 = vpack.c.b16 %v3281_v8, %v3280_v22  ;;  %v1979_v6 = vrot.slane %v1915_v57, 5 }
 0x598   :  { %v2265_v20 = vsel %vm8039_vm15, %v6147_v0, %v2264_v10  ;;  %v3471_v50 = vunpack.c.l.b16 %v2725_v53  ;;  %v3470_v34 = vunpack.c.l.b16 %v2722_v33  ;;  %v2071_v14 = vsel %vm8391_vm3, %v2069_v63, %v2070_v46  ;;  %v2785_v63 = vld [vmem:[#allocation6 + $0x50] sm:$0x1] }
 0x599   :  { %v3240_v10 = vunpack.c.l.b16 %v2265_v20  ;;  %v6124_v32 = vrot.slane %v1914_v26, 9  ;;  %v1980_v42 = vsel %vm8039_vm15, %v1978_v11, %v1979_v6  ;;  %v2841_v0 = vrot.slane %v9035_v17, 5  ;;  %4226 = vmatpush.bf16.msrb.mxu1 %v6726_v9  ;;  %v2308_v9 = vld [vmem:[#allocation6 + $0x50] sm:$0x3] }
 0x59a   :  { %v2068_v53 = vsel %vm8391_vm3, %v6132_v61, %v2067_v49  ;;  %v3131_v8 = vunpack.c.l.b16 %v2071_v14  ;;  %v2441_v33 = vsel %vm8348_vm4, %v6163_v52, %v2440_v15  ;;  %v2931_v49 = vrot.slane %v2929_v38, 4  ;;  %v2784_v61 = vld [vmem:[#allocation6 + $0x48] sm:$0xe] }
 0x59b   :  { %v1977_v20 = vsel %vm8039_vm15, %v6124_v32, %v1976_v40  ;;  %v3130_v57 = vunpack.c.l.b16 %v2068_v53  ;;  %v2843_v22 = vrot.slane %v2841_v0, 4  ;;  %v2160_v11 = vrot.slane %v2158_v48, 4 }
 0x59c   :  { %v3090_v40 = vunpack.c.l.b16 %v1977_v20  ;;  %v3320_v46 = vunpack.c.l.b16 %v2441_v33  ;;  %v2844_v15 = vrot.slane %v2785_v63, 5  ;;  %v6195_v14 = vrot.slane %v2784_v61, 9 }
 0x59d   :  { %3454 = vrot.lane.b32.xlu1 %v3444_v30, %s7237_s29  ;;  %v2443_v30 = vrot.slane %v2392_v13, 7  ;;  %v9058_v13 = vld [vmem:[#allocation6 + $0x4c] sm:$0xf]  ;;  %v3142_v26 = vpack.c.b16 %v3131_v8, %v3130_v57  ;;  %v3017_v53 = vrot.slane %v9035_v17, 7 }
 0x59e   :  { %3414 = vrot.lane.b32.xlu0 %v3404_v56, %s10110_s17  ;;  %v3484_v56 = vpack.c.b16 %v3471_v50, %v3470_v34  ;;  %v2102_v50 = vld [vmem:[#allocation6 + $0x38] sm:$0x7]  ;;  %v6140_v34 = vrot.slane %v2101_v59, 11  ;;  %v2559_v32 = vrot.slane %v9058_v13, 5  ;;  %v2842_v20 = vsel %vm8039_vm15, %v6195_v14, %v2841_v0  ;;  %v2969_v59 = vld [vmem:[#allocation6 + $0x50] sm:$0x7] }
 0x59f   :  { %3200 = vrot.lane.b32.xlu2 %v3185_v27, %s7238_s4  ;;  %v3253_v27 = vpack.c.b16 %v3241_v44, %v3240_v10  ;;  %v2444_v16 = vsel %vm8348_vm4, %v2442_v23, %v2443_v30  ;;  %v3091_v44 = vunpack.c.l.b16 %v1980_v42  ;;  %v6203_v10 = vrot.slane %v2880_v5, 10  ;;  %v2593_v5 = vld [vmem:[#allocation6 + $0x48] sm:$0xc] }
 0x5a0   :  { %v3321_v47 = vunpack.c.l.b16 %v2444_v16  ;;  %v2932_v23 = vrot.slane %v2881_v2, 6  ;;  %v2161_v52 = vrot.slane %v2102_v50, 7  ;;  %v2594_v2 = vld [vmem:[#allocation6 + $0x50] sm:$0x3]  ;;  %v2159_v33 = vsel %vm8348_vm4, %v6140_v34, %v2158_v48  ;;  %v9081_v50 = vld [vmem:[#allocation6 + $0x4c] sm:$0xf] }
 0x5a1   :  { %v2930_v16 = vsel %vm8391_vm3, %v6203_v10, %v2929_v38  ;;  %v2561_v57 = vrot.slane %v2559_v32, 4  ;;  %v3544_v0 = vunpack.c.l.b16 %v2842_v20  ;;  %v2497_v10 = vld [vmem:[#allocation6 + $0x48] sm:$0xe] }
 0x5a2   :  { %v2933_v6 = vsel %vm8391_vm3, %v2931_v49, %v2932_v23  ;;  %v3333_v30 = vpack.c.b16 %v3321_v47, %v3320_v46  ;;  %v2162_v42 = vsel %vm8348_vm4, %v2160_v11, %v2161_v52  ;;  %v2498_v49 = vld [vmem:[#allocation6 + $0x50] sm:$0x1]  ;;  %v3584_v63 = vunpack.c.l.b16 %v2930_v16  ;;  %v2968_v47 = vld [vmem:[#allocation6 + $0x48] sm:$0x8] }
 0x5a3   :  { %v3585_v8 = vunpack.c.l.b16 %v2933_v6  ;;  %v3171_v17 = vunpack.c.l.b16 %v2162_v42  ;;  %v2650_v11 = vrot.slane %v2594_v2, 6  ;;  %v3170_v23 = vunpack.c.l.b16 %v2159_v33  ;;  %v2307_v20 = vld [vmem:[#allocation6 + $0x48] sm:$0xc]  ;;  %v6725_v33 = vld [vmem:[%s10081_s9 + $0x58] sm:$0xff] }
 0x5a4   :  { %v3020_v46 = vrot.slane %v2969_v59, 7  ;;  %v2562_v48 = vrot.slane %v2498_v49, 5  ;;  %v2366_v52 = vrot.slane %v9081_v50, 6  ;;  %v2681_v59 = vld [vmem:[#allocation6 + $0x48] sm:$0x8]  ;;  %4227 = vmatpush.bf16.msrb.mxu1 %v6725_v33 }
 0x5a5   :  { %3304 = vrot.lane.b32.xlu1 %v3293_v54, %s7237_s29  ;;  %v3102_v54 = vpack.c.b16 %v3091_v44, %v3090_v40  ;;  %v6180_v40 = vrot.slane %v2593_v5, 10  ;;  %v3597_v61 = vpack.c.b16 %v3585_v8, %v3584_v63  ;;  %v3182_v6 = vpack.c.b16 %v3171_v17, %v3170_v23  ;;  %v2212_v49 = vld [vmem:[#allocation6 + $0x50] sm:$0x1]  ;;  %v2211_v23 = vld [vmem:[#allocation6 + $0x48] sm:$0xe] }
 0x5a6   :  { %3264 = vrot.lane.b32.xlu0 %v3253_v27, %s10110_s17  ;;  %v2647_v27 = vrot.slane %v9058_v13, 6  ;;  %v2563_v14 = vsel %vm8039_vm15, %v2561_v57, %v2562_v48  ;;  %v2735_v8 = vrot.slane %v9058_v13, 7  ;;  %v9117_v48 = vpop.permute.xlu1 %3156  ;;  %v2789_v33 = vld [vmem:[#allocation6 + $0x68] sm:$0x1] }
 0x5a7   :  { %3494 = vrot.lane.b32.xlu2 %v3484_v56, %s7238_s4  ;;  %v2845_v56 = vsel %vm8039_vm15, %v2843_v22, %v2844_v15  ;;  %v3019_v22 = vrot.slane %v3017_v53, 4  ;;  %v6211_v15 = vrot.slane %v2968_v47, 11  ;;  %v3395_v13 = vunpack.c.l.b16 %v2563_v14  ;;  %v2682_v47 = vld [vmem:[#allocation6 + $0x50] sm:$0x7] }
 0x5a8   :  { %v3545_v44 = vunpack.c.l.b16 %v2845_v56  ;;  %v2649_v38 = vrot.slane %v2647_v27, 4  ;;  %v2278_v56 = vrot.slane %v9081_v50, 5  ;;  %v2648_v16 = vsel %vm8391_vm3, %v6180_v40, %v2647_v27 }
 0x5a9   :  { %v3021_v42 = vsel %vm8348_vm4, %v3019_v22, %v3020_v46  ;;  %v3018_v27 = vsel %vm8348_vm4, %v6211_v15, %v3017_v53  ;;  %v6735_v22 = vld [vmem:[%s10081_s9 + $0xa8] sm:$0xff]  ;;  %v2737_v53 = vrot.slane %v2735_v8, 4 }
 0x5aa   :  { %v3557_v34 = vpack.c.b16 %v3545_v44, %v3544_v0  ;;  %v6736_v44 = vld [vmem:[%s10081_s9 + $0xb0] sm:$0xff]  ;;  %v3625_v63 = vunpack.c.l.b16 %v3021_v42  ;;  %v2280_v57 = vrot.slane %v2278_v56, 4  ;;  %v9112_v0 = vld [vmem:[#allocation6 + $0x64] sm:$0xf] }
 0x5ab   :  { %v2943_v14 = vrot.slane %v9112_v0, 6 }
 0x5ad   :  { %3154 = vrot.lane.b32.xlu1 %v3142_v26, %s7237_s29  ;;  %v6737_v26 = vld [vmem:[%s10081_s9 + $0xb8] sm:$0xff] }
 0x5ae   :  { %3114 = vrot.lane.b32.xlu0 %v3102_v54, %s10110_s17  ;;  %v2651_v54 = vsel %vm8391_vm3, %v2649_v38, %v2650_v11  ;;  %4272 = vmatpush.bf16.msra.mxu2 %v6737_v26  ;;  %v2368_v38 = vrot.slane %v2366_v52, 4  ;;  %v6157_v11 = vrot.slane %v2307_v20, 10  ;;  %v6188_v26 = vrot.slane %v2681_v59, 11  ;;  %v2884_v59 = vld [vmem:[#allocation6 + $0x60] sm:$0xc] }
 0x5af   :  { %3344 = vrot.lane.b32.xlu2 %v3333_v30, %s7238_s4  ;;  %v6172_v30 = vrot.slane %v2497_v10, 9  ;;  %v3435_v5 = vunpack.c.l.b16 %v2651_v54  ;;  %v2369_v10 = vrot.slane %v2308_v9, 6  ;;  %v2738_v54 = vrot.slane %v2682_v47, 7  ;;  %v2396_v47 = vld [vmem:[#allocation6 + $0x50] sm:$0x7] }
 0x5b0   :  { %v2367_v9 = vsel %vm8391_vm3, %v6157_v11, %v2366_v52  ;;  %v6734_v52 = vld [vmem:[%s10081_s9 + $0xa0] sm:$0xff]  ;;  %v2858_v11 = vrot.slane %v2789_v33, 5 }
 0x5b1   :  { %v2560_v2 = vsel %vm8039_vm15, %v6172_v30, %v2559_v32  ;;  %v3434_v32 = vunpack.c.l.b16 %v2648_v16  ;;  %v2885_v30 = vld [vmem:[#allocation6 + $0x68] sm:$0x3]  ;;  %v6149_v16 = vrot.slane %v2211_v23, 9 }
 0x5b2   :  { %4273 = vmatpush.bf16.msra.mxu2 %v6736_v44  ;;  %v3394_v40 = vunpack.c.l.b16 %v2560_v2  ;;  %v2739_v2 = vsel %vm8348_vm4, %v2737_v53, %v2738_v54  ;;  %v2855_v44 = vrot.slane %v9112_v0, 5  ;;  %v2457_v54 = vrot.slane %v2396_v47, 7 }
 0x5b3   :  { %v3446_v46 = vpack.c.b16 %v3435_v5, %v3434_v32  ;;  %v2454_v5 = vrot.slane %v9081_v50, 7  ;;  %v2279_v50 = vsel %vm8039_vm15, %v6149_v16, %v2278_v56  ;;  %v2395_v32 = vld [vmem:[#allocation6 + $0x48] sm:$0x8]  ;;  %v2788_v56 = vld [vmem:[#allocation6 + $0x60] sm:$0xe]  ;;  %v3031_v47 = vrot.slane %v9112_v0, 7 }
 0x5b4   :  { %v3406_v15 = vpack.c.b16 %v3395_v13, %v3394_v40  ;;  %v3284_v40 = vunpack.c.l.b16 %v2367_v9  ;;  %v6732_v0 = vld [vmem:[%s10081_s9 + $0x90] sm:$0xff] }
 0x5b5   :  { %3608 = vrot.lane.b32.xlu1 %v3597_v61, %s7237_s29  ;;  %v3624_v61 = vunpack.c.l.b16 %v3018_v27  ;;  %v2736_v27 = vsel %vm8348_vm4, %v6188_v26, %v2735_v8  ;;  %v3475_v8 = vunpack.c.l.b16 %v2739_v2  ;;  %v2456_v53 = vrot.slane %v2454_v5, 4  ;;  %v2972_v2 = vld [vmem:[#allocation6 + $0x60] sm:$0x8] }
 0x5b6   :  { %3568 = vrot.lane.b32.xlu0 %v3557_v34, %s10110_s17  ;;  %v2281_v34 = vrot.slane %v2212_v49, 5  ;;  %4274 = vmatpush.bf16.msra.mxu2 %v6735_v22  ;;  %v6724_v49 = vld [vmem:[%s10081_s9 + $0x50] sm:$0xff]  ;;  %v3474_v23 = vunpack.c.l.b16 %v2736_v27  ;;  %v2857_v26 = vrot.slane %v2855_v44, 4  ;;  %v9156_v27 = vpop.permute.xlu1 %3460 }
 0x5b7   :  { %3194 = vrot.lane.b32.xlu2 %v3182_v6, %s7238_s4  ;;  %v2370_v6 = vsel %vm8391_vm3, %v2368_v38, %v2369_v10  ;;  %v3637_v42 = vpack.c.b16 %v3625_v63, %v3624_v61  ;;  %v2946_v38 = vrot.slane %v2885_v30, 6  ;;  %v9145_v10 = vld [vmem:[#allocation6 + $0x4c] sm:$0xf]  ;;  %4228 = vmatpush.bf16.msrb.mxu1 %v6724_v49  ;;  %v3244_v61 = vunpack.c.l.b16 %v2279_v50  ;;  %v6733_v30 = vld [vmem:[%s10081_s9 + $0x98] sm:$0xff]  ;;  %v2014_v49 = vld [vmem:[#allocation6 + $0x48] sm:$0xc] }
 0x5b8   :  { %v2282_v20 = vsel %vm8039_vm15, %v2280_v57, %v2281_v34  ;;  %v3285_v13 = vunpack.c.l.b16 %v2370_v6  ;;  %v2945_v57 = vrot.slane %v2943_v14, 4  ;;  %v2081_v9 = vrot.slane %v9145_v10, 6 }
 0x5b9   :  { %v9110_v17 = vpop.permute.xlu2 %3110  ;;  %v3245_v63 = vunpack.c.l.b16 %v2282_v20  ;;  %v6197_v20 = vrot.slane %v2788_v56, 9  ;;  %v3486_v33 = vpack.c.b16 %v3475_v8, %v3474_v23  ;;  %v2859_v50 = vsel %vm8039_vm15, %v2857_v26, %v2858_v11  ;;  %v1918_v11 = vld [vmem:[#allocation6 + $0x48] sm:$0xe]  ;;  %v1919_v23 = vld [vmem:[#allocation6 + $0x50] sm:$0x1] }
 0x5ba   :  { %4275 = vmatpush.bf16.msra.mxu2 %v6734_v52  ;;  %v3295_v34 = vpack.c.b16 %v3285_v13, %v3284_v40  ;;  %v2947_v6 = vsel %vm8391_vm3, %v2945_v57, %v2946_v38  ;;  %v2458_v13 = vsel %vm8348_vm4, %v2456_v53, %v2457_v54  ;;  %v2973_v38 = vld [vmem:[#allocation6 + $0x68] sm:$0x7]  ;;  %v2015_v57 = vld [vmem:[#allocation6 + $0x50] sm:$0x3]  ;;  %v3549_v53 = vunpack.c.l.b16 %v2859_v50 }
 0x5bb   :  { %v3325_v8 = vunpack.c.l.b16 %v2458_v13  ;;  %v2083_v56 = vrot.slane %v2081_v9, 4  ;;  %v6134_v26 = vrot.slane %v2014_v49, 10  ;;  %v6731_v13 = vld [vmem:[%s10081_s9 + $0x88] sm:$0xff]  ;;  %v6126_v49 = vrot.slane %v1918_v11, 9 }
 0x5bd   :  { %3458 = vrot.lane.b32.xlu1 %v3446_v46, %s7237_s29  ;;  %v6205_v46 = vrot.slane %v2884_v59, 10  ;;  %v1990_v59 = vrot.slane %v9145_v10, 5 }
 0x5be   :  { %3418 = vrot.lane.b32.xlu0 %v3406_v15, %s10110_s17  ;;  %v6165_v15 = vrot.slane %v2395_v32, 11  ;;  %4276 = vmatpush.bf16.msra.mxu2 %v6733_v30  ;;  %v6213_v32 = vrot.slane %v2972_v2, 11  ;;  %v9178_v30 = vld [vmem:[#allocation6 + $0x64] sm:$0xf]  ;;  %v1993_v2 = vrot.slane %v1919_v23, 5 }
 0x5bf   :  { %3648 = vrot.lane.b32.xlu2 %v3637_v42, %s7238_s4  ;;  %v3255_v42 = vpack.c.b16 %v3245_v63, %v3244_v61  ;;  %v2944_v16 = vsel %vm8391_vm3, %v6205_v46, %v2943_v14  ;;  %v3589_v14 = vunpack.c.l.b16 %v2947_v6  ;;  %v2856_v63 = vsel %vm8039_vm15, %v6197_v20, %v2855_v44  ;;  %v2502_v23 = vld [vmem:[#allocation6 + $0x68] sm:$0x1] }
 0x5c0   :  { %v2455_v52 = vsel %vm8348_vm4, %v6165_v15, %v2454_v5  ;;  %v3588_v40 = vunpack.c.l.b16 %v2944_v16  ;;  %v3034_v46 = vrot.slane %v2973_v38, 7  ;;  %v6723_v5 = vld [vmem:[%s10081_s9 + $0x48] sm:$0xff]  ;;  %v3548_v54 = vunpack.c.l.b16 %v2856_v63 }
 0x5c1   :  { %v9143_v22 = vpop.permute.xlu2 %3196  ;;  %v3324_v44 = vunpack.c.l.b16 %v2455_v52  ;;  %v2084_v6 = vrot.slane %v2015_v57, 6  ;;  %v3033_v16 = vrot.slane %v3031_v47, 4  ;;  %v2082_v20 = vsel %vm8391_vm3, %v6134_v26, %v2081_v9  ;;  %4229 = vmatpush.bf16.msrb.mxu1 %v6723_v5  ;;  %v2598_v52 = vld [vmem:[#allocation6 + $0x68] sm:$0x3] }
 0x5c2   :  { %v3599_v15 = vpack.c.b16 %v3589_v14, %v3588_v40  ;;  %4277 = vmatpush.bf16.msra.mxu2 %v6732_v0  ;;  %v3559_v14 = vpack.c.b16 %v3549_v53, %v3548_v54  ;;  %v2661_v57 = vrot.slane %v9178_v30, 6  ;;  %v3134_v53 = vunpack.c.l.b16 %v2082_v20  ;;  %v9204_v0 = vld [vmem:[#allocation6 + $0x70] sm:$0xf] }
 0x5c3   :  { %v3335_v50 = vpack.c.b16 %v3325_v8, %v3324_v44  ;;  %v2085_v38 = vsel %vm8391_vm3, %v2083_v56, %v2084_v6  ;;  %v3035_v9 = vsel %vm8348_vm4, %v3033_v16, %v3034_v46  ;;  %v6684_v8 = vld [vmem:[#allocation6 + $0x18] sm:$0xff]  ;;  %v2106_v56 = vld [vmem:[#allocation6 + $0x50] sm:$0x7]  ;;  %v2664_v5 = vrot.slane %v2598_v52, 6  ;;  %v6722_v44 = vld [vmem:[%s10081_s9 + $0x40] sm:$0xff] }
 0x5c4   :  { %v3135_v26 = vunpack.c.l.b16 %v2085_v38  ;;  %v3666_v54 = vsel %vm366_vm8, %v6684_v8, %v9110_v17  ;;  %v2175_v52 = vrot.slane %v2106_v56, 7  ;;  %v2668_v12 = vrot.slane %v9204_v0, 6  ;;  %v2600_v8 = vld [vmem:[#allocation6 + $0x74] sm:$0x3] }
 0x5c5   :  { %3308 = vrot.lane.b32.xlu1 %v3295_v34, %s7237_s29  ;;  %v1992_v34 = vrot.slane %v1990_v59, 4  ;;  %4230 = vmatpush.bf16.msrb.mxu1 %v6722_v44 }
 0x5c6   :  { %3268 = vrot.lane.b32.xlu0 %v3255_v42, %s10110_s17  ;;  %v3032_v42 = vsel %vm8348_vm4, %v6213_v32, %v3031_v47  ;;  %v2105_v32 = vld [vmem:[#allocation6 + $0x48] sm:$0x8]  ;;  %v2172_v47 = vrot.slane %v9145_v10, 7  ;;  %v2573_v10 = vrot.slane %v9178_v30, 5  ;;  %4278 = vmatpush.bf16.msra.mxu2 %v6731_v13  ;;  %v2663_v13 = vrot.slane %v2661_v57, 4 }
 0x5c7   :  { %3498 = vrot.lane.b32.xlu2 %v3486_v33, %s7238_s4  ;;  %v9184_v33 = vld [vmem:[#allocation6 + $0x60] sm:$0xc]  ;;  %v1994_v63 = vsel %vm8039_vm15, %v1992_v34, %v1993_v2  ;;  %v3628_v40 = vunpack.c.l.b16 %v3032_v42  ;;  %v1991_v34 = vsel %vm8039_vm15, %v6126_v49, %v1990_v59  ;;  %v3629_v42 = vunpack.c.l.b16 %v3035_v9 }
 0x5c8   :  { %v6182_v11 = vrot.slane %v9184_v33, 10  ;;  %v3095_v59 = vunpack.c.l.b16 %v1994_v63  ;;  %v6142_v16 = vrot.slane %v2105_v32, 11  ;;  %v2174_v33 = vrot.slane %v2172_v47, 4  ;;  %v2599_v32 = vld [vmem:[#allocation6 + $0x6c] sm:$0xc] }
 0x5c9   :  { %v9170_v61 = vpop.permute.xlu2 %3500  ;;  %v3094_v49 = vunpack.c.l.b16 %v1991_v34  ;;  %v3144_v17 = vpack.c.b16 %v3135_v26, %v3134_v53  ;;  %v2665_v9 = vsel %vm8391_vm3, %v2663_v13, %v2664_v5  ;;  %v2575_v63 = vrot.slane %v2573_v10, 4  ;;  %v6685_v34 = vld [vmem:[#allocation6 + $0x24] sm:$0xff] }
 0x5ca   :  { %v2173_v53 = vsel %vm8348_vm4, %v6142_v16, %v2172_v47  ;;  %v2176_v56 = vsel %vm8348_vm4, %v2174_v33, %v2175_v52  ;;  %v2662_v26 = vsel %vm8391_vm3, %v6182_v11, %v2661_v57  ;;  %v2686_v16 = vld [vmem:[#allocation6 + $0x68] sm:$0x7] }
 0x5cd   :  { %3612 = vrot.lane.b32.xlu1 %v3599_v15, %s7237_s29  ;;  %v6730_v15 = vld [vmem:[%s10081_s9 + $0x80] sm:$0xff] }
 0x5ce   :  { %3572 = vrot.lane.b32.xlu0 %v3559_v14, %s10110_s17  ;;  %v2576_v14 = vrot.slane %v2502_v23, 5  ;;  %4279 = vmatpush.bf16.msra.mxu2 %v6730_v15  ;;  %v3104_v23 = vpack.c.b16 %v3095_v59, %v3094_v49  ;;  %v6183_v15 = vrot.slane %v2599_v32, 10  ;;  %v2671_v59 = vrot.slane %v2600_v8, 6  ;;  %v9244_v32 = vld [vmem:[#allocation6 + $0x64] sm:$0xf] }
 0x5cf   :  { %3348 = vrot.lane.b32.xlu2 %v3335_v50, %s7238_s4  ;;  %v3191_v46 = vpop.permute.xlu1 %3190  ;;  %v2501_v50 = vld [vmem:[#allocation6 + $0x60] sm:$0xe]  ;;  %v3669_v49 = vsel %vm366_vm8, %v6685_v34, %v8673_v51  ;;  %v2312_v34 = vld [vmem:[#allocation6 + $0x68] sm:$0x3] }
 0x5d0   :  { %v3151_v6 = vpop.permute.xlu0 %3150  ;;  %v6174_v44 = vrot.slane %v2501_v50, 9  ;;  %v2577_v5 = vsel %vm8039_vm15, %v2575_v63, %v2576_v14  ;;  %v2685_v14 = vld [vmem:[#allocation6 + $0x60] sm:$0x8]  ;;  %v3438_v63 = vunpack.c.l.b16 %v2662_v26  ;;  %v2669_v8 = vsel %vm8391_vm3, %v6183_v15, %v2668_v12  ;;  %v2687_v26 = vld [vmem:[#allocation6 + $0x6c] sm:$0x8] }
 0x5d1   :  { %v9214_v20 = vpop.permute.xlu2 %3350  ;;  %v3687_v2 = vsel %vm1380_vm9, %v3666_v54, %v3151_v6  ;;  %v2580_v54 = vrot.slane %v9204_v0, 5  ;;  %v3639_v6 = vpack.c.b16 %v3629_v42, %v3628_v40  ;;  %v3439_v40 = vunpack.c.l.b16 %v2665_v9 }
 0x5d2   :  { %10119 = vst [vmem:[#allocation8_spill] sm:$0xff] %v9214_v20  ;;  %v3705_v38 = vsel %vm1521_vm13, %v3687_v2, %v3191_v46  ;;  %v2503_v20 = vld [vmem:[#allocation6 + $0x6c] sm:$0xe]  ;;  %v2504_v46 = vld [vmem:[#allocation6 + $0x74] sm:$0x1]  ;;  %v2670_v42 = vrot.slane %v2668_v12, 4  ;;  %v2574_v47 = vsel %vm8039_vm15, %v6174_v44, %v2573_v10  ;;  %v3399_v50 = vunpack.c.l.b16 %v2577_v5 }
 0x5d3   :  { %4192 = vmatmul.bf16.gmra.mxu1 %v3705_v38  ;;  %v6175_v33 = vrot.slane %v2503_v20, 9  ;;  %v2582_v13 = vrot.slane %v2580_v54, 4  ;;  %v2583_v57 = vrot.slane %v2504_v46, 5  ;;  %v2749_v38 = vrot.slane %v9178_v30, 7  ;;  %v2311_v46 = vld [vmem:[#allocation6 + $0x60] sm:$0xc] }
 0x5d4   :  { %v3175_v9 = vunpack.c.l.b16 %v2176_v56  ;;  %v3398_v10 = vunpack.c.l.b16 %v2574_v47  ;;  %v2752_v20 = vrot.slane %v2686_v16, 7  ;;  %v6190_v30 = vrot.slane %v2685_v14, 11 }
 0x5d5   :  { %3158 = vrot.lane.b32.xlu1 %v3144_v17, %s7237_s29  ;;  %v3174_v17 = vunpack.c.l.b16 %v2173_v53  ;;  %v2581_v51 = vsel %vm8039_vm15, %v6175_v33, %v2580_v54  ;;  %v2584_v44 = vsel %vm8039_vm15, %v2582_v13, %v2583_v57  ;;  %v2751_v56 = vrot.slane %v2749_v38, 4  ;;  %v2215_v13 = vld [vmem:[#allocation6 + $0x60] sm:$0xe]  ;;  %v2216_v57 = vld [vmem:[#allocation6 + $0x68] sm:$0x1] }
 0x5d6   :  { %3118 = vrot.lane.b32.xlu0 %v3104_v23, %s10110_s17  ;;  %v3448_v23 = vpack.c.b16 %v3439_v40, %v3438_v63  ;;  %v3408_v53 = vpack.c.b16 %v3399_v50, %v3398_v10  ;;  %v2756_v5 = vrot.slane %v9204_v0, 7  ;;  %v2380_v12 = vrot.slane %v9244_v32, 6  ;;  %v9266_v63 = vld [vmem:[#allocation6 + $0x7c] sm:$0xf] }
 0x5d7   :  { %3652 = vrot.lane.b32.xlu2 %v3639_v6, %s7238_s4  ;;  %v9233_v2 = vpop.permute.xlu1 %3310  ;;  %v2672_v6 = vsel %vm8391_vm3, %v2670_v42, %v2671_v59  ;;  %v3184_v15 = vpack.c.b16 %v3175_v9, %v3174_v17  ;;  %v3440_v40 = vunpack.c.l.b16 %v2669_v8  ;;  %v2688_v59 = vld [vmem:[#allocation6 + $0x74] sm:$0x7]  ;;  %v2753_v54 = vsel %vm8348_vm4, %v2751_v56, %v2752_v20 }
 0x5d8   :  { %v9237_v11 = vpop.permute.xlu0 %3116  ;;  %v3441_v42 = vunpack.c.l.b16 %v2672_v6  ;;  %v3400_v47 = vunpack.c.l.b16 %v2581_v51  ;;  %v3401_v16 = vunpack.c.l.b16 %v2584_v44  ;;  %v2383_v33 = vrot.slane %v2312_v34, 6 }
 0x5d9   :  { %v9242_v52 = vpop.permute.xlu2 %3450  ;;  %v3689_v0 = vsel %vm1380_vm9, %v3669_v49, %v8700_v4  ;;  %v6191_v14 = vrot.slane %v2687_v26, 11  ;;  %v6159_v17 = vrot.slane %v2311_v46, 10  ;;  %v2292_v9 = vrot.slane %v9244_v32, 5 }
 0x5da   :  { %v2750_v20 = vsel %vm8348_vm4, %v6190_v30, %v2749_v38  ;;  %v2758_v8 = vrot.slane %v2756_v5, 4  ;;  %v2759_v6 = vrot.slane %v2688_v59, 7  ;;  %v3479_v4 = vunpack.c.l.b16 %v2753_v54 }
 0x5db   :  { %v3449_v49 = vpack.c.b16 %v3441_v42, %v3440_v40  ;;  %v6151_v44 = vrot.slane %v2215_v13, 9  ;;  %v2295_v34 = vrot.slane %v2216_v57, 5  ;;  %v3708_v46 = vsel %vm1521_vm13, %v3689_v0, %v8702_v3  ;;  %v2888_v40 = vld [vmem:[#allocation6 + $0x78] sm:$0xc]  ;;  %v2889_v42 = vld [vmem:[#allocation6 + $0x80] sm:$0x3] }
 0x5dc   :  { %v2957_v26 = vrot.slane %v9266_v63, 6  ;;  %v3478_v38 = vunpack.c.l.b16 %v2750_v20  ;;  %v2757_v30 = vsel %vm8348_vm4, %v6191_v14, %v2756_v5  ;;  %v2869_v59 = vrot.slane %v9266_v63, 5 }
 0x5dd   :  { %3462 = vrot.lane.b32.xlu1 %v3448_v23, %s7237_s29  ;;  %v2382_v23 = vrot.slane %v2380_v12, 4  ;;  %v2760_v54 = vsel %vm8348_vm4, %v2758_v8, %v2759_v6  ;;  %v2381_v3 = vsel %vm8391_vm3, %v6159_v17, %v2380_v12  ;;  %v2293_v5 = vsel %vm8039_vm15, %v6151_v44, %v2292_v9 }
 0x5de   :  { %3422 = vrot.lane.b32.xlu0 %v3408_v53, %s10110_s17  ;;  %v3409_v53 = vpack.c.b16 %v3401_v16, %v3400_v47  ;;  %v2792_v47 = vld [vmem:[#allocation6 + $0x78] sm:$0xe]  ;;  %v2793_v16 = vld [vmem:[#allocation6 + $0x80] sm:$0x1]  ;;  %v3488_v13 = vpack.c.b16 %v3479_v4, %v3478_v38  ;;  %v3480_v14 = vunpack.c.l.b16 %v2757_v30  ;;  %v6207_v20 = vrot.slane %v2888_v40, 10 }
 0x5df   :  { %3198 = vrot.lane.b32.xlu2 %v3184_v15, %s7238_s4  ;;  %v9263_v50 = vpop.permute.xlu1 %3614  ;;  %v2384_v56 = vsel %vm8391_vm3, %v2382_v23, %v2383_v33  ;;  %v2294_v15 = vrot.slane %v2292_v9, 4  ;;  %v6690_v33 = vld [vmem:[#allocation6 + $0xc] sm:$0xff]  ;;  %v2959_v8 = vrot.slane %v2957_v26, 4  ;;  %v2960_v6 = vrot.slane %v2889_v42, 6  ;;  %v2400_v23 = vld [vmem:[#allocation6 + $0x68] sm:$0x7] }
 0x5e0   :  { %v9268_v10 = vpop.permute.xlu0 %3420  ;;  %v3289_v57 = vunpack.c.l.b16 %v2384_v56  ;;  %v3481_v17 = vunpack.c.l.b16 %v2760_v54  ;;  %v6199_v4 = vrot.slane %v2792_v47, 9  ;;  %v2468_v44 = vrot.slane %v9244_v32, 7  ;;  %v2399_v30 = vld [vmem:[#allocation6 + $0x60] sm:$0x8] }
 0x5e1   :  { %v9272_v51 = vpop.permute.xlu2 %3654  ;;  %v2296_v0 = vsel %vm8039_vm15, %v2294_v15, %v2295_v34  ;;  %v3724_v34 = vsel %vm366_vm8, %v6690_v33, %v8710_v62  ;;  %v3288_v38 = vunpack.c.l.b16 %v2381_v3  ;;  %v6698_v15 = vld [vmem:[#allocation6 + $0x18] sm:$0xff]  ;;  %v3248_v40 = vunpack.c.l.b16 %v2293_v5 }
 0x5e2   :  { %v3249_v9 = vunpack.c.l.b16 %v2296_v0  ;;  %v2471_v42 = vrot.slane %v2400_v23, 7  ;;  %v2958_v54 = vsel %vm8391_vm3, %v6207_v20, %v2957_v26  ;;  %v2961_v47 = vsel %vm8391_vm3, %v2959_v8, %v2960_v6 }
 0x5e3   :  { %4197 = vmatmul.bf16.gmra.mxu1 %v3708_v46  ;;  %v2872_v46 = vrot.slane %v2793_v16, 5  ;;  %v3489_v16 = vpack.c.b16 %v3481_v17, %v3480_v14  ;;  %v2870_v32 = vsel %vm8039_vm15, %v6199_v4, %v2869_v59  ;;  %v6167_v0 = vrot.slane %v2399_v30, 11  ;;  %v2977_v30 = vld [vmem:[#allocation6 + $0x80] sm:$0x7] }
 0x5e4   :  { %v3257_v33 = vpack.c.b16 %v3249_v9, %v3248_v40  ;;  %v2470_v5 = vrot.slane %v2468_v44, 4  ;;  %v3592_v23 = vunpack.c.l.b16 %v2958_v54  ;;  %v3593_v26 = vunpack.c.l.b16 %v2961_v47 }
 0x5e5   :  { %3464 = vrot.lane.b32.xlu1 %v3449_v49, %s7237_s29  ;;  %v2871_v49 = vrot.slane %v2869_v59, 4  ;;  %v3552_v14 = vunpack.c.l.b16 %v2870_v32  ;;  %v3747_v59 = vsel %vm1380_vm9, %v3724_v34, %v8720_v45  ;;  %v2469_v4 = vsel %vm8348_vm4, %v6167_v0, %v2468_v44 }
 0x5e6   :  { %3424 = vrot.lane.b32.xlu0 %v3409_v53, %s10110_s17  ;;  %v3601_v9 = vpack.c.b16 %v3593_v26, %v3592_v23  ;;  %v3045_v45 = vrot.slane %v9266_v63, 7  ;;  %v3763_v34 = vsel %vm1521_vm13, %v3747_v59, %v8722_v36  ;;  %v3048_v40 = vrot.slane %v2977_v30, 7  ;;  %v6691_v23 = vld [vmem:[#allocation6 + $0x18] sm:$0xff] }
 0x5e7   :  { %3502 = vrot.lane.b32.xlu2 %v3488_v13, %s7238_s4  ;;  %v3411_v12 = vpop.permute.xlu1 %3410  ;;  %v3297_v13 = vpack.c.b16 %v3289_v57, %v3288_v38  ;;  %v2873_v62 = vsel %vm8039_vm15, %v2871_v49, %v2872_v46  ;;  %v2472_v57 = vsel %vm8348_vm4, %v2470_v5, %v2471_v42  ;;  %v2976_v38 = vld [vmem:[#allocation6 + $0x78] sm:$0x8]  ;;  %v3328_v42 = vunpack.c.l.b16 %v2469_v4 }
 0x5e8   :  { %v9293_v56 = vpop.permute.xlu0 %3270  ;;  %v3788_v3 = vsel %vm366_vm8, %v6698_v15, %v3411_v12  ;;  %v3553_v20 = vunpack.c.l.b16 %v2873_v62  ;;  %v3329_v46 = vunpack.c.l.b16 %v2472_v57  ;;  %v3047_v54 = vrot.slane %v3045_v45, 4 }
 0x5e9   :  { %v9298_v53 = vpop.permute.xlu2 %3260  ;;  %v3811_v6 = vsel %vm1380_vm9, %v3788_v3, %v9242_v52  ;;  %v6215_v52 = vrot.slane %v2976_v38, 11 }
 0x5ea   :  { %v3561_v15 = vpack.c.b16 %v3553_v20, %v3552_v14  ;;  %v3337_v47 = vpack.c.b16 %v3329_v46, %v3328_v42  ;;  %v3727_v57 = vsel %vm366_vm8, %v6691_v23, %v9298_v53 }
 0x5eb   :  { %v3046_v44 = vsel %vm8348_vm4, %v6215_v52, %v3045_v45 }
 0x5ec   :  { %v3632_v63 = vunpack.c.l.b16 %v3046_v44 }
 0x5ed   :  { %3312 = vrot.lane.b32.xlu1 %v3297_v13, %s7237_s29  ;;  %v6699_v13 = vld [vmem:[#allocation6 + $0x24] sm:$0xff] }
 0x5ee   :  { %3272 = vrot.lane.b32.xlu0 %v3257_v33, %s10110_s17  ;;  %v3791_v33 = vsel %vm366_vm8, %v6699_v13, %v8744_v7  ;;  %v3897_v13 = vsel %vm1521_vm13, %v9010_v28, %v8748_v55 }
 0x5ef   :  { %3504 = vrot.lane.b32.xlu2 %v3489_v16, %s7238_s4  ;;  %v3491_v8 = vpop.permute.xlu1 %3490  ;;  %v3049_v16 = vsel %vm8348_vm4, %v3047_v54, %v3048_v40  ;;  %v3813_v5 = vsel %vm1380_vm9, %v3791_v33, %v8763_v43  ;;  %v6686_v33 = vld [vmem:[#allocation6 + $0x30] sm:$0xff] }
 0x5f0   :  { %v3827_v12 = vsel %vm1521_vm13, %v3811_v6, %v3491_v8  ;;  %v9319_v17 = vpop.permute.xlu0 %3574  ;;  %v3633_v32 = vunpack.c.l.b16 %v3049_v16  ;;  %v3830_v20 = vsel %vm1521_vm13, %v3813_v5, %v8765_v21  ;;  %v6707_v6 = vld [vmem:[#allocation6 + $0x30] sm:$0xff] }
 0x5f1   :  { %v3565_v49 = vpop.permute.xlu2 %3564  ;;  %4280 = vmatmul.bf16.vlgmr.msra.gmra.mxu2 %v3827_v12  ;;  %v6692_v12 = vld [vmem:[#allocation6 + $0x24] sm:$0xff] }
 0x5f2   :  { %v3641_v0 = vpack.c.b16 %v3633_v32, %v3632_v63  ;;  %v3855_v4 = vsel %vm366_vm8, %v6707_v6, %v3565_v49  ;;  %v3730_v21 = vsel %vm366_vm8, %v6692_v12, %v8773_v60  ;;  %v9378_v6 = vpop.f32.mrf.mxu1 }
 0x5f3   :  { %4231 = vmatmul.bf16.vlgmr.msrb.gmra.mxu1 %v3763_v34  ;;  %v3751_v30 = vsel %vm1380_vm9, %v3730_v21, %v8775_v18  ;;  %v6700_v34 = vld [vmem:[#allocation6 + $0x30] sm:$0xff] }
 0x5f4   :  { %v3769_v49 = vsel %vm1521_vm13, %v3751_v30, %v8746_v41  ;;  %v6693_v18 = vld [vmem:[#allocation6 + $0x30] sm:$0xff] }
 0x5f5   :  { %3616 = vrot.lane.b32.xlu1 %v3601_v9, %s7237_s29  ;;  %v6689_v30 = vld [vmem:[#allocation6 + $0x54] sm:$0xff] }
 0x5f6   :  { %3576 = vrot.lane.b32.xlu0 %v3561_v15, %s10110_s17 }
 0x5f7   :  { %3352 = vrot.lane.b32.xlu2 %v3337_v47, %s7238_s4  ;;  %v9333_v36 = vpop.permute.xlu1 %3160  ;;  %v6701_v47 = vld [vmem:[#allocation6 + $0x3c] sm:$0xff] }
 0x5f8   :  { %v9335_v62 = vpop.permute.xlu0 %3120  ;;  %v3797_v41 = vsel %vm366_vm8, %v6701_v47, %v8833_v24 }
 0x5f9   :  { %v9337_v3 = vpop.permute.xlu2 %3200  ;;  %v3817_v23 = vsel %vm1380_vm9, %v3797_v41, %v8831_v37  ;;  %v6711_v41 = vld [vmem:[#allocation6 + $0x60] sm:$0xff] }
 0x5fa   :  { %v3836_v24 = vsel %vm1521_vm13, %v3817_v23, %v8770_v25 }
 0x5ff   :  { %v3341_v26 = vpop.permute.xlu1 %3340  ;;  %3656 = vrot.lane.b32.xlu2 %v3641_v0, %s7238_s4 }
 0x600   :  { %v3301_v14 = vpop.permute.xlu0 %3300 }
 0x601   :  { %v3495_v59 = vpop.permute.xlu2 %3494  ;;  %v3749_v8 = vsel %vm1380_vm9, %v3727_v57, %v3301_v14  ;;  %4285 = vmatmul.bf16.gmra.mxu2 %v3830_v20 }
 0x602   :  { %v3766_v7 = vsel %vm1521_vm13, %v3749_v8, %v3341_v26 }
 0x603   :  { %4236 = vmatmul.bf16.gmra.mxu1 %v3766_v7  ;;  %v6687_v7 = vld [vmem:[#allocation6 + $0x3c] sm:$0xff] }
 0x607   :  { %v3645_v43 = vpop.permute.xlu1 %3644 }
 0x608   :  { %v3605_v46 = vpop.permute.xlu0 %3604 }
 0x609   :  { %v3345_v9 = vpop.permute.xlu2 %3344  ;;  %v3877_v53 = vsel %vm1380_vm9, %v3855_v4, %v3605_v46  ;;  %v3675_v4 = vsel %vm366_vm8, %v6687_v7, %v9237_v11  ;;  %v6712_v7 = vld [vmem:[#allocation6 + $0x6c] sm:$0xff] }
 0x60a   :  { %v3894_v38 = vsel %vm1521_vm13, %v3877_v53, %v3645_v43 }
 0x60b   :  { %4334 = vmatmul.bf16.gmra.mxu0 %v3894_v38  ;;  %v3693_v38 = vsel %vm1380_vm9, %v3675_v4, %v9117_v48  ;;  %v3681_v48 = vsel %vm366_vm8, %v6689_v30, %v9335_v62 }
 0x60c   :  { %v3714_v11 = vsel %vm1521_vm13, %v3693_v38, %v9143_v22 }
 0x60f   :  { %v3455_v45 = vpop.permute.xlu1 %3454 }
 0x610   :  { %v3415_v15 = vpop.permute.xlu0 %3414 }
 0x611   :  { %v3195_v52 = vpop.permute.xlu2 %3194  ;;  %v3794_v40 = vsel %vm366_vm8, %v6700_v34, %v3415_v15 }
 0x612   :  { %v3815_v42 = vsel %vm1380_vm9, %v3794_v40, %v3455_v45  ;;  %v3775_v45 = vsel %vm1521_vm13, %v8935_v19, %v8777_v1  ;;  %v3697_v1 = vsel %vm1380_vm9, %v3681_v48, %v9333_v36  ;;  %v6695_v19 = vld [vmem:[#allocation6 + $0x48] sm:$0xff] }
 0x613   :  { %4241 = vmatmul.bf16.gmra.mxu1 %v3769_v49  ;;  %v3833_v54 = vsel %vm1521_vm13, %v3815_v42, %v3495_v59  ;;  %v6709_v59 = vld [vmem:[#allocation6 + $0x48] sm:$0xff]  ;;  %v3720_v22 = vsel %vm1521_vm13, %v3697_v1, %v9337_v3 }
 0x614   :  { %4290 = vmatmul.bf16.gmra.mxu2 %v3833_v54  ;;  %v6703_v54 = vld [vmem:[#allocation6 + $0x54] sm:$0xff]  ;;  %v4515_v48 = vld [vmem:[#allocation7 + $0x4] sm:$0xf] }
 0x615   :  { %v3803_v62 = vsel %vm366_vm8, %v6703_v54, %v9268_v10  ;;  %v10121_v54 = vmov 0  }
 0x616   :  { %130 = vst.msk [vmem:[#allocation7 + $0x8] sm:$0x3] %vm129_vm1, %v10121_v54 }
 0x617   :  { %v3305_v44 = vpop.permute.xlu1 %3304  ;;  %133 = vst.msk [vmem:[#allocation7 + $0x14] sm:$0x3] %vm129_vm1, %v10121_v54 }
 0x618   :  { %v3265_v60 = vpop.permute.xlu0 %3264  ;;  %136 = vst.msk [vmem:[#allocation7 + $0x20] sm:$0x3] %vm129_vm1, %v10121_v54 }
 0x619   :  { %v3649_v16 = vpop.permute.xlu2 %3648  ;;  %v3733_v63 = vsel %vm366_vm8, %v6693_v18, %v3265_v60  ;;  %139 = vst.msk [vmem:[#allocation7 + $0x2c] sm:$0x3] %vm129_vm1, %v10121_v54 }
 0x61a   :  { %v3753_v0 = vsel %vm1380_vm9, %v3733_v63, %v3305_v44  ;;  %v3903_v44 = vsel %vm1521_vm13, %v8948_v58, %v8784_v35  ;;  %142 = vst.msk [vmem:[#allocation7 + $0x38] sm:$0x3] %vm129_vm1, %v10121_v54 }
 0x61b   :  { %4339 = vmatmul.bf16.gmra.mxu0 %v3897_v13  ;;  %v3772_v57 = vsel %vm1521_vm13, %v3753_v0, %v3345_v9  ;;  %v6702_v9 = vld [vmem:[#allocation6 + $0x48] sm:$0xff]  ;;  %v3821_v13 = vsel %vm1380_vm9, %v3803_v62, %v9156_v27  ;;  %v6696_v0 = vld [vmem:[#allocation6 + $0x54] sm:$0xff]  ;;  %v4660_v62 = vrot.slane %v4515_v48, 6  ;;  %145 = vst.msk [vmem:[#allocation7 + $0x44] sm:$0x3] %vm129_vm1, %v10121_v54 }
 0x61c   :  { %v3842_v35 = vsel %vm1521_vm13, %v3821_v13, %v9170_v61  ;;  %148 = vst.msk [vmem:[#allocation7 + $0x50] sm:$0x3] %vm129_vm1, %v10121_v54 }
 0x61d   :  { %151 = vst.msk [vmem:[#allocation7 + $0x5c] sm:$0x3] %vm129_vm1, %v10121_v54 }
 0x61e   :  { %154 = vst.msk [vmem:[#allocation7 + $0x68] sm:$0x3] %vm129_vm1, %v10121_v54 }
 0x61f   :  { %v3155_v32 = vpop.permute.xlu1 %3154  ;;  %157 = vst.msk [vmem:[#allocation7 + $0x74] sm:$0x3] %vm129_vm1, %v10121_v54 }
 0x620   :  { %v3115_v5 = vpop.permute.xlu0 %3114 }
 0x621   :  { %v3672_v26 = vsel %vm366_vm8, %v6686_v33, %v3115_v5  ;;  %v3499_v28 = vpop.permute.xlu2 %3498 }
 0x622   :  { %v3691_v55 = vsel %vm1380_vm9, %v3672_v26, %v3155_v32  ;;  %v6688_v32 = vld [vmem:[#allocation6 + $0x48] sm:$0xff] }
 0x623   :  { %4246 = vmatmul.bf16.gmra.mxu1 %v3772_v57  ;;  %v3711_v14 = vsel %vm1521_vm13, %v3691_v55, %v3195_v52  ;;  %v9394_v52 = vpop.f32.mrf.mxu1 }
 0x624   :  { %4202 = vmatmul.bf16.vlgmr.msrb.gmra.mxu3 %v3711_v14  ;;  %4295 = vmatmul.bf16.gmra.mxu2 %v3836_v24  ;;  %v6704_v24 = vld [vmem:[#allocation6 + $0x60] sm:$0xff] }
 0x627   :  { %v3609_v20 = vpop.permute.xlu1 %3608 }
 0x628   :  { %v3569_v8 = vpop.permute.xlu0 %3568 }
 0x629   :  { %v3861_v37 = vsel %vm366_vm8, %v6709_v59, %v3569_v8  ;;  %v3349_v46 = vpop.permute.xlu2 %3348 }
 0x62a   :  { %v3881_v43 = vsel %vm1380_vm9, %v3861_v37, %v3609_v20 }
 0x62b   :  { %v3900_v12 = vsel %vm1521_vm13, %v3881_v43, %v3649_v16  ;;  %v9408_v47 = vpop.f32.mrf.mxu1  ;;  %v10120_v43 = vld [vmem:[#allocation8_spill] sm:$0xff] }
 0x62c   :  { %4344 = vmatmul.bf16.gmra.mxu0 %v3900_v12 }
 0x62f   :  { %v3459_v25 = vpop.permute.xlu1 %3458 }
 0x630   :  { %v3419_v53 = vpop.permute.xlu0 %3418 }
 0x631   :  { %v3800_v21 = vsel %vm366_vm8, %v6702_v9, %v3419_v53  ;;  %v3653_v40 = vpop.permute.xlu2 %3652  ;;  %v6705_v9 = vld [vmem:[#allocation6 + $0x6c] sm:$0xff] }
 0x632   :  { %v3819_v34 = vsel %vm1380_vm9, %v3800_v21, %v3459_v25 }
 0x633   :  { %4251 = vmatmul.bf16.gmra.mxu1 %v3775_v45  ;;  %v3839_v15 = vsel %vm1521_vm13, %v3819_v34, %v3499_v28  ;;  %v9417_v33 = vpop.f32.mrf.mxu1  ;;  %v3742_v28 = vsel %vm366_vm8, %v6696_v0, %v9293_v56 }
 0x634   :  { %4207 = vmatmul.bf16.gmra.mxu3 %v3714_v11  ;;  %4300 = vmatmul.bf16.gmra.mxu2 %v3839_v15  ;;  %v3759_v20 = vsel %vm1380_vm9, %v3742_v28, %v9233_v2  ;;  %v6697_v15 = vld [vmem:[#allocation6 + $0x60] sm:$0xff] }
 0x635   :  { %v3781_v12 = vsel %vm1521_vm13, %v3759_v20, %v10120_v43 }
 0x637   :  { %v3309_v49 = vpop.permute.xlu1 %3308 }
 0x638   :  { %v3269_v42 = vpop.permute.xlu0 %3268 }
 0x639   :  { %v3739_v60 = vsel %vm366_vm8, %v6695_v19, %v3269_v42  ;;  %v3199_v3 = vpop.permute.xlu2 %3198 }
 0x63a   :  { %v3757_v18 = vsel %vm1380_vm9, %v3739_v60, %v3309_v49 }
 0x63b   :  { %v3778_v63 = vsel %vm1521_vm13, %v3757_v18, %v3349_v46  ;;  %v3870_v46 = vsel %vm366_vm8, %v6712_v7, %v9319_v17  ;;  %v6713_v18 = vld [vmem:[#allocation6 + $0x78] sm:$0xff] }
 0x63c   :  { %4349 = vmatmul.bf16.gmra.mxu0 %v3903_v44  ;;  %v3887_v21 = vsel %vm1380_vm9, %v3870_v46, %v9263_v50  ;;  %v4626_v50 = vld [vmem:[#allocation7] sm:$0xc]  ;;  %v4572_v44 = vrot.slane %v4515_v48, 5 }
 0x63d   :  { %v3909_v45 = vsel %vm1521_vm13, %v3887_v21, %v9272_v51  ;;  %v6480_v60 = vrot.slane %v4626_v50, 10 }
 0x63e   :  { %v4574_v13 = vrot.slane %v4572_v44, 4 }
 0x63f   :  { %v3613_v16 = vpop.permute.xlu1 %3612 }
 0x640   :  { %v3573_v36 = vpop.permute.xlu0 %3572 }
 0x641   :  { %v3867_v58 = vsel %vm366_vm8, %v6711_v41, %v3573_v36  ;;  %v3503_v57 = vpop.permute.xlu2 %3502 }
 0x642   :  { %v3885_v23 = vsel %vm1380_vm9, %v3867_v58, %v3613_v16  ;;  %v4531_v58 = vld [vmem:[#allocation7 + $0x8] sm:$0x1] }
 0x643   :  { %4256 = vmatmul.bf16.gmra.mxu1 %v3778_v63  ;;  %v3906_v61 = vsel %vm1521_vm13, %v3885_v23, %v3653_v40  ;;  %v4530_v40 = vld [vmem:[#allocation7] sm:$0xe]  ;;  %v4662_v63 = vrot.slane %v4660_v62, 4 }
 0x644   :  { %4305 = vmatmul.bf16.gmra.mxu2 %v3842_v35  ;;  %v6472_v19 = vrot.slane %v4530_v40, 9 }
 0x646   :  { %v4573_v36 = vsel %vm8039_vm15, %v6472_v19, %v4572_v44 }
 0x647   :  { %v3159_v10 = vpop.permute.xlu1 %3158 }
 0x648   :  { %v3119_v5 = vpop.permute.xlu0 %3118 }
 0x649   :  { %v3678_v27 = vsel %vm366_vm8, %v6688_v32, %v3119_v5  ;;  %v3505_v25 = vpop.permute.xlu2 %3504  ;;  %v4575_v5 = vrot.slane %v4531_v58, 5 }
 0x64a   :  { %v3695_v26 = vsel %vm1380_vm9, %v3678_v27, %v3159_v10  ;;  %v4627_v10 = vld [vmem:[#allocation7 + $0x8] sm:$0x3] }
 0x64b   :  { %v3717_v55 = vsel %vm1521_vm13, %v3695_v26, %v3199_v3  ;;  %v4661_v3 = vsel %vm8391_vm3, %v6480_v60, %v4660_v62  ;;  %v4663_v23 = vrot.slane %v4627_v10, 6  ;;  %v5146_v26 = vunpack.c.l.b16 %v4573_v36 }
 0x64c   :  { %4212 = vmatmul.bf16.gmra.mxu3 %v3717_v55  ;;  %4354 = vmatmul.bf16.gmra.mxu0 %v3906_v61  ;;  %v4576_v61 = vsel %vm8039_vm15, %v4574_v13, %v4575_v5 }
 0x64d   :  { %v4664_v28 = vsel %vm8391_vm3, %v4662_v63, %v4663_v23 }
 0x64e   :  { %v5187_v20 = vunpack.c.l.b16 %v4664_v28 }
 0x64f   :  { %v3463_v14 = vpop.permute.xlu1 %3462 }
 0x650   :  { %v9428_v59 = vpop.f32.mrf.mxu1  ;;  %v3423_v8 = vpop.permute.xlu0 %3422 }
 0x651   :  { %v3806_v37 = vsel %vm366_vm8, %v6704_v24, %v3423_v8  ;;  %v3353_v11 = vpop.permute.xlu2 %3352  ;;  %v5147_v24 = vunpack.c.l.b16 %v4576_v61  ;;  %v9487_v8 = vld [vmem:[%s10084_s10] ss:$0 sm:$0xff] }
 0x652   :  { %v3823_v4 = vsel %vm1380_vm9, %v3806_v37, %v3463_v14  ;;  %v4189_v40 = vadd.f32 %v9487_v8, %v9408_v47 }
 0x653   :  { %4261 = vmatmul.bf16.gmra.mxu1 %v3781_v12  ;;  %v3845_v56 = vsel %vm1521_vm13, %v3823_v4, %v3503_v57  ;;  %v5186_v57 = vunpack.c.l.b16 %v4661_v3  ;;  %v5162_v7 = vpack.c.b16 %v5147_v24, %v5146_v26  ;;  %v4184_v12 = vadd.f32 %v9487_v8, %v9378_v6 }
 0x654   :  { %4310 = vmatmul.bf16.gmra.mxu2 %v3845_v56  ;;  %v4330_v56 = vpop.f32.mrf.mxu0  ;;  %v4194_v24 = vadd.f32 %v9487_v8, %v9428_v59 }
 0x655   :  { %v5202_v37 = vpack.c.b16 %v5187_v20, %v5186_v57  ;;  %5170 = vrot.lane.b32.xlu0 %v5162_v7, %s10109_s30 }
 0x657   :  { %v3465_v2 = vpop.permute.xlu1 %3464  ;;  %5210 = vrot.lane.b32.xlu1 %v5202_v37, %s10108_s16 }
 0x658   :  { %v9437_v53 = vpop.f32.mrf.mxu1  ;;  %v3425_v38 = vpop.permute.xlu0 %3424 }
 0x659   :  { %v3809_v30 = vsel %vm366_vm8, %v6705_v9, %v3425_v38  ;;  %v3657_v35 = vpop.permute.xlu2 %3656  ;;  %v4186_v38 = vadd.f32 %v9487_v8, %v9394_v52 }
 0x65a   :  { %v3825_v34 = vsel %vm1380_vm9, %v3809_v30, %v3465_v2 }
 0x65b   :  { %v3848_v51 = vsel %vm1521_vm13, %v3825_v34, %v3505_v25 }
 0x65c   :  { %4217 = vmatmul.bf16.gmra.mxu3 %v3720_v22  ;;  %4359 = vmatmul.bf16.gmra.mxu0 %v3909_v45 }
 0x65f   :  { %v3313_v17 = vpop.permute.xlu1 %3312 }
 0x660   :  { %v9445_v49 = vpop.f32.mrf.mxu1  ;;  %v3273_v42 = vpop.permute.xlu0 %3272 }
 0x661   :  { %v3745_v1 = vsel %vm366_vm8, %v6697_v15, %v3273_v42  ;;  %v4332_v15 = vpop.f32.mrf.mxu0 }
 0x662   :  { %v3761_v22 = vsel %vm1380_vm9, %v3745_v1, %v3313_v17 }
 0x663   :  { %v3784_v16 = vsel %vm1521_vm13, %v3761_v22, %v3353_v11 }
 0x664   :  { %4266 = vmatmul.bf16.gmra.mxu1 %v3784_v16  ;;  %4315 = vmatmul.bf16.gmra.mxu2 %v3848_v51  ;;  %v4191_v16 = vadd.f32 %v9487_v8, %v9417_v33 }
 0x667   :  { %v3617_v41 = vpop.permute.xlu1 %3616 }
 0x668   :  { %v9471_v32 = vpop.f32.mrf.mxu1  ;;  %v3577_v0 = vpop.permute.xlu0 %3576 }
 0x669   :  { %v3873_v27 = vsel %vm366_vm8, %v6713_v18, %v3577_v0 }
 0x66a   :  { %v3889_v55 = vsel %vm1380_vm9, %v3873_v27, %v3617_v41 }
 0x66b   :  { %v3912_v14 = vsel %vm1521_vm13, %v3889_v55, %v3657_v35  ;;  %vm10127_vm13 = vcmask 588800  }
 0x66c   :  { %4364 = vmatmul.bf16.gmra.mxu0 %v3912_v14 }
 0x670   :  { %v4232_v43 = vpop.f32.mrf.mxu1 }
 0x671   :  { %v4233_v4 = vadd.f32 %v4232_v43, %v4184_v12 }
 0x674   :  { %v4281_v46 = vpop.f32.mrf.mxu2 }
 0x675   :  { %v4282_v25 = vadd.f32 %v4281_v46, %v4233_v4 }
 0x677   :  { %v4331_v2 = vadd.f32 %v4330_v56, %v4282_v25 }
 0x678   :  { %v4234_v9 = vpop.f32.mrf.mxu1 }
 0x679   :  { %v4370_v21 = vmax.f32 %v4331_v2, 0.0  ;;  %v4235_v45 = vadd.f32 %v4234_v9, %v4186_v38 }
 0x67b   :  { %v4386_v30 = vpack.c.bf16 %v4370_v21, %v4370_v21 }
 0x67c   :  { %v4283_v34 = vpop.f32.mrf.mxu2 }
 0x67d   :  { %v4404_v11 = vrot.slane %v4386_v30, 7  ;;  %v4284_v17 = vadd.f32 %v4283_v34, %v4235_v45 }
 0x67f   :  { %4413 = vst.msk [vmem:[#allocation7 + $0xc] sm:$0xe] %vm1041_vm12, %v4404_v11  ;;  %v4333_v48 = vadd.f32 %v4332_v15, %v4284_v17  ;;  %v4405_v51 = vrot.slane %v4404_v11, 4 }
 0x680   :  { %v4237_v6 = vpop.f32.mrf.mxu1 }
 0x681   :  { %v4371_v42 = vmax.f32 %v4333_v48, 0.0  ;;  %v4238_v50 = vadd.f32 %v4237_v6, %v4189_v40 }
 0x683   :  { %v4387_v54 = vpack.c.bf16 %v4371_v42, %v4371_v42 }
 0x684   :  { %v4286_v1 = vpop.f32.mrf.mxu2 }
 0x685   :  { %v4406_v52 = vrot.slane %v4387_v54, 7  ;;  %v4287_v19 = vadd.f32 %v4286_v1, %v4238_v50 }
 0x686   :  { %v4826_v13 = vld [vmem:[#allocation7 + $0xc] sm:$0xc] }
 0x687   :  { %v4407_v22 = vsel %vm8348_vm4, %v4405_v51, %v4406_v52  ;;  %v4408_v44 = vrot.slane %v4406_v52, 4  ;;  %v4730_v3 = vld [vmem:[#allocation7 + $0xc] sm:$0xe]  ;;  %v6496_v58 = vrot.slane %v4826_v13, 10 }
 0x688   :  { %4414 = vst.msk [vmem:[#allocation7 + $0x10] sm:$0xf] %vm50_vm10, %v4407_v22  ;;  %v4239_v60 = vpop.f32.mrf.mxu1  ;;  %v4335_v62 = vpop.f32.mrf.mxu0  ;;  %v6488_v10 = vrot.slane %v4730_v3, 9  ;;  %v4532_v0 = vld [vmem:[#allocation7 + $0xc] sm:$0xe] }
 0x689   :  { %4415 = vst.msk [vmem:[#allocation7 + $0x14] sm:$0x1] %vm52_vm11, %v4408_v44  ;;  %v4336_v47 = vadd.f32 %v4335_v62, %v4287_v19  ;;  %v4240_v18 = vadd.f32 %v4239_v60, %v4191_v16  ;;  %v6473_v43 = vrot.slane %v4532_v0, 9  ;;  %v4628_v6 = vld [vmem:[#allocation7 + $0xc] sm:$0xc]  ;;  %v4196_v0 = vadd.f32 %v9487_v8, %v9437_v53 }
 0x68b   :  { %v4372_v36 = vmax.f32 %v4336_v47, 0.0 }
 0x68c   :  { %v4288_v63 = vpop.f32.mrf.mxu2 }
 0x68d   :  { %v4388_v41 = vpack.c.bf16 %v4372_v36, %v4372_v36  ;;  %v4289_v35 = vadd.f32 %v4288_v63, %v4240_v18  ;;  %v6481_v18 = vrot.slane %v4628_v6, 10 }
 0x68f   :  { %v4418_v5 = vrot.slane %v4388_v41, 7  ;;  %v6754_v23 = vld [vmem:[#allocation7 + $0xc] sm:$0xff] }
 0x690   :  { %v4715_v27 = vld [vmem:[#allocation7 + $0x10] sm:$0xf]  ;;  %v4242_v57 = vpop.f32.mrf.mxu1  ;;  %v4337_v55 = vpop.f32.mrf.mxu0  ;;  %v4827_v33 = vld [vmem:[#allocation7 + $0x14] sm:$0x3]  ;;  %5258 = vrot.lane.b32.xlu2 %v6754_v23, %s10107_s24 }
 0x691   :  { %v4517_v26 = vld [vmem:[#allocation7 + $0x10] sm:$0xf]  ;;  %v4860_v61 = vrot.slane %v4715_v27, 6  ;;  %v4731_v28 = vld [vmem:[#allocation7 + $0x14] sm:$0x1]  ;;  %v4772_v14 = vrot.slane %v4715_v27, 5  ;;  %v4338_v20 = vadd.f32 %v4337_v55, %v4289_v35  ;;  %v4243_v25 = vadd.f32 %v4242_v57, %v4194_v24 }
 0x692   :  { %4427 = vst.msk [vmem:[#allocation7 + $0x18] sm:$0xe] %vm1041_vm12, %v4418_v5  ;;  %v4863_v7 = vrot.slane %v4827_v33, 6  ;;  %v4533_v37 = vld [vmem:[#allocation7 + $0x14] sm:$0x1]  ;;  %v4775_v59 = vrot.slane %v4731_v28, 5 }
 0x693   :  { %v4861_v12 = vsel %vm8391_vm3, %v6496_v58, %v4860_v61  ;;  %v4862_v4 = vrot.slane %v4860_v61, 4  ;;  %v4773_v56 = vsel %vm8039_vm15, %v6488_v10, %v4772_v14  ;;  %v4774_v46 = vrot.slane %v4772_v14, 4  ;;  %v4629_v38 = vld [vmem:[#allocation7 + $0x14] sm:$0x3] }
 0x694   :  { %v4373_v2 = vmax.f32 %v4338_v20, 0.0  ;;  %v5314_v9 = vunpack.c.l.b16 %v4861_v12  ;;  %v4579_v30 = vrot.slane %v4517_v26, 5  ;;  %v4582_v45 = vrot.slane %v4533_v37, 5 }
 0x695   :  { %v4864_v21 = vsel %vm8391_vm3, %v4862_v4, %v4863_v7  ;;  %v4667_v34 = vrot.slane %v4517_v26, 6  ;;  %v4776_v15 = vsel %vm8039_vm15, %v4774_v46, %v4775_v59  ;;  %v5274_v48 = vunpack.c.l.b16 %v4773_v56 }
 0x696   :  { %v4389_v11 = vpack.c.bf16 %v4373_v2, %v4373_v2  ;;  %v5315_v17 = vunpack.c.l.b16 %v4864_v21  ;;  %v5275_v40 = vunpack.c.l.b16 %v4776_v15  ;;  %v4580_v42 = vsel %vm8039_vm15, %v6473_v43, %v4579_v30 }
 0x697   :  { %v4581_v54 = vrot.slane %v4579_v30, 4  ;;  %v4670_v50 = vrot.slane %v4629_v38, 6  ;;  %v4419_v1 = vrot.slane %v4418_v5, 4  ;;  %v4291_v52 = vpop.f32.mrf.mxu2  ;;  %v4669_v22 = vrot.slane %v4667_v34, 4 }
 0x698   :  { %v4420_v51 = vrot.slane %v4389_v11, 7  ;;  %v5330_v19 = vpack.c.b16 %v5315_v17, %v5314_v9  ;;  %v4292_v44 = vadd.f32 %v4291_v52, %v4243_v25  ;;  %v4244_v60 = vpop.f32.mrf.mxu1  ;;  %v4340_v62 = vpop.f32.mrf.mxu0  ;;  %v5290_v16 = vpack.c.b16 %v5275_v40, %v5274_v48 }
 0x699   :  { %v4583_v47 = vsel %vm8039_vm15, %v4581_v54, %v4582_v45  ;;  %v5148_v3 = vunpack.c.l.b16 %v4580_v42  ;;  %v4671_v35 = vsel %vm8391_vm3, %v4669_v22, %v4670_v50  ;;  %v4668_v10 = vsel %vm8391_vm3, %v6481_v18, %v4667_v34  ;;  %v4930_v55 = vld [vmem:[#allocation7 + $0x18] sm:$0xe] }
 0x69a   :  { %v4421_v36 = vsel %vm8348_vm4, %v4419_v1, %v4420_v51  ;;  %v4422_v13 = vrot.slane %v4420_v51, 4  ;;  %5338 = vrot.lane.b32.xlu1 %v5330_v19, %s7236_s25  ;;  %v5149_v63 = vunpack.c.l.b16 %v4583_v47  ;;  %v4341_v41 = vadd.f32 %v4340_v62, %v4292_v44  ;;  %5298 = vrot.lane.b32.xlu0 %v5290_v16, %s10110_s17  ;;  %v5026_v33 = vld [vmem:[#allocation7 + $0x18] sm:$0xc] }
 0x69b   :  { %4428 = vst.msk [vmem:[#allocation7 + $0x1c] sm:$0xf] %vm50_vm10, %v4421_v36  ;;  %v5189_v23 = vunpack.c.l.b16 %v4671_v35  ;;  %v4245_v27 = vadd.f32 %v4244_v60, %v4196_v0  ;;  %v5188_v57 = vunpack.c.l.b16 %v4668_v10  ;;  %v4732_v28 = vld [vmem:[#allocation7 + $0x18] sm:$0xe]  ;;  %v4199_v43 = vadd.f32 %v9487_v8, %v9445_v49 }
 0x69c   :  { %4429 = vst.msk [vmem:[#allocation7 + $0x20] sm:$0x1] %vm52_vm11, %v4422_v13  ;;  %v5163_v58 = vpack.c.b16 %v5149_v63, %v5148_v3  ;;  %v4374_v5 = vmax.f32 %v4341_v41, 0.0  ;;  %v6504_v56 = vrot.slane %v4930_v55, 9  ;;  %v6512_v46 = vrot.slane %v5026_v33, 10 }
 0x69d   :  { %v5203_v37 = vpack.c.b16 %v5189_v23, %v5188_v57  ;;  %v6489_v59 = vrot.slane %v4732_v28, 9  ;;  %v9539_v38 = vadd.f32 %v9487_v8, %v9471_v32  ;;  %v4828_v19 = vld [vmem:[#allocation7 + $0x18] sm:$0xc] }
 0x69e   :  { %5172 = vrot.lane.b32.xlu2 %v5163_v58, %s10109_s30  ;;  %v4390_v26 = vpack.c.bf16 %v4374_v5, %v4374_v5  ;;  %v6497_v23 = vrot.slane %v4828_v19, 10  ;;  %v4534_v28 = vld [vmem:[#allocation7 + $0x18] sm:$0xe] }
 0x69f   :  { %v4293_v61 = vpop.f32.mrf.mxu2 }
 0x6a0   :  { %v4432_v14 = vrot.slane %v4390_v26, 7  ;;  %v4294_v24 = vadd.f32 %v4293_v61, %v4245_v27  ;;  %v4247_v20 = vpop.f32.mrf.mxu1  ;;  %v4342_v7 = vpop.f32.mrf.mxu0  ;;  %v4630_v27 = vld [vmem:[#allocation7 + $0x18] sm:$0xc] }
 0x6a1   :  { %v4248_v21 = vadd.f32 %v4247_v20, %v4199_v43 }
 0x6a2   :  { %v6762_v53 = vld [vmem:[#allocation7 + $0x18] sm:$0xff]  ;;  %4441 = vst.msk [vmem:[#allocation7 + $0x24] sm:$0xe] %vm1041_vm12, %v4432_v14  ;;  %v4343_v25 = vadd.f32 %v4342_v7, %v4294_v24  ;;  %5212 = vrot.lane.b32.xlu0 %v5203_v37, %s10108_s16  ;;  %v4433_v40 = vrot.slane %v4432_v14, 4 }
 0x6a3   :  { %v6755_v12 = vld [vmem:[#allocation7 + $0x18] sm:$0xff]  ;;  %v4931_v2 = vld [vmem:[#allocation7 + $0x20] sm:$0x1] }
 0x6a4   :  { %v4915_v4 = vld [vmem:[#allocation7 + $0x1c] sm:$0xf]  ;;  %5260 = vrot.lane.b32.xlu1 %v6755_v12, %s10107_s24  ;;  %v4975_v49 = vrot.slane %v4931_v2, 5  ;;  %v5027_v30 = vld [vmem:[#allocation7 + $0x20] sm:$0x3]  ;;  %v4375_v11 = vmax.f32 %v4343_v25, 0.0 }
 0x6a5   :  { %v4972_v9 = vrot.slane %v4915_v4, 5  ;;  %v5060_v45 = vrot.slane %v4915_v4, 6  ;;  %v4717_v34 = vld [vmem:[#allocation7 + $0x1c] sm:$0xf]  ;;  %v5063_v48 = vrot.slane %v5027_v30, 6 }
 0x6a6   :  { %v4733_v6 = vld [vmem:[#allocation7 + $0x20] sm:$0x1]  ;;  %5386 = vrot.lane.b32.xlu2 %v6762_v53, %s7234_s2  ;;  %v4779_v54 = vrot.slane %v4717_v34, 5  ;;  %v4391_v50 = vpack.c.bf16 %v4375_v11, %v4375_v11  ;;  %v4519_v41 = vld [vmem:[#allocation7 + $0x1c] sm:$0xf]  ;;  %v4867_v20 = vrot.slane %v4717_v34, 6 }
 0x6a7   :  { %v4973_v17 = vsel %vm8039_vm15, %v6504_v56, %v4972_v9  ;;  %v4974_v15 = vrot.slane %v4972_v9, 4  ;;  %v5061_v32 = vsel %vm8391_vm3, %v6512_v46, %v5060_v45  ;;  %v5062_v42 = vrot.slane %v5060_v45, 4  ;;  %v4296_v22 = vpop.f32.mrf.mxu2  ;;  %v4829_v63 = vld [vmem:[#allocation7 + $0x20] sm:$0x3]  ;;  %v4203_v35 = vpop.f32.mrf.mxu3 }
 0x6a8   :  { %v5402_v51 = vunpack.c.l.b16 %v4973_v17  ;;  %v4782_v52 = vrot.slane %v4733_v6, 5  ;;  %v4780_v62 = vsel %vm8039_vm15, %v6489_v59, %v4779_v54  ;;  %v4781_v16 = vrot.slane %v4779_v54, 4  ;;  %v4249_v36 = vpop.f32.mrf.mxu1  ;;  %v4631_v26 = vld [vmem:[#allocation7 + $0x20] sm:$0x3] }
 0x6a9   :  { %v4976_v1 = vsel %vm8039_vm15, %v4974_v15, %v4975_v49  ;;  %v5064_v60 = vsel %vm8391_vm3, %v5062_v42, %v5063_v48  ;;  %v4434_v47 = vrot.slane %v4391_v50, 7  ;;  %v4297_v18 = vadd.f32 %v4296_v22, %v4248_v21  ;;  %v4345_v58 = vpop.f32.mrf.mxu0  ;;  %v4535_v14 = vld [vmem:[#allocation7 + $0x20] sm:$0x1]  ;;  %v4932_v50 = vld [vmem:[#allocation7 + $0x24] sm:$0xe] }
 0x6aa   :  { %v5403_v44 = vunpack.c.l.b16 %v4976_v1  ;;  %v5442_v13 = vunpack.c.l.b16 %v5061_v32  ;;  %v5443_v3 = vunpack.c.l.b16 %v5064_v60  ;;  %v4783_v0 = vsel %vm8039_vm15, %v4781_v16, %v4782_v52 }
 0x6ab   :  { %v5276_v5 = vunpack.c.l.b16 %v4780_v62  ;;  %v4435_v57 = vsel %vm8348_vm4, %v4433_v40, %v4434_v47  ;;  %v4436_v55 = vrot.slane %v4434_v47, 4  ;;  %v4346_v33 = vadd.f32 %v4345_v58, %v4297_v18 }
 0x6ac   :  { %v5418_v10 = vpack.c.b16 %v5403_v44, %v5402_v51  ;;  %v5458_v61 = vpack.c.b16 %v5443_v3, %v5442_v13  ;;  %4442 = vst.msk [vmem:[#allocation7 + $0x28] sm:$0xf] %vm50_vm10, %v4435_v57  ;;  %v5277_v24 = vunpack.c.l.b16 %v4783_v0  ;;  %v4870_v7 = vrot.slane %v4829_v63, 6 }
 0x6ad   :  { %v4674_v37 = vrot.slane %v4519_v41, 6  ;;  %4443 = vst.msk [vmem:[#allocation7 + $0x2c] sm:$0x1] %vm52_vm11, %v4436_v55  ;;  %v4376_v43 = vmax.f32 %v4346_v33, 0.0  ;;  %v6482_v53 = vrot.slane %v4630_v27, 10  ;;  %v4677_v12 = vrot.slane %v4631_v26, 6 }
 0x6ae   :  { %5426 = vrot.lane.b32.xlu0 %v5418_v10, %s7235_s28  ;;  %5466 = vrot.lane.b32.xlu1 %v5458_v61, %s7237_s29  ;;  %v4586_v4 = vrot.slane %v4519_v41, 5  ;;  %v5291_v56 = vpack.c.b16 %v5277_v24, %v5276_v5  ;;  %v4868_v46 = vsel %vm8391_vm3, %v6497_v23, %v4867_v20  ;;  %v4869_v25 = vrot.slane %v4867_v20, 4  ;;  %v5028_v26 = vld [vmem:[#allocation7 + $0x24] sm:$0xc] }
 0x6af   :  { %v4589_v2 = vrot.slane %v4535_v14, 5  ;;  %v4250_v9 = vadd.f32 %v4249_v36, %v9539_v38  ;;  %v4392_v59 = vpack.c.bf16 %v4376_v43, %v4376_v43  ;;  %v4676_v21 = vrot.slane %v4674_v37, 4  ;;  %v4298_v30 = vpop.f32.mrf.mxu2  ;;  %v4205_v22 = vpop.f32.mrf.mxu3 }
 0x6b0   :  { %v6474_v49 = vrot.slane %v4534_v28, 9  ;;  %5300 = vrot.lane.b32.xlu2 %v5291_v56, %s10110_s17  ;;  %v4871_v45 = vsel %vm8391_vm3, %v4869_v25, %v4870_v7  ;;  %v5316_v34 = vunpack.c.l.b16 %v4868_v46  ;;  %v4675_v11 = vsel %vm8391_vm3, %v6482_v53, %v4674_v37  ;;  %v4252_v6 = vpop.f32.mrf.mxu1  ;;  %v4830_v56 = vld [vmem:[#allocation7 + $0x24] sm:$0xc] }
 0x6b1   :  { %v4588_v17 = vrot.slane %v4586_v4, 4  ;;  %v4446_v15 = vrot.slane %v4392_v59, 7  ;;  %v4299_v48 = vadd.f32 %v4298_v30, %v4250_v9  ;;  %v5317_v40 = vunpack.c.l.b16 %v4871_v45  ;;  %v4347_v32 = vpop.f32.mrf.mxu0 }
 0x6b2   :  { %v4587_v38 = vsel %vm8039_vm15, %v6474_v49, %v4586_v4  ;;  %v4678_v42 = vsel %vm8391_vm3, %v4676_v21, %v4677_v12  ;;  %v4204_v19 = vadd.f32 %v9487_v8, %v4203_v35  ;;  %v5190_v44 = vunpack.c.l.b16 %v4675_v11  ;;  %v4734_v21 = vld [vmem:[#allocation7 + $0x24] sm:$0xe] }
 0x6b3   :  { %v4590_v54 = vsel %vm8039_vm15, %v4588_v17, %v4589_v2  ;;  %4455 = vst.msk [vmem:[#allocation7 + $0x30] sm:$0xe] %vm1041_vm12, %v4446_v15  ;;  %v4348_v1 = vadd.f32 %v4347_v32, %v4299_v48  ;;  %v5331_v51 = vpack.c.b16 %v5317_v40, %v5316_v34  ;;  %v5191_v52 = vunpack.c.l.b16 %v4678_v42  ;;  %v4917_v16 = vld [vmem:[#allocation7 + $0x28] sm:$0xf] }
 0x6b4   :  { %v5150_v60 = vunpack.c.l.b16 %v4587_v38  ;;  %v5151_v62 = vunpack.c.l.b16 %v4590_v54  ;;  %v4933_v47 = vld [vmem:[#allocation7 + $0x2c] sm:$0x1]  ;;  %v6505_v13 = vrot.slane %v4932_v50, 9  ;;  %v4979_v3 = vrot.slane %v4917_v16, 5  ;;  %v9578_v41 = vld [vmem:[#allocation7 + $0x28] sm:$0xf] }
 0x6b5   :  { %v5029_v18 = vld [vmem:[#allocation7 + $0x2c] sm:$0x3]  ;;  %v4377_v36 = vmax.f32 %v4348_v1, 0.0  ;;  %v4982_v63 = vrot.slane %v4933_v47, 5  ;;  %v4253_v58 = vadd.f32 %v4252_v6, %v4204_v19  ;;  %v5204_v10 = vpack.c.b16 %v5191_v52, %v5190_v44  ;;  %v6756_v9 = vld [vmem:[#allocation7 + $0x24] sm:$0xff] }
 0x6b6   :  { %5340 = vrot.lane.b32.xlu0 %v5331_v51, %s7236_s25  ;;  %v5164_v0 = vpack.c.b16 %v5151_v62, %v5150_v60  ;;  %v5067_v5 = vrot.slane %v4917_v16, 6  ;;  %v4980_v23 = vsel %vm8039_vm15, %v6505_v13, %v4979_v3  ;;  %v4981_v27 = vrot.slane %v4979_v3, 4  ;;  %v4831_v37 = vld [vmem:[#allocation7 + $0x2c] sm:$0x3]  ;;  %v9593_v17 = vld [vmem:[#allocation7 + $0x28] sm:$0xf] }
 0x6b7   :  { %v4393_v35 = vpack.c.bf16 %v4377_v36, %v4377_v36  ;;  %v5070_v57 = vrot.slane %v5029_v18, 6  ;;  %v4301_v55 = vpop.f32.mrf.mxu2  ;;  %v4874_v61 = vrot.slane %v9578_v41, 6  ;;  %v4447_v28 = vrot.slane %v4446_v15, 4  ;;  %v4735_v49 = vld [vmem:[#allocation7 + $0x2c] sm:$0x1]  ;;  %v4208_v40 = vpop.f32.mrf.mxu3  ;;  %v6763_v32 = vld [vmem:[#allocation7 + $0x24] sm:$0xff] }
 0x6b8   :  { %5214 = vrot.lane.b32.xlu2 %v5204_v10, %s10108_s16  ;;  %5174 = vrot.lane.b32.xlu1 %v5164_v0, %s10109_s30  ;;  %v5069_v33 = vrot.slane %v5067_v5, 4  ;;  %v4302_v24 = vadd.f32 %v4301_v55, %v4253_v58  ;;  %v4254_v20 = vpop.f32.mrf.mxu1  ;;  %v4983_v7 = vsel %vm8039_vm15, %v4981_v27, %v4982_v63  ;;  %v5404_v53 = vunpack.c.l.b16 %v4980_v23  ;;  %v4537_v1 = vld [vmem:[#allocation7 + $0x2c] sm:$0x1]  ;;  %v4536_v47 = vld [vmem:[#allocation7 + $0x24] sm:$0xe] }
 0x6b9   :  { %v4448_v14 = vrot.slane %v4393_v35, 7  ;;  %v4350_v43 = vpop.f32.mrf.mxu0  ;;  %v5405_v12 = vunpack.c.l.b16 %v4983_v7  ;;  %v6513_v4 = vrot.slane %v5028_v26, 10  ;;  %v4206_v30 = vadd.f32 %v9487_v8, %v4205_v22  ;;  %v4633_v58 = vld [vmem:[#allocation7 + $0x2c] sm:$0x3] }
 0x6ba   :  { %v4351_v2 = vadd.f32 %v4350_v43, %v4302_v24  ;;  %v5071_v59 = vsel %vm8391_vm3, %v5069_v33, %v5070_v57  ;;  %v4876_v34 = vrot.slane %v4874_v61, 4  ;;  %v4877_v11 = vrot.slane %v4831_v37, 6 }
 0x6bb   :  { %v4449_v46 = vsel %vm8348_vm4, %v4447_v28, %v4448_v14  ;;  %v4450_v25 = vrot.slane %v4448_v14, 4  ;;  %v5419_v45 = vpack.c.b16 %v5405_v12, %v5404_v53  ;;  %v5068_v48 = vsel %vm8391_vm3, %v6513_v4, %v5067_v5 }
 0x6bc   :  { %4456 = vst.msk [vmem:[#allocation7 + $0x34] sm:$0xf] %vm50_vm10, %v4449_v46  ;;  %v4378_v15 = vmax.f32 %v4351_v2, 0.0  ;;  %v6498_v6 = vrot.slane %v4830_v56, 10  ;;  %v4255_v38 = vadd.f32 %v4254_v20, %v4206_v30  ;;  %v5445_v42 = vunpack.c.l.b16 %v5071_v59  ;;  %v4934_v56 = vld [vmem:[#allocation7 + $0x30] sm:$0xe] }
 0x6bd   :  { %4457 = vst.msk [vmem:[#allocation7 + $0x38] sm:$0x1] %vm52_vm11, %v4450_v25  ;;  %v4786_v54 = vrot.slane %v9578_v41, 5  ;;  %v4789_v50 = vrot.slane %v4735_v49, 5  ;;  %v4878_v52 = vsel %vm8391_vm3, %v4876_v34, %v4877_v11  ;;  %v6490_v19 = vrot.slane %v4734_v21, 9 }
 0x6be   :  { %5262 = vrot.lane.b32.xlu0 %v6756_v9, %s10107_s24  ;;  %v4394_v51 = vpack.c.bf16 %v4378_v15, %v4378_v15  ;;  %v4593_v22 = vrot.slane %v9593_v17, 5  ;;  %v5444_v60 = vunpack.c.l.b16 %v5068_v48  ;;  %v4875_v62 = vsel %vm8391_vm3, %v6498_v6, %v4874_v61  ;;  %v4632_v61 = vld [vmem:[#allocation7 + $0x24] sm:$0xc] }
 0x6bf   :  { %v4303_v44 = vpop.f32.mrf.mxu2  ;;  %v4788_v16 = vrot.slane %v4786_v54, 4  ;;  %v4681_v18 = vrot.slane %v9593_v17, 6  ;;  %v4787_v63 = vsel %vm8039_vm15, %v6490_v19, %v4786_v54  ;;  %v4596_v41 = vrot.slane %v4537_v1, 5  ;;  %v4210_v30 = vpop.f32.mrf.mxu3 }
 0x6c0   :  { %5388 = vrot.lane.b32.xlu1 %v6763_v32, %s7234_s2  ;;  %5428 = vrot.lane.b32.xlu2 %v5419_v45, %s7235_s28  ;;  %v4460_v36 = vrot.slane %v4394_v51, 7  ;;  %v4304_v13 = vadd.f32 %v4303_v44, %v4255_v38  ;;  %v4257_v3 = vpop.f32.mrf.mxu1  ;;  %v5459_v0 = vpack.c.b16 %v5445_v42, %v5444_v60  ;;  %v5319_v5 = vunpack.c.l.b16 %v4878_v52  ;;  %v5030_v52 = vld [vmem:[#allocation7 + $0x30] sm:$0xc] }
 0x6c1   :  { %v4352_v10 = vpop.f32.mrf.mxu0  ;;  %v4790_v35 = vsel %vm8039_vm15, %v4788_v16, %v4789_v50  ;;  %v6475_v26 = vrot.slane %v4536_v47, 9  ;;  %v4595_v57 = vrot.slane %v4593_v22, 4  ;;  %v5318_v55 = vunpack.c.l.b16 %v4875_v62 }
 0x6c2   :  { %4469 = vst.msk [vmem:[#allocation7 + $0x3c] sm:$0xe] %vm1041_vm12, %v4460_v36  ;;  %v4353_v23 = vadd.f32 %v4352_v10, %v4304_v13  ;;  %v5279_v27 = vunpack.c.l.b16 %v4790_v35  ;;  %v5278_v33 = vunpack.c.l.b16 %v4787_v63  ;;  %v4683_v28 = vrot.slane %v4681_v18, 4 }
 0x6c3   :  { %v4684_v14 = vrot.slane %v4633_v58, 6  ;;  %v9613_v24 = vld [vmem:[#allocation7 + $0x34] sm:$0xf]  ;;  %v4209_v20 = vadd.f32 %v9487_v8, %v4208_v40  ;;  %v4594_v37 = vsel %vm8039_vm15, %v6475_v26, %v4593_v22  ;;  %v4597_v43 = vsel %vm8039_vm15, %v4595_v57, %v4596_v41  ;;  %v4736_v41 = vld [vmem:[#allocation7 + $0x30] sm:$0xe] }
 0x6c4   :  { %v4379_v7 = vmax.f32 %v4353_v23, 0.0  ;;  %v5332_v53 = vpack.c.b16 %v5319_v5, %v5318_v55  ;;  %v5292_v12 = vpack.c.b16 %v5279_v27, %v5278_v33  ;;  %v5153_v4 = vunpack.c.l.b16 %v4597_v43  ;;  %v4935_v21 = vld [vmem:[#allocation7 + $0x38] sm:$0x1]  ;;  %v9629_v32 = vld [vmem:[#allocation7 + $0x34] sm:$0xf] }
 0x6c5   :  { %v4986_v46 = vrot.slane %v9613_v24, 5  ;;  %v4258_v25 = vadd.f32 %v4257_v3, %v4209_v20  ;;  %v6483_v9 = vrot.slane %v4632_v61, 10  ;;  %v4685_v59 = vsel %vm8391_vm3, %v4683_v28, %v4684_v14  ;;  %v5031_v38 = vld [vmem:[#allocation7 + $0x38] sm:$0x3]  ;;  %v4832_v23 = vld [vmem:[#allocation7 + $0x30] sm:$0xc] }
 0x6c6   :  { %5468 = vrot.lane.b32.xlu0 %v5459_v0, %s7237_s29  ;;  %v4395_v2 = vpack.c.bf16 %v4379_v7, %v4379_v7  ;;  %v4461_v49 = vrot.slane %v4460_v36, 4  ;;  %v5152_v34 = vunpack.c.l.b16 %v4594_v37  ;;  %v5074_v11 = vrot.slane %v9613_v24, 6  ;;  %v4737_v62 = vld [vmem:[#allocation7 + $0x38] sm:$0x1]  ;;  %v6757_v0 = vld [vmem:[#allocation7 + $0x30] sm:$0xff] }
 0x6c7   :  { %v4306_v45 = vpop.f32.mrf.mxu2  ;;  %v4682_v6 = vsel %vm8391_vm3, %v6483_v9, %v4681_v18  ;;  %v6506_v40 = vrot.slane %v4934_v56, 9  ;;  %v5193_v50 = vunpack.c.l.b16 %v4685_v59  ;;  %v4988_v1 = vrot.slane %v4986_v46, 4  ;;  %v4833_v55 = vld [vmem:[#allocation7 + $0x38] sm:$0x3]  ;;  %v9645_v61 = vld [vmem:[#allocation7 + $0x34] sm:$0xf] }
 0x6c8   :  { %5342 = vrot.lane.b32.xlu2 %v5332_v53, %s7236_s25  ;;  %5302 = vrot.lane.b32.xlu1 %v5292_v12, %s10110_s17  ;;  %v4462_v17 = vrot.slane %v4395_v2, 7  ;;  %v4307_v15 = vadd.f32 %v4306_v45, %v4258_v25  ;;  %v4259_v48 = vpop.f32.mrf.mxu1  ;;  %v5165_v54 = vpack.c.b16 %v5153_v4, %v5152_v34  ;;  %v4989_v51 = vrot.slane %v4935_v21, 5  ;;  %v4539_v56 = vld [vmem:[#allocation7 + $0x38] sm:$0x1] }
 0x6c9   :  { %v4355_v42 = vpop.f32.mrf.mxu0  ;;  %v5076_v60 = vrot.slane %v5074_v11, 4  ;;  %v4211_v16 = vadd.f32 %v9487_v8, %v4210_v30  ;;  %v5192_v47 = vunpack.c.l.b16 %v4682_v6  ;;  %v5077_v18 = vrot.slane %v5031_v38, 6  ;;  %v6764_v30 = vld [vmem:[#allocation7 + $0x30] sm:$0xff] }
 0x6ca   :  { %v4463_v19 = vsel %vm8348_vm4, %v4461_v49, %v4462_v17  ;;  %v4464_v22 = vrot.slane %v4462_v17, 4  ;;  %v4356_v44 = vadd.f32 %v4355_v42, %v4307_v15  ;;  %v4793_v36 = vrot.slane %v9629_v32, 5  ;;  %v4635_v42 = vld [vmem:[#allocation7 + $0x38] sm:$0x3] }
 0x6cb   :  { %4470 = vst.msk [vmem:[#allocation7 + $0x40] sm:$0xf] %vm50_vm10, %v4463_v19  ;;  %v4987_v3 = vsel %vm8039_vm15, %v6506_v40, %v4986_v46  ;;  %v6514_v63 = vrot.slane %v5030_v52, 10  ;;  %v4260_v58 = vadd.f32 %v4259_v48, %v4211_v16  ;;  %v5205_v10 = vpack.c.b16 %v5193_v50, %v5192_v47 }
 0x6cc   :  { %4471 = vst.msk [vmem:[#allocation7 + $0x44] sm:$0x1] %vm52_vm11, %v4464_v22  ;;  %v4380_v13 = vmax.f32 %v4356_v44, 0.0  ;;  %v4990_v5 = vsel %vm8039_vm15, %v4988_v1, %v4989_v51  ;;  %v4796_v35 = vrot.slane %v4737_v62, 5  ;;  %v5078_v26 = vsel %vm8391_vm3, %v5076_v60, %v5077_v18  ;;  %v4634_v62 = vld [vmem:[#allocation7 + $0x30] sm:$0xc] }
 0x6cd   :  { %v4795_v57 = vrot.slane %v4793_v36, 4  ;;  %v4881_v33 = vrot.slane %v9629_v32, 6  ;;  %v5406_v24 = vunpack.c.l.b16 %v4987_v3  ;;  %v5075_v20 = vsel %vm8391_vm3, %v6514_v63, %v5074_v11  ;;  %v4538_v11 = vld [vmem:[#allocation7 + $0x30] sm:$0xe] }
 0x6ce   :  { %5176 = vrot.lane.b32.xlu0 %v5165_v54, %s10109_s30  ;;  %v4396_v27 = vpack.c.bf16 %v4380_v13, %v4380_v13  ;;  %v6491_v7 = vrot.slane %v4736_v41, 9  ;;  %v5407_v12 = vunpack.c.l.b16 %v4990_v5  ;;  %v6499_v4 = vrot.slane %v4832_v23, 10 }
 0x6cf   :  { %v4213_v28 = vpop.f32.mrf.mxu3  ;;  %v4308_v14 = vpop.f32.mrf.mxu2  ;;  %v5447_v25 = vunpack.c.l.b16 %v5078_v26  ;;  %v4884_v9 = vrot.slane %v4833_v55, 6  ;;  %v4600_v59 = vrot.slane %v9645_v61, 5  ;;  %v4797_v45 = vsel %vm8039_vm15, %v4795_v57, %v4796_v35 }
 0x6d0   :  { %5216 = vrot.lane.b32.xlu1 %v5205_v10, %s10108_s16  ;;  %5264 = vrot.lane.b32.xlu2 %v6757_v0, %s10107_s24  ;;  %v4474_v37 = vrot.slane %v4396_v27, 7  ;;  %v4309_v43 = vadd.f32 %v4308_v14, %v4260_v58  ;;  %v4262_v53 = vpop.f32.mrf.mxu1  ;;  %v4794_v2 = vsel %vm8039_vm15, %v6491_v7, %v4793_v36  ;;  %v4214_v21 = vadd.f32 %v9487_v8, %v4213_v28  ;;  %v4936_v14 = vld [vmem:[#allocation7 + $0x3c] sm:$0xe] }
 0x6d1   :  { %v4357_v46 = vpop.f32.mrf.mxu0  ;;  %v4883_v34 = vrot.slane %v4881_v33, 4  ;;  %v5446_v17 = vunpack.c.l.b16 %v5075_v20  ;;  %v4602_v15 = vrot.slane %v4600_v59, 4  ;;  %v4603_v48 = vrot.slane %v4539_v56, 5 }
 0x6d2   :  { %4483 = vst.msk [vmem:[#allocation7 + $0x48] sm:$0xe] %vm1041_vm12, %v4474_v37  ;;  %v4358_v49 = vadd.f32 %v4357_v46, %v4309_v43  ;;  %v5420_v40 = vpack.c.b16 %v5407_v12, %v5406_v24  ;;  %v5280_v38 = vunpack.c.l.b16 %v4794_v2  ;;  %v4882_v32 = vsel %vm8391_vm3, %v6499_v4, %v4881_v33  ;;  %v9661_v54 = vld [vmem:[#allocation7 + $0x40] sm:$0xf]  ;;  %v5032_v4 = vld [vmem:[#allocation7 + $0x3c] sm:$0xc] }
 0x6d3   :  { %v5460_v50 = vpack.c.b16 %v5447_v25, %v5446_v17  ;;  %v5281_v1 = vunpack.c.l.b16 %v4797_v45  ;;  %v6476_v51 = vrot.slane %v4538_v11, 9  ;;  %v4688_v52 = vrot.slane %v9645_v61, 6  ;;  %v4937_v5 = vld [vmem:[#allocation7 + $0x44] sm:$0x1]  ;;  %v9676_v24 = vld [vmem:[#allocation7 + $0x40] sm:$0xf] }
 0x6d4   :  { %v4381_v6 = vmax.f32 %v4358_v49, 0.0  ;;  %v4263_v19 = vadd.f32 %v4262_v53, %v4214_v21  ;;  %v4885_v44 = vsel %vm8391_vm3, %v4883_v34, %v4884_v9  ;;  %v4604_v60 = vsel %vm8039_vm15, %v4602_v15, %v4603_v48  ;;  %v5033_v9 = vld [vmem:[#allocation7 + $0x44] sm:$0x3] }
 0x6d5   :  { %v5320_v18 = vunpack.c.l.b16 %v4882_v32  ;;  %v4690_v36 = vrot.slane %v4688_v52, 4  ;;  %v4691_v13 = vrot.slane %v4635_v42, 6  ;;  %v4993_v3 = vrot.slane %v9661_v54, 5  ;;  %v4739_v45 = vld [vmem:[#allocation7 + $0x44] sm:$0x1] }
 0x6d6   :  { %5390 = vrot.lane.b32.xlu0 %v6764_v30, %s7234_s2  ;;  %v4397_v22 = vpack.c.bf16 %v4381_v6, %v4381_v6  ;;  %v4475_v63 = vrot.slane %v4474_v37, 4  ;;  %v4601_v0 = vsel %vm8039_vm15, %v6476_v51, %v4600_v59  ;;  %v5293_v23 = vpack.c.b16 %v5281_v1, %v5280_v38 }
 0x6d7   :  { %v4215_v16 = vpop.f32.mrf.mxu3  ;;  %v4311_v47 = vpop.f32.mrf.mxu2  ;;  %v5321_v27 = vunpack.c.l.b16 %v4885_v44  ;;  %v5155_v26 = vunpack.c.l.b16 %v4604_v60  ;;  %v6484_v57 = vrot.slane %v4634_v62, 10  ;;  %v5154_v20 = vunpack.c.l.b16 %v4601_v0  ;;  %v6758_v0 = vld [vmem:[#allocation7 + $0x3c] sm:$0xff] }
 0x6d8   :  { %5430 = vrot.lane.b32.xlu1 %v5420_v40, %s7235_s28  ;;  %5470 = vrot.lane.b32.xlu2 %v5460_v50, %s7237_s29  ;;  %v4476_v41 = vrot.slane %v4397_v22, 7  ;;  %v4312_v58 = vadd.f32 %v4311_v47, %v4263_v19  ;;  %v4264_v10 = vpop.f32.mrf.mxu1  ;;  %v4216_v61 = vadd.f32 %v9487_v8, %v4215_v16  ;;  %v4692_v7 = vsel %vm8391_vm3, %v4690_v36, %v4691_v13  ;;  %v4835_v19 = vld [vmem:[#allocation7 + $0x44] sm:$0x3]  ;;  %v4738_v47 = vld [vmem:[#allocation7 + $0x3c] sm:$0xe] }
 0x6d9   :  { %v4360_v35 = vpop.f32.mrf.mxu0  ;;  %v4995_v37 = vrot.slane %v4993_v3, 4  ;;  %v4996_v43 = vrot.slane %v4937_v5, 5  ;;  %v4689_v12 = vsel %vm8391_vm3, %v6484_v57, %v4688_v52  ;;  %v5081_v56 = vrot.slane %v9661_v54, 6 }
 0x6da   :  { %v4477_v55 = vsel %vm8348_vm4, %v4475_v63, %v4476_v41  ;;  %v4478_v33 = vrot.slane %v4476_v41, 4  ;;  %v4361_v28 = vadd.f32 %v4360_v35, %v4312_v58  ;;  %v5333_v46 = vpack.c.b16 %v5321_v27, %v5320_v18  ;;  %v9700_v18 = vld [vmem:[#allocation7 + $0x40] sm:$0xf]  ;;  %v4834_v63 = vld [vmem:[#allocation7 + $0x3c] sm:$0xc] }
 0x6db   :  { %4484 = vst.msk [vmem:[#allocation7 + $0x4c] sm:$0xf] %vm50_vm10, %v4477_v55  ;;  %v5166_v25 = vpack.c.b16 %v5155_v26, %v5154_v20  ;;  %v6507_v2 = vrot.slane %v4936_v14, 9  ;;  %v4800_v59 = vrot.slane %v9676_v24, 5  ;;  %v4265_v21 = vadd.f32 %v4264_v10, %v4216_v61  ;;  %v6765_v10 = vld [vmem:[#allocation7 + $0x3c] sm:$0xff] }
 0x6dc   :  { %4485 = vst.msk [vmem:[#allocation7 + $0x50] sm:$0x1] %vm52_vm11, %v4478_v33  ;;  %v4382_v53 = vmax.f32 %v4361_v28, 0.0  ;;  %v5195_v30 = vunpack.c.l.b16 %v4692_v7  ;;  %v5194_v17 = vunpack.c.l.b16 %v4689_v12  ;;  %v4997_v48 = vsel %vm8039_vm15, %v4995_v37, %v4996_v43  ;;  %v4637_v55 = vld [vmem:[#allocation7 + $0x44] sm:$0x3] }
 0x6dd   :  { %v4994_v15 = vsel %vm8039_vm15, %v6507_v2, %v4993_v3  ;;  %v6515_v6 = vrot.slane %v5032_v4, 10  ;;  %v5083_v32 = vrot.slane %v5081_v56, 4  ;;  %v5084_v42 = vrot.slane %v5033_v9, 6  ;;  %v4541_v33 = vld [vmem:[#allocation7 + $0x44] sm:$0x1] }
 0x6de   :  { %5304 = vrot.lane.b32.xlu0 %v5293_v23, %s10110_s17  ;;  %v4398_v49 = vpack.c.bf16 %v4382_v53, %v4382_v53  ;;  %v4802_v51 = vrot.slane %v4800_v59, 4  ;;  %v4803_v52 = vrot.slane %v4739_v45, 5  ;;  %v4888_v22 = vrot.slane %v9676_v24, 6  ;;  %v4636_v2 = vld [vmem:[#allocation7 + $0x3c] sm:$0xc] }
 0x6df   :  { %v4218_v34 = vpop.f32.mrf.mxu3  ;;  %v4313_v11 = vpop.f32.mrf.mxu2  ;;  %v9695_v1 = vsel %vm8391_vm3, %v6515_v6, %v5081_v56  ;;  %v5206_v62 = vpack.c.b16 %v5195_v30, %v5194_v17  ;;  %v5409_v16 = vunpack.c.l.b16 %v4997_v48  ;;  %v5408_v36 = vunpack.c.l.b16 %v4994_v15  ;;  %v7224_v56 = vld [vmem:[%s10084_s10] ss:$0 sm:$0xff] }
 0x6e0   :  { %5344 = vrot.lane.b32.xlu1 %v5333_v46, %s7236_s25  ;;  %5178 = vrot.lane.b32.xlu2 %v5166_v25, %s10109_s30  ;;  %v4488_v40 = vrot.slane %v4398_v49, 7  ;;  %v4314_v38 = vadd.f32 %v4313_v11, %v4265_v21  ;;  %v4219_v44 = vadd.f32 %v9487_v8, %v4218_v34  ;;  %v5085_v3 = vsel %vm8391_vm3, %v5083_v32, %v5084_v42  ;;  %v4540_v34 = vld [vmem:[#allocation7 + $0x3c] sm:$0xe]  ;;  %v6773_v42 = vld [vmem:[%s10083_s11 + $0x18] sm:$0xff] }
 0x6e1   :  { %v4267_v54 = vpop.f32.mrf.mxu1  ;;  %v4362_v50 = vpop.f32.mrf.mxu0  ;;  %v4890_v41 = vrot.slane %v4888_v22, 4  ;;  %v4891_v58 = vrot.slane %v4835_v19, 6  ;;  %v5448_v8 = vunpack.c.l.b16 %v9695_v1  ;;  %v6492_v5 = vrot.slane %v4738_v47, 9  ;;  %5681 = vmatpush.bf16.msra.mxu3 %v6773_v42 }
 0x6e2   :  { %4497 = vst.msk [vmem:[#allocation7 + $0x54] sm:$0xe] %vm1041_vm12, %v4488_v40  ;;  %v4363_v60 = vadd.f32 %v4362_v50, %v4314_v38  ;;  %v4804_v35 = vsel %vm8039_vm15, %v4802_v51, %v4803_v52  ;;  %v4695_v23 = vrot.slane %v9700_v18, 6  ;;  %v4268_v27 = vadd.f32 %v4267_v54, %v4219_v44  ;;  %v9721_v17 = vld [vmem:[#allocation7 + $0x4c] sm:$0xf] }
 0x6e3   :  { %v5421_v57 = vpack.c.b16 %v5409_v16, %v5408_v36  ;;  %v4607_v61 = vrot.slane %v9700_v18, 5  ;;  %v4489_v28 = vrot.slane %v4488_v40, 4  ;;  %v5449_v20 = vunpack.c.l.b16 %v5085_v3  ;;  %v4939_v47 = vld [vmem:[#allocation7 + $0x50] sm:$0x1] }
 0x6e4   :  { %v4383_v13 = vmax.f32 %v4363_v60, 0.0  ;;  %v4801_v7 = vsel %vm8039_vm15, %v6492_v5, %v4800_v59  ;;  %v6500_v37 = vrot.slane %v4834_v63, 10  ;;  %v5283_v12 = vunpack.c.l.b16 %v4804_v35  ;;  %v9745_v35 = vld [vmem:[#allocation7 + $0x4c] sm:$0xf] }
 0x6e5   :  { %v4892_v4 = vsel %vm8391_vm3, %v4890_v41, %v4891_v58  ;;  %v4697_v9 = vrot.slane %v4695_v23, 4  ;;  %v4698_v21 = vrot.slane %v4637_v55, 6  ;;  %v4610_v49 = vrot.slane %v4541_v33, 5  ;;  %v5035_v33 = vld [vmem:[#allocation7 + $0x50] sm:$0x3] }
 0x6e6   :  { %5218 = vrot.lane.b32.xlu0 %v5206_v62, %s10108_s16  ;;  %v4399_v26 = vpack.c.bf16 %v4383_v13, %v4383_v13  ;;  %v4609_v11 = vrot.slane %v4607_v61, 4  ;;  %v5282_v48 = vunpack.c.l.b16 %v4801_v7  ;;  %v5461_v40 = vpack.c.b16 %v5449_v20, %v5448_v8 }
 0x6e7   :  { %v4220_v14 = vpop.f32.mrf.mxu3  ;;  %v4316_v24 = vpop.f32.mrf.mxu2  ;;  %v4889_v38 = vsel %vm8391_vm3, %v6500_v37, %v4888_v22  ;;  %v6485_v32 = vrot.slane %v4636_v2, 10  ;;  %v5323_v1 = vunpack.c.l.b16 %v4892_v4  ;;  %v6477_v51 = vrot.slane %v4540_v34, 9  ;;  %v4837_v37 = vld [vmem:[#allocation7 + $0x50] sm:$0x3] }
 0x6e8   :  { %5392 = vrot.lane.b32.xlu2 %v6765_v10, %s7234_s2  ;;  %5266 = vrot.lane.b32.xlu1 %v6758_v0, %s10107_s24  ;;  %v4490_v43 = vrot.slane %v4399_v26, 7  ;;  %v4317_v53 = vadd.f32 %v4316_v24, %v4268_v27  ;;  %v4221_v46 = vadd.f32 %v7224_v56, %v4220_v14  ;;  %v5294_v54 = vpack.c.b16 %v5283_v12, %v5282_v48  ;;  %v5034_v12 = vld [vmem:[#allocation7 + $0x48] sm:$0xc] }
 0x6e9   :  { %v4365_v25 = vpop.f32.mrf.mxu0  ;;  %v4269_v15 = vpop.f32.mrf.mxu1  ;;  %v5000_v52 = vrot.slane %v9721_v17, 5  ;;  %v4699_v60 = vsel %vm8391_vm3, %v4697_v9, %v4698_v21  ;;  %v4611_v22 = vsel %vm8039_vm15, %v4609_v11, %v4610_v49  ;;  %v5322_v16 = vunpack.c.l.b16 %v4889_v38  ;;  %v9759_v21 = vld [vmem:[#allocation7 + $0x4c] sm:$0xf] }
 0x6ea   :  { %v4491_v59 = vsel %vm8348_vm4, %v4489_v28, %v4490_v43  ;;  %v4492_v30 = vrot.slane %v4490_v43, 4  ;;  %v4366_v45 = vadd.f32 %v4365_v25, %v4317_v53  ;;  %v9731_v50 = vpop.permute.xlu2 %5258  ;;  %v4270_v19 = vadd.f32 %v4269_v15, %v4221_v46  ;;  %v4741_v46 = vld [vmem:[#allocation7 + $0x50] sm:$0x1]  ;;  %v4836_v15 = vld [vmem:[#allocation7 + $0x48] sm:$0xc] }
 0x6eb   :  { %4498 = vst.msk [vmem:[#allocation7 + $0x58] sm:$0xf] %vm50_vm10, %v4491_v59  ;;  %v4696_v13 = vsel %vm8391_vm3, %v6485_v32, %v4695_v23  ;;  %v4608_v3 = vsel %vm8039_vm15, %v6477_v51, %v4607_v61  ;;  %v5197_v41 = vunpack.c.l.b16 %v4699_v60  ;;  %v5157_v58 = vunpack.c.l.b16 %v4611_v22  ;;  %v6772_v49 = vld [vmem:[%s10083_s11 + $0x10] sm:$0xff] }
 0x6ec   :  { %4499 = vst.msk [vmem:[#allocation7 + $0x5c] sm:$0x1] %vm52_vm11, %v4492_v30  ;;  %v4384_v6 = vmax.f32 %v4366_v45, 0.0  ;;  %v5334_v0 = vpack.c.b16 %v5323_v1, %v5322_v16  ;;  %v5002_v8 = vrot.slane %v5000_v52, 4  ;;  %v5003_v5 = vrot.slane %v4939_v47, 5  ;;  %v6759_v59 = vld [vmem:[#allocation7 + $0x48] sm:$0xff]  ;;  %5682 = vmatpush.bf16.msra.mxu3 %v6772_v49 }
 0x6ed   :  { %v5196_v27 = vunpack.c.l.b16 %v4696_v13  ;;  %v5156_v26 = vunpack.c.l.b16 %v4608_v3  ;;  %v5088_v55 = vrot.slane %v9721_v17, 6  ;;  %v4895_v14 = vrot.slane %v9745_v35, 6  ;;  %v4543_v1 = vld [vmem:[#allocation7 + $0x50] sm:$0x1]  ;;  %v6766_v51 = vld [vmem:[#allocation7 + $0x48] sm:$0xff] }
 0x6ee   :  { %5432 = vrot.lane.b32.xlu0 %v5421_v57, %s7235_s28  ;;  %v4400_v44 = vpack.c.bf16 %v4384_v6, %v4384_v6  ;;  %v4938_v57 = vld [vmem:[#allocation7 + $0x48] sm:$0xe]  ;;  %v5004_v7 = vsel %vm8039_vm15, %v5002_v8, %v5003_v5  ;;  %v4807_v43 = vrot.slane %v9745_v35, 5  ;;  %v5091_v56 = vrot.slane %v5035_v33, 6  ;;  %v4639_v3 = vld [vmem:[#allocation7 + $0x50] sm:$0x3] }
 0x6ef   :  { %v4318_v62 = vpop.f32.mrf.mxu2  ;;  %v5207_v61 = vpack.c.b16 %v5197_v41, %v5196_v27  ;;  %v5167_v28 = vpack.c.b16 %v5157_v58, %v5156_v26  ;;  %v6508_v20 = vrot.slane %v4938_v57, 9  ;;  %v5090_v4 = vrot.slane %v5088_v55, 4 }
 0x6f0   :  { %5472 = vrot.lane.b32.xlu1 %v5461_v40, %s7237_s29  ;;  %5306 = vrot.lane.b32.xlu2 %v5294_v54, %s10110_s17  ;;  %v4502_v18 = vrot.slane %v4400_v44, 7  ;;  %v4319_v36 = vadd.f32 %v4318_v62, %v4270_v19  ;;  %v5411_v30 = vunpack.c.l.b16 %v5004_v7  ;;  %v4897_v45 = vrot.slane %v4895_v14, 4  ;;  %v6771_v40 = vld [vmem:[%s10083_s11 + $0x8] sm:$0xff] }
 0x6f1   :  { %v4367_v63 = vpop.f32.mrf.mxu0  ;;  %v5001_v9 = vsel %vm8039_vm15, %v6508_v20, %v5000_v52  ;;  %v4898_v34 = vrot.slane %v4837_v37, 6  ;;  %v4809_v48 = vrot.slane %v4807_v43, 4  ;;  %v4810_v6 = vrot.slane %v4741_v46, 5  ;;  %v4740_v54 = vld [vmem:[#allocation7 + $0x48] sm:$0xe]  ;;  %5683 = vmatpush.bf16.msra.mxu3 %v6771_v40 }
 0x6f2   :  { %4511 = vst.msk [vmem:[#allocation7 + $0x60] sm:$0xe] %vm1041_vm12, %v4502_v18  ;;  %v4368_v10 = vadd.f32 %v4367_v63, %v4319_v36  ;;  %v4503_v25 = vrot.slane %v4502_v18, 4  ;;  %v5410_v38 = vunpack.c.l.b16 %v5001_v9  ;;  %v6516_v32 = vrot.slane %v5034_v12, 10  ;;  %v6770_v63 = vld [vmem:[%s10083_s11] sm:$0xff] }
 0x6f3   :  { %v5092_v42 = vsel %vm8391_vm3, %v5090_v4, %v5091_v56  ;;  %v4614_v39 = vrot.slane %v9759_v21, 5  ;;  %v6501_v44 = vrot.slane %v4836_v15, 10  ;;  %v4899_v60 = vsel %vm8391_vm3, %v4897_v45, %v4898_v34  ;;  %v4925_v57 = vld [vmem:[#allocation7 + $0x58] sm:$0xf]  ;;  %v4941_v46 = vld [vmem:[#allocation7 + $0x5c] sm:$0x1] }
 0x6f4   :  { %v4385_v23 = vmax.f32 %v4368_v10, 0.0  ;;  %v5422_v52 = vpack.c.b16 %v5411_v30, %v5410_v38  ;;  %v5089_v19 = vsel %vm8391_vm3, %v6516_v32, %v5088_v55  ;;  %v5451_v22 = vunpack.c.l.b16 %v5092_v42  ;;  %v5211_v55 = vpop.permute.xlu1 %5210  ;;  %v9802_v9 = vld [vmem:[#allocation7 + $0x58] sm:$0xf]  ;;  %v4940_v30 = vld [vmem:[#allocation7 + $0x54] sm:$0xe] }
 0x6f5   :  { %v6493_v62 = vrot.slane %v4740_v54, 9  ;;  %v4811_v16 = vsel %vm8039_vm15, %v4809_v48, %v4810_v6  ;;  %v4702_v47 = vrot.slane %v9759_v21, 6  ;;  %v4616_v36 = vrot.slane %v4614_v39, 4  ;;  %5684 = vmatpush.bf16.msra.mxu3 %v6770_v63  ;;  %v6746_v21 = vld [vmem:[#allocation7] sm:$0xff]  ;;  %v5036_v48 = vld [vmem:[#allocation7 + $0x54] sm:$0xc] }
 0x6f6   :  { %5346 = vrot.lane.b32.xlu0 %v5334_v0, %s7236_s25  ;;  %v4401_v24 = vpack.c.bf16 %v4385_v23, %v4385_v23  ;;  %v4617_v13 = vrot.slane %v4543_v1, 5  ;;  %v5450_v41 = vunpack.c.l.b16 %v5089_v19  ;;  %v4896_v58 = vsel %vm8391_vm3, %v6501_v44, %v4895_v14  ;;  %v4542_v0 = vld [vmem:[#allocation7 + $0x48] sm:$0xe]  ;;  %v5171_v14 = vpop.permute.xlu0 %5170  ;;  %v6760_v19 = vld [vmem:[#allocation7 + $0x54] sm:$0xff]  ;;  %v4839_v63 = vld [vmem:[#allocation7 + $0x5c] sm:$0x3] }
 0x6f7   :  { %v4808_v10 = vsel %vm8039_vm15, %v6493_v62, %v4807_v43  ;;  %v5325_v8 = vunpack.c.l.b16 %v4899_v60  ;;  %v5285_v5 = vunpack.c.l.b16 %v4811_v16  ;;  %v4704_v27 = vrot.slane %v4702_v47, 4 }
 0x6f8   :  { %5220 = vrot.lane.b32.xlu2 %v5207_v61, %s10108_s16  ;;  %5180 = vrot.lane.b32.xlu1 %v5167_v28, %s10109_s30  ;;  %v9755_v53 = vpop.permute.xlu2 %5172  ;;  %v4504_v2 = vrot.slane %v4401_v24, 7  ;;  %v5462_v35 = vpack.c.b16 %v5451_v22, %v5450_v41  ;;  %v4705_v26 = vrot.slane %v4639_v3, 6  ;;  %v5324_v23 = vunpack.c.l.b16 %v4896_v58  ;;  %v4638_v24 = vld [vmem:[#allocation7 + $0x48] sm:$0xc]  ;;  %v4742_v3 = vld [vmem:[#allocation7 + $0x54] sm:$0xe] }
 0x6f9   :  { %v5284_v33 = vunpack.c.l.b16 %v4808_v10  ;;  %v6478_v61 = vrot.slane %v4542_v0, 9  ;;  %v4618_v28 = vsel %vm8039_vm15, %v4616_v36, %v4617_v13  ;;  %v5007_v43 = vrot.slane %v4925_v57, 5 }
 0x6fa   :  { %v4505_v11 = vsel %vm8348_vm4, %v4503_v25, %v4504_v2  ;;  %v4506_v17 = vrot.slane %v4504_v2, 4  ;;  %v5335_v20 = vpack.c.b16 %v5325_v8, %v5324_v23  ;;  %v5159_v12 = vunpack.c.l.b16 %v4618_v28  ;;  %v5037_v2 = vld [vmem:[#allocation7 + $0x5c] sm:$0x3] }
 0x6fb   :  { %4512 = vst.msk [vmem:[#allocation7 + $0x64] sm:$0xf] %vm50_vm10, %v4505_v11  ;;  %v5295_v7 = vpack.c.b16 %v5285_v5, %v5284_v33  ;;  %v4615_v37 = vsel %vm8039_vm15, %v6478_v61, %v4614_v39  ;;  %v6486_v4 = vrot.slane %v4638_v24, 10  ;;  %v4706_v56 = vsel %vm8391_vm3, %v4704_v27, %v4705_v26  ;;  %v4743_v39 = vld [vmem:[#allocation7 + $0x5c] sm:$0x1]  ;;  %v6767_v27 = vld [vmem:[#allocation7 + $0x54] sm:$0xff] }
 0x6fc   :  { %4513 = vst.msk [vmem:[#allocation7 + $0x68] sm:$0x1] %vm52_vm11, %v4506_v17  ;;  %v5095_v25 = vrot.slane %v4925_v57, 6  ;;  %v5158_v49 = vunpack.c.l.b16 %v4615_v37  ;;  %v5199_v34 = vunpack.c.l.b16 %v4706_v56  ;;  %v5009_v11 = vrot.slane %v5007_v43, 4  ;;  %v4838_v24 = vld [vmem:[#allocation7 + $0x54] sm:$0xc] }
 0x6fd   :  { %v5010_v17 = vrot.slane %v4941_v46, 5  ;;  %v5098_v40 = vrot.slane %v5037_v2, 6  ;;  %v4814_v38 = vrot.slane %v9802_v9, 5  ;;  %v6509_v54 = vrot.slane %v4940_v30, 9  ;;  %v4942_v56 = vld [vmem:[#allocation7 + $0x60] sm:$0xe] }
 0x6fe   :  { %5268 = vrot.lane.b32.xlu0 %v6759_v59, %s10107_s24  ;;  %v4703_v59 = vsel %vm8391_vm3, %v6486_v4, %v4702_v47  ;;  %v5168_v15 = vpack.c.b16 %v5159_v12, %v5158_v49  ;;  %v5097_v6 = vrot.slane %v5095_v25, 4  ;;  %v5484_v1 = vsel %vm336_vm2, %v6746_v21, %v5171_v14  ;;  %v9832_v14 = vld [vmem:[#allocation7 + $0x58] sm:$0xf] }
 0x6ff   :  { %v5198_v42 = vunpack.c.l.b16 %v4703_v59  ;;  %v5008_v44 = vsel %vm8039_vm15, %v6509_v54, %v5007_v43  ;;  %v5011_v60 = vsel %vm8039_vm15, %v5009_v11, %v5010_v17  ;;  %v6517_v22 = vrot.slane %v5036_v48, 10 }
 0x700   :  { %5394 = vrot.lane.b32.xlu1 %v6766_v51, %s7234_s2  ;;  %5434 = vrot.lane.b32.xlu2 %v5422_v52, %s7235_s28  ;;  %v9784_v18 = vpop.permute.xlu2 %5386  ;;  %v5099_v62 = vsel %vm8391_vm3, %v5097_v6, %v5098_v40  ;;  %v4816_v16 = vrot.slane %v4814_v38, 4  ;;  %v4817_v47 = vrot.slane %v4743_v39, 5  ;;  %v4902_v36 = vrot.slane %v9802_v9, 6 }
 0x701   :  { %v5208_v52 = vpack.c.b16 %v5199_v34, %v5198_v42  ;;  %v5413_v41 = vunpack.c.l.b16 %v5011_v60  ;;  %v5096_v58 = vsel %vm8391_vm3, %v6517_v22, %v5095_v25  ;;  %vm10122_vm4 = vcmask 130048  }
 0x702   :  { %v9820_v13 = vld [vmem:[#allocation7 + $0x64] sm:$0xf]  ;;  %v5507_v10 = vsel %vm10122_vm4, %v5484_v1, %v5211_v55  ;;  %v5412_v8 = vunpack.c.l.b16 %v5008_v44  ;;  %v5453_v5 = vunpack.c.l.b16 %v5099_v62  ;;  %v6494_v26 = vrot.slane %v4742_v3, 9  ;;  %v5038_v44 = vld [vmem:[#allocation7 + $0x60] sm:$0xc]  ;;  %vm10128_vm14 = vmmov %vm10122_vm4 }
 0x703   :  { %v4818_v57 = vsel %vm8039_vm15, %v4816_v16, %v4817_v47  ;;  %v4904_v23 = vrot.slane %v4902_v36, 4  ;;  %v4905_v33 = vrot.slane %v4839_v63, 6  ;;  %v4943_v61 = vld [vmem:[#allocation7 + $0x68] sm:$0x1]  ;;  %v5452_v28 = vunpack.c.l.b16 %v5096_v58  ;;  %v4641_v16 = vld [vmem:[#allocation7 + $0x5c] sm:$0x3]  ;;  %vm10134_vm1 = vmmov %vm10122_vm4 }
 0x704   :  { %vm10123_vm10 = vcmask 195584   ;;  %v4815_v37 = vsel %vm8039_vm15, %v6494_v26, %v4814_v38  ;;  %v5287_v4 = vunpack.c.l.b16 %v4818_v57  ;;  %v5017_v25 = vrot.slane %v4943_v61, 5  ;;  %v5039_v34 = vld [vmem:[#allocation7 + $0x68] sm:$0x3]  ;;  %v4544_v38 = vld [vmem:[#allocation7 + $0x54] sm:$0xe] }
 0x705   :  { %v5523_v55 = vsel %vm10123_vm10, %v5507_v10, %v9731_v50  ;;  %v5463_v43 = vpack.c.b16 %v5453_v5, %v5452_v28  ;;  %v6502_v2 = vrot.slane %v4838_v24, 10  ;;  %v4906_v9 = vsel %vm8391_vm3, %v4904_v23, %v4905_v33  ;;  %v4545_v50 = vld [vmem:[#allocation7 + $0x5c] sm:$0x1]  ;;  %vm10129_vm7 = vmmov %vm10123_vm10 }
 0x706   :  { %5474 = vrot.lane.b32.xlu0 %v5462_v35, %s7237_s29  ;;  %v5014_v35 = vrot.slane %v9820_v13, 5  ;;  %v4621_v21 = vrot.slane %v9832_v14, 5  ;;  %v5102_v49 = vrot.slane %v9820_v13, 6  ;;  %v5286_v30 = vunpack.c.l.b16 %v4815_v37  ;;  %vm10135_vm4 = vmmov %vm10129_vm7 }
 0x707   :  { %v4903_v11 = vsel %vm8391_vm3, %v6502_v2, %v4902_v36  ;;  %v6510_v17 = vrot.slane %v4942_v56, 9  ;;  %v5327_v6 = vunpack.c.l.b16 %v4906_v9  ;;  %v4624_v42 = vrot.slane %v4545_v50, 5  ;;  %v6768_v36 = vld [vmem:[#allocation7 + $0x60] sm:$0xff]  ;;  %v4841_v50 = vld [vmem:[#allocation7 + $0x68] sm:$0x3] }
 0x708   :  { %5348 = vrot.lane.b32.xlu2 %v5335_v20, %s7236_s25  ;;  %5308 = vrot.lane.b32.xlu1 %v5295_v7, %s10110_s17  ;;  %v5423_v20 = vpack.c.b16 %v5413_v41, %v5412_v8  ;;  %v5016_v46 = vrot.slane %v5014_v35, 4  ;;  %v5296_v48 = vpack.c.b16 %v5287_v4, %v5286_v30  ;;  %vm10124_vm11 = vcmask 326656   ;;  %v4744_v4 = vld [vmem:[#allocation7 + $0x60] sm:$0xe] }
 0x709   :  { %v4623_v39 = vrot.slane %v4621_v21, 4  ;;  %v5104_v1 = vrot.slane %v5102_v49, 4  ;;  %v4709_v60 = vrot.slane %v9832_v14, 6  ;;  %v5015_v22 = vsel %vm8039_vm15, %v6510_v17, %v5014_v35  ;;  %v4745_v35 = vld [vmem:[#allocation7 + $0x68] sm:$0x1]  ;;  %vm10130_vm0 = vmmov %vm10124_vm11 }
 0x70a   :  { %v9806_v45 = vpop.permute.xlu2 %5300  ;;  %v5018_v40 = vsel %vm8039_vm15, %v5016_v46, %v5017_v25  ;;  %v6479_v62 = vrot.slane %v4544_v38, 9  ;;  %vm10125_vm12 = vcmask 392192   ;;  %v6518_v8 = vrot.slane %v5038_v44, 10  ;;  %v4929_v17 = vld [vmem:[#allocation7 + $0x70] sm:$0xf]  ;;  %vm10136_vm10 = vmmov %vm10130_vm0 }
 0x70b   :  { %v5415_v3 = vunpack.c.l.b16 %v5018_v40  ;;  %v4625_v10 = vsel %vm8039_vm15, %v4623_v39, %v4624_v42  ;;  %v4711_v26 = vrot.slane %v4709_v60, 4  ;;  %v4712_v57 = vrot.slane %v4641_v16, 6  ;;  %v6747_v42 = vld [vmem:[#allocation7 + $0xc] sm:$0xff]  ;;  %vm10131_vm6 = vmmov %vm10125_vm12 }
 0x70c   :  { %v9809_v32 = vpop.permute.xlu1 %5338  ;;  %v5299_v51 = vpop.permute.xlu0 %5298  ;;  %v5414_v23 = vunpack.c.l.b16 %v5015_v22  ;;  %v4622_v33 = vsel %vm8039_vm15, %v6479_v62, %v4621_v21  ;;  %v5103_v61 = vsel %vm8391_vm3, %v6518_v8, %v5102_v49  ;;  %v5161_v24 = vunpack.c.l.b16 %v4625_v10  ;;  %v5041_v62 = vld [vmem:[#allocation7 + $0x74] sm:$0x3] }
 0x70d   :  { %v5539_v59 = vsel %vm366_vm8, %v5523_v55, %v5299_v51  ;;  %v5105_v51 = vrot.slane %v5039_v34, 6  ;;  %v5160_v56 = vunpack.c.l.b16 %v4622_v33  ;;  %v5454_v46 = vunpack.c.l.b16 %v5103_v61 }
 0x70e   :  { %5182 = vrot.lane.b32.xlu0 %v5168_v15, %s10109_s30  ;;  %v5555_v54 = vsel %vm10124_vm11, %v5539_v59, %v9809_v32  ;;  %v5424_v37 = vpack.c.b16 %v5415_v3, %v5414_v23  ;;  %v4713_v25 = vsel %vm8391_vm3, %v4711_v26, %v4712_v57  ;;  %v6495_v59 = vrot.slane %v4744_v4, 9  ;;  %vm10137_vm11 = vmmov %vm10131_vm6 }
 0x70f   :  { %v5571_v32 = vsel %vm10125_vm12, %v5555_v54, %v9784_v18  ;;  %v5106_v5 = vsel %vm8391_vm3, %v5104_v1, %v5105_v51  ;;  %v5169_v21 = vpack.c.b16 %v5161_v24, %v5160_v56  ;;  %v4912_v38 = vrot.slane %v4841_v50, 6  ;;  %v5040_v51 = vld [vmem:[#allocation7 + $0x6c] sm:$0xc]  ;;  %vm10138_vm12 = vmmov %vm10126_vm5 }
 0x710   :  { %5222 = vrot.lane.b32.xlu1 %v5208_v52, %s10108_s16  ;;  %5270 = vrot.lane.b32.xlu2 %v6760_v19, %s10107_s24  ;;  %v9858_v52 = vld [vmem:[#allocation7 + $0x64] sm:$0xf]  ;;  %v5326_v19 = vunpack.c.l.b16 %v4903_v11  ;;  %v5455_v14 = vunpack.c.l.b16 %v5106_v5  ;;  %v5201_v11 = vunpack.c.l.b16 %v4713_v25  ;;  %v6519_v3 = vrot.slane %v5040_v51, 10  ;;  %v6769_v56 = vld [vmem:[#allocation7 + $0x6c] sm:$0xff] }
 0x711   :  { %v4821_v63 = vrot.slane %v9858_v52, 5  ;;  %v4909_v2 = vrot.slane %v9858_v52, 6  ;;  %v5109_v52 = vrot.slane %v4929_v17, 6  ;;  %v5112_v8 = vrot.slane %v5041_v62, 6  ;;  %v6749_v51 = vld [vmem:[#allocation7 + $0x24] sm:$0xff] }
 0x712   :  { %v9827_v0 = vpop.permute.xlu2 %5214  ;;  %v5336_v47 = vpack.c.b16 %v5327_v6, %v5326_v19  ;;  %v5464_v49 = vpack.c.b16 %v5455_v14, %v5454_v46  ;;  %v4840_v6 = vld [vmem:[#allocation7 + $0x60] sm:$0xc]  ;;  %v5487_v19 = vsel %vm336_vm2, %v6747_v42, %v9755_v53  ;;  %v4944_v53 = vld [vmem:[#allocation7 + $0x6c] sm:$0xe] }
 0x713   :  { %v4823_v55 = vrot.slane %v4821_v63, 4  ;;  %v4911_v40 = vrot.slane %v4909_v2, 4  ;;  %v6503_v22 = vrot.slane %v4840_v6, 10  ;;  %v5111_v10 = vrot.slane %v5109_v52, 4 }
 0x714   :  { %v9837_v7 = vpop.permute.xlu0 %5212  ;;  %v6511_v5 = vrot.slane %v4944_v53, 9 }
 0x715   :  { %v5509_v16 = vsel %vm10128_vm14, %v5487_v19, %v9837_v7  ;;  %vm10141_vm14 = vmmov %vm10135_vm4 }
 0x716   :  { %5396 = vrot.lane.b32.xlu0 %v6767_v27, %s7234_s2  ;;  %v9841_v12 = vpop.permute.xlu1 %5260  ;;  %v4640_v27 = vld [vmem:[#allocation7 + $0x54] sm:$0xc] }
 0x718   :  { %5436 = vrot.lane.b32.xlu1 %v5423_v20, %s7235_s28  ;;  %5476 = vrot.lane.b32.xlu2 %v5463_v43, %s7237_s29  ;;  %v4824_v20 = vrot.slane %v4745_v35, 5  ;;  %v6487_v43 = vrot.slane %v4640_v27, 10  ;;  %v5525_v35 = vsel %vm10129_vm7, %v5509_v16, %v9841_v12  ;;  %v5110_v12 = vsel %vm8391_vm3, %v6519_v3, %v5109_v52  ;;  %vm10142_vm7 = vmmov %vm10130_vm0 }
 0x719   :  { %v5541_v24 = vsel %vm366_vm8, %v5525_v35, %v9806_v45  ;;  %v5456_v46 = vunpack.c.l.b16 %v5110_v12 }
 0x71a   :  { %v9852_v15 = vpop.permute.xlu2 %5428  ;;  %v4710_v9 = vsel %vm8391_vm3, %v6487_v43, %v4709_v60  ;;  %v4825_v30 = vsel %vm8039_vm15, %v4823_v55, %v4824_v20  ;;  %v5113_v55 = vsel %vm8391_vm3, %v5111_v10, %v5112_v8  ;;  %v6750_v8 = vld [vmem:[#allocation7 + $0x30] sm:$0xff] }
 0x71b   :  { %v5200_v54 = vunpack.c.l.b16 %v4710_v9  ;;  %v5289_v39 = vunpack.c.l.b16 %v4825_v30  ;;  %v5457_v25 = vunpack.c.l.b16 %v5113_v55 }
 0x71d   :  { %v5209_v44 = vpack.c.b16 %v5201_v11, %v5200_v54  ;;  %v5465_v50 = vpack.c.b16 %v5457_v25, %v5456_v46 }
 0x71e   :  { %5310 = vrot.lane.b32.xlu0 %v5296_v48, %s10110_s17  ;;  %v4822_v48 = vsel %vm8039_vm15, %v6495_v59, %v4821_v63  ;;  %v4945_v63 = vld [vmem:[#allocation7 + $0x74] sm:$0x1] }
 0x71f   :  { %v5288_v60 = vunpack.c.l.b16 %v4822_v48  ;;  %v5024_v7 = vrot.slane %v4945_v63, 5 }
 0x720   :  { %v5427_v13 = vpop.permute.xlu0 %5426  ;;  %v5467_v58 = vpop.permute.xlu1 %5466  ;;  %5350 = vrot.lane.b32.xlu1 %v5336_v47, %s7236_s25  ;;  %5398 = vrot.lane.b32.xlu2 %v6768_v36, %s7234_s2  ;;  %v4913_v36 = vsel %vm8391_vm3, %v4911_v40, %v4912_v38 }
 0x721   :  { %v5587_v41 = vsel %vm10126_vm5, %v5571_v32, %v5427_v13  ;;  %v5297_v32 = vpack.c.b16 %v5289_v39, %v5288_v60  ;;  %v4910_v13 = vsel %vm8391_vm3, %v6503_v22, %v4909_v2  ;;  %v5329_v27 = vunpack.c.l.b16 %v4913_v36  ;;  %vm10133_vm3 = vmmov %vm10127_vm13 }
 0x722   :  { %v5603_v18 = vsel %vm1380_vm9, %v5587_v41, %v5467_v58  ;;  %v9880_v28 = vpop.permute.xlu2 %5342  ;;  %v5021_v41 = vrot.slane %v4929_v17, 5  ;;  %v6761_v58 = vld [vmem:[#allocation7 + $0x60] sm:$0xff]  ;;  %v5328_v23 = vunpack.c.l.b16 %v4910_v13 }
 0x723   :  { %6632 = vmatmul.msk.bf16.vlgmr.msra.gmra.mxu3 %vm10127_vm13, %v5603_v18  ;;  %vm10140_vm13 = vmmov %vm10134_vm1 }
 0x724   :  { %v5023_v26 = vrot.slane %v5021_v41, 4  ;;  %v5022_v57 = vsel %vm8039_vm15, %v6511_v5, %v5021_v41  ;;  %v5337_v43 = vpack.c.b16 %v5329_v27, %v5328_v23 }
 0x725   :  { %v5416_v61 = vunpack.c.l.b16 %v5022_v57 }
 0x726   :  { %5438 = vrot.lane.b32.xlu0 %v5424_v37, %s7235_s28  ;;  %v5025_v33 = vsel %vm8039_vm15, %v5023_v26, %v5024_v7  ;;  %vm10132_vm15 = vmmov %vm10126_vm5 }
 0x727   :  { %v5417_v20 = vunpack.c.l.b16 %v5025_v33  ;;  %vm10139_vm5 = vmmov %vm10133_vm3 }
 0x728   :  { %v5341_v34 = vpop.permute.xlu0 %5340  ;;  %5184 = vrot.lane.b32.xlu2 %v5169_v21, %s10109_s30  ;;  %5478 = vrot.lane.b32.xlu1 %v5464_v49, %s7237_s29  ;;  %v6748_v49 = vld [vmem:[#allocation7 + $0x18] sm:$0xff] }
 0x729   :  { %v5557_v37 = vsel %vm10130_vm0, %v5541_v24, %v5341_v34  ;;  %v5425_v29 = vpack.c.b16 %v5417_v20, %v5416_v61  ;;  %vm10143_vm0 = vmmov %vm10131_vm6  ;;  %v6751_v20 = vld [vmem:[#allocation7 + $0x3c] sm:$0xff] }
 0x72a   :  { %v5175_v1 = vpop.permute.xlu1 %5174  ;;  %v9898_v47 = vpop.permute.xlu2 %5264 }
 0x72b   :  { %v5490_v59 = vsel %vm336_vm2, %v6748_v49, %v5175_v1 }
 0x72e   :  { %5224 = vrot.lane.b32.xlu0 %v5209_v44, %s10108_s16 }
 0x730   :  { %v5263_v18 = vpop.permute.xlu0 %5262  ;;  %5272 = vrot.lane.b32.xlu1 %v6761_v58, %s10107_s24  ;;  %5312 = vrot.lane.b32.xlu2 %v5297_v32, %s10110_s17 }
 0x732   :  { %v5389_v14 = vpop.permute.xlu1 %5388  ;;  %v5471_v45 = vpop.permute.xlu2 %5470 }
 0x733   :  { %v5573_v4 = vsel %vm10131_vm6, %v5557_v37, %v5389_v14  ;;  %vm10144_vm6 = vmmov %vm10138_vm12 }
 0x734   :  { %v5589_v9 = vsel %vm10132_vm15, %v5573_v4, %v9852_v15  ;;  %v5511_v15 = vsel %vm10134_vm1, %v5490_v59, %v9827_v0  ;;  %vm10145_vm15 = vmmov %vm10133_vm3 }
 0x735   :  { %v5527_v17 = vsel %vm10135_vm4, %v5511_v15, %v5263_v18 }
 0x736   :  { %5352 = vrot.lane.b32.xlu0 %v5337_v43, %s7236_s25 }
 0x738   :  { %v5469_v2 = vpop.permute.xlu0 %5468  ;;  %5400 = vrot.lane.b32.xlu1 %v6769_v56, %s7234_s2  ;;  %5440 = vrot.lane.b32.xlu2 %v5425_v29, %s7235_s28 }
 0x739   :  { %v5605_v31 = vsel %vm1380_vm9, %v5589_v9, %v5469_v2  ;;  %v6752_v9 = vld [vmem:[#allocation7 + $0x48] sm:$0xff] }
 0x73a   :  { %6633 = vmatmul.msk.bf16.gmra.mxu3 %vm10133_vm3, %v5605_v31  ;;  %v5303_v21 = vpop.permute.xlu1 %5302  ;;  %v5179_v34 = vpop.permute.xlu2 %5178  ;;  %vm10146_vm3 = vmmov %vm10134_vm1 }
 0x73b   :  { %v5543_v48 = vsel %vm366_vm8, %v5527_v17, %v5303_v21  ;;  %v5496_v5 = vsel %vm336_vm2, %v6750_v8, %v5179_v34  ;;  %vm10147_vm1 = vmmov %vm10135_vm4 }
 0x73c   :  { %v5559_v6 = vsel %vm10136_vm10, %v5543_v48, %v9880_v28  ;;  %vm10148_vm4 = vmmov %vm10142_vm7 }
 0x73d   :  { %vm10149_vm10 = vmmov %vm10143_vm0 }
 0x73e   :  { %5480 = vrot.lane.b32.xlu0 %v5465_v50, %s7237_s29 }
 0x740   :  { %v5177_v30 = vpop.permute.xlu0 %5176 }
 0x741   :  { %v5493_v52 = vsel %vm336_vm2, %v6749_v51, %v5177_v30 }
 0x742   :  { %v5217_v11 = vpop.permute.xlu1 %5216  ;;  %v5393_v42 = vpop.permute.xlu2 %5392 }
 0x743   :  { %v5513_v60 = vsel %vm10140_vm13, %v5493_v52, %v5217_v11  ;;  %vm10153_vm13 = vmmov %vm10147_vm1 }
 0x744   :  { %v5529_v22 = vsel %vm10141_vm14, %v5513_v60, %v9898_v47  ;;  %vm10154_vm14 = vmmov %vm10148_vm4 }
 0x748   :  { %v5391_v40 = vpop.permute.xlu0 %5390 }
 0x749   :  { %v5575_v38 = vsel %vm10137_vm11, %v5559_v6, %v5391_v40  ;;  %vm10150_vm11 = vmmov %vm10144_vm6 }
 0x74a   :  { %v5431_v54 = vpop.permute.xlu1 %5430  ;;  %v5307_v44 = vpop.permute.xlu2 %5306 }
 0x74b   :  { %v5591_v39 = vsel %vm10138_vm12, %v5575_v38, %v5431_v54  ;;  %vm10151_vm12 = vmmov %vm10139_vm5 }
 0x74c   :  { %v5607_v1 = vsel %vm1380_vm9, %v5591_v39, %v5471_v45 }
 0x74d   :  { %6634 = vmatmul.msk.bf16.gmra.mxu3 %vm10139_vm5, %v5607_v1  ;;  %vm10152_vm5 = vmmov %vm10146_vm3 }
 0x750   :  { %v5305_v0 = vpop.permute.xlu0 %5304 }
 0x751   :  { %v5545_v62 = vsel %vm366_vm8, %v5529_v22, %v5305_v0  ;;  %v6753_v0 = vld [vmem:[#allocation7 + $0x54] sm:$0xff] }
 0x752   :  { %v5345_v19 = vpop.permute.xlu1 %5344  ;;  %v5221_v32 = vpop.permute.xlu2 %5220 }
 0x753   :  { %v5561_v36 = vsel %vm10142_vm7, %v5545_v62, %v5345_v19  ;;  %vm10155_vm7 = vmmov %vm10143_vm0  ;;  %v9981_v19 = vld [vmem:[%s10085_s12] ss:$0 sm:$0xff] }
 0x754   :  { %v5577_v13 = vsel %vm10143_vm0, %v5561_v36, %v5393_v42  ;;  %vm10156_vm0 = vmmov %vm10144_vm6 }
 0x758   :  { %v5219_v28 = vpop.permute.xlu0 %5218 }
 0x759   :  { %v5515_v7 = vsel %vm10146_vm3, %v5496_v5, %v5219_v28 }
 0x75a   :  { %v5267_v16 = vpop.permute.xlu1 %5266  ;;  %v5435_v10 = vpop.permute.xlu2 %5434 }
 0x75b   :  { %v5531_v35 = vsel %vm10147_vm1, %v5515_v7, %v5267_v16 }
 0x75c   :  { %v5547_v26 = vsel %vm366_vm8, %v5531_v35, %v5307_v44 }
 0x760   :  { %v5433_v3 = vpop.permute.xlu0 %5432 }
 0x761   :  { %v5593_v53 = vsel %vm10144_vm6, %v5577_v13, %v5433_v3  ;;  %vm10157_vm6 = vmmov %vm10146_vm3 }
 0x762   :  { %v5473_v63 = vpop.permute.xlu1 %5472  ;;  %v5349_v27 = vpop.permute.xlu2 %5348  ;;  %vm10159_vm3 = vmmov %vm10147_vm1 }
 0x763   :  { %v5609_v41 = vsel %vm1380_vm9, %v5593_v53, %v5473_v63  ;;  %vm10160_vm1 = vmmov %vm10148_vm4 }
 0x764   :  { %6635 = vmatmul.msk.bf16.gmra.mxu3 %vm10145_vm15, %v5609_v41  ;;  %vm10158_vm15 = vmmov %vm10151_vm12 }
 0x768   :  { %v5347_v58 = vpop.permute.xlu0 %5346 }
 0x769   :  { %v5563_v23 = vsel %vm10148_vm4, %v5547_v26, %v5347_v58  ;;  %vm10161_vm4 = vmmov %vm10155_vm7 }
 0x76a   :  { %v5181_v47 = vpop.permute.xlu1 %5180  ;;  %v5271_v55 = vpop.permute.xlu2 %5270 }
 0x76b   :  { %v5499_v37 = vsel %vm336_vm2, %v6751_v20, %v5181_v47 }
 0x76c   :  { %v5517_v4 = vsel %vm10152_vm5, %v5499_v37, %v5221_v32 }
 0x770   :  { %v5269_v18 = vpop.permute.xlu0 %5268 }
 0x771   :  { %v5533_v29 = vsel %vm10153_vm13, %v5517_v4, %v5269_v18  ;;  %vm10167_vm13 = vmmov %vm10161_vm4 }
 0x772   :  { %v5395_v57 = vpop.permute.xlu1 %5394  ;;  %v5477_v25 = vpop.permute.xlu2 %5476 }
 0x773   :  { %v5579_v33 = vsel %vm10149_vm10, %v5563_v23, %v5395_v57  ;;  %vm10162_vm10 = vmmov %vm10156_vm0 }
 0x774   :  { %v5595_v24 = vsel %vm10150_vm11, %v5579_v33, %v5435_v10  ;;  %vm10163_vm11 = vmmov %vm10151_vm12 }
 0x778   :  { %v5475_v61 = vpop.permute.xlu0 %5474 }
 0x779   :  { %v5611_v14 = vsel %vm1380_vm9, %v5595_v24, %v5475_v61 }
 0x77a   :  { %6636 = vmatmul.msk.bf16.gmra.mxu3 %vm10151_vm12, %v5611_v14  ;;  %v5309_v12 = vpop.permute.xlu1 %5308  ;;  %v5399_v15 = vpop.permute.xlu2 %5398  ;;  %vm10164_vm12 = vmmov %vm10152_vm5 }
 0x77b   :  { %v5549_v46 = vsel %vm366_vm8, %v5533_v29, %v5309_v12  ;;  %vm10165_vm5 = vmmov %vm10159_vm3 }
 0x77c   :  { %v5565_v45 = vsel %vm10154_vm14, %v5549_v46, %v5349_v27  ;;  %vm10168_vm14 = vmmov %vm10156_vm0 }
 0x780   :  { %v5183_v43 = vpop.permute.xlu0 %5182 }
 0x781   :  { %v5502_v50 = vsel %vm336_vm2, %v6752_v9, %v5183_v43 }
 0x782   :  { %v5223_v56 = vpop.permute.xlu1 %5222  ;;  %v5185_v54 = vpop.permute.xlu2 %5184 }
 0x783   :  { %v5519_v30 = vsel %vm10157_vm6, %v5502_v50, %v5223_v56  ;;  %v5505_v52 = vsel %vm336_vm2, %v6753_v0, %v5185_v54  ;;  %vm10166_vm2 = vmmov %vm10160_vm1 }
 0x784   :  { %v5535_v11 = vsel %vm10159_vm3, %v5519_v30, %v5271_v55 }
 0x788   :  { %v5397_v2 = vpop.permute.xlu0 %5396 }
 0x789   :  { %v5581_v31 = vsel %vm10155_vm7, %v5565_v45, %v5397_v2  ;;  %vm10170_vm7 = vmmov %vm10157_vm6 }
 0x78a   :  { %v5437_v21 = vpop.permute.xlu1 %5436  ;;  %v5313_v28 = vpop.permute.xlu2 %5312 }
 0x78b   :  { %v5597_v49 = vsel %vm10156_vm0, %v5581_v31, %v5437_v21  ;;  %vm10172_vm0 = vmmov %vm10157_vm6 }
 0x78c   :  { %v5613_v59 = vsel %vm1380_vm9, %v5597_v49, %v5477_v25  ;;  %vm10175_vm3 = vmmov %vm10172_vm0 }
 0x78d   :  { %6637 = vmatmul.msk.bf16.gmra.mxu3 %vm10158_vm15, %v5613_v59  ;;  %vm10174_vm15 = vmmov %vm10172_vm0 }
 0x790   :  { %v5311_v34 = vpop.permute.xlu0 %5310 }
 0x791   :  { %v5551_v17 = vsel %vm366_vm8, %v5535_v11, %v5311_v34 }
 0x792   :  { %v5351_v48 = vpop.permute.xlu1 %5350  ;;  %v5441_v58 = vpop.permute.xlu2 %5440 }
 0x793   :  { %v5567_v6 = vsel %vm10160_vm1, %v5551_v17, %v5351_v48  ;;  %vm10176_vm1 = vmmov %vm10172_vm0 }
 0x794   :  { %v5583_v40 = vsel %vm10161_vm4, %v5567_v6, %v5399_v15  ;;  %vm10177_vm4 = vmmov %vm10172_vm0 }
 0x798   :  { %v5439_v38 = vpop.permute.xlu0 %5438 }
 0x799   :  { %v5599_v42 = vsel %vm10162_vm10, %v5583_v40, %v5439_v38  ;;  %vm10178_vm10 = vmmov %vm10172_vm0 }
 0x79a   :  { %v5479_v39 = vpop.permute.xlu1 %5478 }
 0x79b   :  { %v5615_v1 = vsel %vm1380_vm9, %v5599_v42, %v5479_v39 }
 0x79d   :  { %6638 = vmatmul.msk.bf16.gmra.mxu3 %vm10163_vm11, %v5615_v1 }
 0x7a0   :  { %v5225_v51 = vpop.permute.xlu0 %5224 }
 0x7a1   :  { %v5521_v44 = vsel %vm10164_vm12, %v5505_v52, %v5225_v51  ;;  %vm10180_vm12 = vmmov %vm10172_vm0 }
 0x7a2   :  { %v5273_v60 = vpop.permute.xlu1 %5272 }
 0x7a3   :  { %v5537_v62 = vsel %vm10165_vm5, %v5521_v44, %v5273_v60  ;;  %vm10181_vm5 = vmmov %vm10172_vm0 }
 0x7a4   :  { %v5553_v13 = vsel %vm366_vm8, %v5537_v62, %v5313_v28  ;;  %vm10169_vm8 = vmmov %vm10163_vm11 }
 0x7a5   :  { %vm10179_vm11 = vmmov %vm10172_vm0 }
 0x7a6   :  { %v5686_v22 = vpop.f32.mrf.mxu3 }
 0x7a7   :  { %v5687_v16 = vadd.f32 %v9981_v19, %v5686_v22 }
 0x7a8   :  { %v5353_v32 = vpop.permute.xlu0 %5352 }
 0x7a9   :  { %v5726_v36 = vsub.f32 0.0, %v5687_v16  ;;  %v5569_v53 = vsel %vm10166_vm2, %v5553_v13, %v5353_v32  ;;  %vm10182_vm2 = vmmov %vm10172_vm0 }
 0x7aa   :  { %v5401_v63 = vpop.permute.xlu1 %5400 }
 0x7ab   :  { %v5742_v3 = vmul.f32 1.442695, %v5726_v36  ;;  %v5585_v41 = vsel %vm10167_vm13, %v5569_v53, %v5401_v63  ;;  %vm10183_vm13 = vmmov %vm10172_vm0 }
 0x7ac   :  { %v5601_v47 = vsel %vm10168_vm14, %v5585_v41, %v5441_v58  ;;  %vm10184_vm14 = vmmov %vm10172_vm0 }
 0x7ad   :  { %7160 = vpow2.f32 %v5742_v3 }
 0x7ae   :  { %v5688_v10 = vpop.f32.mrf.mxu3 }
 0x7af   :  { %v5689_v8 = vadd.f32 %v9981_v19, %v5688_v10 }
 0x7b0   :  { %v5481_v7 = vpop.permute.xlu0 %5480 }
 0x7b1   :  { %v5727_v5 = vsub.f32 0.0, %v5689_v8  ;;  %v5617_v35 = vsel %vm1380_vm9, %v5601_v47, %v5481_v7  ;;  %vm10171_vm9 = vmmov %vm10157_vm6 }
 0x7b2   :  { %6639 = vmatmul.msk.bf16.gmra.mxu3 %vm10169_vm8, %v5617_v35  ;;  %vm10173_vm6 = vmmov %vm10172_vm0 }
 0x7b3   :  { %v7161_v18 = vpop.eup %7160  ;;  %v5744_v27 = vmul.f32 1.442695, %v5727_v5  ;;  %vm10185_vm8 = vmmov %vm10172_vm0 }
 0x7b4   :  { %v5774_v26 = vadd.f32 1.0, %v7161_v18 }
 0x7b5   :  { %7162 = vpow2.f32 %v5744_v27 }
 0x7b6   :  { %7164 = vrcp.f32 %v5774_v26 }
 0x7bb   :  { %v7163_v57 = vpop.eup %7162 }
 0x7bc   :  { %v7165_v23 = vpop.eup %7164  ;;  %v5775_v33 = vadd.f32 1.0, %v7163_v57 }
 0x7bd   :  { %5806 = vst.msk [vmem:[%s10086_s14] sm:$0xff] %vm10170_vm7, %v7165_v23  ;;  %v5691_v61 = vpop.f32.mrf.mxu3 }
 0x7be   :  { %7166 = vrcp.f32 %v5775_v33  ;;  %v5692_v24 = vadd.f32 %v9981_v19, %v5691_v61 }
 0x7c0   :  { %v5728_v14 = vsub.f32 0.0, %v5692_v24 }
 0x7c2   :  { %v5746_v12 = vmul.f32 1.442695, %v5728_v14 }
 0x7c4   :  { %v7167_v55 = vpop.eup %7166  ;;  %7168 = vpow2.f32 %v5746_v12 }
 0x7c5   :  { %5807 = vst.msk [vmem:[%s10086_s14 + $0x8] sm:$0xff] %vm10171_vm9, %v7167_v55  ;;  %v5693_v20 = vpop.f32.mrf.mxu3 }
 0x7c6   :  { %v5694_v37 = vadd.f32 %v9981_v19, %v5693_v20 }
 0x7c8   :  { %v5729_v43 = vsub.f32 0.0, %v5694_v37 }
 0x7ca   :  { %v7169_v4 = vpop.eup %7168  ;;  %v5748_v56 = vmul.f32 1.442695, %v5729_v43 }
 0x7cb   :  { %v5776_v29 = vadd.f32 1.0, %v7169_v4 }
 0x7cc   :  { %7170 = vpow2.f32 %v5748_v56 }
 0x7cd   :  { %7172 = vrcp.f32 %v5776_v29 }
 0x7d0   :  { %v5696_v46 = vpop.f32.mrf.mxu3 }
 0x7d1   :  { %v5697_v45 = vadd.f32 %v9981_v19, %v5696_v46 }
 0x7d2   :  { %v7171_v25 = vpop.eup %7170 }
 0x7d3   :  { %v7173_v2 = vpop.eup %7172  ;;  %v5777_v9 = vadd.f32 1.0, %v7171_v25  ;;  %v5730_v31 = vsub.f32 0.0, %v5697_v45 }
 0x7d4   :  { %5808 = vst.msk [vmem:[%s10086_s14 + $0x10] sm:$0xff] %vm10172_vm0, %v7173_v2 }
 0x7d5   :  { %7174 = vrcp.f32 %v5777_v9  ;;  %v5750_v50 = vmul.f32 1.442695, %v5730_v31 }
 0x7d7   :  { %7176 = vpow2.f32 %v5750_v50 }
 0x7d8   :  { %v5698_v21 = vpop.f32.mrf.mxu3 }
 0x7d9   :  { %v5699_v49 = vadd.f32 %v9981_v19, %v5698_v21 }
 0x7db   :  { %v7175_v59 = vpop.eup %7174  ;;  %v5731_v30 = vsub.f32 0.0, %v5699_v49 }
 0x7dc   :  { %5809 = vst.msk [vmem:[%s10086_s14 + $0x18] sm:$0xff] %vm10173_vm6, %v7175_v59 }
 0x7dd   :  { %v7177_v34 = vpop.eup %7176  ;;  %v5752_v15 = vmul.f32 1.442695, %v5731_v30 }
 0x7de   :  { %v5778_v11 = vadd.f32 1.0, %v7177_v34 }
 0x7df   :  { %7178 = vpow2.f32 %v5752_v15 }
 0x7e0   :  { %7180 = vrcp.f32 %v5778_v11 }
 0x7e5   :  { %v7179_v17 = vpop.eup %7178 }
 0x7e6   :  { %v7181_v48 = vpop.eup %7180  ;;  %v5779_v6 = vadd.f32 1.0, %v7179_v17 }
 0x7e7   :  { %5810 = vst.msk [vmem:[%s10086_s14 + $0x20] sm:$0xff] %vm10174_vm15, %v7181_v48  ;;  %v5701_v40 = vpop.f32.mrf.mxu3 }
 0x7e8   :  { %7182 = vrcp.f32 %v5779_v6  ;;  %v5702_v38 = vadd.f32 %v9981_v19, %v5701_v40 }
 0x7ea   :  { %v5732_v42 = vsub.f32 0.0, %v5702_v38 }
 0x7ec   :  { %v5754_v54 = vmul.f32 1.442695, %v5732_v42 }
 0x7ee   :  { %v7183_v39 = vpop.eup %7182  ;;  %7184 = vpow2.f32 %v5754_v54 }
 0x7ef   :  { %5811 = vst.msk [vmem:[%s10086_s14 + $0x28] sm:$0xff] %vm10175_vm3, %v7183_v39  ;;  %v5703_v1 = vpop.f32.mrf.mxu3 }
 0x7f0   :  { %v5704_v0 = vadd.f32 %v9981_v19, %v5703_v1 }
 0x7f2   :  { %v5733_v51 = vsub.f32 0.0, %v5704_v0 }
 0x7f4   :  { %v7185_v52 = vpop.eup %7184  ;;  %v5756_v44 = vmul.f32 1.442695, %v5733_v51 }
 0x7f5   :  { %v5780_v60 = vadd.f32 1.0, %v7185_v52 }
 0x7f6   :  { %7186 = vpow2.f32 %v5756_v44 }
 0x7f7   :  { %7188 = vrcp.f32 %v5780_v60 }
 0x7fc   :  { %v7187_v28 = vpop.eup %7186 }
 0x7fd   :  { %v5706_v22 = vpop.f32.mrf.mxu3  ;;  %v7189_v62 = vpop.eup %7188  ;;  %v5781_v16 = vadd.f32 1.0, %v7187_v28 }
 0x7fe   :  { %v5707_v36 = vadd.f32 %v9981_v19, %v5706_v22  ;;  %5812 = vst.msk [vmem:[%s10086_s14 + $0x30] sm:$0xff] %vm10176_vm1, %v7189_v62 }
 0x7ff   :  { %7190 = vrcp.f32 %v5781_v16 }
 0x800   :  { %v5734_v32 = vsub.f32 0.0, %v5707_v36 }
 0x802   :  { %v5758_v13 = vmul.f32 1.442695, %v5734_v32 }
 0x804   :  { %7192 = vpow2.f32 %v5758_v13 }
 0x805   :  { %v5708_v3 = vpop.f32.mrf.mxu3  ;;  %v7191_v53 = vpop.eup %7190 }
 0x806   :  { %v5709_v63 = vadd.f32 %v9981_v19, %v5708_v3  ;;  %5813 = vst.msk [vmem:[%s10086_s14 + $0x38] sm:$0xff] %vm10177_vm4, %v7191_v53 }
 0x808   :  { %v5735_v41 = vsub.f32 0.0, %v5709_v63 }
 0x80a   :  { %v7193_v58 = vpop.eup %7192  ;;  %v5760_v10 = vmul.f32 1.442695, %v5735_v41 }
 0x80b   :  { %v5782_v8 = vadd.f32 1.0, %v7193_v58 }
 0x80c   :  { %7194 = vpow2.f32 %v5760_v10 }
 0x80d   :  { %7196 = vrcp.f32 %v5782_v8 }
 0x810   :  { %v5711_v47 = vpop.f32.mrf.mxu3 }
 0x811   :  { %v5712_v7 = vadd.f32 %v9981_v19, %v5711_v47 }
 0x812   :  { %v7195_v5 = vpop.eup %7194 }
 0x813   :  { %v7197_v35 = vpop.eup %7196  ;;  %v5783_v18 = vadd.f32 1.0, %v7195_v5  ;;  %v5736_v27 = vsub.f32 0.0, %v5712_v7 }
 0x814   :  { %5814 = vst.msk [vmem:[%s10086_s14 + $0x40] sm:$0xff] %vm10178_vm10, %v7197_v35 }
 0x815   :  { %7198 = vrcp.f32 %v5783_v18  ;;  %v5762_v26 = vmul.f32 1.442695, %v5736_v27 }
 0x817   :  { %7200 = vpow2.f32 %v5762_v26 }
 0x818   :  { %v5713_v57 = vpop.f32.mrf.mxu3 }
 0x819   :  { %v5714_v23 = vadd.f32 %v9981_v19, %v5713_v57 }
 0x81b   :  { %v7199_v33 = vpop.eup %7198  ;;  %v5737_v61 = vsub.f32 0.0, %v5714_v23 }
 0x81c   :  { %5815 = vst.msk [vmem:[%s10086_s14 + $0x48] sm:$0xff] %vm10179_vm11, %v7199_v33 }
 0x81d   :  { %v7201_v24 = vpop.eup %7200  ;;  %v5764_v14 = vmul.f32 1.442695, %v5737_v61 }
 0x81e   :  { %v5784_v12 = vadd.f32 1.0, %v7201_v24 }
 0x81f   :  { %7202 = vpow2.f32 %v5764_v14 }
 0x820   :  { %7204 = vrcp.f32 %v5784_v12  ;;  %v5716_v55 = vpop.f32.mrf.mxu3 }
 0x821   :  { %v5717_v20 = vadd.f32 %v9981_v19, %v5716_v55 }
 0x823   :  { %v5738_v37 = vsub.f32 0.0, %v5717_v20 }
 0x825   :  { %v7203_v43 = vpop.eup %7202  ;;  %v5766_v4 = vmul.f32 1.442695, %v5738_v37 }
 0x826   :  { %v7205_v56 = vpop.eup %7204  ;;  %v5785_v29 = vadd.f32 1.0, %v7203_v43 }
 0x827   :  { %5816 = vst.msk [vmem:[%s10086_s14 + $0x50] sm:$0xff] %vm10180_vm12, %v7205_v56  ;;  %7206 = vpow2.f32 %v5766_v4 }
 0x828   :  { %7208 = vrcp.f32 %v5785_v29  ;;  %v5718_v46 = vpop.f32.mrf.mxu3 }
 0x829   :  { %v5719_v25 = vadd.f32 %v9981_v19, %v5718_v46 }
 0x82b   :  { %v5739_v45 = vsub.f32 0.0, %v5719_v25 }
 0x82d   :  { %v7207_v2 = vpop.eup %7206  ;;  %v5768_v9 = vmul.f32 1.442695, %v5739_v45 }
 0x82e   :  { %v7209_v31 = vpop.eup %7208  ;;  %v5786_v50 = vadd.f32 1.0, %v7207_v2 }
 0x82f   :  { %5817 = vst.msk [vmem:[%s10086_s14 + $0x58] sm:$0xff] %vm10181_vm5, %v7209_v31  ;;  %7210 = vpow2.f32 %v5768_v9 }
 0x830   :  { %7212 = vrcp.f32 %v5786_v50 }
 0x835   :  { %v5721_v21 = vpop.f32.mrf.mxu3  ;;  %v7211_v49 = vpop.eup %7210 }
 0x836   :  { %v5722_v59 = vadd.f32 %v9981_v19, %v5721_v21  ;;  %v7213_v30 = vpop.eup %7212  ;;  %v5787_v34 = vadd.f32 1.0, %v7211_v49 }
 0x837   :  { %5818 = vst.msk [vmem:[%s10086_s14 + $0x60] sm:$0xff] %vm10182_vm2, %v7213_v30 }
 0x838   :  { %v5740_v15 = vsub.f32 0.0, %v5722_v59  ;;  %7214 = vrcp.f32 %v5787_v34 }
 0x83a   :  { %v5770_v11 = vmul.f32 1.442695, %v5740_v15 }
 0x83c   :  { %7216 = vpow2.f32 %v5770_v11 }
 0x83d   :  { %v5723_v17 = vpop.f32.mrf.mxu3 }
 0x83e   :  { %v5724_v48 = vadd.f32 %v9981_v19, %v5723_v17  ;;  %v7215_v6 = vpop.eup %7214 }
 0x83f   :  { %5819 = vst.msk [vmem:[%s10086_s14 + $0x68] sm:$0xff] %vm10183_vm13, %v7215_v6 }
 0x840   :  { %v5741_v40 = vsub.f32 0.0, %v5724_v48 }
 0x842   :  { %v7217_v38 = vpop.eup %7216  ;;  %v5772_v42 = vmul.f32 1.442695, %v5741_v40 }
 0x843   :  { %v5788_v54 = vadd.f32 1.0, %v7217_v38 }
 0x844   :  { %7218 = vpow2.f32 %v5772_v42 }
 0x845   :  { %7220 = vrcp.f32 %v5788_v54 }
 0x84a   :  { %v7219_v39 = vpop.eup %7218 }
 0x84b   :  { %v7221_v1 = vpop.eup %7220  ;;  %v5789_v0 = vadd.f32 1.0, %v7219_v39 }
 0x84c   :  { %5820 = vst.msk [vmem:[%s10086_s14 + $0x70] sm:$0xff] %vm10184_vm14, %v7221_v1 }
 0x84d   :  { %7222 = vrcp.f32 %v5789_v0 }
 0x853   :  { %v7223_v19 = vpop.eup %7222 }
 0x854   :  { %5821 = vst.msk [vmem:[%s10086_s14 + $0x78] sm:$0xff] %vm10185_vm8, %v7223_v19 }

</bundles_post_ra>
